<compile_context>
chip_gen: v7x
topology: tpu7x:2x2x1
jax: 0.10.0
libtpu: 0.0.40
codegen_flags: <defaults>
</compile_context>

<pallas_src>
import functools
import math

import jax
import jax.numpy as jnp
from jax import lax
from jax.experimental import pallas as pl
from jax.experimental.pallas import tpu as pltpu

LANE = 128


# ---------------------------------------------------------------------------
# Small helpers
# ---------------------------------------------------------------------------
def _vmem_limit_bytes():
    # Generation-aware scoped-VMEM budget (v5e/v6e: ~96 MiB, v7x: ~48 MiB).
    try:
        cap = getattr(pltpu.get_tpu_info(), "vmem_capacity_bytes", None)
        if cap:
            return int(min(cap * 3 // 4, 100 * 1024 * 1024))
    except Exception:
        pass
    return 64 * 1024 * 1024


def _compiler_params():
    return pltpu.CompilerParams(dimension_semantics=("parallel",),
                                vmem_limit_bytes=_vmem_limit_bytes())


def _row_tile(n):
    # Row tile capped at 128 so live (tile/8)*(HP/128) vreg footprint stays small.
    for t in (128, 64, 32, 16, 8):
        if n % t == 0:
            return t
    return n


def _relu(x):
    return jnp.maximum(x, 0.0)


def _dot(a, b):
    return jnp.dot(a, b, preferred_element_type=jnp.float32)


def _rup(v):
    return ((v + LANE - 1) // LANE) * LANE


def _pad(a, shape, fill=0.0):
    a = jnp.asarray(a, jnp.float32)
    out = jnp.full(shape, fill, jnp.float32)
    return out.at[: a.shape[0], : a.shape[1]].set(a)


# Order of PointGNNConv weights consumed by the conv kernels (wf1x is only used by the
# preceding pj kernel, so it is not in this list).
_CONV_NAMES = ("wh1", "bh1", "whf", "wf1p", "bfold",
               "wf2", "bf2", "wg1", "bg1", "wg2", "bg2")


# ---------------------------------------------------------------------------
# Kernel 1: encoder MLP + input_transform + pj term for the first conv layer
# ---------------------------------------------------------------------------
def encode_pj_kernel(x_ref, pos_ref, we1, be1, we2, be2, wt, bt,
                     wf1p, wf1x, z_ref, pj_ref):
    z = _relu(_dot(x_ref[...], we1[...]) + be1[...])
    z = _dot(z, we2[...]) + be2[...]                 # encoder (no act on last layer)
    z = _dot(z, wt[...]) + bt[...]                   # input_transform
    z_ref[...] = z
    pj_ref[...] = _dot(pos_ref[...], wf1p[...]) + _dot(z, wf1x[...])


def encode_pj(x, pos, enc_p, it_p, wf1p, wf1x):
    N, C = x.shape
    HP = it_p[0].shape[1]
    tile = _row_tile(N)
    row = lambda i: (i, 0)
    full = lambda i: (0, 0)
    weights = (enc_p[0][0], enc_p[0][1], enc_p[1][0], enc_p[1][1],
               it_p[0], it_p[1], wf1p, wf1x)
    return pl.pallas_call(
        encode_pj_kernel,
        out_shape=(jax.ShapeDtypeStruct((N, HP), jnp.float32),
                   jax.ShapeDtypeStruct((N, HP), jnp.float32)),
        grid=(N // tile,),
        in_specs=[pl.BlockSpec((tile, C), row),
                  pl.BlockSpec((tile, pos.shape[1]), row)]
                 + [pl.BlockSpec(w.shape, full) for w in weights],
        out_specs=(pl.BlockSpec((tile, HP), row), pl.BlockSpec((tile, HP), row)),
        compiler_params=_compiler_params(),
    )(x, pos, *weights)


# ---------------------------------------------------------------------------
# Shared PointGNNConv tile body (mlp_h folded into mlp_f's pos branch)
# ---------------------------------------------------------------------------
def _conv_body(xi, pos_i, gath_ref,
               wh1, bh1, whf, wf1p, bfold, wf2, bf2, wg1, bg1, wg2, bg2, *, k_nn):
    # destination-side term (once per node):
    #   relu(x_i@Wh1+bh1)@(Wh2@Wf1p) - pos_i@Wf1p + (bf1 + bh2@Wf1p)
    h = _relu(_dot(xi, wh1[...]) + bh1[...])
    node_term = _dot(h, whf[...]) - _dot(pos_i, wf1p[...]) + bfold[...]     # (tile, HP)
    tile = node_term.shape[0]

    # pre-gathered source terms: gath_ref block is (K, tile, HP), K-major.
    parts = [_relu(gath_ref[k] + node_term) for k in range(k_nn)]
    p = jnp.concatenate(parts, axis=0)                                      # (K*tile, HP)

    # one batched MXU matmul for all K neighbour candidates, then segment max.
    m = _dot(p, wf2[...]) + bf2[...]                                        # (K*tile, HP)
    agg = m[0:tile]
    for k in range(1, k_nn):
        agg = jnp.maximum(agg, m[k * tile:(k + 1) * tile])

    # node update: out = x + mlp_g(agg)
    g = _relu(_dot(agg, wg1[...]) + bg1[...])
    return xi + _dot(g, wg2[...]) + bg2[...]


# ---------------------------------------------------------------------------
# Kernel 2: PointGNNConv (pre-BN) + per-tile BN partial statistics
# ---------------------------------------------------------------------------
def conv_kernel(x_ref, pos_ref, gath_ref,
                wh1, bh1, whf, wf1p, bfold, wf2, bf2, wg1, bg1, wg2, bg2,
                y_ref, psum_ref, pssq_ref, *, k_nn):
    y = _conv_body(x_ref[...], pos_ref[...], gath_ref,
                   wh1, bh1, whf, wf1p, bfold, wf2, bf2, wg1, bg1, wg2, bg2,
                   k_nn=k_nn)
    y_ref[...] = y
    psum_ref[...] = jnp.sum(y, axis=0, keepdims=True)[None]
    pssq_ref[...] = jnp.sum(y * y, axis=0, keepdims=True)[None]


def conv_layer(x, pos, gathered, cw, *, k_nn):
    N, HP = x.shape
    tile = _row_tile(N)
    ntiles = N // tile
    row = lambda i: (i, 0)
    full = lambda i: (0, 0)
    g3 = lambda i: (0, i, 0)
    s3 = lambda i: (i, 0, 0)
    weights = tuple(cw[name] for name in _CONV_NAMES)
    kern = functools.partial(conv_kernel, k_nn=k_nn)
    return pl.pallas_call(
        kern,
        out_shape=(jax.ShapeDtypeStruct((N, HP), jnp.float32),
                   jax.ShapeDtypeStruct((ntiles, 1, HP), jnp.float32),
                   jax.ShapeDtypeStruct((ntiles, 1, HP), jnp.float32)),
        grid=(ntiles,),
        in_specs=[pl.BlockSpec((tile, HP), row),
                  pl.BlockSpec((tile, pos.shape[1]), row),
                  pl.BlockSpec((k_nn, tile, HP), g3)]
                 + [pl.BlockSpec(w.shape, full) for w in weights],
        out_specs=(pl.BlockSpec((tile, HP), row),
                   pl.BlockSpec((1, 1, HP), s3),
                   pl.BlockSpec((1, 1, HP), s3)),
        compiler_params=_compiler_params(),
    )(x, pos, gathered, *weights)


def _bn_scale_shift(psum, pssq, gamma, beta, n):
    # BatchNorm1d(track_running_stats=False): batch stats, biased variance.
    mean = psum.sum(axis=0) / n                                     # (1, HP)
    var = jnp.maximum(pssq.sum(axis=0) / n - mean * mean, 0.0)      # clamp (avoid NaN)
    scale = gamma * lax.rsqrt(var + 1e-5)
    shift = beta - mean * scale
    return scale, shift


# ---------------------------------------------------------------------------
# Kernel 3: BN-apply + ReLU + pj term for the next conv layer
# ---------------------------------------------------------------------------
def bn_pj_kernel(y_ref, pos_ref, scale, shift, wf1p, wf1x, x_ref, pj_ref):
    x = _relu(y_ref[...] * scale[...] + shift[...])
    x_ref[...] = x
    pj_ref[...] = _dot(pos_ref[...], wf1p[...]) + _dot(x, wf1x[...])


def bn_pj(y, pos, scale, shift, wf1p, wf1x):
    N, HP = y.shape
    HO = wf1x.shape[1]
    tile = _row_tile(N)
    row = lambda i: (i, 0)
    full = lambda i: (0, 0)
    return pl.pallas_call(
        bn_pj_kernel,
        out_shape=(jax.ShapeDtypeStruct((N, HP), jnp.float32),
                   jax.ShapeDtypeStruct((N, HO), jnp.float32)),
        grid=(N // tile,),
        in_specs=[pl.BlockSpec((tile, HP), row),
                  pl.BlockSpec((tile, pos.shape[1]), row),
                  pl.BlockSpec(scale.shape, full), pl.BlockSpec(shift.shape, full),
                  pl.BlockSpec(wf1p.shape, full), pl.BlockSpec(wf1x.shape, full)],
        out_specs=(pl.BlockSpec((tile, HP), row), pl.BlockSpec((tile, HO), row)),
        compiler_params=_compiler_params(),
    )(y, pos, scale, shift, wf1p, wf1x)


# ---------------------------------------------------------------------------
# Kernel 4: BN-apply + ReLU + out_projection + pj term for the out_layer conv
# ---------------------------------------------------------------------------
def bn_proj_pj_kernel(y_ref, pos_ref, scale, shift, wp, bp, wf1p, wf1x,
                      xd_ref, pj_ref):
    x = _relu(y_ref[...] * scale[...] + shift[...])
    xd = _dot(x, wp[...]) + bp[...]                  # out_projection
    xd_ref[...] = xd
    pj_ref[...] = _dot(pos_ref[...], wf1p[...]) + _dot(xd, wf1x[...])


def bn_proj_pj(y, pos, scale, shift, wp, bp, wf1p, wf1x):
    N, HP = y.shape
    DP = wp.shape[1]
    tile = _row_tile(N)
    row = lambda i: (i, 0)
    full = lambda i: (0, 0)
    return pl.pallas_call(
        bn_proj_pj_kernel,
        out_shape=(jax.ShapeDtypeStruct((N, DP), jnp.float32),
                   jax.ShapeDtypeStruct((N, DP), jnp.float32)),
        grid=(N // tile,),
        in_specs=[pl.BlockSpec((tile, HP), row),
                  pl.BlockSpec((tile, pos.shape[1]), row),
                  pl.BlockSpec(scale.shape, full), pl.BlockSpec(shift.shape, full),
                  pl.BlockSpec(wp.shape, full), pl.BlockSpec(bp.shape, full),
                  pl.BlockSpec(wf1p.shape, full), pl.BlockSpec(wf1x.shape, full)],
        out_specs=(pl.BlockSpec((tile, DP), row), pl.BlockSpec((tile, DP), row)),
        compiler_params=_compiler_params(),
    )(y, pos, scale, shift, wp, bp, wf1p, wf1x)


# ---------------------------------------------------------------------------
# Kernel 5: out_layer PointGNNConv + decoder MLP
# ---------------------------------------------------------------------------
def out_conv_dec_kernel(xd_ref, pos_ref, gath_ref,
                        wh1, bh1, whf, wf1p, bfold, wf2, bf2, wg1, bg1, wg2, bg2,
                        wd1, bd1, wd2, bd2, o_ref, *, k_nn):
    y = _conv_body(xd_ref[...], pos_ref[...], gath_ref,
                   wh1, bh1, whf, wf1p, bfold, wf2, bf2, wg1, bg1, wg2, bg2,
                   k_nn=k_nn)
    d = _relu(_dot(y, wd1[...]) + bd1[...])
    o_ref[...] = _dot(d, wd2[...]) + bd2[...]


def out_conv_dec(xd, pos, gathered, cw, dec_p, *, k_nn):
    (wd1, bd1), (wd2, bd2) = dec_p
    N, DP = xd.shape
    CP = wd2.shape[1]
    tile = _row_tile(N)
    ntiles = N // tile
    row = lambda i: (i, 0)
    full = lambda i: (0, 0)
    g3 = lambda i: (0, i, 0)
    weights = tuple(cw[name] for name in _CONV_NAMES) + (wd1, bd1, wd2, bd2)
    kern = functools.partial(out_conv_dec_kernel, k_nn=k_nn)
    return pl.pallas_call(
        kern,
        out_shape=jax.ShapeDtypeStruct((N, CP), jnp.float32),
        grid=(ntiles,),
        in_specs=[pl.BlockSpec((tile, DP), row),
                  pl.BlockSpec((tile, pos.shape[1]), row),
                  pl.BlockSpec((k_nn, tile, DP), g3)]
                 + [pl.BlockSpec(w.shape, full) for w in weights],
        out_specs=pl.BlockSpec((tile, CP), row),
        compiler_params=_compiler_params(),
    )(xd, pos, gathered, *weights)


# ---------------------------------------------------------------------------
# Forward (glue)
# ---------------------------------------------------------------------------
def point_gnn_con_forward(params, x, pos, nbr_km, hparams):
    N = x.shape[0]
    assert N % 8 == 0, "N must be a multiple of 8 for (8,128)-aligned row tiles"
    k_nn = nbr_km.shape[0]
    bn = hparams['bn_bool']
    c_out = hparams['decoder'][-1]

    convs = [params['in_layer']] + list(params['hidden_layers'])
    L = len(convs)

    # encoder + input_transform + pj for the first conv
    z, pj = encode_pj(x, pos, params['encoder'], params['input_transform'],
                      convs[0]['wf1p'], convs[0]['wf1x'])

    for n in range(L):
        gathered = jnp.take(pj, nbr_km, axis=0)            # (K, N, HP) K-major pre-gather
        y, psum, pssq = conv_layer(z, pos, gathered, convs[n], k_nn=k_nn)
        if bn:
            gamma, beta = params['bn'][n]
            scale, shift = _bn_scale_shift(psum, pssq, gamma, beta, N)
        else:
            scale = jnp.ones((1, y.shape[1]), jnp.float32)
            shift = jnp.zeros((1, y.shape[1]), jnp.float32)
        if n + 1 < L:
            nxt = convs[n + 1]
            z, pj = bn_pj(y, pos, scale, shift, nxt['wf1p'], nxt['wf1x'])
        else:
            wp, bp = params['out_projection']
            ol = params['out_layer']
            z, pj = bn_proj_pj(y, pos, scale, shift, wp, bp, ol['wf1p'], ol['wf1x'])

    gathered = jnp.take(pj, nbr_km, axis=0)                 # (K, N, DP)
    out_p = out_conv_dec(z, pos, gathered, params['out_layer'], params['decoder'],
                         k_nn=k_nn)
    return out_p[:, :c_out]


# ---------------------------------------------------------------------------
# Parameter init (deterministic, PyTorch-like), mlp_h folding, lane padding
# ---------------------------------------------------------------------------
def linear_init(key, fan_in, fan_out):
    k1, k2 = jax.random.split(key)
    bound = 1.0 / math.sqrt(fan_in)
    w = jax.random.uniform(k1, (fan_in, fan_out), jnp.float32, -bound, bound)
    b = jax.random.uniform(k2, (1, fan_out), jnp.float32, -bound, bound)
    return w, b


def mlp2_init(key, dims):
    k1, k2 = jax.random.split(key)
    return (linear_init(k1, dims[0], dims[1]), linear_init(k2, dims[1], dims[2]))


def pointgnn_init(key, h):
    """PointGNNConv(mlp_h=[h,h,3], mlp_f=[h+3,h,h], mlp_g=[h,h,h]); mlp_h layer-2 folded
    into mlp_f's pos branch: Whf = Wh2 @ Wf1_pos, bfold = bf1 + bh2 @ Wf1_pos."""
    kh1, kh2, kf1, kf2, kg1, kg2 = jax.random.split(key, 6)
    wh1, bh1 = linear_init(kh1, h, h)
    wh2, bh2 = linear_init(kh2, h, 3)
    wf1, bf1 = linear_init(kf1, h + 3, h)
    wf2, bf2 = linear_init(kf2, h, h)
    wg1, bg1 = linear_init(kg1, h, h)
    wg2, bg2 = linear_init(kg2, h, h)
    wf1p, wf1x = wf1[:3], wf1[3:]
    whf = wh2 @ wf1p
    bfold = bf1 + bh2 @ wf1p
    return dict(wh1=wh1, bh1=bh1, whf=whf, wf1p=wf1p, bfold=bfold, wf1x=wf1x,
                wf2=wf2, bf2=bf2, wg1=wg1, bg1=bg1, wg2=wg2, bg2=bg2)


def init_params(key, hparams):
    H = hparams['size_hidden_layers']
    D = hparams['decoder'][0]
    enc, dec = hparams['encoder'], hparams['decoder']
    nhl = hparams['nb_hidden_layers']

    keys = jax.random.split(key, 6 + nhl)
    raw = {
        'encoder': mlp2_init(keys[0], enc),
        'input_transform': linear_init(keys[1], enc[-1], H),
        'convs': [pointgnn_init(keys[2 + i], H) for i in range(nhl)],
        'out_projection': linear_init(keys[2 + nhl], H, D),
        'out_layer': pointgnn_init(keys[3 + nhl], D),
        'decoder': mlp2_init(keys[4 + nhl], dec),
    }

    HP, DP = _rup(H), _rup(D)
    EP, EOP = _rup(enc[1]), _rup(enc[2])
    D1P, COP = _rup(dec[1]), _rup(dec[2])

    def pad_lin(p, rin, rout):
        w, b = p
        return _pad(w, (rin, rout)), _pad(b, (1, rout))

    def pad_conv(cw, hp):
        out = {}
        for name, v in cw.items():
            rows = 3 if name == 'wf1p' else (1 if v.shape[0] == 1 else hp)
            out[name] = _pad(v, (rows, hp))
        return out

    return {
        'encoder': (pad_lin(raw['encoder'][0], enc[0], EP),
                    pad_lin(raw['encoder'][1], EP, EOP)),
        'input_transform': pad_lin(raw['input_transform'], EOP, HP),
        'in_layer': pad_conv(raw['convs'][0], HP),
        'hidden_layers': [pad_conv(c, HP) for c in raw['convs'][1:]],
        'out_projection': pad_lin(raw['out_projection'], HP, DP),
        'out_layer': pad_conv(raw['out_layer'], DP),
        'decoder': (pad_lin(raw['decoder'][0], DP, D1P),
                    pad_lin(raw['decoder'][1], D1P, COP)),
        # BatchNorm1d defaults: weight=1, bias=0 (pad gamma with 1 so padded cols stay 0)
        'bn': [(_pad(jnp.ones((1, H), jnp.float32), (1, HP), fill=1.0),
                jnp.zeros((1, HP), jnp.float32)) for _ in range(nhl)],
    }


# ---------------------------------------------------------------------------
if __name__ == "__main__":
    hparams = {
        'nb_hidden_layers': 2,
        'size_hidden_layers': 32,
        'bn_bool': True,
        'encoder': [5, 16, 16],
        'decoder': [16, 16, 4],
    }

    key = jax.random.PRNGKey(0)
    kparam, kx, kpos = jax.random.split(key, 3)
    params = init_params(kparam, hparams)

    # Small deterministic point cloud + fixed fan-in graph. Edges are grouped by destination
    # (dst = repeat(arange(N), K_NN)), i.e. a CSR layout with constant in-degree K_NN.
    N, K_NN = 64, 4
    x = jax.random.normal(kx, (N, hparams['encoder'][0]), jnp.float32)    # node features
    pos = jax.random.normal(kpos, (N, 3), jnp.float32)                     # 3-D positions
    dst = jnp.repeat(jnp.arange(N), K_NN)
    src = (dst + jnp.tile(jnp.arange(1, K_NN + 1), N)) % N
    edge_index = jnp.stack([src, dst]).astype(jnp.int32)                   # (2, 256)
    assert bool(jnp.all(edge_index[1] == jnp.repeat(jnp.arange(N), K_NN)))  # dst-sorted, K fixed

    # Neighbour indices in K-major layout: row k holds the k-th neighbour of every node.
    nbr_km = edge_index[0].reshape(N, K_NN).T.astype(jnp.int32)            # (K_NN, N)

    fwd = jax.jit(functools.partial(point_gnn_con_forward, hparams=hparams))
    out = fwd(params, x, pos, nbr_km)
    out = jax.block_until_ready(out)

    assert out.shape == (N, hparams['decoder'][-1]), out.shape
    assert bool(jnp.all(jnp.isfinite(out)))
    print("KERNEL_OK")
</pallas_src>

<mosaic_0001>
module attributes {stable_mosaic.version = 11 : i64} {
  func.func @encode_pj_kernel(%arg0: i32, %arg1: memref<64x5xf32, #tpu.memory_space<vmem>>, %arg2: memref<64x3xf32, #tpu.memory_space<vmem>>, %arg3: memref<5x128xf32, #tpu.memory_space<vmem>>, %arg4: memref<1x128xf32, #tpu.memory_space<vmem>>, %arg5: memref<128x128xf32, #tpu.memory_space<vmem>>, %arg6: memref<1x128xf32, #tpu.memory_space<vmem>>, %arg7: memref<128x128xf32, #tpu.memory_space<vmem>>, %arg8: memref<1x128xf32, #tpu.memory_space<vmem>>, %arg9: memref<3x128xf32, #tpu.memory_space<vmem>>, %arg10: memref<128x128xf32, #tpu.memory_space<vmem>>, %arg11: memref<64x128xf32, #tpu.memory_space<vmem>>, %arg12: memref<64x128xf32, #tpu.memory_space<vmem>>) attributes {dimension_semantics = [#tpu.dimension_semantics<parallel>], iteration_bounds = array<i64: 1>, scalar_prefetch = 0 : i64, scratch_operands = 0 : i64, tpu.core_type = #tpu.core_type<tc>, window_params = [{transform_indices = @transform_0, window_bounds = array<i64: 64, 5>}, {transform_indices = @transform_1, window_bounds = array<i64: 64, 3>}, {pipeline_mode = #tpu.pipeline_mode<synchronous>, transform_indices = @transform_2, window_bounds = array<i64: 5, 128>}, {pipeline_mode = #tpu.pipeline_mode<synchronous>, transform_indices = @transform_3, window_bounds = array<i64: 1, 128>}, {pipeline_mode = #tpu.pipeline_mode<synchronous>, transform_indices = @transform_4, window_bounds = array<i64: 128, 128>}, {pipeline_mode = #tpu.pipeline_mode<synchronous>, transform_indices = @transform_5, window_bounds = array<i64: 1, 128>}, {pipeline_mode = #tpu.pipeline_mode<synchronous>, transform_indices = @transform_6, window_bounds = array<i64: 128, 128>}, {pipeline_mode = #tpu.pipeline_mode<synchronous>, transform_indices = @transform_7, window_bounds = array<i64: 1, 128>}, {pipeline_mode = #tpu.pipeline_mode<synchronous>, transform_indices = @transform_8, window_bounds = array<i64: 3, 128>}, {pipeline_mode = #tpu.pipeline_mode<synchronous>, transform_indices = @transform_9, window_bounds = array<i64: 128, 128>}, {transform_indices = @transform_10, window_bounds = array<i64: 64, 128>}, {transform_indices = @transform_11, window_bounds = array<i64: 64, 128>}]} {
    %c0 = arith.constant 0 : index
    %c0_0 = arith.constant 0 : index
    %0 = vector.load %arg1[%c0, %c0_0] : memref<64x5xf32, #tpu.memory_space<vmem>>, vector<64x5xf32>
    %c0_1 = arith.constant 0 : index
    %c0_2 = arith.constant 0 : index
    %1 = vector.load %arg3[%c0_1, %c0_2] : memref<5x128xf32, #tpu.memory_space<vmem>>, vector<5x128xf32>
    %cst = arith.constant dense<0.000000e+00> : vector<64x128xf32>
    %2 = tpu.matmul %0, %1, %cst {dimension_numbers = #tpu.dot_dimension_numbers<[1], [0], [0], [1], [0, 0, 1, 1], [], []>} : vector<64x5xf32>, vector<5x128xf32>, vector<64x128xf32> -> vector<64x128xf32>
    %c0_3 = arith.constant 0 : index
    %c0_4 = arith.constant 0 : index
    %3 = vector.load %arg4[%c0_3, %c0_4] : memref<1x128xf32, #tpu.memory_space<vmem>>, vector<1x128xf32>
    %4 = vector.broadcast %3 : vector<1x128xf32> to vector<64x128xf32>
    %5 = arith.addf %2, %4 : vector<64x128xf32>
    %cst_5 = arith.constant 0.000000e+00 : f32
    %6 = vector.broadcast %cst_5 : f32 to vector<64x128xf32>
    %7 = arith.maximumf %5, %6 : vector<64x128xf32>
    %c0_6 = arith.constant 0 : index
    %c0_7 = arith.constant 0 : index
    %8 = vector.load %arg5[%c0_6, %c0_7] : memref<128x128xf32, #tpu.memory_space<vmem>>, vector<128x128xf32>
    %cst_8 = arith.constant dense<0.000000e+00> : vector<64x128xf32>
    %9 = tpu.matmul %7, %8, %cst_8 {dimension_numbers = #tpu.dot_dimension_numbers<[1], [0], [0], [1], [0, 0, 1, 1], [], []>} : vector<64x128xf32>, vector<128x128xf32>, vector<64x128xf32> -> vector<64x128xf32>
    %c0_9 = arith.constant 0 : index
    %c0_10 = arith.constant 0 : index
    %10 = vector.load %arg6[%c0_9, %c0_10] : memref<1x128xf32, #tpu.memory_space<vmem>>, vector<1x128xf32>
    %11 = vector.broadcast %10 : vector<1x128xf32> to vector<64x128xf32>
    %12 = arith.addf %9, %11 : vector<64x128xf32>
    %c0_11 = arith.constant 0 : index
    %c0_12 = arith.constant 0 : index
    %13 = vector.load %arg7[%c0_11, %c0_12] : memref<128x128xf32, #tpu.memory_space<vmem>>, vector<128x128xf32>
    %cst_13 = arith.constant dense<0.000000e+00> : vector<64x128xf32>
    %14 = tpu.matmul %12, %13, %cst_13 {dimension_numbers = #tpu.dot_dimension_numbers<[1], [0], [0], [1], [0, 0, 1, 1], [], []>} : vector<64x128xf32>, vector<128x128xf32>, vector<64x128xf32> -> vector<64x128xf32>
    %c0_14 = arith.constant 0 : index
    %c0_15 = arith.constant 0 : index
    %15 = vector.load %arg8[%c0_14, %c0_15] : memref<1x128xf32, #tpu.memory_space<vmem>>, vector<1x128xf32>
    %16 = vector.broadcast %15 : vector<1x128xf32> to vector<64x128xf32>
    %17 = arith.addf %14, %16 : vector<64x128xf32>
    %c0_16 = arith.constant 0 : index
    %c0_17 = arith.constant 0 : index
    %18 = vector.load %arg11[%c0_16, %c0_17] : memref<64x128xf32, #tpu.memory_space<vmem>>, vector<64x128xf32>
    tpu.vector_store %arg11[%c0_16, %c0_17], %17 {strides = array<i32>} : memref<64x128xf32, #tpu.memory_space<vmem>>, vector<64x128xf32>,
    %c0_18 = arith.constant 0 : index
    %c0_19 = arith.constant 0 : index
    %19 = vector.load %arg2[%c0_18, %c0_19] : memref<64x3xf32, #tpu.memory_space<vmem>>, vector<64x3xf32>
    %c0_20 = arith.constant 0 : index
    %c0_21 = arith.constant 0 : index
    %20 = vector.load %arg9[%c0_20, %c0_21] : memref<3x128xf32, #tpu.memory_space<vmem>>, vector<3x128xf32>
    %cst_22 = arith.constant dense<0.000000e+00> : vector<64x128xf32>
    %21 = tpu.matmul %19, %20, %cst_22 {dimension_numbers = #tpu.dot_dimension_numbers<[1], [0], [0], [1], [0, 0, 1, 1], [], []>} : vector<64x3xf32>, vector<3x128xf32>, vector<64x128xf32> -> vector<64x128xf32>
    %c0_23 = arith.constant 0 : index
    %c0_24 = arith.constant 0 : index
    %22 = vector.load %arg10[%c0_23, %c0_24] : memref<128x128xf32, #tpu.memory_space<vmem>>, vector<128x128xf32>
    %cst_25 = arith.constant dense<0.000000e+00> : vector<64x128xf32>
    %23 = tpu.matmul %17, %22, %cst_25 {dimension_numbers = #tpu.dot_dimension_numbers<[1], [0], [0], [1], [0, 0, 1, 1], [], []>} : vector<64x128xf32>, vector<128x128xf32>, vector<64x128xf32> -> vector<64x128xf32>
    %24 = arith.addf %21, %23 : vector<64x128xf32>
    %c0_26 = arith.constant 0 : index
    %c0_27 = arith.constant 0 : index
    %25 = vector.load %arg12[%c0_26, %c0_27] : memref<64x128xf32, #tpu.memory_space<vmem>>, vector<64x128xf32>
    tpu.vector_store %arg12[%c0_26, %c0_27], %24 {strides = array<i32>} : memref<64x128xf32, #tpu.memory_space<vmem>>, vector<64x128xf32>,
    return
  }
  func.func @transform_0(%arg0: i32) -> (i32, i32) {
    %c0_i32 = arith.constant 0 : i32
    %c0_i32_0 = arith.constant 0 : i32
    return %arg0, %c0_i32 : i32, i32
  }
  func.func @transform_1(%arg0: i32) -> (i32, i32) {
    %c0_i32 = arith.constant 0 : i32
    %c0_i32_0 = arith.constant 0 : i32
    return %arg0, %c0_i32 : i32, i32
  }
  func.func @transform_2(%arg0: i32) -> (i32, i32) {
    %c0_i32 = arith.constant 0 : i32
    %c0_i32_0 = arith.constant 0 : i32
    %c0_i32_1 = arith.constant 0 : i32
    return %c0_i32, %c0_i32_0 : i32, i32
  }
  func.func @transform_3(%arg0: i32) -> (i32, i32) {
    %c0_i32 = arith.constant 0 : i32
    %c0_i32_0 = arith.constant 0 : i32
    %c0_i32_1 = arith.constant 0 : i32
    return %c0_i32, %c0_i32_0 : i32, i32
  }
  func.func @transform_4(%arg0: i32) -> (i32, i32) {
    %c0_i32 = arith.constant 0 : i32
    %c0_i32_0 = arith.constant 0 : i32
    %c0_i32_1 = arith.constant 0 : i32
    return %c0_i32, %c0_i32_0 : i32, i32
  }
  func.func @transform_5(%arg0: i32) -> (i32, i32) {
    %c0_i32 = arith.constant 0 : i32
    %c0_i32_0 = arith.constant 0 : i32
    %c0_i32_1 = arith.constant 0 : i32
    return %c0_i32, %c0_i32_0 : i32, i32
  }
  func.func @transform_6(%arg0: i32) -> (i32, i32) {
    %c0_i32 = arith.constant 0 : i32
    %c0_i32_0 = arith.constant 0 : i32
    %c0_i32_1 = arith.constant 0 : i32
    return %c0_i32, %c0_i32_0 : i32, i32
  }
  func.func @transform_7(%arg0: i32) -> (i32, i32) {
    %c0_i32 = arith.constant 0 : i32
    %c0_i32_0 = arith.constant 0 : i32
    %c0_i32_1 = arith.constant 0 : i32
    return %c0_i32, %c0_i32_0 : i32, i32
  }
  func.func @transform_8(%arg0: i32) -> (i32, i32) {
    %c0_i32 = arith.constant 0 : i32
    %c0_i32_0 = arith.constant 0 : i32
    %c0_i32_1 = arith.constant 0 : i32
    return %c0_i32, %c0_i32_0 : i32, i32
  }
  func.func @transform_9(%arg0: i32) -> (i32, i32) {
    %c0_i32 = arith.constant 0 : i32
    %c0_i32_0 = arith.constant 0 : i32
    %c0_i32_1 = arith.constant 0 : i32
    return %c0_i32, %c0_i32_0 : i32, i32
  }
  func.func @transform_10(%arg0: i32) -> (i32, i32) {
    %c0_i32 = arith.constant 0 : i32
    %c0_i32_0 = arith.constant 0 : i32
    return %arg0, %c0_i32 : i32, i32
  }
  func.func @transform_11(%arg0: i32) -> (i32, i32) {
    %c0_i32 = arith.constant 0 : i32
    %c0_i32_0 = arith.constant 0 : i32
    return %arg0, %c0_i32 : i32, i32
  }
}

module attributes {stable_mosaic.version = 11 : i64} {
  func.func @conv_kernel(%arg0: i32, %arg1: memref<64x128xf32, #tpu.memory_space<vmem>>, %arg2: memref<64x3xf32, #tpu.memory_space<vmem>>, %arg3: memref<4x64x128xf32, #tpu.memory_space<vmem>>, %arg4: memref<128x128xf32, #tpu.memory_space<vmem>>, %arg5: memref<1x128xf32, #tpu.memory_space<vmem>>, %arg6: memref<128x128xf32, #tpu.memory_space<vmem>>, %arg7: memref<3x128xf32, #tpu.memory_space<vmem>>, %arg8: memref<1x128xf32, #tpu.memory_space<vmem>>, %arg9: memref<128x128xf32, #tpu.memory_space<vmem>>, %arg10: memref<1x128xf32, #tpu.memory_space<vmem>>, %arg11: memref<128x128xf32, #tpu.memory_space<vmem>>, %arg12: memref<1x128xf32, #tpu.memory_space<vmem>>, %arg13: memref<128x128xf32, #tpu.memory_space<vmem>>, %arg14: memref<1x128xf32, #tpu.memory_space<vmem>>, %arg15: memref<64x128xf32, #tpu.memory_space<vmem>>, %arg16: memref<1x1x128xf32, #tpu.memory_space<vmem>>, %arg17: memref<1x1x128xf32, #tpu.memory_space<vmem>>) attributes {dimension_semantics = [#tpu.dimension_semantics<parallel>], iteration_bounds = array<i64: 1>, scalar_prefetch = 0 : i64, scratch_operands = 0 : i64, tpu.core_type = #tpu.core_type<tc>, window_params = [{transform_indices = @transform_0, window_bounds = array<i64: 64, 128>}, {transform_indices = @transform_1, window_bounds = array<i64: 64, 3>}, {transform_indices = @transform_2, window_bounds = array<i64: 4, 64, 128>}, {pipeline_mode = #tpu.pipeline_mode<synchronous>, transform_indices = @transform_3, window_bounds = array<i64: 128, 128>}, {pipeline_mode = #tpu.pipeline_mode<synchronous>, transform_indices = @transform_4, window_bounds = array<i64: 1, 128>}, {pipeline_mode = #tpu.pipeline_mode<synchronous>, transform_indices = @transform_5, window_bounds = array<i64: 128, 128>}, {pipeline_mode = #tpu.pipeline_mode<synchronous>, transform_indices = @transform_6, window_bounds = array<i64: 3, 128>}, {pipeline_mode = #tpu.pipeline_mode<synchronous>, transform_indices = @transform_7, window_bounds = array<i64: 1, 128>}, {pipeline_mode = #tpu.pipeline_mode<synchronous>, transform_indices = @transform_8, window_bounds = array<i64: 128, 128>}, {pipeline_mode = #tpu.pipeline_mode<synchronous>, transform_indices = @transform_9, window_bounds = array<i64: 1, 128>}, {pipeline_mode = #tpu.pipeline_mode<synchronous>, transform_indices = @transform_10, window_bounds = array<i64: 128, 128>}, {pipeline_mode = #tpu.pipeline_mode<synchronous>, transform_indices = @transform_11, window_bounds = array<i64: 1, 128>}, {pipeline_mode = #tpu.pipeline_mode<synchronous>, transform_indices = @transform_12, window_bounds = array<i64: 128, 128>}, {pipeline_mode = #tpu.pipeline_mode<synchronous>, transform_indices = @transform_13, window_bounds = array<i64: 1, 128>}, {transform_indices = @transform_14, window_bounds = array<i64: 64, 128>}, {transform_indices = @transform_15, window_bounds = array<i64: 1, 1, 128>}, {transform_indices = @transform_16, window_bounds = array<i64: 1, 1, 128>}]} {
    %c0 = arith.constant 0 : index
    %c0_0 = arith.constant 0 : index
    %0 = vector.load %arg1[%c0, %c0_0] : memref<64x128xf32, #tpu.memory_space<vmem>>, vector<64x128xf32>
    %c0_1 = arith.constant 0 : index
    %c0_2 = arith.constant 0 : index
    %1 = vector.load %arg2[%c0_1, %c0_2] : memref<64x3xf32, #tpu.memory_space<vmem>>, vector<64x3xf32>
    %c0_3 = arith.constant 0 : index
    %c0_4 = arith.constant 0 : index
    %2 = vector.load %arg4[%c0_3, %c0_4] : memref<128x128xf32, #tpu.memory_space<vmem>>, vector<128x128xf32>
    %cst = arith.constant dense<0.000000e+00> : vector<64x128xf32>
    %3 = tpu.matmul %0, %2, %cst {dimension_numbers = #tpu.dot_dimension_numbers<[1], [0], [0], [1], [0, 0, 1, 1], [], []>} : vector<64x128xf32>, vector<128x128xf32>, vector<64x128xf32> -> vector<64x128xf32>
    %c0_5 = arith.constant 0 : index
    %c0_6 = arith.constant 0 : index
    %4 = vector.load %arg5[%c0_5, %c0_6] : memref<1x128xf32, #tpu.memory_space<vmem>>, vector<1x128xf32>
    %5 = vector.broadcast %4 : vector<1x128xf32> to vector<64x128xf32>
    %6 = arith.addf %3, %5 : vector<64x128xf32>
    %cst_7 = arith.constant 0.000000e+00 : f32
    %7 = vector.broadcast %cst_7 : f32 to vector<64x128xf32>
    %8 = arith.maximumf %6, %7 : vector<64x128xf32>
    %c0_8 = arith.constant 0 : index
    %c0_9 = arith.constant 0 : index
    %9 = vector.load %arg6[%c0_8, %c0_9] : memref<128x128xf32, #tpu.memory_space<vmem>>, vector<128x128xf32>
    %cst_10 = arith.constant dense<0.000000e+00> : vector<64x128xf32>
    %10 = tpu.matmul %8, %9, %cst_10 {dimension_numbers = #tpu.dot_dimension_numbers<[1], [0], [0], [1], [0, 0, 1, 1], [], []>} : vector<64x128xf32>, vector<128x128xf32>, vector<64x128xf32> -> vector<64x128xf32>
    %c0_11 = arith.constant 0 : index
    %c0_12 = arith.constant 0 : index
    %11 = vector.load %arg7[%c0_11, %c0_12] : memref<3x128xf32, #tpu.memory_space<vmem>>, vector<3x128xf32>
    %cst_13 = arith.constant dense<0.000000e+00> : vector<64x128xf32>
    %12 = tpu.matmul %1, %11, %cst_13 {dimension_numbers = #tpu.dot_dimension_numbers<[1], [0], [0], [1], [0, 0, 1, 1], [], []>} : vector<64x3xf32>, vector<3x128xf32>, vector<64x128xf32> -> vector<64x128xf32>
    %13 = arith.subf %10, %12 : vector<64x128xf32>
    %c0_14 = arith.constant 0 : index
    %c0_15 = arith.constant 0 : index
    %14 = vector.load %arg8[%c0_14, %c0_15] : memref<1x128xf32, #tpu.memory_space<vmem>>, vector<1x128xf32>
    %15 = vector.broadcast %14 : vector<1x128xf32> to vector<64x128xf32>
    %16 = arith.addf %13, %15 : vector<64x128xf32>
    %c0_16 = arith.constant 0 : index
    %c0_17 = arith.constant 0 : index
    %c0_18 = arith.constant 0 : index
    %17 = vector.load %arg3[%c0_16, %c0_17, %c0_18] : memref<4x64x128xf32, #tpu.memory_space<vmem>>, vector<1x64x128xf32>
    %18 = vector.shape_cast %17 : vector<1x64x128xf32> to vector<64x128xf32>
    %19 = arith.addf %18, %16 : vector<64x128xf32>
    %cst_19 = arith.constant 0.000000e+00 : f32
    %20 = vector.broadcast %cst_19 : f32 to vector<64x128xf32>
    %21 = arith.maximumf %19, %20 : vector<64x128xf32>
    %c1 = arith.constant 1 : index
    %c0_20 = arith.constant 0 : index
    %c0_21 = arith.constant 0 : index
    %22 = vector.load %arg3[%c1, %c0_20, %c0_21] : memref<4x64x128xf32, #tpu.memory_space<vmem>>, vector<1x64x128xf32>
    %23 = vector.shape_cast %22 : vector<1x64x128xf32> to vector<64x128xf32>
    %24 = arith.addf %23, %16 : vector<64x128xf32>
    %cst_22 = arith.constant 0.000000e+00 : f32
    %25 = vector.broadcast %cst_22 : f32 to vector<64x128xf32>
    %26 = arith.maximumf %24, %25 : vector<64x128xf32>
    %c2 = arith.constant 2 : index
    %c0_23 = arith.constant 0 : index
    %c0_24 = arith.constant 0 : index
    %27 = vector.load %arg3[%c2, %c0_23, %c0_24] : memref<4x64x128xf32, #tpu.memory_space<vmem>>, vector<1x64x128xf32>
    %28 = vector.shape_cast %27 : vector<1x64x128xf32> to vector<64x128xf32>
    %29 = arith.addf %28, %16 : vector<64x128xf32>
    %cst_25 = arith.constant 0.000000e+00 : f32
    %30 = vector.broadcast %cst_25 : f32 to vector<64x128xf32>
    %31 = arith.maximumf %29, %30 : vector<64x128xf32>
    %c3 = arith.constant 3 : index
    %c0_26 = arith.constant 0 : index
    %c0_27 = arith.constant 0 : index
    %32 = vector.load %arg3[%c3, %c0_26, %c0_27] : memref<4x64x128xf32, #tpu.memory_space<vmem>>, vector<1x64x128xf32>
    %33 = vector.shape_cast %32 : vector<1x64x128xf32> to vector<64x128xf32>
    %34 = arith.addf %33, %16 : vector<64x128xf32>
    %cst_28 = arith.constant 0.000000e+00 : f32
    %35 = vector.broadcast %cst_28 : f32 to vector<64x128xf32>
    %36 = arith.maximumf %34, %35 : vector<64x128xf32>
    %37 = tpu.concatenate %21, %26, %31, %36 in 0 : vector<64x128xf32>, vector<64x128xf32>, vector<64x128xf32>, vector<64x128xf32> -> vector<256x128xf32>
    %c0_29 = arith.constant 0 : index
    %c0_30 = arith.constant 0 : index
    %38 = vector.load %arg9[%c0_29, %c0_30] : memref<128x128xf32, #tpu.memory_space<vmem>>, vector<128x128xf32>
    %cst_31 = arith.constant dense<0.000000e+00> : vector<256x128xf32>
    %39 = tpu.matmul %37, %38, %cst_31 {dimension_numbers = #tpu.dot_dimension_numbers<[1], [0], [0], [1], [0, 0, 1, 1], [], []>} : vector<256x128xf32>, vector<128x128xf32>, vector<256x128xf32> -> vector<256x128xf32>
    %c0_32 = arith.constant 0 : index
    %c0_33 = arith.constant 0 : index
    %40 = vector.load %arg10[%c0_32, %c0_33] : memref<1x128xf32, #tpu.memory_space<vmem>>, vector<1x128xf32>
    %41 = vector.broadcast %40 : vector<1x128xf32> to vector<256x128xf32>
    %42 = arith.addf %39, %41 : vector<256x128xf32>
    %43 = vector.extract_strided_slice %42 {offsets = [0, 0], sizes = [64, 128], strides = [1, 1]} : vector<256x128xf32> to vector<64x128xf32>
    %44 = vector.extract_strided_slice %42 {offsets = [64, 0], sizes = [64, 128], strides = [1, 1]} : vector<256x128xf32> to vector<64x128xf32>
    %45 = arith.maximumf %43, %44 : vector<64x128xf32>
    %46 = vector.extract_strided_slice %42 {offsets = [128, 0], sizes = [64, 128], strides = [1, 1]} : vector<256x128xf32> to vector<64x128xf32>
    %47 = arith.maximumf %45, %46 : vector<64x128xf32>
    %48 = vector.extract_strided_slice %42 {offsets = [192, 0], sizes = [64, 128], strides = [1, 1]} : vector<256x128xf32> to vector<64x128xf32>
    %49 = arith.maximumf %47, %48 : vector<64x128xf32>
    %c0_34 = arith.constant 0 : index
    %c0_35 = arith.constant 0 : index
    %50 = vector.load %arg11[%c0_34, %c0_35] : memref<128x128xf32, #tpu.memory_space<vmem>>, vector<128x128xf32>
    %cst_36 = arith.constant dense<0.000000e+00> : vector<64x128xf32>
    %51 = tpu.matmul %49, %50, %cst_36 {dimension_numbers = #tpu.dot_dimension_numbers<[1], [0], [0], [1], [0, 0, 1, 1], [], []>} : vector<64x128xf32>, vector<128x128xf32>, vector<64x128xf32> -> vector<64x128xf32>
    %c0_37 = arith.constant 0 : index
    %c0_38 = arith.constant 0 : index
    %52 = vector.load %arg12[%c0_37, %c0_38] : memref<1x128xf32, #tpu.memory_space<vmem>>, vector<1x128xf32>
    %53 = vector.broadcast %52 : vector<1x128xf32> to vector<64x128xf32>
    %54 = arith.addf %51, %53 : vector<64x128xf32>
    %cst_39 = arith.constant 0.000000e+00 : f32
    %55 = vector.broadcast %cst_39 : f32 to vector<64x128xf32>
    %56 = arith.maximumf %54, %55 : vector<64x128xf32>
    %c0_40 = arith.constant 0 : index
    %c0_41 = arith.constant 0 : index
    %57 = vector.load %arg13[%c0_40, %c0_41] : memref<128x128xf32, #tpu.memory_space<vmem>>, vector<128x128xf32>
    %cst_42 = arith.constant dense<0.000000e+00> : vector<64x128xf32>
    %58 = tpu.matmul %56, %57, %cst_42 {dimension_numbers = #tpu.dot_dimension_numbers<[1], [0], [0], [1], [0, 0, 1, 1], [], []>} : vector<64x128xf32>, vector<128x128xf32>, vector<64x128xf32> -> vector<64x128xf32>
    %59 = arith.addf %0, %58 : vector<64x128xf32>
    %c0_43 = arith.constant 0 : index
    %c0_44 = arith.constant 0 : index
    %60 = vector.load %arg14[%c0_43, %c0_44] : memref<1x128xf32, #tpu.memory_space<vmem>>, vector<1x128xf32>
    %61 = vector.broadcast %60 : vector<1x128xf32> to vector<64x128xf32>
    %62 = arith.addf %59, %61 : vector<64x128xf32>
    %c0_45 = arith.constant 0 : index
    %c0_46 = arith.constant 0 : index
    %63 = vector.load %arg15[%c0_45, %c0_46] : memref<64x128xf32, #tpu.memory_space<vmem>>, vector<64x128xf32>
    tpu.vector_store %arg15[%c0_45, %c0_46], %62 {strides = array<i32>} : memref<64x128xf32, #tpu.memory_space<vmem>>, vector<64x128xf32>,
    %cst_47 = arith.constant dense<0.000000e+00> : vector<128xf32>
    %64 = vector.multi_reduction <add>, %62, %cst_47 [0] : vector<64x128xf32> to vector<128xf32>
    %65 = vector.shape_cast %64 : vector<128xf32> to vector<1x128xf32>
    %66 = vector.shape_cast %65 : vector<1x128xf32> to vector<1x1x128xf32>
    %c0_48 = arith.constant 0 : index
    %c0_49 = arith.constant 0 : index
    %c0_50 = arith.constant 0 : index
    %67 = vector.load %arg16[%c0_48, %c0_49, %c0_50] : memref<1x1x128xf32, #tpu.memory_space<vmem>>, vector<1x1x128xf32>
    tpu.vector_store %arg16[%c0_48, %c0_49, %c0_50], %66 {strides = array<i32>} : memref<1x1x128xf32, #tpu.memory_space<vmem>>, vector<1x1x128xf32>,
    %68 = arith.mulf %62, %62 : vector<64x128xf32>
    %cst_51 = arith.constant dense<0.000000e+00> : vector<128xf32>
    %69 = vector.multi_reduction <add>, %68, %cst_51 [0] : vector<64x128xf32> to vector<128xf32>
    %70 = vector.shape_cast %69 : vector<128xf32> to vector<1x128xf32>
    %71 = vector.shape_cast %70 : vector<1x128xf32> to vector<1x1x128xf32>
    %c0_52 = arith.constant 0 : index
    %c0_53 = arith.constant 0 : index
    %c0_54 = arith.constant 0 : index
    %72 = vector.load %arg17[%c0_52, %c0_53, %c0_54] : memref<1x1x128xf32, #tpu.memory_space<vmem>>, vector<1x1x128xf32>
    tpu.vector_store %arg17[%c0_52, %c0_53, %c0_54], %71 {strides = array<i32>} : memref<1x1x128xf32, #tpu.memory_space<vmem>>, vector<1x1x128xf32>,
    return
  }
  func.func @transform_0(%arg0: i32) -> (i32, i32) {
    %c0_i32 = arith.constant 0 : i32
    %c0_i32_0 = arith.constant 0 : i32
    return %arg0, %c0_i32 : i32, i32
  }
  func.func @transform_1(%arg0: i32) -> (i32, i32) {
    %c0_i32 = arith.constant 0 : i32
    %c0_i32_0 = arith.constant 0 : i32
    return %arg0, %c0_i32 : i32, i32
  }
  func.func @transform_2(%arg0: i32) -> (i32, i32, i32) {
    %c0_i32 = arith.constant 0 : i32
    %c0_i32_0 = arith.constant 0 : i32
    %c0_i32_1 = arith.constant 0 : i32
    return %c0_i32, %arg0, %c0_i32_0 : i32, i32, i32
  }
  func.func @transform_3(%arg0: i32) -> (i32, i32) {
    %c0_i32 = arith.constant 0 : i32
    %c0_i32_0 = arith.constant 0 : i32
    %c0_i32_1 = arith.constant 0 : i32
    return %c0_i32, %c0_i32_0 : i32, i32
  }
  func.func @transform_4(%arg0: i32) -> (i32, i32) {
    %c0_i32 = arith.constant 0 : i32
    %c0_i32_0 = arith.constant 0 : i32
    %c0_i32_1 = arith.constant 0 : i32
    return %c0_i32, %c0_i32_0 : i32, i32
  }
  func.func @transform_5(%arg0: i32) -> (i32, i32) {
    %c0_i32 = arith.constant 0 : i32
    %c0_i32_0 = arith.constant 0 : i32
    %c0_i32_1 = arith.constant 0 : i32
    return %c0_i32, %c0_i32_0 : i32, i32
  }
  func.func @transform_6(%arg0: i32) -> (i32, i32) {
    %c0_i32 = arith.constant 0 : i32
    %c0_i32_0 = arith.constant 0 : i32
    %c0_i32_1 = arith.constant 0 : i32
    return %c0_i32, %c0_i32_0 : i32, i32
  }
  func.func @transform_7(%arg0: i32) -> (i32, i32) {
    %c0_i32 = arith.constant 0 : i32
    %c0_i32_0 = arith.constant 0 : i32
    %c0_i32_1 = arith.constant 0 : i32
    return %c0_i32, %c0_i32_0 : i32, i32
  }
  func.func @transform_8(%arg0: i32) -> (i32, i32) {
    %c0_i32 = arith.constant 0 : i32
    %c0_i32_0 = arith.constant 0 : i32
    %c0_i32_1 = arith.constant 0 : i32
    return %c0_i32, %c0_i32_0 : i32, i32
  }
  func.func @transform_9(%arg0: i32) -> (i32, i32) {
    %c0_i32 = arith.constant 0 : i32
    %c0_i32_0 = arith.constant 0 : i32
    %c0_i32_1 = arith.constant 0 : i32
    return %c0_i32, %c0_i32_0 : i32, i32
  }
  func.func @transform_10(%arg0: i32) -> (i32, i32) {
    %c0_i32 = arith.constant 0 : i32
    %c0_i32_0 = arith.constant 0 : i32
    %c0_i32_1 = arith.constant 0 : i32
    return %c0_i32, %c0_i32_0 : i32, i32
  }
  func.func @transform_11(%arg0: i32) -> (i32, i32) {
    %c0_i32 = arith.constant 0 : i32
    %c0_i32_0 = arith.constant 0 : i32
    %c0_i32_1 = arith.constant 0 : i32
    return %c0_i32, %c0_i32_0 : i32, i32
  }
  func.func @transform_12(%arg0: i32) -> (i32, i32) {
    %c0_i32 = arith.constant 0 : i32
    %c0_i32_0 = arith.constant 0 : i32
    %c0_i32_1 = arith.constant 0 : i32
    return %c0_i32, %c0_i32_0 : i32, i32
  }
  func.func @transform_13(%arg0: i32) -> (i32, i32) {
    %c0_i32 = arith.constant 0 : i32
    %c0_i32_0 = arith.constant 0 : i32
    %c0_i32_1 = arith.constant 0 : i32
    return %c0_i32, %c0_i32_0 : i32, i32
  }
  func.func @transform_14(%arg0: i32) -> (i32, i32) {
    %c0_i32 = arith.constant 0 : i32
    %c0_i32_0 = arith.constant 0 : i32
    return %arg0, %c0_i32 : i32, i32
  }
  func.func @transform_15(%arg0: i32) -> (i32, i32, i32) {
    %c0_i32 = arith.constant 0 : i32
    %c0_i32_0 = arith.constant 0 : i32
    %c0_i32_1 = arith.constant 0 : i32
    return %arg0, %c0_i32, %c0_i32_0 : i32, i32, i32
  }
  func.func @transform_16(%arg0: i32) -> (i32, i32, i32) {
    %c0_i32 = arith.constant 0 : i32
    %c0_i32_0 = arith.constant 0 : i32
    %c0_i32_1 = arith.constant 0 : i32
    return %arg0, %c0_i32, %c0_i32_0 : i32, i32, i32
  }
}

module attributes {stable_mosaic.version = 11 : i64} {
  func.func @bn_pj_kernel(%arg0: i32, %arg1: memref<64x128xf32, #tpu.memory_space<vmem>>, %arg2: memref<64x3xf32, #tpu.memory_space<vmem>>, %arg3: memref<1x128xf32, #tpu.memory_space<vmem>>, %arg4: memref<1x128xf32, #tpu.memory_space<vmem>>, %arg5: memref<3x128xf32, #tpu.memory_space<vmem>>, %arg6: memref<128x128xf32, #tpu.memory_space<vmem>>, %arg7: memref<64x128xf32, #tpu.memory_space<vmem>>, %arg8: memref<64x128xf32, #tpu.memory_space<vmem>>) attributes {dimension_semantics = [#tpu.dimension_semantics<parallel>], iteration_bounds = array<i64: 1>, scalar_prefetch = 0 : i64, scratch_operands = 0 : i64, tpu.core_type = #tpu.core_type<tc>, window_params = [{transform_indices = @transform_0, window_bounds = array<i64: 64, 128>}, {transform_indices = @transform_1, window_bounds = array<i64: 64, 3>}, {pipeline_mode = #tpu.pipeline_mode<synchronous>, transform_indices = @transform_2, window_bounds = array<i64: 1, 128>}, {pipeline_mode = #tpu.pipeline_mode<synchronous>, transform_indices = @transform_3, window_bounds = array<i64: 1, 128>}, {pipeline_mode = #tpu.pipeline_mode<synchronous>, transform_indices = @transform_4, window_bounds = array<i64: 3, 128>}, {pipeline_mode = #tpu.pipeline_mode<synchronous>, transform_indices = @transform_5, window_bounds = array<i64: 128, 128>}, {transform_indices = @transform_6, window_bounds = array<i64: 64, 128>}, {transform_indices = @transform_7, window_bounds = array<i64: 64, 128>}]} {
    %c0 = arith.constant 0 : index
    %c0_0 = arith.constant 0 : index
    %0 = vector.load %arg1[%c0, %c0_0] : memref<64x128xf32, #tpu.memory_space<vmem>>, vector<64x128xf32>
    %c0_1 = arith.constant 0 : index
    %c0_2 = arith.constant 0 : index
    %1 = vector.load %arg3[%c0_1, %c0_2] : memref<1x128xf32, #tpu.memory_space<vmem>>, vector<1x128xf32>
    %2 = vector.broadcast %1 : vector<1x128xf32> to vector<64x128xf32>
    %3 = arith.mulf %0, %2 : vector<64x128xf32>
    %c0_3 = arith.constant 0 : index
    %c0_4 = arith.constant 0 : index
    %4 = vector.load %arg4[%c0_3, %c0_4] : memref<1x128xf32, #tpu.memory_space<vmem>>, vector<1x128xf32>
    %5 = vector.broadcast %4 : vector<1x128xf32> to vector<64x128xf32>
    %6 = arith.addf %3, %5 : vector<64x128xf32>
    %cst = arith.constant 0.000000e+00 : f32
    %7 = vector.broadcast %cst : f32 to vector<64x128xf32>
    %8 = arith.maximumf %6, %7 : vector<64x128xf32>
    %c0_5 = arith.constant 0 : index
    %c0_6 = arith.constant 0 : index
    %9 = vector.load %arg7[%c0_5, %c0_6] : memref<64x128xf32, #tpu.memory_space<vmem>>, vector<64x128xf32>
    tpu.vector_store %arg7[%c0_5, %c0_6], %8 {strides = array<i32>} : memref<64x128xf32, #tpu.memory_space<vmem>>, vector<64x128xf32>,
    %c0_7 = arith.constant 0 : index
    %c0_8 = arith.constant 0 : index
    %10 = vector.load %arg2[%c0_7, %c0_8] : memref<64x3xf32, #tpu.memory_space<vmem>>, vector<64x3xf32>
    %c0_9 = arith.constant 0 : index
    %c0_10 = arith.constant 0 : index
    %11 = vector.load %arg5[%c0_9, %c0_10] : memref<3x128xf32, #tpu.memory_space<vmem>>, vector<3x128xf32>
    %cst_11 = arith.constant dense<0.000000e+00> : vector<64x128xf32>
    %12 = tpu.matmul %10, %11, %cst_11 {dimension_numbers = #tpu.dot_dimension_numbers<[1], [0], [0], [1], [0, 0, 1, 1], [], []>} : vector<64x3xf32>, vector<3x128xf32>, vector<64x128xf32> -> vector<64x128xf32>
    %c0_12 = arith.constant 0 : index
    %c0_13 = arith.constant 0 : index
    %13 = vector.load %arg6[%c0_12, %c0_13] : memref<128x128xf32, #tpu.memory_space<vmem>>, vector<128x128xf32>
    %cst_14 = arith.constant dense<0.000000e+00> : vector<64x128xf32>
    %14 = tpu.matmul %8, %13, %cst_14 {dimension_numbers = #tpu.dot_dimension_numbers<[1], [0], [0], [1], [0, 0, 1, 1], [], []>} : vector<64x128xf32>, vector<128x128xf32>, vector<64x128xf32> -> vector<64x128xf32>
    %15 = arith.addf %12, %14 : vector<64x128xf32>
    %c0_15 = arith.constant 0 : index
    %c0_16 = arith.constant 0 : index
    %16 = vector.load %arg8[%c0_15, %c0_16] : memref<64x128xf32, #tpu.memory_space<vmem>>, vector<64x128xf32>
    tpu.vector_store %arg8[%c0_15, %c0_16], %15 {strides = array<i32>} : memref<64x128xf32, #tpu.memory_space<vmem>>, vector<64x128xf32>,
    return
  }
  func.func @transform_0(%arg0: i32) -> (i32, i32) {
    %c0_i32 = arith.constant 0 : i32
    %c0_i32_0 = arith.constant 0 : i32
    return %arg0, %c0_i32 : i32, i32
  }
  func.func @transform_1(%arg0: i32) -> (i32, i32) {
    %c0_i32 = arith.constant 0 : i32
    %c0_i32_0 = arith.constant 0 : i32
    return %arg0, %c0_i32 : i32, i32
  }
  func.func @transform_2(%arg0: i32) -> (i32, i32) {
    %c0_i32 = arith.constant 0 : i32
    %c0_i32_0 = arith.constant 0 : i32
    %c0_i32_1 = arith.constant 0 : i32
    return %c0_i32, %c0_i32_0 : i32, i32
  }
  func.func @transform_3(%arg0: i32) -> (i32, i32) {
    %c0_i32 = arith.constant 0 : i32
    %c0_i32_0 = arith.constant 0 : i32
    %c0_i32_1 = arith.constant 0 : i32
    return %c0_i32, %c0_i32_0 : i32, i32
  }
  func.func @transform_4(%arg0: i32) -> (i32, i32) {
    %c0_i32 = arith.constant 0 : i32
    %c0_i32_0 = arith.constant 0 : i32
    %c0_i32_1 = arith.constant 0 : i32
    return %c0_i32, %c0_i32_0 : i32, i32
  }
  func.func @transform_5(%arg0: i32) -> (i32, i32) {
    %c0_i32 = arith.constant 0 : i32
    %c0_i32_0 = arith.constant 0 : i32
    %c0_i32_1 = arith.constant 0 : i32
    return %c0_i32, %c0_i32_0 : i32, i32
  }
  func.func @transform_6(%arg0: i32) -> (i32, i32) {
    %c0_i32 = arith.constant 0 : i32
    %c0_i32_0 = arith.constant 0 : i32
    return %arg0, %c0_i32 : i32, i32
  }
  func.func @transform_7(%arg0: i32) -> (i32, i32) {
    %c0_i32 = arith.constant 0 : i32
    %c0_i32_0 = arith.constant 0 : i32
    return %arg0, %c0_i32 : i32, i32
  }
}

module attributes {stable_mosaic.version = 11 : i64} {
  func.func @bn_proj_pj_kernel(%arg0: i32, %arg1: memref<64x128xf32, #tpu.memory_space<vmem>>, %arg2: memref<64x3xf32, #tpu.memory_space<vmem>>, %arg3: memref<1x128xf32, #tpu.memory_space<vmem>>, %arg4: memref<1x128xf32, #tpu.memory_space<vmem>>, %arg5: memref<128x128xf32, #tpu.memory_space<vmem>>, %arg6: memref<1x128xf32, #tpu.memory_space<vmem>>, %arg7: memref<3x128xf32, #tpu.memory_space<vmem>>, %arg8: memref<128x128xf32, #tpu.memory_space<vmem>>, %arg9: memref<64x128xf32, #tpu.memory_space<vmem>>, %arg10: memref<64x128xf32, #tpu.memory_space<vmem>>) attributes {dimension_semantics = [#tpu.dimension_semantics<parallel>], iteration_bounds = array<i64: 1>, scalar_prefetch = 0 : i64, scratch_operands = 0 : i64, tpu.core_type = #tpu.core_type<tc>, window_params = [{transform_indices = @transform_0, window_bounds = array<i64: 64, 128>}, {transform_indices = @transform_1, window_bounds = array<i64: 64, 3>}, {pipeline_mode = #tpu.pipeline_mode<synchronous>, transform_indices = @transform_2, window_bounds = array<i64: 1, 128>}, {pipeline_mode = #tpu.pipeline_mode<synchronous>, transform_indices = @transform_3, window_bounds = array<i64: 1, 128>}, {pipeline_mode = #tpu.pipeline_mode<synchronous>, transform_indices = @transform_4, window_bounds = array<i64: 128, 128>}, {pipeline_mode = #tpu.pipeline_mode<synchronous>, transform_indices = @transform_5, window_bounds = array<i64: 1, 128>}, {pipeline_mode = #tpu.pipeline_mode<synchronous>, transform_indices = @transform_6, window_bounds = array<i64: 3, 128>}, {pipeline_mode = #tpu.pipeline_mode<synchronous>, transform_indices = @transform_7, window_bounds = array<i64: 128, 128>}, {transform_indices = @transform_8, window_bounds = array<i64: 64, 128>}, {transform_indices = @transform_9, window_bounds = array<i64: 64, 128>}]} {
    %c0 = arith.constant 0 : index
    %c0_0 = arith.constant 0 : index
    %0 = vector.load %arg1[%c0, %c0_0] : memref<64x128xf32, #tpu.memory_space<vmem>>, vector<64x128xf32>
    %c0_1 = arith.constant 0 : index
    %c0_2 = arith.constant 0 : index
    %1 = vector.load %arg3[%c0_1, %c0_2] : memref<1x128xf32, #tpu.memory_space<vmem>>, vector<1x128xf32>
    %2 = vector.broadcast %1 : vector<1x128xf32> to vector<64x128xf32>
    %3 = arith.mulf %0, %2 : vector<64x128xf32>
    %c0_3 = arith.constant 0 : index
    %c0_4 = arith.constant 0 : index
    %4 = vector.load %arg4[%c0_3, %c0_4] : memref<1x128xf32, #tpu.memory_space<vmem>>, vector<1x128xf32>
    %5 = vector.broadcast %4 : vector<1x128xf32> to vector<64x128xf32>
    %6 = arith.addf %3, %5 : vector<64x128xf32>
    %cst = arith.constant 0.000000e+00 : f32
    %7 = vector.broadcast %cst : f32 to vector<64x128xf32>
    %8 = arith.maximumf %6, %7 : vector<64x128xf32>
    %c0_5 = arith.constant 0 : index
    %c0_6 = arith.constant 0 : index
    %9 = vector.load %arg5[%c0_5, %c0_6] : memref<128x128xf32, #tpu.memory_space<vmem>>, vector<128x128xf32>
    %cst_7 = arith.constant dense<0.000000e+00> : vector<64x128xf32>
    %10 = tpu.matmul %8, %9, %cst_7 {dimension_numbers = #tpu.dot_dimension_numbers<[1], [0], [0], [1], [0, 0, 1, 1], [], []>} : vector<64x128xf32>, vector<128x128xf32>, vector<64x128xf32> -> vector<64x128xf32>
    %c0_8 = arith.constant 0 : index
    %c0_9 = arith.constant 0 : index
    %11 = vector.load %arg6[%c0_8, %c0_9] : memref<1x128xf32, #tpu.memory_space<vmem>>, vector<1x128xf32>
    %12 = vector.broadcast %11 : vector<1x128xf32> to vector<64x128xf32>
    %13 = arith.addf %10, %12 : vector<64x128xf32>
    %c0_10 = arith.constant 0 : index
    %c0_11 = arith.constant 0 : index
    %14 = vector.load %arg9[%c0_10, %c0_11] : memref<64x128xf32, #tpu.memory_space<vmem>>, vector<64x128xf32>
    tpu.vector_store %arg9[%c0_10, %c0_11], %13 {strides = array<i32>} : memref<64x128xf32, #tpu.memory_space<vmem>>, vector<64x128xf32>,
    %c0_12 = arith.constant 0 : index
    %c0_13 = arith.constant 0 : index
    %15 = vector.load %arg2[%c0_12, %c0_13] : memref<64x3xf32, #tpu.memory_space<vmem>>, vector<64x3xf32>
    %c0_14 = arith.constant 0 : index
    %c0_15 = arith.constant 0 : index
    %16 = vector.load %arg7[%c0_14, %c0_15] : memref<3x128xf32, #tpu.memory_space<vmem>>, vector<3x128xf32>
    %cst_16 = arith.constant dense<0.000000e+00> : vector<64x128xf32>
    %17 = tpu.matmul %15, %16, %cst_16 {dimension_numbers = #tpu.dot_dimension_numbers<[1], [0], [0], [1], [0, 0, 1, 1], [], []>} : vector<64x3xf32>, vector<3x128xf32>, vector<64x128xf32> -> vector<64x128xf32>
    %c0_17 = arith.constant 0 : index
    %c0_18 = arith.constant 0 : index
    %18 = vector.load %arg8[%c0_17, %c0_18] : memref<128x128xf32, #tpu.memory_space<vmem>>, vector<128x128xf32>
    %cst_19 = arith.constant dense<0.000000e+00> : vector<64x128xf32>
    %19 = tpu.matmul %13, %18, %cst_19 {dimension_numbers = #tpu.dot_dimension_numbers<[1], [0], [0], [1], [0, 0, 1, 1], [], []>} : vector<64x128xf32>, vector<128x128xf32>, vector<64x128xf32> -> vector<64x128xf32>
    %20 = arith.addf %17, %19 : vector<64x128xf32>
    %c0_20 = arith.constant 0 : index
    %c0_21 = arith.constant 0 : index
    %21 = vector.load %arg10[%c0_20, %c0_21] : memref<64x128xf32, #tpu.memory_space<vmem>>, vector<64x128xf32>
    tpu.vector_store %arg10[%c0_20, %c0_21], %20 {strides = array<i32>} : memref<64x128xf32, #tpu.memory_space<vmem>>, vector<64x128xf32>,
    return
  }
  func.func @transform_0(%arg0: i32) -> (i32, i32) {
    %c0_i32 = arith.constant 0 : i32
    %c0_i32_0 = arith.constant 0 : i32
    return %arg0, %c0_i32 : i32, i32
  }
  func.func @transform_1(%arg0: i32) -> (i32, i32) {
    %c0_i32 = arith.constant 0 : i32
    %c0_i32_0 = arith.constant 0 : i32
    return %arg0, %c0_i32 : i32, i32
  }
  func.func @transform_2(%arg0: i32) -> (i32, i32) {
    %c0_i32 = arith.constant 0 : i32
    %c0_i32_0 = arith.constant 0 : i32
    %c0_i32_1 = arith.constant 0 : i32
    return %c0_i32, %c0_i32_0 : i32, i32
  }
  func.func @transform_3(%arg0: i32) -> (i32, i32) {
    %c0_i32 = arith.constant 0 : i32
    %c0_i32_0 = arith.constant 0 : i32
    %c0_i32_1 = arith.constant 0 : i32
    return %c0_i32, %c0_i32_0 : i32, i32
  }
  func.func @transform_4(%arg0: i32) -> (i32, i32) {
    %c0_i32 = arith.constant 0 : i32
    %c0_i32_0 = arith.constant 0 : i32
    %c0_i32_1 = arith.constant 0 : i32
    return %c0_i32, %c0_i32_0 : i32, i32
  }
  func.func @transform_5(%arg0: i32) -> (i32, i32) {
    %c0_i32 = arith.constant 0 : i32
    %c0_i32_0 = arith.constant 0 : i32
    %c0_i32_1 = arith.constant 0 : i32
    return %c0_i32, %c0_i32_0 : i32, i32
  }
  func.func @transform_6(%arg0: i32) -> (i32, i32) {
    %c0_i32 = arith.constant 0 : i32
    %c0_i32_0 = arith.constant 0 : i32
    %c0_i32_1 = arith.constant 0 : i32
    return %c0_i32, %c0_i32_0 : i32, i32
  }
  func.func @transform_7(%arg0: i32) -> (i32, i32) {
    %c0_i32 = arith.constant 0 : i32
    %c0_i32_0 = arith.constant 0 : i32
    %c0_i32_1 = arith.constant 0 : i32
    return %c0_i32, %c0_i32_0 : i32, i32
  }
  func.func @transform_8(%arg0: i32) -> (i32, i32) {
    %c0_i32 = arith.constant 0 : i32
    %c0_i32_0 = arith.constant 0 : i32
    return %arg0, %c0_i32 : i32, i32
  }
  func.func @transform_9(%arg0: i32) -> (i32, i32) {
    %c0_i32 = arith.constant 0 : i32
    %c0_i32_0 = arith.constant 0 : i32
    return %arg0, %c0_i32 : i32, i32
  }
}

module attributes {stable_mosaic.version = 11 : i64} {
  func.func @out_conv_dec_kernel(%arg0: i32, %arg1: memref<64x128xf32, #tpu.memory_space<vmem>>, %arg2: memref<64x3xf32, #tpu.memory_space<vmem>>, %arg3: memref<4x64x128xf32, #tpu.memory_space<vmem>>, %arg4: memref<128x128xf32, #tpu.memory_space<vmem>>, %arg5: memref<1x128xf32, #tpu.memory_space<vmem>>, %arg6: memref<128x128xf32, #tpu.memory_space<vmem>>, %arg7: memref<3x128xf32, #tpu.memory_space<vmem>>, %arg8: memref<1x128xf32, #tpu.memory_space<vmem>>, %arg9: memref<128x128xf32, #tpu.memory_space<vmem>>, %arg10: memref<1x128xf32, #tpu.memory_space<vmem>>, %arg11: memref<128x128xf32, #tpu.memory_space<vmem>>, %arg12: memref<1x128xf32, #tpu.memory_space<vmem>>, %arg13: memref<128x128xf32, #tpu.memory_space<vmem>>, %arg14: memref<1x128xf32, #tpu.memory_space<vmem>>, %arg15: memref<128x128xf32, #tpu.memory_space<vmem>>, %arg16: memref<1x128xf32, #tpu.memory_space<vmem>>, %arg17: memref<128x128xf32, #tpu.memory_space<vmem>>, %arg18: memref<1x128xf32, #tpu.memory_space<vmem>>, %arg19: memref<64x128xf32, #tpu.memory_space<vmem>>) attributes {dimension_semantics = [#tpu.dimension_semantics<parallel>], iteration_bounds = array<i64: 1>, scalar_prefetch = 0 : i64, scratch_operands = 0 : i64, tpu.core_type = #tpu.core_type<tc>, window_params = [{transform_indices = @transform_0, window_bounds = array<i64: 64, 128>}, {transform_indices = @transform_1, window_bounds = array<i64: 64, 3>}, {transform_indices = @transform_2, window_bounds = array<i64: 4, 64, 128>}, {pipeline_mode = #tpu.pipeline_mode<synchronous>, transform_indices = @transform_3, window_bounds = array<i64: 128, 128>}, {pipeline_mode = #tpu.pipeline_mode<synchronous>, transform_indices = @transform_4, window_bounds = array<i64: 1, 128>}, {pipeline_mode = #tpu.pipeline_mode<synchronous>, transform_indices = @transform_5, window_bounds = array<i64: 128, 128>}, {pipeline_mode = #tpu.pipeline_mode<synchronous>, transform_indices = @transform_6, window_bounds = array<i64: 3, 128>}, {pipeline_mode = #tpu.pipeline_mode<synchronous>, transform_indices = @transform_7, window_bounds = array<i64: 1, 128>}, {pipeline_mode = #tpu.pipeline_mode<synchronous>, transform_indices = @transform_8, window_bounds = array<i64: 128, 128>}, {pipeline_mode = #tpu.pipeline_mode<synchronous>, transform_indices = @transform_9, window_bounds = array<i64: 1, 128>}, {pipeline_mode = #tpu.pipeline_mode<synchronous>, transform_indices = @transform_10, window_bounds = array<i64: 128, 128>}, {pipeline_mode = #tpu.pipeline_mode<synchronous>, transform_indices = @transform_11, window_bounds = array<i64: 1, 128>}, {pipeline_mode = #tpu.pipeline_mode<synchronous>, transform_indices = @transform_12, window_bounds = array<i64: 128, 128>}, {pipeline_mode = #tpu.pipeline_mode<synchronous>, transform_indices = @transform_13, window_bounds = array<i64: 1, 128>}, {pipeline_mode = #tpu.pipeline_mode<synchronous>, transform_indices = @transform_14, window_bounds = array<i64: 128, 128>}, {pipeline_mode = #tpu.pipeline_mode<synchronous>, transform_indices = @transform_15, window_bounds = array<i64: 1, 128>}, {pipeline_mode = #tpu.pipeline_mode<synchronous>, transform_indices = @transform_16, window_bounds = array<i64: 128, 128>}, {pipeline_mode = #tpu.pipeline_mode<synchronous>, transform_indices = @transform_17, window_bounds = array<i64: 1, 128>}, {transform_indices = @transform_18, window_bounds = array<i64: 64, 128>}]} {
    %c0 = arith.constant 0 : index
    %c0_0 = arith.constant 0 : index
    %0 = vector.load %arg1[%c0, %c0_0] : memref<64x128xf32, #tpu.memory_space<vmem>>, vector<64x128xf32>
    %c0_1 = arith.constant 0 : index
    %c0_2 = arith.constant 0 : index
    %1 = vector.load %arg2[%c0_1, %c0_2] : memref<64x3xf32, #tpu.memory_space<vmem>>, vector<64x3xf32>
    %c0_3 = arith.constant 0 : index
    %c0_4 = arith.constant 0 : index
    %2 = vector.load %arg4[%c0_3, %c0_4] : memref<128x128xf32, #tpu.memory_space<vmem>>, vector<128x128xf32>
    %cst = arith.constant dense<0.000000e+00> : vector<64x128xf32>
    %3 = tpu.matmul %0, %2, %cst {dimension_numbers = #tpu.dot_dimension_numbers<[1], [0], [0], [1], [0, 0, 1, 1], [], []>} : vector<64x128xf32>, vector<128x128xf32>, vector<64x128xf32> -> vector<64x128xf32>
    %c0_5 = arith.constant 0 : index
    %c0_6 = arith.constant 0 : index
    %4 = vector.load %arg5[%c0_5, %c0_6] : memref<1x128xf32, #tpu.memory_space<vmem>>, vector<1x128xf32>
    %5 = vector.broadcast %4 : vector<1x128xf32> to vector<64x128xf32>
    %6 = arith.addf %3, %5 : vector<64x128xf32>
    %cst_7 = arith.constant 0.000000e+00 : f32
    %7 = vector.broadcast %cst_7 : f32 to vector<64x128xf32>
    %8 = arith.maximumf %6, %7 : vector<64x128xf32>
    %c0_8 = arith.constant 0 : index
    %c0_9 = arith.constant 0 : index
    %9 = vector.load %arg6[%c0_8, %c0_9] : memref<128x128xf32, #tpu.memory_space<vmem>>, vector<128x128xf32>
    %cst_10 = arith.constant dense<0.000000e+00> : vector<64x128xf32>
    %10 = tpu.matmul %8, %9, %cst_10 {dimension_numbers = #tpu.dot_dimension_numbers<[1], [0], [0], [1], [0, 0, 1, 1], [], []>} : vector<64x128xf32>, vector<128x128xf32>, vector<64x128xf32> -> vector<64x128xf32>
    %c0_11 = arith.constant 0 : index
    %c0_12 = arith.constant 0 : index
    %11 = vector.load %arg7[%c0_11, %c0_12] : memref<3x128xf32, #tpu.memory_space<vmem>>, vector<3x128xf32>
    %cst_13 = arith.constant dense<0.000000e+00> : vector<64x128xf32>
    %12 = tpu.matmul %1, %11, %cst_13 {dimension_numbers = #tpu.dot_dimension_numbers<[1], [0], [0], [1], [0, 0, 1, 1], [], []>} : vector<64x3xf32>, vector<3x128xf32>, vector<64x128xf32> -> vector<64x128xf32>
    %13 = arith.subf %10, %12 : vector<64x128xf32>
    %c0_14 = arith.constant 0 : index
    %c0_15 = arith.constant 0 : index
    %14 = vector.load %arg8[%c0_14, %c0_15] : memref<1x128xf32, #tpu.memory_space<vmem>>, vector<1x128xf32>
    %15 = vector.broadcast %14 : vector<1x128xf32> to vector<64x128xf32>
    %16 = arith.addf %13, %15 : vector<64x128xf32>
    %c0_16 = arith.constant 0 : index
    %c0_17 = arith.constant 0 : index
    %c0_18 = arith.constant 0 : index
    %17 = vector.load %arg3[%c0_16, %c0_17, %c0_18] : memref<4x64x128xf32, #tpu.memory_space<vmem>>, vector<1x64x128xf32>
    %18 = vector.shape_cast %17 : vector<1x64x128xf32> to vector<64x128xf32>
    %19 = arith.addf %18, %16 : vector<64x128xf32>
    %cst_19 = arith.constant 0.000000e+00 : f32
    %20 = vector.broadcast %cst_19 : f32 to vector<64x128xf32>
    %21 = arith.maximumf %19, %20 : vector<64x128xf32>
    %c1 = arith.constant 1 : index
    %c0_20 = arith.constant 0 : index
    %c0_21 = arith.constant 0 : index
    %22 = vector.load %arg3[%c1, %c0_20, %c0_21] : memref<4x64x128xf32, #tpu.memory_space<vmem>>, vector<1x64x128xf32>
    %23 = vector.shape_cast %22 : vector<1x64x128xf32> to vector<64x128xf32>
    %24 = arith.addf %23, %16 : vector<64x128xf32>
    %cst_22 = arith.constant 0.000000e+00 : f32
    %25 = vector.broadcast %cst_22 : f32 to vector<64x128xf32>
    %26 = arith.maximumf %24, %25 : vector<64x128xf32>
    %c2 = arith.constant 2 : index
    %c0_23 = arith.constant 0 : index
    %c0_24 = arith.constant 0 : index
    %27 = vector.load %arg3[%c2, %c0_23, %c0_24] : memref<4x64x128xf32, #tpu.memory_space<vmem>>, vector<1x64x128xf32>
    %28 = vector.shape_cast %27 : vector<1x64x128xf32> to vector<64x128xf32>
    %29 = arith.addf %28, %16 : vector<64x128xf32>
    %cst_25 = arith.constant 0.000000e+00 : f32
    %30 = vector.broadcast %cst_25 : f32 to vector<64x128xf32>
    %31 = arith.maximumf %29, %30 : vector<64x128xf32>
    %c3 = arith.constant 3 : index
    %c0_26 = arith.constant 0 : index
    %c0_27 = arith.constant 0 : index
    %32 = vector.load %arg3[%c3, %c0_26, %c0_27] : memref<4x64x128xf32, #tpu.memory_space<vmem>>, vector<1x64x128xf32>
    %33 = vector.shape_cast %32 : vector<1x64x128xf32> to vector<64x128xf32>
    %34 = arith.addf %33, %16 : vector<64x128xf32>
    %cst_28 = arith.constant 0.000000e+00 : f32
    %35 = vector.broadcast %cst_28 : f32 to vector<64x128xf32>
    %36 = arith.maximumf %34, %35 : vector<64x128xf32>
    %37 = tpu.concatenate %21, %26, %31, %36 in 0 : vector<64x128xf32>, vector<64x128xf32>, vector<64x128xf32>, vector<64x128xf32> -> vector<256x128xf32>
    %c0_29 = arith.constant 0 : index
    %c0_30 = arith.constant 0 : index
    %38 = vector.load %arg9[%c0_29, %c0_30] : memref<128x128xf32, #tpu.memory_space<vmem>>, vector<128x128xf32>
    %cst_31 = arith.constant dense<0.000000e+00> : vector<256x128xf32>
    %39 = tpu.matmul %37, %38, %cst_31 {dimension_numbers = #tpu.dot_dimension_numbers<[1], [0], [0], [1], [0, 0, 1, 1], [], []>} : vector<256x128xf32>, vector<128x128xf32>, vector<256x128xf32> -> vector<256x128xf32>
    %c0_32 = arith.constant 0 : index
    %c0_33 = arith.constant 0 : index
    %40 = vector.load %arg10[%c0_32, %c0_33] : memref<1x128xf32, #tpu.memory_space<vmem>>, vector<1x128xf32>
    %41 = vector.broadcast %40 : vector<1x128xf32> to vector<256x128xf32>
    %42 = arith.addf %39, %41 : vector<256x128xf32>
    %43 = vector.extract_strided_slice %42 {offsets = [0, 0], sizes = [64, 128], strides = [1, 1]} : vector<256x128xf32> to vector<64x128xf32>
    %44 = vector.extract_strided_slice %42 {offsets = [64, 0], sizes = [64, 128], strides = [1, 1]} : vector<256x128xf32> to vector<64x128xf32>
    %45 = arith.maximumf %43, %44 : vector<64x128xf32>
    %46 = vector.extract_strided_slice %42 {offsets = [128, 0], sizes = [64, 128], strides = [1, 1]} : vector<256x128xf32> to vector<64x128xf32>
    %47 = arith.maximumf %45, %46 : vector<64x128xf32>
    %48 = vector.extract_strided_slice %42 {offsets = [192, 0], sizes = [64, 128], strides = [1, 1]} : vector<256x128xf32> to vector<64x128xf32>
    %49 = arith.maximumf %47, %48 : vector<64x128xf32>
    %c0_34 = arith.constant 0 : index
    %c0_35 = arith.constant 0 : index
    %50 = vector.load %arg11[%c0_34, %c0_35] : memref<128x128xf32, #tpu.memory_space<vmem>>, vector<128x128xf32>
    %cst_36 = arith.constant dense<0.000000e+00> : vector<64x128xf32>
    %51 = tpu.matmul %49, %50, %cst_36 {dimension_numbers = #tpu.dot_dimension_numbers<[1], [0], [0], [1], [0, 0, 1, 1], [], []>} : vector<64x128xf32>, vector<128x128xf32>, vector<64x128xf32> -> vector<64x128xf32>
    %c0_37 = arith.constant 0 : index
    %c0_38 = arith.constant 0 : index
    %52 = vector.load %arg12[%c0_37, %c0_38] : memref<1x128xf32, #tpu.memory_space<vmem>>, vector<1x128xf32>
    %53 = vector.broadcast %52 : vector<1x128xf32> to vector<64x128xf32>
    %54 = arith.addf %51, %53 : vector<64x128xf32>
    %cst_39 = arith.constant 0.000000e+00 : f32
    %55 = vector.broadcast %cst_39 : f32 to vector<64x128xf32>
    %56 = arith.maximumf %54, %55 : vector<64x128xf32>
    %c0_40 = arith.constant 0 : index
    %c0_41 = arith.constant 0 : index
    %57 = vector.load %arg13[%c0_40, %c0_41] : memref<128x128xf32, #tpu.memory_space<vmem>>, vector<128x128xf32>
    %cst_42 = arith.constant dense<0.000000e+00> : vector<64x128xf32>
    %58 = tpu.matmul %56, %57, %cst_42 {dimension_numbers = #tpu.dot_dimension_numbers<[1], [0], [0], [1], [0, 0, 1, 1], [], []>} : vector<64x128xf32>, vector<128x128xf32>, vector<64x128xf32> -> vector<64x128xf32>
    %59 = arith.addf %0, %58 : vector<64x128xf32>
    %c0_43 = arith.constant 0 : index
    %c0_44 = arith.constant 0 : index
    %60 = vector.load %arg14[%c0_43, %c0_44] : memref<1x128xf32, #tpu.memory_space<vmem>>, vector<1x128xf32>
    %61 = vector.broadcast %60 : vector<1x128xf32> to vector<64x128xf32>
    %62 = arith.addf %59, %61 : vector<64x128xf32>
    %c0_45 = arith.constant 0 : index
    %c0_46 = arith.constant 0 : index
    %63 = vector.load %arg15[%c0_45, %c0_46] : memref<128x128xf32, #tpu.memory_space<vmem>>, vector<128x128xf32>
    %cst_47 = arith.constant dense<0.000000e+00> : vector<64x128xf32>
    %64 = tpu.matmul %62, %63, %cst_47 {dimension_numbers = #tpu.dot_dimension_numbers<[1], [0], [0], [1], [0, 0, 1, 1], [], []>} : vector<64x128xf32>, vector<128x128xf32>, vector<64x128xf32> -> vector<64x128xf32>
    %c0_48 = arith.constant 0 : index
    %c0_49 = arith.constant 0 : index
    %65 = vector.load %arg16[%c0_48, %c0_49] : memref<1x128xf32, #tpu.memory_space<vmem>>, vector<1x128xf32>
    %66 = vector.broadcast %65 : vector<1x128xf32> to vector<64x128xf32>
    %67 = arith.addf %64, %66 : vector<64x128xf32>
    %cst_50 = arith.constant 0.000000e+00 : f32
    %68 = vector.broadcast %cst_50 : f32 to vector<64x128xf32>
    %69 = arith.maximumf %67, %68 : vector<64x128xf32>
    %c0_51 = arith.constant 0 : index
    %c0_52 = arith.constant 0 : index
    %70 = vector.load %arg17[%c0_51, %c0_52] : memref<128x128xf32, #tpu.memory_space<vmem>>, vector<128x128xf32>
    %cst_53 = arith.constant dense<0.000000e+00> : vector<64x128xf32>
    %71 = tpu.matmul %69, %70, %cst_53 {dimension_numbers = #tpu.dot_dimension_numbers<[1], [0], [0], [1], [0, 0, 1, 1], [], []>} : vector<64x128xf32>, vector<128x128xf32>, vector<64x128xf32> -> vector<64x128xf32>
    %c0_54 = arith.constant 0 : index
    %c0_55 = arith.constant 0 : index
    %72 = vector.load %arg18[%c0_54, %c0_55] : memref<1x128xf32, #tpu.memory_space<vmem>>, vector<1x128xf32>
    %73 = vector.broadcast %72 : vector<1x128xf32> to vector<64x128xf32>
    %74 = arith.addf %71, %73 : vector<64x128xf32>
    %c0_56 = arith.constant 0 : index
    %c0_57 = arith.constant 0 : index
    %75 = vector.load %arg19[%c0_56, %c0_57] : memref<64x128xf32, #tpu.memory_space<vmem>>, vector<64x128xf32>
    tpu.vector_store %arg19[%c0_56, %c0_57], %74 {strides = array<i32>} : memref<64x128xf32, #tpu.memory_space<vmem>>, vector<64x128xf32>,
    return
  }
  func.func @transform_0(%arg0: i32) -> (i32, i32) {
    %c0_i32 = arith.constant 0 : i32
    %c0_i32_0 = arith.constant 0 : i32
    return %arg0, %c0_i32 : i32, i32
  }
  func.func @transform_1(%arg0: i32) -> (i32, i32) {
    %c0_i32 = arith.constant 0 : i32
    %c0_i32_0 = arith.constant 0 : i32
    return %arg0, %c0_i32 : i32, i32
  }
  func.func @transform_2(%arg0: i32) -> (i32, i32, i32) {
    %c0_i32 = arith.constant 0 : i32
    %c0_i32_0 = arith.constant 0 : i32
    %c0_i32_1 = arith.constant 0 : i32
    return %c0_i32, %arg0, %c0_i32_0 : i32, i32, i32
  }
  func.func @transform_3(%arg0: i32) -> (i32, i32) {
    %c0_i32 = arith.constant 0 : i32
    %c0_i32_0 = arith.constant 0 : i32
    %c0_i32_1 = arith.constant 0 : i32
    return %c0_i32, %c0_i32_0 : i32, i32
  }
  func.func @transform_4(%arg0: i32) -> (i32, i32) {
    %c0_i32 = arith.constant 0 : i32
    %c0_i32_0 = arith.constant 0 : i32
    %c0_i32_1 = arith.constant 0 : i32
    return %c0_i32, %c0_i32_0 : i32, i32
  }
  func.func @transform_5(%arg0: i32) -> (i32, i32) {
    %c0_i32 = arith.constant 0 : i32
    %c0_i32_0 = arith.constant 0 : i32
    %c0_i32_1 = arith.constant 0 : i32
    return %c0_i32, %c0_i32_0 : i32, i32
  }
  func.func @transform_6(%arg0: i32) -> (i32, i32) {
    %c0_i32 = arith.constant 0 : i32
    %c0_i32_0 = arith.constant 0 : i32
    %c0_i32_1 = arith.constant 0 : i32
    return %c0_i32, %c0_i32_0 : i32, i32
  }
  func.func @transform_7(%arg0: i32) -> (i32, i32) {
    %c0_i32 = arith.constant 0 : i32
    %c0_i32_0 = arith.constant 0 : i32
    %c0_i32_1 = arith.constant 0 : i32
    return %c0_i32, %c0_i32_0 : i32, i32
  }
  func.func @transform_8(%arg0: i32) -> (i32, i32) {
    %c0_i32 = arith.constant 0 : i32
    %c0_i32_0 = arith.constant 0 : i32
    %c0_i32_1 = arith.constant 0 : i32
    return %c0_i32, %c0_i32_0 : i32, i32
  }
  func.func @transform_9(%arg0: i32) -> (i32, i32) {
    %c0_i32 = arith.constant 0 : i32
    %c0_i32_0 = arith.constant 0 : i32
    %c0_i32_1 = arith.constant 0 : i32
    return %c0_i32, %c0_i32_0 : i32, i32
  }
  func.func @transform_10(%arg0: i32) -> (i32, i32) {
    %c0_i32 = arith.constant 0 : i32
    %c0_i32_0 = arith.constant 0 : i32
    %c0_i32_1 = arith.constant 0 : i32
    return %c0_i32, %c0_i32_0 : i32, i32
  }
  func.func @transform_11(%arg0: i32) -> (i32, i32) {
    %c0_i32 = arith.constant 0 : i32
    %c0_i32_0 = arith.constant 0 : i32
    %c0_i32_1 = arith.constant 0 : i32
    return %c0_i32, %c0_i32_0 : i32, i32
  }
  func.func @transform_12(%arg0: i32) -> (i32, i32) {
    %c0_i32 = arith.constant 0 : i32
    %c0_i32_0 = arith.constant 0 : i32
    %c0_i32_1 = arith.constant 0 : i32
    return %c0_i32, %c0_i32_0 : i32, i32
  }
  func.func @transform_13(%arg0: i32) -> (i32, i32) {
    %c0_i32 = arith.constant 0 : i32
    %c0_i32_0 = arith.constant 0 : i32
    %c0_i32_1 = arith.constant 0 : i32
    return %c0_i32, %c0_i32_0 : i32, i32
  }
  func.func @transform_14(%arg0: i32) -> (i32, i32) {
    %c0_i32 = arith.constant 0 : i32
    %c0_i32_0 = arith.constant 0 : i32
    %c0_i32_1 = arith.constant 0 : i32
    return %c0_i32, %c0_i32_0 : i32, i32
  }
  func.func @transform_15(%arg0: i32) -> (i32, i32) {
    %c0_i32 = arith.constant 0 : i32
    %c0_i32_0 = arith.constant 0 : i32
    %c0_i32_1 = arith.constant 0 : i32
    return %c0_i32, %c0_i32_0 : i32, i32
  }
  func.func @transform_16(%arg0: i32) -> (i32, i32) {
    %c0_i32 = arith.constant 0 : i32
    %c0_i32_0 = arith.constant 0 : i32
    %c0_i32_1 = arith.constant 0 : i32
    return %c0_i32, %c0_i32_0 : i32, i32
  }
  func.func @transform_17(%arg0: i32) -> (i32, i32) {
    %c0_i32 = arith.constant 0 : i32
    %c0_i32_0 = arith.constant 0 : i32
    %c0_i32_1 = arith.constant 0 : i32
    return %c0_i32, %c0_i32_0 : i32, i32
  }
  func.func @transform_18(%arg0: i32) -> (i32, i32) {
    %c0_i32 = arith.constant 0 : i32
    %c0_i32_0 = arith.constant 0 : i32
    return %arg0, %c0_i32 : i32, i32
  }
}

</mosaic_0001>

<bundles_post_ra>
// kernel: point_gnn_con_forward.8
= control target key start
LH: loop header
LB: loop body
LE: loop exit
PB: predicated region body
PF: predicated region fallthrough
CT: control target
= control target key end

     0   :  { %13 = vsyncpa [#allocation3], 0  ;;  %s989_s0 = inlined_call_operand.hbm [shape: f32[64,128], index: 0, kind: input, shape index: {}]   ;;  %s990_s1 = inlined_call_operand.hbm [shape: f32[64,3], index: 1, kind: input, shape index: {}]   ;;  %s991_s2 = inlined_call_operand.hbm [shape: f32[1,128], index: 2, kind: input, shape index: {}]   ;;  %s992_s3 = inlined_call_operand.hbm [shape: f32[1,128], index: 3, kind: input, shape index: {}]   ;;  %s993_s4 = inlined_call_operand.hbm [shape: f32[3,128], index: 4, kind: input, shape index: {}]   ;;  %s994_s5 = inlined_call_operand.hbm [shape: f32[128,128], index: 5, kind: input, shape index: {}]   ;;  %s995_s6 = inlined_call_operand.hbm [shape: f32[64,128], index: 6, kind: output, shape index: {0}]   ;;  %s996_s7 = inlined_call_operand.hbm [shape: f32[64,128], index: 7, kind: output, shape index: {1}]  }
   0x1   :  { %14 = vsyncpa [#allocation6], 0 }
   0x2   :  { %15 = vsyncpa [#allocation9], 0 }
   0x3   :  { %16 = vsyncpa [#allocation12], 0 }
   0x4   :  { %17 = vsyncpa [#allocation4], 0 }
   0x5   :  { %18 = vsyncpa [#allocation15], 0  ;;  %s805_s24 = smov [#allocation5]   ;;  %s806_s26 = smov [#allocation8]  }
   0x6   :  { %s36_s25 = sshll.u32 %s805_s24, 4  ;;  %s59_s27 = sshll.u32 %s806_s26, 4  ;;  %s37_s25 = int_to_ptr.vmem [resolvable:$true] %s36_s25  ;;  %s855_s27 = int_to_ptr.vmem [resolvable:$true] %s59_s27 }
   0x7   :  { %s617_s30 = scalar_lea.hbm %s990_s1, 1024 }
   0x8   :  { %p618_p0 = scmp.ne.s32.totalorder %s990_s1, %s617_s30  ;;  %p621_p1 = scmp.lt.u32.totalorder %s617_s30, %s990_s1 }
   0xa   :  { %p623_p2 = pnand %p621_p1, %p618_p0 }
   0xc   :  { %626 = shalt.err (!%p623_p2)
}
   0xd   :  { %s627_s12 = scalar_lea.vmem %s37_s25, 1024  ;;  %p632_p4 = scmp.lt.s32.totalorder %s37_s25, %s37_s25 }
   0xe   :  { %p628_p3 = scmp.ne.s32.totalorder %s37_s25, %s627_s12  ;;  %p633_p5 = scmp.lt.s32.totalorder %s627_s12, %s627_s12 }
  0x10   :  { %p634_p6 = por %p633_p5, %p632_p4 }
  0x12   :  { %p635_p7 = pnand %p634_p6, %p628_p3 }
  0x14   :  { %638 = shalt.err (!%p635_p7)
}
  0x15   :  { %s807_s13 = smov 128   ;;  %s808_s14 = smov 8  }
  0x16   :  { %42 = dma.hbm_to_vmem [thread:$0]  %s990_s1, 1024, %s37_s25, [#allocation6], %s807_s13, %s807_s13, %s808_s14  }
  0x17   :  { %s639_s19 = scalar_lea.hbm %s992_s3, 16 }
  0x18   :  { %p640_p8 = scmp.ne.s32.totalorder %s992_s3, %s639_s19  ;;  %p643_p9 = scmp.lt.u32.totalorder %s639_s19, %s992_s3 }
  0x1a   :  { %p645_p10 = pnand %p643_p9, %p640_p8 }
  0x1c   :  { %648 = shalt.err (!%p645_p10)
}
  0x1d   :  { %s649_s24 = scalar_lea.vmem %s855_s27, 16  ;;  %s653_s1 = scalar_lea.vmem %s855_s27, 32 }
  0x1e   :  { %p650_p11 = scmp.ne.s32.totalorder %s855_s27, %s649_s24  ;;  %p654_p12 = scmp.lt.s32.totalorder %s855_s27, %s855_s27 }
  0x1f   :  { %p655_p13 = scmp.lt.s32.totalorder %s653_s1, %s649_s24 }
  0x21   :  { %p656_p0 = por %p655_p13, %p654_p12 }
  0x23   :  { %p657_p1 = pnand %p656_p0, %p650_p11 }
  0x25   :  { %660 = shalt.err (!%p657_p1)
}
  0x26   :  { %62 = dma.hbm_to_vmem [thread:$0]  %s992_s3, 16, %s855_s27, [#allocation9]  }
  0x27   :  { %s809_s28 = smov [#allocation2]   ;;  %s810_s30 = smov [#allocation7]  }
  0x28   :  { %s24_s29 = sshll.u32 %s809_s28, 4  ;;  %s49_s8 = sshll.u32 %s810_s30, 4  ;;  %s25_s29 = int_to_ptr.vmem [resolvable:$true] %s24_s29  ;;  %s50_s8 = int_to_ptr.vmem [resolvable:$true] %s49_s8 }
  0x29   :  { %s661_s11 = scalar_lea.hbm %s989_s0, 1024 }
  0x2a   :  { %p662_p2 = scmp.ne.s32.totalorder %s989_s0, %s661_s11  ;;  %p665_p3 = scmp.lt.u32.totalorder %s661_s11, %s989_s0 }
  0x2c   :  { %p667_p4 = pnand %p665_p3, %p662_p2 }
  0x2e   :  { %670 = shalt.err (!%p667_p4)
}
  0x2f   :  { %s671_s3 = scalar_lea.vmem %s25_s29, 1024  ;;  %p676_p6 = scmp.lt.s32.totalorder %s25_s29, %s25_s29 }
  0x30   :  { %p672_p5 = scmp.ne.s32.totalorder %s25_s29, %s671_s3  ;;  %p677_p7 = scmp.lt.s32.totalorder %s671_s3, %s671_s3 }
  0x32   :  { %p678_p8 = por %p677_p7, %p676_p6 }
  0x34   :  { %p679_p9 = pnand %p678_p8, %p672_p5 }
  0x36   :  { %682 = shalt.err (!%p679_p9)
}
  0x37   :  { %30 = dma.hbm_to_vmem [thread:$0]  %s989_s0, 1024, %s25_s29, [#allocation3], %s807_s13, %s807_s13, %s808_s14  }
  0x38   :  { %s683_s21 = scalar_lea.hbm %s991_s2, 16 }
  0x39   :  { %p684_p10 = scmp.ne.s32.totalorder %s991_s2, %s683_s21  ;;  %p687_p11 = scmp.lt.u32.totalorder %s683_s21, %s991_s2 }
  0x3b   :  { %p689_p12 = pnand %p687_p11, %p684_p10 }
  0x3d   :  { %692 = shalt.err (!%p689_p12)
}
  0x3e   :  { %s693_s25 = scalar_lea.vmem %s50_s8, 16  ;;  %s697_s26 = scalar_lea.vmem %s50_s8, 32 }
  0x3f   :  { %p694_p13 = scmp.ne.s32.totalorder %s50_s8, %s693_s25  ;;  %p698_p0 = scmp.lt.s32.totalorder %s50_s8, %s50_s8 }
  0x40   :  { %p699_p1 = scmp.lt.s32.totalorder %s697_s26, %s693_s25 }
  0x42   :  { %p700_p2 = por %p699_p1, %p698_p0 }
  0x44   :  { %p701_p3 = pnand %p700_p2, %p694_p13 }
  0x46   :  { %704 = shalt.err (!%p701_p3)
}
  0x47   :  { %52 = dma.hbm_to_vmem [thread:$0]  %s991_s2, 16, %s50_s8, [#allocation6]  }
  0x48   :  { %s811_s29 = smov [#allocation10]   ;;  %s812_s9 = smov [#allocation11]  }
  0x49   :  { %s69_s30 = sshll.u32 %s811_s29, 4  ;;  %s78_s10 = sshll.u32 %s812_s9, 4  ;;  %s70_s30 = int_to_ptr.vmem [resolvable:$true] %s69_s30  ;;  %s917_s10 = int_to_ptr.vmem [resolvable:$true] %s78_s10 }
  0x4a   :  { %s705_s15 = scalar_lea.hbm %s993_s4, 64 }
  0x4b   :  { %p706_p4 = scmp.ne.s32.totalorder %s993_s4, %s705_s15  ;;  %p709_p5 = scmp.lt.u32.totalorder %s705_s15, %s993_s4 }
  0x4d   :  { %p711_p6 = pnand %p709_p5, %p706_p4 }
  0x4f   :  { %714 = shalt.err (!%p711_p6)
}
  0x50   :  { %s715_s2 = scalar_lea.vmem %s70_s30, 64  ;;  %p720_p8 = scmp.lt.s32.totalorder %s70_s30, %s70_s30 }
  0x51   :  { %p716_p7 = scmp.ne.s32.totalorder %s70_s30, %s715_s2  ;;  %p721_p9 = scmp.lt.s32.totalorder %s715_s2, %s715_s2 }
  0x53   :  { %p722_p10 = por %p721_p9, %p720_p8 }
  0x55   :  { %p723_p11 = pnand %p722_p10, %p716_p7 }
  0x57   :  { %726 = shalt.err (!%p723_p11)
}
  0x58   :  { %72 = dma.hbm_to_vmem [thread:$0]  %s993_s4, 64, %s70_s30, [#allocation9]  }
  0x59   :  { %s727_s21 = scalar_lea.hbm %s994_s5, 2048 }
  0x5a   :  { %p728_p12 = scmp.ne.s32.totalorder %s994_s5, %s727_s21  ;;  %p731_p13 = scmp.lt.u32.totalorder %s727_s21, %s994_s5 }
  0x5c   :  { %p733_p0 = pnand %p731_p13, %p728_p12 }
  0x5e   :  { %736 = shalt.err (!%p733_p0)
}
  0x5f   :  { %s737_s25 = scalar_lea.vmem %s917_s10, 2048  ;;  %p742_p2 = scmp.lt.s32.totalorder %s917_s10, %s917_s10 }
  0x60   :  { %p738_p1 = scmp.ne.s32.totalorder %s917_s10, %s737_s25  ;;  %p743_p3 = scmp.lt.s32.totalorder %s737_s25, %s737_s25 }
  0x62   :  { %p744_p4 = por %p743_p3, %p742_p2 }
  0x64   :  { %p745_p5 = pnand %p744_p4, %p738_p1 }
  0x66   :  { %748 = shalt.err (!%p745_p5)
}
  0x67   :  { %84 = dma.hbm_to_vmem [thread:$0]  %s994_s5, 2048, %s917_s10, [#allocation12], %s807_s13, %s807_s13, %s808_s14  }
  0x68   :  { %793 = dma.done.wait [#allocation3], 1024  }
  0x69   :  { %794 = vsyncadd [#allocation3], 4294966272 }
  0x6a   :  { %795 = dma.done.wait [#allocation6], 1040  }
  0x6b   :  { %796 = vsyncadd [#allocation6], 4294966256 }
  0x6c   :  { %797 = dma.done.wait [#allocation9], 80  }
  0x6d   :  { %798 = vsyncadd [#allocation9], 4294967216 }
  0x6e   :  { %799 = dma.done.wait [#allocation12], 2048  }
  0x6f   :  { %800 = vsyncadd [#allocation12], 4294965248  ;;  %v166_v0 = vld [vmem:[#allocation11] sm:$0xff]  ;;  %v167_v1 = vld [vmem:[#allocation11 + $0x8] sm:$0xff]  ;;  %vm312_vm0 = vcmask 1042432   ;;  %vm287_vm1 = vcmask 23552  }
  0x70   :  { %v168_v2 = vld [vmem:[#allocation11 + $0x10] sm:$0xff]  ;;  %v567_v3 = vpack.c.bf16 %v167_v1, %v166_v0  ;;  %v169_v4 = vld [vmem:[#allocation11 + $0x18] sm:$0xff]  ;;  %v170_v6 = vld [vmem:[#allocation11 + $0x20] sm:$0xff]  ;;  %s813_s5 = smov [#allocation13]  }
  0x71   :  { %v571_v5 = vpack.c.bf16 %v169_v4, %v168_v2  ;;  %v171_v7 = vld [vmem:[#allocation11 + $0x28] sm:$0xff]  ;;  %v172_v8 = vld [vmem:[#allocation11 + $0x30] sm:$0xff]  ;;  %v173_v10 = vld [vmem:[#allocation11 + $0x38] sm:$0xff]  ;;  %s434_s0 = sshll.u32 %s813_s5, 4  ;;  %s435_s0 = int_to_ptr.vmem [resolvable:$true] %s434_s0 }
  0x72   :  { %568 = vmatprep.subr.bf16.mxu1 %v567_v3  ;;  %v575_v9 = vpack.c.bf16 %v171_v7, %v170_v6  ;;  %v165_v11 = vld [vmem:[#allocation10] sm:$0x7]  ;;  %v465_v14 = vld [vmem:[#allocation7] ss:$0 sm:$0xff]  ;;  %v466_v15 = vld [vmem:[#allocation8] ss:$0 sm:$0xff]  ;;  %v579_v20 = vpack.c.bf16 %v173_v10, %v172_v8  ;;  %p754_p7 = scmp.lt.s32.totalorder %s435_s0, %s435_s0 }
  0x73   :  { %570 = vmatpush3.bf16.msra.mxu1 %v567_v3  ;;  %v157_v12 = vld [vmem:[#allocation5] sm:$0xff]  ;;  %553 = vmatprep.subr.msk.mxu0 %vm312_vm0, %v165_v11  ;;  %v158_v17 = vld [vmem:[#allocation5 + $0x8] sm:$0xff]  ;;  %v159_v19 = vld [vmem:[#allocation5 + $0x10] sm:$0xff]  ;;  %s749_s28 = scalar_lea.vmem %s435_s0, 1024 }
  0x74   :  { %572 = vmatprep.subr.bf16.mxu1 %v571_v5  ;;  %555 = vmatprep.mubr.msk.f32.mxu0 %vm287_vm1, %v157_v12  ;;  %v103_v13 = vld [vmem:[#allocation2] sm:$0xff]  ;;  %v104_v18 = vld [vmem:[#allocation2 + $0x8] sm:$0xff]  ;;  %v105_v22 = vld [vmem:[#allocation2 + $0x10] sm:$0xff]  ;;  %p750_p6 = scmp.ne.s32.totalorder %s435_s0, %s749_s28  ;;  %p755_p8 = scmp.lt.s32.totalorder %s749_s28, %s749_s28 }
  0x75   :  { %554 = vmatpush3.msk.msra.mxu0 %vm312_vm0, %v165_v11  ;;  %v118_v16 = vmul.f32 %v465_v14, %v103_v13  ;;  %v119_v21 = vmul.f32 %v465_v14, %v104_v18  ;;  %v106_v23 = vld [vmem:[#allocation2 + $0x18] sm:$0xff]  ;;  %v174_v24 = vld [vmem:[#allocation11 + $0x40] sm:$0xff]  ;;  %v120_v26 = vmul.f32 %v465_v14, %v105_v22  ;;  %v107_v29 = vld [vmem:[#allocation2 + $0x20] sm:$0xff] }
  0x76   :  { %556 = vmatmul.mubr.msk.f32.vlgmr.msra.gmra.mrb[0].mxu0 %vm287_vm1, %v158_v17  ;;  %v160_v27 = vld [vmem:[#allocation5 + $0x18] sm:$0xff]  ;;  %v121_v28 = vmul.f32 %v465_v14, %v106_v23  ;;  %v175_v30 = vld [vmem:[#allocation11 + $0x48] sm:$0xff]  ;;  %v122_v32 = vmul.f32 %v465_v14, %v107_v29  ;;  %v108_v33 = vld [vmem:[#allocation2 + $0x28] sm:$0xff]  ;;  %p756_p9 = por %p755_p8, %p754_p7 }
  0x77   :  { %574 = vmatpush3.bf16.msra.mxu1 %v571_v5  ;;  %v133_v25 = vadd.f32 %v466_v15, %v118_v16  ;;  %558 = vmatprep.mubr.msk.f32.mxu0 %vm287_vm1, %v159_v19  ;;  %v134_v31 = vadd.f32 %v466_v15, %v119_v21  ;;  %v109_v34 = vld [vmem:[#allocation2 + $0x30] sm:$0xff]  ;;  %v135_v36 = vadd.f32 %v466_v15, %v120_v26  ;;  %v161_v38 = vld [vmem:[#allocation5 + $0x20] sm:$0xff]  ;;  %v110_v40 = vld [vmem:[#allocation2 + $0x38] sm:$0xff] }
  0x78   :  { %576 = vmatprep.subr.bf16.mxu1 %v575_v9  ;;  %v136_v37 = vadd.f32 %v466_v15, %v121_v28  ;;  %v123_v39 = vmul.f32 %v465_v14, %v108_v33  ;;  %v137_v42 = vadd.f32 %v466_v15, %v122_v32  ;;  %v124_v43 = vmul.f32 %v465_v14, %v109_v34  ;;  %v162_v48 = vld [vmem:[#allocation5 + $0x28] sm:$0xff]  ;;  %v176_v50 = vld [vmem:[#allocation11 + $0x50] sm:$0xff]  ;;  %v177_v51 = vld [vmem:[#allocation11 + $0x58] sm:$0xff]  ;;  %p757_p10 = pnand %p756_p9, %p750_p6 }
  0x79   :  { %v141_v35 = vmax.f32 %v133_v25, 0.0  ;;  %v142_v41 = vmax.f32 %v134_v31, 0.0  ;;  %v125_v44 = vmul.f32 %v465_v14, %v110_v40  ;;  %v583_v45 = vpack.c.bf16 %v175_v30, %v174_v24  ;;  %v163_v53 = vld [vmem:[#allocation5 + $0x30] sm:$0xff]  ;;  %v164_v60 = vld [vmem:[#allocation5 + $0x38] sm:$0xff]  ;;  %v178_v61 = vld [vmem:[#allocation11 + $0x60] sm:$0xff] }
  0x7a   :  { %559 = vmatmul.mubr.msk.f32.gmra.mrb[2].mxu0 %vm287_vm1, %v160_v27  ;;  %v143_v46 = vmax.f32 %v135_v36, 0.0  ;;  %v144_v47 = vmax.f32 %v136_v37, 0.0  ;;  %v138_v49 = vadd.f32 %v466_v15, %v123_v39  ;;  %v145_v52 = vmax.f32 %v137_v42, 0.0  ;;  %v179_v62 = vld [vmem:[#allocation11 + $0x68] sm:$0xff]  ;;  %v180_v0 = vld [vmem:[#allocation11 + $0x70] sm:$0xff]  ;;  %v181_v1 = vld [vmem:[#allocation11 + $0x78] sm:$0xff] }
  0x7b   :  { %578 = vmatpush3.bf16.msra.mxu1 %v575_v9  ;;  %149 = vst [vmem:[#allocation13] sm:$0xff] %v141_v35  ;;  %541 = vmatprep.mubr.f32.mxu1 %v141_v35  ;;  %150 = vst [vmem:[#allocation13 + $0x8] sm:$0xff] %v142_v41  ;;  %v139_v54 = vadd.f32 %v466_v15, %v124_v43  ;;  %v140_v55 = vadd.f32 %v466_v15, %v125_v44 }
  0x7c   :  { %580 = vmatprep.subr.bf16.mxu1 %v579_v20  ;;  %561 = vmatprep.mubr.msk.f32.mxu0 %vm287_vm1, %v161_v38  ;;  %151 = vst [vmem:[#allocation13 + $0x10] sm:$0xff] %v143_v46  ;;  %152 = vst [vmem:[#allocation13 + $0x18] sm:$0xff] %v144_v47  ;;  %v146_v56 = vmax.f32 %v138_v49, 0.0  ;;  %v587_v59 = vpack.c.bf16 %v177_v51, %v176_v50  ;;  %v591_v63 = vpack.c.bf16 %v179_v62, %v178_v61 }
  0x7d   :  { %153 = vst [vmem:[#allocation13 + $0x20] sm:$0xff] %v145_v52  ;;  %v147_v57 = vmax.f32 %v139_v54, 0.0  ;;  %v148_v58 = vmax.f32 %v140_v55, 0.0  ;;  %v595_v2 = vpack.c.bf16 %v181_v1, %v180_v0 }
  0x7e   :  { %562 = vmatmul.mubr.msk.f32.gmra.mrb[4].mxu0 %vm287_vm1, %v162_v48  ;;  %154 = vst [vmem:[#allocation13 + $0x28] sm:$0xff] %v146_v56 }
  0x7f   :  { %582 = vmatpush3.bf16.msra.mxu1 %v579_v20  ;;  %564 = vmatprep.mubr.msk.f32.mxu0 %vm287_vm1, %v163_v53  ;;  %155 = vst [vmem:[#allocation13 + $0x30] sm:$0xff] %v147_v57  ;;  %156 = vst [vmem:[#allocation13 + $0x38] sm:$0xff] %v148_v58 }
  0x80   :  { %584 = vmatprep.subr.bf16.mxu1 %v583_v45 }
  0x82   :  { %565 = vmatmul.mubr.msk.f32.gmra.mrb[6].mxu0 %vm287_vm1, %v164_v60 }
  0x83   :  { %586 = vmatpush3.bf16.msra.mxu1 %v583_v45 }
  0x84   :  { %588 = vmatprep.subr.bf16.mxu1 %v587_v59 }
  0x87   :  { %590 = vmatpush3.bf16.msra.mxu1 %v587_v59 }
  0x88   :  { %592 = vmatprep.subr.bf16.mxu1 %v591_v63 }
  0x8b   :  { %594 = vmatpush3.bf16.msra.mxu1 %v591_v63 }
  0x8c   :  { %596 = vmatprep.subr.bf16.mxu1 %v595_v2 }
  0x8f   :  { %598 = vmatpush3.bf16.msra.mxu1 %v595_v2 }
  0x92   :  { %542 = vmatmul.mubr.f32.vlgmr.msra.gmra.mrb[0].mxu1 %v142_v41 }
  0x93   :  { %544 = vmatprep.mubr.f32.mxu1 %v143_v46 }
  0x96   :  { %545 = vmatmul.mubr.f32.gmra.mrb[2].mxu1 %v144_v47 }
  0x97   :  { %547 = vmatprep.mubr.f32.mxu1 %v145_v52 }
  0x9a   :  { %548 = vmatmul.mubr.f32.gmra.mrb[4].mxu1 %v146_v56 }
  0x9b   :  { %550 = vmatprep.mubr.f32.mxu1 %v147_v57 }
  0x9e   :  { %551 = vmatmul.mubr.f32.gmra.mrb[6].mxu1 %v148_v58 }
  0x9f   :  { %760 = shalt.err (!%p757_p10)
}
  0xa0   :  { %s761_s9 = scalar_lea.hbm %s995_s6, 1024 }
  0xa1   :  { %p762_p11 = scmp.ne.s32.totalorder %s995_s6, %s761_s9  ;;  %p765_p12 = scmp.lt.u32.totalorder %s761_s9, %s995_s6 }
  0xa3   :  { %p767_p13 = pnand %p765_p12, %p762_p11 }
  0xa5   :  { %770 = shalt.err (!%p767_p13)
}
  0xa6   :  { %440 = dma.vmem_to_hbm [thread:$0]  %s435_s0, 1024, %s995_s6, [#allocation4], %s807_s13, %s807_s13, %s808_s14  }
  0xa7   :  { %s814_s6 = smov [#allocation14]  }
  0xa8   :  { %s446_s3 = sshll.u32 %s814_s6, 4  ;;  %s447_s3 = int_to_ptr.vmem [resolvable:$true] %s446_s3 }
  0xa9   :  { %s771_s27 = scalar_lea.vmem %s447_s3, 1024  ;;  %p776_p1 = scmp.lt.s32.totalorder %s447_s3, %s447_s3 }
  0xaa   :  { %p772_p0 = scmp.ne.s32.totalorder %s447_s3, %s771_s27  ;;  %p777_p2 = scmp.lt.s32.totalorder %s771_s27, %s771_s27 }
  0xac   :  { %p778_p3 = por %p777_p2, %p776_p1 }
  0xae   :  { %p779_p4 = pnand %p778_p3, %p772_p0 }
 0x149   :  { %v557_v3 = vpop.f32.mrb[0].mxu0 }
 0x14a   :  { %v382_v4 = vpop.f32.mrb[1].mxu0 }
 0x14d   :  { %v560_v5 = vpop.f32.mrb[2].mxu0 }
 0x14e   :  { %v392_v6 = vpop.f32.mrb[3].mxu0 }
 0x151   :  { %v563_v7 = vpop.f32.mrb[4].mxu0 }
 0x152   :  { %v402_v8 = vpop.f32.mrb[5].mxu0 }
 0x155   :  { %v566_v9 = vpop.f32.mrb[6].mxu0 }
 0x156   :  { %v412_v10 = vpop.f32.mrb[7].mxu0 }
 0x165   :  { %v543_v11 = vpop.f32.mrb[0].mxu1 }
 0x166   :  { %v388_v12 = vadd.f32 %v557_v3, %v543_v11  ;;  %v248_v13 = vpop.f32.mrb[1].mxu1 }
 0x167   :  { %v383_v14 = vadd.f32 %v382_v4, %v248_v13 }
 0x168   :  { %422 = vst [vmem:[#allocation14 + $0x8] sm:$0xff] %v388_v12 }
 0x169   :  { %421 = vst [vmem:[#allocation14] sm:$0xff] %v383_v14  ;;  %v546_v15 = vpop.f32.mrb[2].mxu1 }
 0x16a   :  { %v398_v16 = vadd.f32 %v560_v5, %v546_v15  ;;  %v258_v17 = vpop.f32.mrb[3].mxu1 }
 0x16b   :  { %v393_v18 = vadd.f32 %v392_v6, %v258_v17 }
 0x16c   :  { %424 = vst [vmem:[#allocation14 + $0x18] sm:$0xff] %v398_v16 }
 0x16d   :  { %423 = vst [vmem:[#allocation14 + $0x10] sm:$0xff] %v393_v18  ;;  %v549_v19 = vpop.f32.mrb[4].mxu1 }
 0x16e   :  { %v408_v20 = vadd.f32 %v563_v7, %v549_v19  ;;  %v268_v21 = vpop.f32.mrb[5].mxu1 }
 0x16f   :  { %v403_v22 = vadd.f32 %v402_v8, %v268_v21 }
 0x170   :  { %426 = vst [vmem:[#allocation14 + $0x28] sm:$0xff] %v408_v20 }
 0x171   :  { %425 = vst [vmem:[#allocation14 + $0x20] sm:$0xff] %v403_v22  ;;  %v552_v23 = vpop.f32.mrb[6].mxu1 }
 0x172   :  { %v418_v24 = vadd.f32 %v566_v9, %v552_v23  ;;  %v278_v25 = vpop.f32.mrb[7].mxu1 }
 0x173   :  { %v413_v26 = vadd.f32 %v412_v10, %v278_v25 }
 0x174   :  { %428 = vst [vmem:[#allocation14 + $0x38] sm:$0xff] %v418_v24 }
 0x175   :  { %427 = vst [vmem:[#allocation14 + $0x30] sm:$0xff] %v413_v26 }
 0x176   :  { %782 = shalt.err (!%p779_p4)
}
 0x177   :  { %s783_s18 = scalar_lea.hbm %s996_s7, 1024 }
 0x178   :  { %p784_p5 = scmp.ne.s32.totalorder %s996_s7, %s783_s18  ;;  %p787_p6 = scmp.lt.u32.totalorder %s783_s18, %s996_s7 }
 0x17a   :  { %p789_p7 = pnand %p787_p6, %p784_p5 }
 0x17c   :  { %792 = shalt.err (!%p789_p7)
}
 0x17d   :  { %452 = dma.vmem_to_hbm [thread:$0]  %s447_s3, 1024, %s996_s7, [#allocation15], %s807_s13, %s807_s13, %s808_s14  }
 0x17e   :  { %801 = dma.done.wait [#allocation4], 1024  }
 0x17f   :  { %802 = vsyncadd [#allocation4], 4294966272 }
 0x180   :  { %803 = dma.done.wait [#allocation15], 1024  }
 0x181   :  { %804 = vsyncadd [#allocation15], 4294966272 }
 0x182   :  { %459 = vsyncpa [#allocation3], 1 }
 0x183   :  { %460 = vsyncpa [#allocation6], 1 }
 0x184   :  { %461 = vsyncpa [#allocation9], 1 }
 0x185   :  { %462 = vsyncpa [#allocation12], 1 }
 0x186   :  { %463 = vsyncpa [#allocation4], 1 }
 0x187   :  { %464 = vsyncpa [#allocation15], 1 }

// kernel: point_gnn_con_forward.10
= control target key start
LH: loop header
LB: loop body
LE: loop exit
PB: predicated region body
PF: predicated region fallthrough
CT: control target
= control target key end

     0   :  { %15 = vsyncpa [#allocation3], 0  ;;  %s1377_s0 = inlined_call_operand.hbm [shape: f32[64,128], index: 0, kind: input, shape index: {}]   ;;  %s1378_s1 = inlined_call_operand.hbm [shape: f32[64,3], index: 1, kind: input, shape index: {}]   ;;  %s1379_s2 = inlined_call_operand.hbm [shape: f32[1,128], index: 2, kind: input, shape index: {}]   ;;  %s1380_s3 = inlined_call_operand.hbm [shape: f32[1,128], index: 3, kind: input, shape index: {}]   ;;  %s1381_s4 = inlined_call_operand.hbm [shape: f32[128,128], index: 4, kind: input, shape index: {}]   ;;  %s1382_s5 = inlined_call_operand.hbm [shape: f32[1,128], index: 5, kind: input, shape index: {}]   ;;  %s1383_s6 = inlined_call_operand.hbm [shape: f32[3,128], index: 6, kind: input, shape index: {}]   ;;  %s1384_s7 = inlined_call_operand.hbm [shape: f32[128,128], index: 7, kind: input, shape index: {}]   ;;  %s1385_s8 = inlined_call_operand.hbm [shape: f32[64,128], index: 8, kind: output, shape index: {0}]   ;;  %s1386_s9 = inlined_call_operand.hbm [shape: f32[64,128], index: 9, kind: output, shape index: {1}]  }
   0x1   :  { %16 = vsyncpa [#allocation6], 0 }
   0x2   :  { %17 = vsyncpa [#allocation9], 0 }
   0x3   :  { %18 = vsyncpa [#allocation12], 0 }
   0x4   :  { %19 = vsyncpa [#allocation15], 0 }
   0x5   :  { %20 = vsyncpa [#allocation4], 0 }
   0x6   :  { %21 = vsyncpa [#allocation18], 0  ;;  %s1116_s30 = smov [#allocation5]   ;;  %s1117_s11 = smov [#allocation8]  }
   0x7   :  { %s39_s10 = sshll.u32 %s1116_s30, 4  ;;  %s62_s12 = sshll.u32 %s1117_s11, 4  ;;  %s40_s10 = int_to_ptr.vmem [resolvable:$true] %s39_s10  ;;  %s1178_s12 = int_to_ptr.vmem [resolvable:$true] %s62_s12 }
   0x8   :  { %s882_s15 = scalar_lea.hbm %s1378_s1, 1024 }
   0x9   :  { %p883_p0 = scmp.ne.s32.totalorder %s1378_s1, %s882_s15  ;;  %p886_p1 = scmp.lt.u32.totalorder %s882_s15, %s1378_s1 }
   0xb   :  { %p888_p2 = pnand %p886_p1, %p883_p0 }
   0xd   :  { %891 = shalt.err (!%p888_p2)
}
   0xe   :  { %s892_s20 = scalar_lea.vmem %s40_s10, 1024  ;;  %p897_p4 = scmp.lt.s32.totalorder %s40_s10, %s40_s10 }
   0xf   :  { %p893_p3 = scmp.ne.s32.totalorder %s40_s10, %s892_s20  ;;  %p898_p5 = scmp.lt.s32.totalorder %s892_s20, %s892_s20 }
  0x11   :  { %p899_p6 = por %p898_p5, %p897_p4 }
  0x13   :  { %p900_p7 = pnand %p899_p6, %p893_p3 }
  0x15   :  { %903 = shalt.err (!%p900_p7)
}
  0x16   :  { %s1118_s21 = smov 128   ;;  %s1119_s22 = smov 8  }
  0x17   :  { %45 = dma.hbm_to_vmem [thread:$0]  %s1378_s1, 1024, %s40_s10, [#allocation6], %s1118_s21, %s1118_s21, %s1119_s22  }
  0x18   :  { %s904_s27 = scalar_lea.hbm %s1380_s3, 16 }
  0x19   :  { %p905_p8 = scmp.ne.s32.totalorder %s1380_s3, %s904_s27  ;;  %p908_p9 = scmp.lt.u32.totalorder %s904_s27, %s1380_s3 }
  0x1b   :  { %p910_p10 = pnand %p908_p9, %p905_p8 }
  0x1d   :  { %913 = shalt.err (!%p910_p10)
}
  0x1e   :  { %s914_s13 = scalar_lea.vmem %s1178_s12, 16  ;;  %s918_s1 = scalar_lea.vmem %s1178_s12, 32 }
  0x1f   :  { %p915_p11 = scmp.ne.s32.totalorder %s1178_s12, %s914_s13  ;;  %p919_p12 = scmp.lt.s32.totalorder %s1178_s12, %s1178_s12 }
  0x20   :  { %p920_p13 = scmp.lt.s32.totalorder %s918_s1, %s914_s13 }
  0x22   :  { %p921_p0 = por %p920_p13, %p919_p12 }
  0x24   :  { %p922_p1 = pnand %p921_p0, %p915_p11 }
  0x26   :  { %925 = shalt.err (!%p922_p1)
}
  0x27   :  { %65 = dma.hbm_to_vmem [thread:$0]  %s1380_s3, 16, %s1178_s12, [#allocation9]  }
  0x28   :  { %s1120_s15 = smov [#allocation11]   ;;  %s1121_s17 = smov [#allocation2]  }
  0x29   :  { %s84_s16 = sshll.u32 %s1120_s15, 4  ;;  %s27_s18 = sshll.u32 %s1121_s17, 4  ;;  %s85_s16 = int_to_ptr.vmem [resolvable:$true] %s84_s16  ;;  %s1213_s18 = int_to_ptr.vmem [resolvable:$true] %s27_s18 }
  0x2a   :  { %s926_s23 = scalar_lea.hbm %s1382_s5, 16 }
  0x2b   :  { %p927_p2 = scmp.ne.s32.totalorder %s1382_s5, %s926_s23  ;;  %p930_p3 = scmp.lt.u32.totalorder %s926_s23, %s1382_s5 }
  0x2d   :  { %p932_p4 = pnand %p930_p3, %p927_p2 }
  0x2f   :  { %935 = shalt.err (!%p932_p4)
}
  0x30   :  { %s936_s3 = scalar_lea.vmem %s85_s16, 16  ;;  %s940_s12 = scalar_lea.vmem %s85_s16, 32 }
  0x31   :  { %p937_p5 = scmp.ne.s32.totalorder %s85_s16, %s936_s3  ;;  %p941_p6 = scmp.lt.s32.totalorder %s85_s16, %s85_s16 }
  0x32   :  { %p942_p7 = scmp.lt.s32.totalorder %s940_s12, %s936_s3 }
  0x34   :  { %p943_p8 = por %p942_p7, %p941_p6 }
  0x36   :  { %p944_p9 = pnand %p943_p8, %p937_p5 }
  0x38   :  { %947 = shalt.err (!%p944_p9)
}
  0x39   :  { %87 = dma.hbm_to_vmem [thread:$0]  %s1382_s5, 16, %s85_s16, [#allocation12]  }
  0x3a   :  { %s948_s13 = scalar_lea.hbm %s1377_s0, 1024 }
  0x3b   :  { %p949_p10 = scmp.ne.s32.totalorder %s1377_s0, %s948_s13  ;;  %p952_p11 = scmp.lt.u32.totalorder %s948_s13, %s1377_s0 }
  0x3d   :  { %p954_p12 = pnand %p952_p11, %p949_p10 }
  0x3f   :  { %957 = shalt.err (!%p954_p12)
}
  0x40   :  { %s958_s17 = scalar_lea.vmem %s1213_s18, 1024  ;;  %p963_p0 = scmp.lt.s32.totalorder %s1213_s18, %s1213_s18 }
  0x41   :  { %p959_p13 = scmp.ne.s32.totalorder %s1213_s18, %s958_s17  ;;  %p964_p1 = scmp.lt.s32.totalorder %s958_s17, %s958_s17 }
  0x43   :  { %p965_p2 = por %p964_p1, %p963_p0 }
  0x45   :  { %p966_p3 = pnand %p965_p2, %p959_p13 }
  0x47   :  { %969 = shalt.err (!%p966_p3)
}
  0x48   :  { %33 = dma.hbm_to_vmem [thread:$0]  %s1377_s0, 1024, %s1213_s18, [#allocation3], %s1118_s21, %s1118_s21, %s1119_s22  }
  0x49   :  { %s1122_s19 = smov [#allocation7]   ;;  %s1123_s23 = smov [#allocation10]  }
  0x4a   :  { %s52_s20 = sshll.u32 %s1122_s19, 4  ;;  %s71_s24 = sshll.u32 %s1123_s23, 4  ;;  %s53_s20 = int_to_ptr.vmem [resolvable:$true] %s52_s20  ;;  %s1247_s24 = int_to_ptr.vmem [resolvable:$true] %s71_s24 }
  0x4b   :  { %s970_s27 = scalar_lea.hbm %s1379_s2, 16 }
  0x4c   :  { %p971_p4 = scmp.ne.s32.totalorder %s1379_s2, %s970_s27  ;;  %p974_p5 = scmp.lt.u32.totalorder %s970_s27, %s1379_s2 }
  0x4e   :  { %p976_p6 = pnand %p974_p5, %p971_p4 }
  0x50   :  { %979 = shalt.err (!%p976_p6)
}
  0x51   :  { %s980_s0 = scalar_lea.vmem %s53_s20, 16  ;;  %s984_s18 = scalar_lea.vmem %s53_s20, 32 }
  0x52   :  { %p981_p7 = scmp.ne.s32.totalorder %s53_s20, %s980_s0  ;;  %p985_p8 = scmp.lt.s32.totalorder %s53_s20, %s53_s20 }
  0x53   :  { %p986_p9 = scmp.lt.s32.totalorder %s984_s18, %s980_s0 }
  0x55   :  { %p987_p10 = por %p986_p9, %p985_p8 }
  0x57   :  { %p988_p11 = pnand %p987_p10, %p981_p7 }
  0x59   :  { %991 = shalt.err (!%p988_p11)
}
  0x5a   :  { %55 = dma.hbm_to_vmem [thread:$0]  %s1379_s2, 16, %s53_s20, [#allocation6]  }
  0x5b   :  { %s992_s10 = scalar_lea.hbm %s1381_s4, 2048 }
  0x5c   :  { %p993_p12 = scmp.ne.s32.totalorder %s1381_s4, %s992_s10  ;;  %p996_p13 = scmp.lt.u32.totalorder %s992_s10, %s1381_s4 }
  0x5e   :  { %p998_p0 = pnand %p996_p13, %p993_p12 }
  0x60   :  { %1001 = shalt.err (!%p998_p0)
}
  0x61   :  { %s1002_s16 = scalar_lea.vmem %s1247_s24, 2048  ;;  %p1007_p2 = scmp.lt.s32.totalorder %s1247_s24, %s1247_s24 }
  0x62   :  { %p1003_p1 = scmp.ne.s32.totalorder %s1247_s24, %s1002_s16  ;;  %p1008_p3 = scmp.lt.s32.totalorder %s1002_s16, %s1002_s16 }
  0x64   :  { %p1009_p4 = por %p1008_p3, %p1007_p2 }
  0x66   :  { %p1010_p5 = pnand %p1009_p4, %p1003_p1 }
  0x68   :  { %1013 = shalt.err (!%p1010_p5)
}
  0x69   :  { %77 = dma.hbm_to_vmem [thread:$0]  %s1381_s4, 2048, %s1247_s24, [#allocation9], %s1118_s21, %s1118_s21, %s1119_s22  }
  0x6a   :  { %s1124_s20 = smov [#allocation13]   ;;  %s1125_s25 = smov [#allocation14]  }
  0x6b   :  { %s94_s23 = sshll.u32 %s1124_s20, 4  ;;  %s103_s26 = sshll.u32 %s1125_s25, 4  ;;  %s95_s23 = int_to_ptr.vmem [resolvable:$true] %s94_s23  ;;  %s1281_s26 = int_to_ptr.vmem [resolvable:$true] %s103_s26 }
  0x6c   :  { %s1014_s12 = scalar_lea.hbm %s1383_s6, 64 }
  0x6d   :  { %p1015_p6 = scmp.ne.s32.totalorder %s1383_s6, %s1014_s12  ;;  %p1018_p7 = scmp.lt.u32.totalorder %s1014_s12, %s1383_s6 }
  0x6f   :  { %p1020_p8 = pnand %p1018_p7, %p1015_p6 }
  0x71   :  { %1023 = shalt.err (!%p1020_p8)
}
  0x72   :  { %s1024_s4 = scalar_lea.vmem %s95_s23, 64  ;;  %p1029_p10 = scmp.lt.s32.totalorder %s95_s23, %s95_s23 }
  0x73   :  { %p1025_p9 = scmp.ne.s32.totalorder %s95_s23, %s1024_s4  ;;  %p1030_p11 = scmp.lt.s32.totalorder %s1024_s4, %s1024_s4 }
  0x75   :  { %p1031_p12 = por %p1030_p11, %p1029_p10 }
  0x77   :  { %p1032_p13 = pnand %p1031_p12, %p1025_p9 }
  0x79   :  { %1035 = shalt.err (!%p1032_p13)
}
  0x7a   :  { %97 = dma.hbm_to_vmem [thread:$0]  %s1383_s6, 64, %s95_s23, [#allocation12]  }
  0x7b   :  { %s1036_s1 = scalar_lea.hbm %s1384_s7, 2048 }
  0x7c   :  { %p1037_p0 = scmp.ne.s32.totalorder %s1384_s7, %s1036_s1  ;;  %p1040_p1 = scmp.lt.u32.totalorder %s1036_s1, %s1384_s7 }
  0x7e   :  { %p1042_p2 = pnand %p1040_p1, %p1037_p0 }
  0x80   :  { %1045 = shalt.err (!%p1042_p2)
}
  0x81   :  { %s1046_s5 = scalar_lea.vmem %s1281_s26, 2048  ;;  %p1051_p4 = scmp.lt.s32.totalorder %s1281_s26, %s1281_s26 }
  0x82   :  { %p1047_p3 = scmp.ne.s32.totalorder %s1281_s26, %s1046_s5  ;;  %p1052_p5 = scmp.lt.s32.totalorder %s1046_s5, %s1046_s5 }
  0x84   :  { %p1053_p6 = por %p1052_p5, %p1051_p4 }
  0x86   :  { %p1054_p7 = pnand %p1053_p6, %p1047_p3 }
  0x88   :  { %1057 = shalt.err (!%p1054_p7)
}
  0x89   :  { %109 = dma.hbm_to_vmem [thread:$0]  %s1384_s7, 2048, %s1281_s26, [#allocation15], %s1118_s21, %s1118_s21, %s1119_s22  }
  0x8a   :  { %1102 = dma.done.wait [#allocation3], 1024  }
  0x8b   :  { %1103 = vsyncadd [#allocation3], 4294966272 }
  0x8c   :  { %1104 = dma.done.wait [#allocation6], 1040  }
  0x8d   :  { %1105 = vsyncadd [#allocation6], 4294966256 }
  0x8e   :  { %1106 = dma.done.wait [#allocation9], 2064  }
  0x8f   :  { %1107 = vsyncadd [#allocation9], 4294965232 }
  0x90   :  { %1108 = dma.done.wait [#allocation12], 80  }
  0x91   :  { %1109 = vsyncadd [#allocation12], 4294967216 }
  0x92   :  { %1110 = dma.done.wait [#allocation15], 2048  }
  0x93   :  { %1111 = vsyncadd [#allocation15], 4294965248  ;;  %v180_v0 = vld [vmem:[#allocation10] sm:$0xff]  ;;  %v181_v1 = vld [vmem:[#allocation10 + $0x8] sm:$0xff]  ;;  %vm471_vm0 = vcmask 1042432   ;;  %vm446_vm1 = vcmask 23552  }
  0x94   :  { %v182_v2 = vld [vmem:[#allocation10 + $0x10] sm:$0xff]  ;;  %v796_v3 = vpack.c.bf16 %v181_v1, %v180_v0  ;;  %v183_v4 = vld [vmem:[#allocation10 + $0x18] sm:$0xff]  ;;  %v184_v6 = vld [vmem:[#allocation10 + $0x20] sm:$0xff]  ;;  %s1126_s7 = smov [#allocation16]  }
  0x95   :  { %v800_v5 = vpack.c.bf16 %v183_v4, %v182_v2  ;;  %v185_v7 = vld [vmem:[#allocation10 + $0x28] sm:$0xff]  ;;  %v134_v9 = vld [vmem:[#allocation2] sm:$0xff]  ;;  %v186_v11 = vld [vmem:[#allocation10 + $0x30] sm:$0xff]  ;;  %s593_s2 = sshll.u32 %s1126_s7, 4  ;;  %s594_s2 = int_to_ptr.vmem [resolvable:$true] %s593_s2 }
  0x96   :  { %797 = vmatprep.subr.bf16.mxu0 %v796_v3  ;;  %v804_v8 = vpack.c.bf16 %v185_v7, %v184_v6  ;;  %v1315_v10 = vld [vmem:[#allocation7] ss:$0 sm:$0xff]  ;;  %v1318_v14 = vld [vmem:[#allocation8] ss:$0 sm:$0xff]  ;;  %v188_v17 = vld [vmem:[#allocation10 + $0x40] sm:$0xff]  ;;  %s1058_s19 = scalar_lea.vmem %s594_s2, 1024  ;;  %p1063_p9 = scmp.lt.s32.totalorder %s594_s2, %s594_s2 }
  0x97   :  { %799 = vmatpush3.bf16.msra.mxu0 %v796_v3  ;;  %v187_v12 = vld [vmem:[#allocation10 + $0x38] sm:$0xff]  ;;  %v149_v13 = vmul.f32 %v1315_v10, %v134_v9  ;;  %v325_v18 = vld [vmem:[#allocation14] sm:$0xff]  ;;  %v326_v19 = vld [vmem:[#allocation14 + $0x8] sm:$0xff]  ;;  %p1059_p8 = scmp.ne.s32.totalorder %s594_s2, %s1058_s19  ;;  %p1064_p10 = scmp.lt.s32.totalorder %s1058_s19, %s1058_s19 }
  0x98   :  { %801 = vmatprep.subr.bf16.mxu0 %v800_v5  ;;  %v808_v16 = vpack.c.bf16 %v187_v12, %v186_v11  ;;  %v189_v20 = vld [vmem:[#allocation10 + $0x48] sm:$0xff]  ;;  %v327_v22 = vld [vmem:[#allocation14 + $0x10] sm:$0xff]  ;;  %v328_v23 = vld [vmem:[#allocation14 + $0x18] sm:$0xff]  ;;  %v828_v24 = vpack.c.bf16 %v326_v19, %v325_v18 }
  0x99   :  { %v164_v15 = vadd.f32 %v1318_v14, %v149_v13  ;;  %v812_v25 = vpack.c.bf16 %v189_v20, %v188_v17  ;;  %v832_v26 = vpack.c.bf16 %v328_v23, %v327_v22  ;;  %v329_v27 = vld [vmem:[#allocation14 + $0x20] sm:$0xff]  ;;  %v330_v28 = vld [vmem:[#allocation14 + $0x28] sm:$0xff]  ;;  %v191_v30 = vld [vmem:[#allocation10 + $0x58] sm:$0xff]  ;;  %p1065_p11 = por %p1064_p10, %p1063_p9 }
  0x9a   :  { %v190_v29 = vld [vmem:[#allocation10 + $0x50] sm:$0xff]  ;;  %829 = vmatprep.subr.bf16.mxu1 %v828_v24  ;;  %v836_v31 = vpack.c.bf16 %v330_v28, %v329_v27  ;;  %v332_v34 = vld [vmem:[#allocation14 + $0x38] sm:$0xff]  ;;  %v193_v36 = vld [vmem:[#allocation10 + $0x68] sm:$0xff] }
  0x9b   :  { %803 = vmatpush3.bf16.msra.mxu0 %v800_v5  ;;  %v172_v21 = vmax.f32 %v164_v15, 0.0  ;;  %831 = vmatpush3.bf16.msra.mxu1 %v828_v24  ;;  %v816_v32 = vpack.c.bf16 %v191_v30, %v190_v29  ;;  %v331_v33 = vld [vmem:[#allocation14 + $0x30] sm:$0xff]  ;;  %v192_v35 = vld [vmem:[#allocation10 + $0x60] sm:$0xff]  ;;  %v136_v40 = vld [vmem:[#allocation2 + $0x10] sm:$0xff]  ;;  %p1066_p12 = pnand %p1065_p11, %p1059_p8 }
  0x9c   :  { %805 = vmatprep.subr.bf16.mxu0 %v804_v8  ;;  %833 = vmatprep.subr.bf16.mxu1 %v832_v26  ;;  %v135_v37 = vld [vmem:[#allocation2 + $0x8] sm:$0xff]  ;;  %v840_v38 = vpack.c.bf16 %v332_v34, %v331_v33  ;;  %v820_v39 = vpack.c.bf16 %v193_v36, %v192_v35  ;;  %v334_v42 = vld [vmem:[#allocation14 + $0x48] sm:$0xff]  ;;  %v195_v44 = vld [vmem:[#allocation10 + $0x78] sm:$0xff]  ;;  %v151_v46 = vmul.f32 %v1315_v10, %v136_v40 }
  0x9d   :  { %726 = vmatprep.mubr.f32.mxu0 %v172_v21  ;;  %v333_v41 = vld [vmem:[#allocation14 + $0x40] sm:$0xff]  ;;  %v194_v43 = vld [vmem:[#allocation10 + $0x70] sm:$0xff]  ;;  %v150_v45 = vmul.f32 %v1315_v10, %v135_v37  ;;  %v138_v50 = vld [vmem:[#allocation2 + $0x20] sm:$0xff] }
  0x9e   :  { %v137_v47 = vld [vmem:[#allocation2 + $0x18] sm:$0xff]  ;;  %v844_v48 = vpack.c.bf16 %v334_v42, %v333_v41  ;;  %v824_v49 = vpack.c.bf16 %v195_v44, %v194_v43  ;;  %v336_v52 = vld [vmem:[#allocation14 + $0x58] sm:$0xff]  ;;  %v166_v55 = vadd.f32 %v1318_v14, %v151_v46  ;;  %v153_v56 = vmul.f32 %v1315_v10, %v138_v50  ;;  %v140_v59 = vld [vmem:[#allocation2 + $0x30] sm:$0xff] }
  0x9f   :  { %807 = vmatpush3.bf16.msra.mxu0 %v804_v8  ;;  %835 = vmatpush3.bf16.msra.mxu1 %v832_v26  ;;  %v335_v51 = vld [vmem:[#allocation14 + $0x50] sm:$0xff]  ;;  %v165_v53 = vadd.f32 %v1318_v14, %v150_v45  ;;  %v152_v54 = vmul.f32 %v1315_v10, %v137_v47  ;;  %v139_v57 = vld [vmem:[#allocation2 + $0x28] sm:$0xff]  ;;  %v338_v61 = vld [vmem:[#allocation14 + $0x68] sm:$0xff]  ;;  %v155_v3 = vmul.f32 %v1315_v10, %v140_v59 }
  0xa0   :  { %809 = vmatprep.subr.bf16.mxu0 %v808_v16  ;;  %837 = vmatprep.subr.bf16.mxu1 %v836_v31  ;;  %v848_v58 = vpack.c.bf16 %v336_v52, %v335_v51  ;;  %v337_v60 = vld [vmem:[#allocation14 + $0x60] sm:$0xff]  ;;  %v154_v0 = vmul.f32 %v1315_v10, %v139_v57  ;;  %v174_v1 = vmax.f32 %v166_v55, 0.0  ;;  %v168_v2 = vadd.f32 %v1318_v14, %v153_v56  ;;  %v141_v4 = vld [vmem:[#allocation2 + $0x38] sm:$0xff]  ;;  %v340_v18 = vld [vmem:[#allocation14 + $0x78] sm:$0xff] }
  0xa1   :  { %v173_v62 = vmax.f32 %v165_v53, 0.0  ;;  %v167_v63 = vadd.f32 %v1318_v14, %v152_v54  ;;  %v852_v5 = vpack.c.bf16 %v338_v61, %v337_v60  ;;  %v156_v8 = vmul.f32 %v1315_v10, %v141_v4  ;;  %v339_v17 = vld [vmem:[#allocation14 + $0x70] sm:$0xff]  ;;  %v324_v19 = vld [vmem:[#allocation13] sm:$0x7]  ;;  %v318_v21 = vld [vmem:[#allocation5 + $0x10] sm:$0xff] }
  0xa2   :  { %v169_v7 = vadd.f32 %v1318_v14, %v154_v0  ;;  %v176_v9 = vmax.f32 %v168_v2, 0.0  ;;  %v170_v11 = vadd.f32 %v1318_v14, %v155_v3  ;;  %v856_v10 = vpack.c.bf16 %v340_v18, %v339_v17  ;;  %v316_v20 = vld [vmem:[#allocation5] sm:$0xff]  ;;  %v319_v22 = vld [vmem:[#allocation5 + $0x18] sm:$0xff]  ;;  %v321_v41 = vld [vmem:[#allocation5 + $0x28] sm:$0xff] }
  0xa3   :  { %811 = vmatpush3.bf16.msra.mxu0 %v808_v16  ;;  %839 = vmatpush3.bf16.msra.mxu1 %v836_v31  ;;  %v175_v6 = vmax.f32 %v167_v63, 0.0  ;;  %v171_v13 = vadd.f32 %v1318_v14, %v156_v8  ;;  %v317_v14 = vld [vmem:[#allocation5 + $0x8] sm:$0xff]  ;;  %v627_v23 = vld [vmem:[#allocation11] ss:$0 sm:$0xff]  ;;  %v322_v42 = vld [vmem:[#allocation5 + $0x30] sm:$0xff] }
  0xa4   :  { %813 = vmatprep.subr.bf16.mxu0 %v812_v25  ;;  %841 = vmatprep.subr.bf16.mxu1 %v840_v38  ;;  %v177_v12 = vmax.f32 %v169_v7, 0.0  ;;  %v178_v15 = vmax.f32 %v170_v11, 0.0  ;;  %v320_v40 = vld [vmem:[#allocation5 + $0x20] sm:$0xff]  ;;  %v323_v43 = vld [vmem:[#allocation5 + $0x38] sm:$0xff] }
  0xa5   :  { %v179_v16 = vmax.f32 %v171_v13, 0.0 }
  0xa7   :  { %815 = vmatpush3.bf16.msra.mxu0 %v812_v25  ;;  %843 = vmatpush3.bf16.msra.mxu1 %v840_v38 }
  0xa8   :  { %817 = vmatprep.subr.bf16.mxu0 %v816_v32  ;;  %845 = vmatprep.subr.bf16.mxu1 %v844_v48 }
  0xab   :  { %819 = vmatpush3.bf16.msra.mxu0 %v816_v32  ;;  %847 = vmatpush3.bf16.msra.mxu1 %v844_v48 }
  0xac   :  { %821 = vmatprep.subr.bf16.mxu0 %v820_v39  ;;  %849 = vmatprep.subr.bf16.mxu1 %v848_v58 }
  0xaf   :  { %823 = vmatpush3.bf16.msra.mxu0 %v820_v39  ;;  %851 = vmatpush3.bf16.msra.mxu1 %v848_v58 }
  0xb0   :  { %825 = vmatprep.subr.bf16.mxu0 %v824_v49  ;;  %853 = vmatprep.subr.bf16.mxu1 %v852_v5 }
  0xb3   :  { %827 = vmatpush3.bf16.msra.mxu0 %v824_v49  ;;  %855 = vmatpush3.bf16.msra.mxu1 %v852_v5 }
  0xb4   :  { %857 = vmatprep.subr.bf16.mxu1 %v856_v10  ;;  %782 = vmatprep.subr.msk.mxu0 %vm471_vm0, %v324_v19 }
  0xb6   :  { %727 = vmatmul.mubr.f32.vlgmr.msra.gmra.mrb[0].mxu0 %v173_v62 }
  0xb7   :  { %729 = vmatprep.mubr.f32.mxu0 %v174_v1  ;;  %859 = vmatpush3.bf16.msra.mxu1 %v856_v10 }
  0xb8   :  { %860 = vmatprep.subr.msk.mxu1 %vm471_vm0, %v324_v19  ;;  %783 = vmatpush3.msk.msra.mxu0 %vm471_vm0, %v324_v19 }
  0xba   :  { %730 = vmatmul.mubr.f32.gmra.mrb[2].mxu0 %v175_v6 }
  0xbb   :  { %732 = vmatprep.mubr.f32.mxu0 %v176_v9 }
  0xbe   :  { %733 = vmatmul.mubr.f32.gmra.mrb[4].mxu0 %v177_v12 }
  0xbf   :  { %735 = vmatprep.mubr.f32.mxu0 %v178_v15 }
  0xc2   :  { %736 = vmatmul.mubr.f32.gmra.mrb[6].mxu0 %v179_v16 }
  0xc3   :  { %784 = vmatprep.mubr.msk.f32.mxu0 %vm446_vm1, %v316_v20 }
  0xc6   :  { %785 = vmatmul.mubr.msk.f32.vlgmr.msra.gmra.mrb[8].mxu0 %vm446_vm1, %v317_v14 }
  0xc7   :  { %787 = vmatprep.mubr.msk.f32.mxu0 %vm446_vm1, %v318_v21 }
  0xca   :  { %788 = vmatmul.mubr.msk.f32.gmra.mrb[10].mxu0 %vm446_vm1, %v319_v22 }
 0x189   :  { %v728_v24 = vpop.f32.mrb[0].mxu0 }
 0x18a   :  { %v275_v25 = vadd.f32 %v728_v24, %v627_v23  ;;  %v269_v26 = vpop.f32.mrb[1].mxu0 }
 0x18b   :  { %v270_v27 = vadd.f32 %v627_v23, %v269_v26 }
 0x18c   :  { %309 = vst [vmem:[#allocation16 + $0x8] sm:$0xff] %v275_v25 }
 0x18d   :  { %308 = vst [vmem:[#allocation16] sm:$0xff] %v270_v27  ;;  %v731_v28 = vpop.f32.mrb[2].mxu0  ;;  %770 = vmatprep.mubr.f32.mxu1 %v270_v27 }
 0x18e   :  { %v285_v29 = vadd.f32 %v731_v28, %v627_v23  ;;  %v279_v30 = vpop.f32.mrb[3].mxu0  ;;  %771 = vmatmul.mubr.f32.vlgmr.msra.gmra.mrb[0].mxu1 %v275_v25 }
 0x18f   :  { %v280_v31 = vadd.f32 %v627_v23, %v279_v30  ;;  %861 = vmatpush3.msk.msra.mxu1 %vm471_vm0, %v324_v19 }
 0x190   :  { %311 = vst [vmem:[#allocation16 + $0x18] sm:$0xff] %v285_v29 }
 0x191   :  { %310 = vst [vmem:[#allocation16 + $0x10] sm:$0xff] %v280_v31  ;;  %v734_v32 = vpop.f32.mrb[4].mxu0  ;;  %773 = vmatprep.mubr.f32.mxu1 %v280_v31 }
 0x192   :  { %v295_v33 = vadd.f32 %v734_v32, %v627_v23  ;;  %v289_v34 = vpop.f32.mrb[5].mxu0  ;;  %774 = vmatmul.mubr.f32.gmra.mrb[2].mxu1 %v285_v29 }
 0x193   :  { %v290_v35 = vadd.f32 %v627_v23, %v289_v34 }
 0x194   :  { %313 = vst [vmem:[#allocation16 + $0x28] sm:$0xff] %v295_v33 }
 0x195   :  { %312 = vst [vmem:[#allocation16 + $0x20] sm:$0xff] %v290_v35  ;;  %v737_v36 = vpop.f32.mrb[6].mxu0  ;;  %776 = vmatprep.mubr.f32.mxu1 %v290_v35 }
 0x196   :  { %v305_v37 = vadd.f32 %v737_v36, %v627_v23  ;;  %v299_v38 = vpop.f32.mrb[7].mxu0  ;;  %777 = vmatmul.mubr.f32.gmra.mrb[4].mxu1 %v295_v33 }
 0x197   :  { %v300_v39 = vadd.f32 %v627_v23, %v299_v38 }
 0x198   :  { %315 = vst [vmem:[#allocation16 + $0x38] sm:$0xff] %v305_v37 }
 0x199   :  { %314 = vst [vmem:[#allocation16 + $0x30] sm:$0xff] %v300_v39  ;;  %779 = vmatprep.mubr.f32.mxu1 %v300_v39  ;;  %v786_v44 = vpop.f32.mrb[8].mxu0 }
 0x19a   :  { %780 = vmatmul.mubr.f32.gmra.mrb[6].mxu1 %v305_v37  ;;  %v541_v45 = vpop.f32.mrb[9].mxu0 }
 0x19b   :  { %790 = vmatprep.mubr.msk.f32.mxu1 %vm446_vm1, %v320_v40 }
 0x19d   :  { %v789_v46 = vpop.f32.mrb[10].mxu0 }
 0x19e   :  { %791 = vmatmul.mubr.msk.f32.vlgmr.msra.gmra.mrb[4].mxu1 %vm446_vm1, %v321_v41  ;;  %v551_v47 = vpop.f32.mrb[11].mxu0 }
 0x19f   :  { %793 = vmatprep.mubr.msk.f32.mxu1 %vm446_vm1, %v322_v42 }
 0x1a2   :  { %794 = vmatmul.mubr.msk.f32.gmra.mrb[6].mxu1 %vm446_vm1, %v323_v43 }
 0x1a3   :  { %1069 = shalt.err (!%p1066_p12)
}
 0x1a4   :  { %s1070_s25 = scalar_lea.hbm %s1385_s8, 1024 }
 0x1a5   :  { %p1071_p13 = scmp.ne.s32.totalorder %s1385_s8, %s1070_s25  ;;  %p1074_p0 = scmp.lt.u32.totalorder %s1070_s25, %s1385_s8 }
 0x1a7   :  { %p1076_p1 = pnand %p1074_p0, %p1071_p13 }
 0x1a9   :  { %1079 = shalt.err (!%p1076_p1)
}
 0x1aa   :  { %599 = dma.vmem_to_hbm [thread:$0]  %s594_s2, 1024, %s1385_s8, [#allocation4], %s1118_s21, %s1118_s21, %s1119_s22  }
 0x1ab   :  { %s1127_s0 = smov [#allocation17]  }
 0x1ac   :  { %s605_s18 = sshll.u32 %s1127_s0, 4  ;;  %s606_s18 = int_to_ptr.vmem [resolvable:$true] %s605_s18 }
 0x1ad   :  { %s1080_s8 = scalar_lea.vmem %s606_s18, 1024  ;;  %p1085_p3 = scmp.lt.s32.totalorder %s606_s18, %s606_s18 }
 0x1ae   :  { %p1081_p2 = scmp.ne.s32.totalorder %s606_s18, %s1080_s8  ;;  %p1086_p4 = scmp.lt.s32.totalorder %s1080_s8, %s1080_s8 }
 0x1b0   :  { %p1087_p5 = por %p1086_p4, %p1085_p3 }
 0x1b2   :  { %p1088_p6 = pnand %p1087_p5, %p1081_p2 }
 0x261   :  { %v772_v48 = vpop.f32.mrb[0].mxu1 }
 0x262   :  { %v547_v49 = vadd.f32 %v786_v44, %v772_v48  ;;  %v407_v50 = vpop.f32.mrb[1].mxu1 }
 0x263   :  { %v542_v51 = vadd.f32 %v541_v45, %v407_v50 }
 0x264   :  { %581 = vst [vmem:[#allocation17 + $0x8] sm:$0xff] %v547_v49 }
 0x265   :  { %580 = vst [vmem:[#allocation17] sm:$0xff] %v542_v51  ;;  %v775_v52 = vpop.f32.mrb[2].mxu1 }
 0x266   :  { %v557_v53 = vadd.f32 %v789_v46, %v775_v52  ;;  %v417_v54 = vpop.f32.mrb[3].mxu1 }
 0x267   :  { %v552_v55 = vadd.f32 %v551_v47, %v417_v54 }
 0x268   :  { %583 = vst [vmem:[#allocation17 + $0x18] sm:$0xff] %v557_v53 }
 0x269   :  { %582 = vst [vmem:[#allocation17 + $0x10] sm:$0xff] %v552_v55 }
 0x271   :  { %v792_v56 = vpop.f32.mrb[4].mxu1 }
 0x272   :  { %585 = vst [vmem:[#allocation17 + $0x28] sm:$0xff] %v792_v56  ;;  %v561_v57 = vpop.f32.mrb[5].mxu1 }
 0x273   :  { %584 = vst [vmem:[#allocation17 + $0x20] sm:$0xff] %v561_v57 }
 0x275   :  { %v795_v58 = vpop.f32.mrb[6].mxu1 }
 0x276   :  { %587 = vst [vmem:[#allocation17 + $0x38] sm:$0xff] %v795_v58  ;;  %v571_v59 = vpop.f32.mrb[7].mxu1 }
 0x277   :  { %586 = vst [vmem:[#allocation17 + $0x30] sm:$0xff] %v571_v59 }
 0x278   :  { %1091 = shalt.err (!%p1088_p6)
}
 0x279   :  { %s1092_s30 = scalar_lea.hbm %s1386_s9, 1024 }
 0x27a   :  { %p1093_p7 = scmp.ne.s32.totalorder %s1386_s9, %s1092_s30  ;;  %p1096_p8 = scmp.lt.u32.totalorder %s1092_s30, %s1386_s9 }
 0x27c   :  { %p1098_p9 = pnand %p1096_p8, %p1093_p7 }
 0x27e   :  { %1101 = shalt.err (!%p1098_p9)
}
 0x27f   :  { %611 = dma.vmem_to_hbm [thread:$0]  %s606_s18, 1024, %s1386_s9, [#allocation18], %s1118_s21, %s1118_s21, %s1119_s22  }
 0x280   :  { %1112 = dma.done.wait [#allocation4], 1024  }
 0x281   :  { %1113 = vsyncadd [#allocation4], 4294966272 }
 0x282   :  { %1114 = dma.done.wait [#allocation18], 1024  }
 0x283   :  { %1115 = vsyncadd [#allocation18], 4294966272 }
 0x284   :  { %618 = vsyncpa [#allocation3], 1 }
 0x285   :  { %619 = vsyncpa [#allocation6], 1 }
 0x286   :  { %620 = vsyncpa [#allocation9], 1 }
 0x287   :  { %621 = vsyncpa [#allocation12], 1 }
 0x288   :  { %622 = vsyncpa [#allocation15], 1 }
 0x289   :  { %623 = vsyncpa [#allocation4], 1 }
 0x28a   :  { %624 = vsyncpa [#allocation18], 1 }

// kernel: point_gnn_con_forward.6
= control target key start
LH: loop header
LB: loop body
LE: loop exit
PB: predicated region body
PF: predicated region fallthrough
CT: control target
= control target key end

     0   :  { %17 = vsyncpa [#allocation3], 0  ;;  %s1837_s0 = inlined_call_operand.hbm [shape: f32[64,5], index: 0, kind: input, shape index: {}]   ;;  %s1838_s1 = inlined_call_operand.hbm [shape: f32[64,3], index: 1, kind: input, shape index: {}]   ;;  %s1839_s2 = inlined_call_operand.hbm [shape: f32[5,128], index: 2, kind: input, shape index: {}]   ;;  %s1840_s3 = inlined_call_operand.hbm [shape: f32[1,128], index: 3, kind: input, shape index: {}]   ;;  %s1841_s4 = inlined_call_operand.hbm [shape: f32[128,128], index: 4, kind: input, shape index: {}]   ;;  %s1842_s5 = inlined_call_operand.hbm [shape: f32[1,128], index: 5, kind: input, shape index: {}]   ;;  %s1843_s6 = inlined_call_operand.hbm [shape: f32[128,128], index: 6, kind: input, shape index: {}]   ;;  %s1844_s7 = inlined_call_operand.hbm [shape: f32[1,128], index: 7, kind: input, shape index: {}]   ;;  %s1845_s8 = inlined_call_operand.hbm [shape: f32[3,128], index: 8, kind: input, shape index: {}]   ;;  %s1846_s9 = inlined_call_operand.hbm [shape: f32[128,128], index: 9, kind: input, shape index: {}]   ;;  %s1847_s10 = inlined_call_operand.hbm [shape: f32[64,128], index: 10, kind: output, shape index: {0}]   ;;  %s1848_s11 = inlined_call_operand.hbm [shape: f32[64,128], index: 11, kind: output, shape index: {1}]  }
   0x1   :  { %18 = vsyncpa [#allocation6], 0 }
   0x2   :  { %19 = vsyncpa [#allocation9], 0 }
   0x3   :  { %20 = vsyncpa [#allocation12], 0 }
   0x4   :  { %21 = vsyncpa [#allocation15], 0 }
   0x5   :  { %22 = vsyncpa [#allocation18], 0 }
   0x6   :  { %23 = vsyncpa [#allocation4], 0 }
   0x7   :  { %24 = vsyncpa [#allocation21], 0  ;;  %s1566_s17 = smov [#allocation5]   ;;  %s1567_s19 = smov [#allocation8]  }
   0x8   :  { %s42_s18 = sshll.u32 %s1566_s17, 4  ;;  %s65_s20 = sshll.u32 %s1567_s19, 4  ;;  %s43_s18 = int_to_ptr.vmem [resolvable:$true] %s42_s18  ;;  %s1640_s20 = int_to_ptr.vmem [resolvable:$true] %s65_s20 }
   0x9   :  { %s1286_s23 = scalar_lea.hbm %s1838_s1, 1024 }
   0xa   :  { %p1287_p0 = scmp.ne.s32.totalorder %s1838_s1, %s1286_s23  ;;  %p1290_p1 = scmp.lt.u32.totalorder %s1286_s23, %s1838_s1 }
   0xc   :  { %p1292_p2 = pnand %p1290_p1, %p1287_p0 }
   0xe   :  { %1295 = shalt.err (!%p1292_p2)
}
   0xf   :  { %s1296_s28 = scalar_lea.vmem %s43_s18, 1024  ;;  %p1301_p4 = scmp.lt.s32.totalorder %s43_s18, %s43_s18 }
  0x10   :  { %p1297_p3 = scmp.ne.s32.totalorder %s43_s18, %s1296_s28  ;;  %p1302_p5 = scmp.lt.s32.totalorder %s1296_s28, %s1296_s28 }
  0x12   :  { %p1303_p6 = por %p1302_p5, %p1301_p4 }
  0x14   :  { %p1304_p7 = pnand %p1303_p6, %p1297_p3 }
  0x16   :  { %1307 = shalt.err (!%p1304_p7)
}
  0x17   :  { %s1568_s29 = smov 128   ;;  %s1569_s30 = smov 8  }
  0x18   :  { %48 = dma.hbm_to_vmem [thread:$0]  %s1838_s1, 1024, %s43_s18, [#allocation6], %s1568_s29, %s1568_s29, %s1569_s30  }
  0x19   :  { %s1308_s16 = scalar_lea.hbm %s1840_s3, 16 }
  0x1a   :  { %p1309_p8 = scmp.ne.s32.totalorder %s1840_s3, %s1308_s16  ;;  %p1312_p9 = scmp.lt.u32.totalorder %s1308_s16, %s1840_s3 }
  0x1c   :  { %p1314_p10 = pnand %p1312_p9, %p1309_p8 }
  0x1e   :  { %1317 = shalt.err (!%p1314_p10)
}
  0x1f   :  { %s1318_s23 = scalar_lea.vmem %s1640_s20, 16  ;;  %s1322_s1 = scalar_lea.vmem %s1640_s20, 32 }
  0x20   :  { %p1319_p11 = scmp.ne.s32.totalorder %s1640_s20, %s1318_s23  ;;  %p1323_p12 = scmp.lt.s32.totalorder %s1640_s20, %s1640_s20 }
  0x21   :  { %p1324_p13 = scmp.lt.s32.totalorder %s1322_s1, %s1318_s23 }
  0x23   :  { %p1325_p0 = por %p1324_p13, %p1323_p12 }
  0x25   :  { %p1326_p1 = pnand %p1325_p0, %p1319_p11 }
  0x27   :  { %1329 = shalt.err (!%p1326_p1)
}
  0x28   :  { %68 = dma.hbm_to_vmem [thread:$0]  %s1840_s3, 16, %s1640_s20, [#allocation9]  }
  0x29   :  { %s1570_s25 = smov [#allocation11]   ;;  %s1571_s27 = smov [#allocation14]  }
  0x2a   :  { %s87_s26 = sshll.u32 %s1570_s25, 4  ;;  %s109_s28 = sshll.u32 %s1571_s27, 4  ;;  %s88_s26 = int_to_ptr.vmem [resolvable:$true] %s87_s26  ;;  %s110_s28 = int_to_ptr.vmem [resolvable:$true] %s109_s28 }
  0x2b   :  { %s1330_s14 = scalar_lea.hbm %s1842_s5, 16 }
  0x2c   :  { %p1331_p2 = scmp.ne.s32.totalorder %s1842_s5, %s1330_s14  ;;  %p1334_p3 = scmp.lt.u32.totalorder %s1330_s14, %s1842_s5 }
  0x2e   :  { %p1336_p4 = pnand %p1334_p3, %p1331_p2 }
  0x30   :  { %1339 = shalt.err (!%p1336_p4)
}
  0x31   :  { %s1340_s3 = scalar_lea.vmem %s88_s26, 16  ;;  %s1344_s20 = scalar_lea.vmem %s88_s26, 32 }
  0x32   :  { %p1341_p5 = scmp.ne.s32.totalorder %s88_s26, %s1340_s3  ;;  %p1345_p6 = scmp.lt.s32.totalorder %s88_s26, %s88_s26 }
  0x33   :  { %p1346_p7 = scmp.lt.s32.totalorder %s1344_s20, %s1340_s3 }
  0x35   :  { %p1347_p8 = por %p1346_p7, %p1345_p6 }
  0x37   :  { %p1348_p9 = pnand %p1347_p8, %p1341_p5 }
  0x39   :  { %1351 = shalt.err (!%p1348_p9)
}
  0x3a   :  { %90 = dma.hbm_to_vmem [thread:$0]  %s1842_s5, 16, %s88_s26, [#allocation12]  }
  0x3b   :  { %s1352_s18 = scalar_lea.hbm %s1844_s7, 16 }
  0x3c   :  { %p1353_p10 = scmp.ne.s32.totalorder %s1844_s7, %s1352_s18  ;;  %p1356_p11 = scmp.lt.u32.totalorder %s1352_s18, %s1844_s7 }
  0x3e   :  { %p1358_p12 = pnand %p1356_p11, %p1353_p10 }
  0x40   :  { %1361 = shalt.err (!%p1358_p12)
}
  0x41   :  { %s1362_s13 = scalar_lea.vmem %s110_s28, 16  ;;  %s1366_s14 = scalar_lea.vmem %s110_s28, 32 }
  0x42   :  { %p1363_p13 = scmp.ne.s32.totalorder %s110_s28, %s1362_s13  ;;  %p1367_p0 = scmp.lt.s32.totalorder %s110_s28, %s110_s28 }
  0x43   :  { %p1368_p1 = scmp.lt.s32.totalorder %s1366_s14, %s1362_s13 }
  0x45   :  { %p1369_p2 = por %p1368_p1, %p1367_p0 }
  0x47   :  { %p1370_p3 = pnand %p1369_p2, %p1363_p13 }
  0x49   :  { %1373 = shalt.err (!%p1370_p3)
}
  0x4a   :  { %112 = dma.hbm_to_vmem [thread:$0]  %s1844_s7, 16, %s110_s28, [#allocation15]  }
  0x4b   :  { %s1572_s15 = smov [#allocation2]   ;;  %s1573_s17 = smov [#allocation7]  }
  0x4c   :  { %s30_s16 = sshll.u32 %s1572_s15, 4  ;;  %s55_s19 = sshll.u32 %s1573_s17, 4  ;;  %s31_s16 = int_to_ptr.vmem [resolvable:$true] %s30_s16  ;;  %s56_s19 = int_to_ptr.vmem [resolvable:$true] %s55_s19 }
  0x4d   :  { %s1374_s21 = scalar_lea.hbm %s1837_s0, 1024 }
  0x4e   :  { %p1375_p4 = scmp.ne.s32.totalorder %s1837_s0, %s1374_s21  ;;  %p1378_p5 = scmp.lt.u32.totalorder %s1374_s21, %s1837_s0 }
  0x50   :  { %p1380_p6 = pnand %p1378_p5, %p1375_p4 }
  0x52   :  { %1383 = shalt.err (!%p1380_p6)
}
  0x53   :  { %s1384_s7 = scalar_lea.vmem %s31_s16, 1024  ;;  %p1389_p8 = scmp.lt.s32.totalorder %s31_s16, %s31_s16 }
  0x54   :  { %p1385_p7 = scmp.ne.s32.totalorder %s31_s16, %s1384_s7  ;;  %p1390_p9 = scmp.lt.s32.totalorder %s1384_s7, %s1384_s7 }
  0x56   :  { %p1391_p10 = por %p1390_p9, %p1389_p8 }
  0x58   :  { %p1392_p11 = pnand %p1391_p10, %p1385_p7 }
  0x5a   :  { %1395 = shalt.err (!%p1392_p11)
}
  0x5b   :  { %36 = dma.hbm_to_vmem [thread:$0]  %s1837_s0, 1024, %s31_s16, [#allocation3], %s1568_s29, %s1568_s29, %s1569_s30  }
  0x5c   :  { %s1396_s12 = scalar_lea.hbm %s1839_s2, 128 }
  0x5d   :  { %p1397_p12 = scmp.ne.s32.totalorder %s1839_s2, %s1396_s12  ;;  %p1400_p13 = scmp.lt.u32.totalorder %s1396_s12, %s1839_s2 }
  0x5f   :  { %p1402_p0 = pnand %p1400_p13, %p1397_p12 }
  0x61   :  { %1405 = shalt.err (!%p1402_p0)
}
  0x62   :  { %s1406_s15 = scalar_lea.vmem %s56_s19, 128  ;;  %p1411_p2 = scmp.lt.s32.totalorder %s56_s19, %s56_s19 }
  0x63   :  { %p1407_p1 = scmp.ne.s32.totalorder %s56_s19, %s1406_s15  ;;  %p1412_p3 = scmp.lt.s32.totalorder %s1406_s15, %s1406_s15 }
  0x65   :  { %p1413_p4 = por %p1412_p3, %p1411_p2 }
  0x67   :  { %p1414_p5 = pnand %p1413_p4, %p1407_p1 }
  0x69   :  { %1417 = shalt.err (!%p1414_p5)
}
  0x6a   :  { %58 = dma.hbm_to_vmem [thread:$0]  %s1839_s2, 128, %s56_s19, [#allocation6]  }
  0x6b   :  { %s1574_s17 = smov [#allocation10]   ;;  %s1575_s20 = smov [#allocation13]  }
  0x6c   :  { %s74_s3 = sshll.u32 %s1574_s17, 4  ;;  %s96_s21 = sshll.u32 %s1575_s20, 4  ;;  %s75_s3 = int_to_ptr.vmem [resolvable:$true] %s74_s3  ;;  %s1726_s21 = int_to_ptr.vmem [resolvable:$true] %s96_s21 }
  0x6d   :  { %s1418_s1 = scalar_lea.hbm %s1841_s4, 2048 }
  0x6e   :  { %p1419_p6 = scmp.ne.s32.totalorder %s1841_s4, %s1418_s1  ;;  %p1422_p7 = scmp.lt.u32.totalorder %s1418_s1, %s1841_s4 }
  0x70   :  { %p1424_p8 = pnand %p1422_p7, %p1419_p6 }
  0x72   :  { %1427 = shalt.err (!%p1424_p8)
}
  0x73   :  { %s1428_s2 = scalar_lea.vmem %s75_s3, 2048  ;;  %p1433_p10 = scmp.lt.s32.totalorder %s75_s3, %s75_s3 }
  0x74   :  { %p1429_p9 = scmp.ne.s32.totalorder %s75_s3, %s1428_s2  ;;  %p1434_p11 = scmp.lt.s32.totalorder %s1428_s2, %s1428_s2 }
  0x76   :  { %p1435_p12 = por %p1434_p11, %p1433_p10 }
  0x78   :  { %p1436_p13 = pnand %p1435_p12, %p1429_p9 }
  0x7a   :  { %1439 = shalt.err (!%p1436_p13)
}
  0x7b   :  { %80 = dma.hbm_to_vmem [thread:$0]  %s1841_s4, 2048, %s75_s3, [#allocation9], %s1568_s29, %s1568_s29, %s1569_s30  }
  0x7c   :  { %s1440_s13 = scalar_lea.hbm %s1843_s6, 2048 }
  0x7d   :  { %p1441_p0 = scmp.ne.s32.totalorder %s1843_s6, %s1440_s13  ;;  %p1444_p1 = scmp.lt.u32.totalorder %s1440_s13, %s1843_s6 }
  0x7f   :  { %p1446_p2 = pnand %p1444_p1, %p1441_p0 }
  0x81   :  { %1449 = shalt.err (!%p1446_p2)
}
  0x82   :  { %s1450_s0 = scalar_lea.vmem %s1726_s21, 2048  ;;  %p1455_p4 = scmp.lt.s32.totalorder %s1726_s21, %s1726_s21 }
  0x83   :  { %p1451_p3 = scmp.ne.s32.totalorder %s1726_s21, %s1450_s0  ;;  %p1456_p5 = scmp.lt.s32.totalorder %s1450_s0, %s1450_s0 }
  0x85   :  { %p1457_p6 = por %p1456_p5, %p1455_p4 }
  0x87   :  { %p1458_p7 = pnand %p1457_p6, %p1451_p3 }
  0x89   :  { %1461 = shalt.err (!%p1458_p7)
}
  0x8a   :  { %102 = dma.hbm_to_vmem [thread:$0]  %s1843_s6, 2048, %s1726_s21, [#allocation12], %s1568_s29, %s1568_s29, %s1569_s30  }
  0x8b   :  { %s1576_s17 = smov [#allocation16]   ;;  %s1577_s20 = smov [#allocation17]  }
  0x8c   :  { %s119_s3 = sshll.u32 %s1576_s17, 4  ;;  %s128_s22 = sshll.u32 %s1577_s20, 4  ;;  %s120_s3 = int_to_ptr.vmem [resolvable:$true] %s119_s3  ;;  %s1763_s22 = int_to_ptr.vmem [resolvable:$true] %s128_s22 }
  0x8d   :  { %s1462_s18 = scalar_lea.hbm %s1845_s8, 64 }
  0x8e   :  { %p1463_p8 = scmp.ne.s32.totalorder %s1845_s8, %s1462_s18  ;;  %p1466_p9 = scmp.lt.u32.totalorder %s1462_s18, %s1845_s8 }
  0x90   :  { %p1468_p10 = pnand %p1466_p9, %p1463_p8 }
  0x92   :  { %1471 = shalt.err (!%p1468_p10)
}
  0x93   :  { %s1472_s6 = scalar_lea.vmem %s120_s3, 64  ;;  %p1477_p12 = scmp.lt.s32.totalorder %s120_s3, %s120_s3 }
  0x94   :  { %p1473_p11 = scmp.ne.s32.totalorder %s120_s3, %s1472_s6  ;;  %p1478_p13 = scmp.lt.s32.totalorder %s1472_s6, %s1472_s6 }
  0x96   :  { %p1479_p0 = por %p1478_p13, %p1477_p12 }
  0x98   :  { %p1480_p1 = pnand %p1479_p0, %p1473_p11 }
  0x9a   :  { %1483 = shalt.err (!%p1480_p1)
}
  0x9b   :  { %122 = dma.hbm_to_vmem [thread:$0]  %s1845_s8, 64, %s120_s3, [#allocation15]  }
  0x9c   :  { %s1484_s12 = scalar_lea.hbm %s1846_s9, 2048 }
  0x9d   :  { %p1485_p2 = scmp.ne.s32.totalorder %s1846_s9, %s1484_s12  ;;  %p1488_p3 = scmp.lt.u32.totalorder %s1484_s12, %s1846_s9 }
  0x9f   :  { %p1490_p4 = pnand %p1488_p3, %p1485_p2 }
  0xa1   :  { %1493 = shalt.err (!%p1490_p4)
}
  0xa2   :  { %s1494_s15 = scalar_lea.vmem %s1763_s22, 2048  ;;  %p1499_p6 = scmp.lt.s32.totalorder %s1763_s22, %s1763_s22 }
  0xa3   :  { %p1495_p5 = scmp.ne.s32.totalorder %s1763_s22, %s1494_s15  ;;  %p1500_p7 = scmp.lt.s32.totalorder %s1494_s15, %s1494_s15 }
  0xa5   :  { %p1501_p8 = por %p1500_p7, %p1499_p6 }
  0xa7   :  { %p1502_p9 = pnand %p1501_p8, %p1495_p5 }
  0xa9   :  { %1505 = shalt.err (!%p1502_p9)
}
  0xaa   :  { %134 = dma.hbm_to_vmem [thread:$0]  %s1846_s9, 2048, %s1763_s22, [#allocation18], %s1568_s29, %s1568_s29, %s1569_s30  }
  0xab   :  { %1550 = dma.done.wait [#allocation3], 1024  }
  0xac   :  { %1551 = vsyncadd [#allocation3], 4294966272 }
  0xad   :  { %1552 = dma.done.wait [#allocation6], 1152  }
  0xae   :  { %1553 = vsyncadd [#allocation6], 4294966144 }
  0xaf   :  { %1554 = dma.done.wait [#allocation9], 2064  }
  0xb0   :  { %1555 = vsyncadd [#allocation9], 4294965232 }
  0xb1   :  { %1556 = dma.done.wait [#allocation12], 2064  }
  0xb2   :  { %1557 = vsyncadd [#allocation12], 4294965232 }
  0xb3   :  { %1558 = dma.done.wait [#allocation15], 80  }
  0xb4   :  { %1559 = vsyncadd [#allocation15], 4294967216 }
  0xb5   :  { %1560 = dma.done.wait [#allocation18], 2048  }
  0xb6   :  { %1561 = vsyncadd [#allocation18], 4294965248  ;;  %vm206_vm0 = vcmask 1044480   ;;  %vm181_vm1 = vcmask 39936   ;;  %v173_v0 = vld [vmem:[#allocation7] sm:$0x1f] }
  0xb7   :  { %v165_v1 = vld [vmem:[#allocation2] sm:$0xff]  ;;  %v166_v2 = vld [vmem:[#allocation2 + $0x8] sm:$0xff]  ;;  %1008 = vmatprep.subr.msk.mxu0 %vm206_vm0, %v173_v0  ;;  %v167_v3 = vld [vmem:[#allocation2 + $0x10] sm:$0xff]  ;;  %vm742_vm2 = vcmask 1042432   ;;  %vm717_vm3 = vcmask 23552   ;;  %s1578_s9 = smov [#allocation19]  }
  0xb8   :  { %1010 = vmatprep.mubr.msk.f32.mxu0 %vm181_vm1, %v165_v1  ;;  %1009 = vmatpush3.msk.msra.mxu0 %vm206_vm0, %v173_v0  ;;  %v323_v4 = vld [vmem:[#allocation10] sm:$0xff]  ;;  %v324_v5 = vld [vmem:[#allocation10 + $0x8] sm:$0xff]  ;;  %v325_v6 = vld [vmem:[#allocation10 + $0x10] sm:$0xff]  ;;  %s864_s4 = sshll.u32 %s1578_s9, 4  ;;  %s865_s4 = int_to_ptr.vmem [resolvable:$true] %s864_s4 }
  0xb9   :  { %1011 = vmatmul.mubr.msk.f32.vlgmr.msra.gmra.mrb[0].mxu0 %vm181_vm1, %v166_v2  ;;  %v168_v7 = vld [vmem:[#allocation2 + $0x18] sm:$0xff]  ;;  %v1168_v8 = vpack.c.bf16 %v324_v5, %v323_v4  ;;  %v326_v9 = vld [vmem:[#allocation10 + $0x18] sm:$0xff]  ;;  %v327_v12 = vld [vmem:[#allocation10 + $0x20] sm:$0xff]  ;;  %s1506_s16 = scalar_lea.vmem %s865_s4, 1024  ;;  %p1511_p11 = scmp.lt.s32.totalorder %s865_s4, %s865_s4 }
  0xba   :  { %1013 = vmatprep.mubr.msk.f32.mxu0 %vm181_vm1, %v167_v3  ;;  %v169_v10 = vld [vmem:[#allocation2 + $0x20] sm:$0xff]  ;;  %v1172_v11 = vpack.c.bf16 %v326_v9, %v325_v6  ;;  %v328_v13 = vld [vmem:[#allocation10 + $0x28] sm:$0xff]  ;;  %v170_v14 = vld [vmem:[#allocation2 + $0x28] sm:$0xff]  ;;  %p1507_p10 = scmp.ne.s32.totalorder %s865_s4, %s1506_s16  ;;  %p1512_p12 = scmp.lt.s32.totalorder %s1506_s16, %s1506_s16 }
  0xbb   :  { %1169 = vmatprep.subr.bf16.mxu1 %v1168_v8  ;;  %v1176_v15 = vpack.c.bf16 %v328_v13, %v327_v12  ;;  %v171_v16 = vld [vmem:[#allocation2 + $0x30] sm:$0xff]  ;;  %v329_v17 = vld [vmem:[#allocation10 + $0x30] sm:$0xff]  ;;  %v330_v18 = vld [vmem:[#allocation10 + $0x38] sm:$0xff] }
  0xbc   :  { %1171 = vmatpush3.bf16.msra.mxu1 %v1168_v8  ;;  %v172_v19 = vld [vmem:[#allocation2 + $0x38] sm:$0xff]  ;;  %v1180_v20 = vpack.c.bf16 %v330_v18, %v329_v17  ;;  %v331_v21 = vld [vmem:[#allocation10 + $0x40] sm:$0xff]  ;;  %v334_v25 = vld [vmem:[#allocation10 + $0x58] sm:$0xff]  ;;  %p1513_p13 = por %p1512_p12, %p1511_p11 }
  0xbd   :  { %1014 = vmatmul.mubr.msk.f32.gmra.mrb[2].mxu0 %vm181_vm1, %v168_v7  ;;  %1173 = vmatprep.subr.bf16.mxu1 %v1172_v11  ;;  %v332_v22 = vld [vmem:[#allocation10 + $0x48] sm:$0xff]  ;;  %v333_v24 = vld [vmem:[#allocation10 + $0x50] sm:$0xff]  ;;  %v335_v27 = vld [vmem:[#allocation10 + $0x60] sm:$0xff] }
  0xbe   :  { %1016 = vmatprep.mubr.msk.f32.mxu0 %vm181_vm1, %v169_v10  ;;  %v1184_v23 = vpack.c.bf16 %v332_v22, %v331_v21  ;;  %v1188_v26 = vpack.c.bf16 %v334_v25, %v333_v24  ;;  %v336_v28 = vld [vmem:[#allocation10 + $0x68] sm:$0xff]  ;;  %v337_v30 = vld [vmem:[#allocation10 + $0x70] sm:$0xff]  ;;  %v338_v31 = vld [vmem:[#allocation10 + $0x78] sm:$0xff]  ;;  %p1514_p0 = pnand %p1513_p13, %p1507_p10 }
  0xbf   :  { %v1192_v29 = vpack.c.bf16 %v336_v28, %v335_v27  ;;  %v1196_v32 = vpack.c.bf16 %v338_v31, %v337_v30  ;;  %v451_v33 = vld [vmem:[#allocation13] sm:$0xff]  ;;  %v452_v34 = vld [vmem:[#allocation13 + $0x8] sm:$0xff]  ;;  %v453_v35 = vld [vmem:[#allocation13 + $0x10] sm:$0xff] }
  0xc0   :  { %1175 = vmatpush3.bf16.msra.mxu1 %v1172_v11  ;;  %v1200_v36 = vpack.c.bf16 %v452_v34, %v451_v33  ;;  %v454_v37 = vld [vmem:[#allocation13 + $0x18] sm:$0xff]  ;;  %v455_v39 = vld [vmem:[#allocation13 + $0x20] sm:$0xff]  ;;  %v456_v40 = vld [vmem:[#allocation13 + $0x28] sm:$0xff] }
  0xc1   :  { %1017 = vmatmul.mubr.msk.f32.gmra.mrb[4].mxu0 %vm181_vm1, %v170_v14  ;;  %1177 = vmatprep.subr.bf16.mxu1 %v1176_v15  ;;  %v1204_v38 = vpack.c.bf16 %v454_v37, %v453_v35  ;;  %v1208_v41 = vpack.c.bf16 %v456_v40, %v455_v39  ;;  %v457_v42 = vld [vmem:[#allocation13 + $0x30] sm:$0xff]  ;;  %v458_v43 = vld [vmem:[#allocation13 + $0x38] sm:$0xff]  ;;  %v459_v45 = vld [vmem:[#allocation13 + $0x40] sm:$0xff] }
  0xc2   :  { %1019 = vmatprep.mubr.msk.f32.mxu0 %vm181_vm1, %v171_v16  ;;  %1201 = vmatprep.subr.bf16.mxu0 %v1200_v36  ;;  %v1212_v44 = vpack.c.bf16 %v458_v43, %v457_v42  ;;  %v460_v46 = vld [vmem:[#allocation13 + $0x48] sm:$0xff]  ;;  %v461_v48 = vld [vmem:[#allocation13 + $0x50] sm:$0xff]  ;;  %v462_v49 = vld [vmem:[#allocation13 + $0x58] sm:$0xff] }
  0xc3   :  { %1203 = vmatpush3.bf16.msra.mxu0 %v1200_v36  ;;  %v1216_v47 = vpack.c.bf16 %v460_v46, %v459_v45  ;;  %v1220_v50 = vpack.c.bf16 %v462_v49, %v461_v48  ;;  %v463_v51 = vld [vmem:[#allocation13 + $0x60] sm:$0xff]  ;;  %v464_v52 = vld [vmem:[#allocation13 + $0x68] sm:$0xff]  ;;  %v897_v54 = vld [vmem:[#allocation8] ss:$0 sm:$0xff] }
  0xc4   :  { %1179 = vmatpush3.bf16.msra.mxu1 %v1176_v15  ;;  %1205 = vmatprep.subr.bf16.mxu0 %v1204_v38  ;;  %v1224_v53 = vpack.c.bf16 %v464_v52, %v463_v51  ;;  %v465_v15 = vld [vmem:[#allocation13 + $0x70] sm:$0xff]  ;;  %v466_v16 = vld [vmem:[#allocation13 + $0x78] sm:$0xff]  ;;  %v596_v18 = vld [vmem:[#allocation17] sm:$0xff] }
  0xc5   :  { %1020 = vmatmul.mubr.msk.f32.gmra.mrb[6].mxu0 %vm181_vm1, %v172_v19  ;;  %1181 = vmatprep.subr.bf16.mxu1 %v1180_v20  ;;  %v1228_v17 = vpack.c.bf16 %v466_v16, %v465_v15  ;;  %v597_v19 = vld [vmem:[#allocation17 + $0x8] sm:$0xff]  ;;  %v599_v22 = vld [vmem:[#allocation17 + $0x18] sm:$0xff]  ;;  %v600_v24 = vld [vmem:[#allocation17 + $0x20] sm:$0xff] }
  0xc6   :  { %v1232_v21 = vpack.c.bf16 %v597_v19, %v596_v18  ;;  %v601_v25 = vld [vmem:[#allocation17 + $0x28] sm:$0xff]  ;;  %v602_v28 = vld [vmem:[#allocation17 + $0x30] sm:$0xff]  ;;  %v604_v31 = vld [vmem:[#allocation17 + $0x40] sm:$0xff] }
  0xc7   :  { %1207 = vmatpush3.bf16.msra.mxu0 %v1204_v38  ;;  %v1240_v27 = vpack.c.bf16 %v601_v25, %v600_v24  ;;  %v606_v34 = vld [vmem:[#allocation17 + $0x50] sm:$0xff]  ;;  %v607_v35 = vld [vmem:[#allocation17 + $0x58] sm:$0xff]  ;;  %v608_v37 = vld [vmem:[#allocation17 + $0x60] sm:$0xff] }
  0xc8   :  { %1183 = vmatpush3.bf16.msra.mxu1 %v1180_v20  ;;  %1209 = vmatprep.subr.bf16.mxu0 %v1208_v41  ;;  %v598_v20 = vld [vmem:[#allocation17 + $0x10] sm:$0xff]  ;;  %v1252_v36 = vpack.c.bf16 %v607_v35, %v606_v34  ;;  %v609_v38 = vld [vmem:[#allocation17 + $0x68] sm:$0xff]  ;;  %v907_v40 = vld [vmem:[#allocation11] ss:$0 sm:$0xff] }
  0xc9   :  { %1185 = vmatprep.subr.bf16.mxu1 %v1184_v23  ;;  %v1256_v39 = vpack.c.bf16 %v609_v38, %v608_v37 }
  0xcb   :  { %1211 = vmatpush3.bf16.msra.mxu0 %v1208_v41 }
  0xcc   :  { %1187 = vmatpush3.bf16.msra.mxu1 %v1184_v23  ;;  %1213 = vmatprep.subr.bf16.mxu0 %v1212_v44  ;;  %v1236_v23 = vpack.c.bf16 %v599_v22, %v598_v20 }
  0xcd   :  { %1189 = vmatprep.subr.bf16.mxu1 %v1188_v26 }
  0xcf   :  { %1215 = vmatpush3.bf16.msra.mxu0 %v1212_v44 }
  0xd0   :  { %1191 = vmatpush3.bf16.msra.mxu1 %v1188_v26  ;;  %1217 = vmatprep.subr.bf16.mxu0 %v1216_v47  ;;  %v595_v26 = vld [vmem:[#allocation16] sm:$0x7] }
  0xd1   :  { %1193 = vmatprep.subr.bf16.mxu1 %v1192_v29 }
  0xd3   :  { %1219 = vmatpush3.bf16.msra.mxu0 %v1216_v47 }
  0xd4   :  { %1195 = vmatpush3.bf16.msra.mxu1 %v1192_v29  ;;  %1221 = vmatprep.subr.bf16.mxu0 %v1220_v50  ;;  %v603_v29 = vld [vmem:[#allocation17 + $0x38] sm:$0xff] }
  0xd5   :  { %1197 = vmatprep.subr.bf16.mxu1 %v1196_v32  ;;  %v1244_v30 = vpack.c.bf16 %v603_v29, %v602_v28 }
  0xd7   :  { %1223 = vmatpush3.bf16.msra.mxu0 %v1220_v50 }
  0xd8   :  { %1199 = vmatpush3.bf16.msra.mxu1 %v1196_v32  ;;  %1225 = vmatprep.subr.bf16.mxu0 %v1224_v53  ;;  %v605_v32 = vld [vmem:[#allocation17 + $0x48] sm:$0xff] }
  0xd9   :  { %1233 = vmatprep.subr.bf16.mxu1 %v1232_v21  ;;  %v1248_v33 = vpack.c.bf16 %v605_v32, %v604_v31 }
  0xdb   :  { %1227 = vmatpush3.bf16.msra.mxu0 %v1224_v53 }
  0xdc   :  { %1229 = vmatprep.subr.bf16.mxu0 %v1228_v17 }
  0xdf   :  { %1231 = vmatpush3.bf16.msra.mxu0 %v1228_v17 }
  0xe0   :  { %1154 = vmatprep.subr.msk.mxu0 %vm742_vm2, %v595_v26 }
 0x18c   :  { %v1012_v55 = vpop.f32.mrb[0].mxu0 }
 0x18d   :  { %v282_v56 = vadd.f32 %v1012_v55, %v897_v54  ;;  %v276_v57 = vpop.f32.mrb[1].mxu0 }
 0x18e   :  { %v277_v58 = vadd.f32 %v897_v54, %v276_v57  ;;  %v610_v57 = vld [vmem:[#allocation17 + $0x70] sm:$0xff] }
 0x18f   :  { %v316_v61 = vmax.f32 %v282_v56, 0.0 }
 0x190   :  { %v1015_v59 = vpop.f32.mrb[2].mxu0  ;;  %v315_v60 = vmax.f32 %v277_v58, 0.0  ;;  %v611_v58 = vld [vmem:[#allocation17 + $0x78] sm:$0xff] }
 0x191   :  { %v292_v62 = vadd.f32 %v1015_v59, %v897_v54  ;;  %v286_v63 = vpop.f32.mrb[3].mxu0  ;;  %v1260_v59 = vpack.c.bf16 %v611_v58, %v610_v57 }
 0x192   :  { %v287_v0 = vadd.f32 %v897_v54, %v286_v63  ;;  %1054 = vmatprep.mubr.f32.mxu1 %v315_v60  ;;  %v587_v60 = vld [vmem:[#allocation5] sm:$0xff]  ;;  %v590_v63 = vld [vmem:[#allocation5 + $0x18] sm:$0xff] }
 0x193   :  { %1055 = vmatmul.mubr.f32.vlgmr.msra.gmra.mrb[0].mxu1 %v316_v61  ;;  %v318_v3 = vmax.f32 %v292_v62, 0.0  ;;  %v588_v61 = vld [vmem:[#allocation5 + $0x8] sm:$0xff]  ;;  %v589_v62 = vld [vmem:[#allocation5 + $0x10] sm:$0xff] }
 0x194   :  { %v317_v1 = vmax.f32 %v287_v0, 0.0  ;;  %v1018_v2 = vpop.f32.mrb[4].mxu0  ;;  %1235 = vmatpush3.bf16.msra.mxu1 %v1232_v21  ;;  %v591_v0 = vld [vmem:[#allocation5 + $0x20] sm:$0xff] }
 0x195   :  { %v302_v4 = vadd.f32 %v1018_v2, %v897_v54  ;;  %v296_v5 = vpop.f32.mrb[5].mxu0  ;;  %1237 = vmatprep.subr.bf16.mxu1 %v1236_v23  ;;  %v593_v2 = vld [vmem:[#allocation5 + $0x30] sm:$0xff] }
 0x196   :  { %v297_v6 = vadd.f32 %v897_v54, %v296_v5  ;;  %1057 = vmatprep.mubr.f32.mxu1 %v317_v1  ;;  %v592_v1 = vld [vmem:[#allocation5 + $0x28] sm:$0xff] }
 0x197   :  { %1058 = vmatmul.mubr.f32.gmra.mrb[2].mxu1 %v318_v3  ;;  %v320_v9 = vmax.f32 %v302_v4, 0.0  ;;  %v594_v3 = vld [vmem:[#allocation5 + $0x38] sm:$0xff]  ;;  %v908_v4 = vld [vmem:[#allocation14] ss:$0 sm:$0xff] }
 0x198   :  { %v319_v7 = vmax.f32 %v297_v6, 0.0  ;;  %v1021_v8 = vpop.f32.mrb[6].mxu0  ;;  %1239 = vmatpush3.bf16.msra.mxu1 %v1236_v23 }
 0x199   :  { %v312_v10 = vadd.f32 %v1021_v8, %v897_v54  ;;  %v306_v11 = vpop.f32.mrb[7].mxu0  ;;  %1241 = vmatprep.subr.bf16.mxu1 %v1240_v27 }
 0x19a   :  { %v307_v12 = vadd.f32 %v897_v54, %v306_v11  ;;  %1060 = vmatprep.mubr.f32.mxu1 %v319_v7 }
 0x19b   :  { %1061 = vmatmul.mubr.f32.gmra.mrb[4].mxu1 %v320_v9  ;;  %v322_v14 = vmax.f32 %v312_v10, 0.0 }
 0x19c   :  { %v321_v13 = vmax.f32 %v307_v12, 0.0  ;;  %1243 = vmatpush3.bf16.msra.mxu1 %v1240_v27 }
 0x19d   :  { %1245 = vmatprep.subr.bf16.mxu1 %v1244_v30 }
 0x19e   :  { %1063 = vmatprep.mubr.f32.mxu1 %v321_v13 }
 0x19f   :  { %1064 = vmatmul.mubr.f32.gmra.mrb[6].mxu1 %v322_v14 }
 0x1a0   :  { %1247 = vmatpush3.bf16.msra.mxu1 %v1244_v30 }
 0x1a1   :  { %1249 = vmatprep.subr.bf16.mxu1 %v1248_v33 }
 0x1a4   :  { %1251 = vmatpush3.bf16.msra.mxu1 %v1248_v33 }
 0x1a5   :  { %1253 = vmatprep.subr.bf16.mxu1 %v1252_v36 }
 0x1a8   :  { %1255 = vmatpush3.bf16.msra.mxu1 %v1252_v36 }
 0x1a9   :  { %1257 = vmatprep.subr.bf16.mxu1 %v1256_v39 }
 0x1ac   :  { %1259 = vmatpush3.bf16.msra.mxu1 %v1256_v39 }
 0x1ad   :  { %1261 = vmatprep.subr.bf16.mxu1 %v1260_v59 }
 0x1b0   :  { %1263 = vmatpush3.bf16.msra.mxu1 %v1260_v59 }
 0x266   :  { %v1056_v41 = vpop.f32.mrb[0].mxu1 }
 0x267   :  { %v412_v42 = vpop.f32.mrb[1].mxu1  ;;  %v418_v44 = vadd.f32 %v1056_v41, %v907_v40 }
 0x268   :  { %v413_v43 = vadd.f32 %v907_v40, %v412_v42 }
 0x26a   :  { %v1059_v45 = vpop.f32.mrb[2].mxu1  ;;  %1098 = vmatprep.mubr.f32.mxu0 %v413_v43 }
 0x26b   :  { %v422_v46 = vpop.f32.mrb[3].mxu1  ;;  %1099 = vmatmul.mubr.f32.vlgmr.msra.gmra.mrb[8].mxu0 %v418_v44  ;;  %v428_v48 = vadd.f32 %v1059_v45, %v907_v40 }
 0x26c   :  { %v423_v47 = vadd.f32 %v907_v40, %v422_v46  ;;  %1155 = vmatpush3.msk.msra.mxu0 %vm742_vm2, %v595_v26 }
 0x26e   :  { %v1062_v49 = vpop.f32.mrb[4].mxu1  ;;  %1101 = vmatprep.mubr.f32.mxu0 %v423_v47 }
 0x26f   :  { %v432_v50 = vpop.f32.mrb[5].mxu1  ;;  %1102 = vmatmul.mubr.f32.gmra.mrb[10].mxu0 %v428_v48  ;;  %v438_v52 = vadd.f32 %v1062_v49, %v907_v40 }
 0x270   :  { %v433_v51 = vadd.f32 %v907_v40, %v432_v50 }
 0x272   :  { %v1065_v53 = vpop.f32.mrb[6].mxu1  ;;  %1104 = vmatprep.mubr.f32.mxu0 %v433_v51 }
 0x273   :  { %v442_v54 = vpop.f32.mrb[7].mxu1  ;;  %1105 = vmatmul.mubr.f32.gmra.mrb[12].mxu0 %v438_v52  ;;  %v448_v56 = vadd.f32 %v1065_v53, %v907_v40 }
 0x274   :  { %v443_v55 = vadd.f32 %v907_v40, %v442_v54 }
 0x276   :  { %1107 = vmatprep.mubr.f32.mxu0 %v443_v55 }
 0x277   :  { %1108 = vmatmul.mubr.f32.gmra.mrb[14].mxu0 %v448_v56 }
 0x278   :  { %1156 = vmatprep.mubr.msk.f32.mxu0 %vm717_vm3, %v587_v60 }
 0x27b   :  { %1157 = vmatmul.mubr.msk.f32.vlgmr.msra.gmra.mrb[16].mxu0 %vm717_vm3, %v588_v61 }
 0x27c   :  { %1159 = vmatprep.mubr.msk.f32.mxu0 %vm717_vm3, %v589_v62 }
 0x27f   :  { %1160 = vmatmul.mubr.msk.f32.gmra.mrb[18].mxu0 %vm717_vm3, %v590_v63 }
 0x280   :  { %1162 = vmatprep.mubr.msk.f32.mxu0 %vm717_vm3, %v591_v0 }
 0x283   :  { %1163 = vmatmul.mubr.msk.f32.gmra.mrb[20].mxu0 %vm717_vm3, %v592_v1 }
 0x284   :  { %1165 = vmatprep.mubr.msk.f32.mxu0 %vm717_vm3, %v593_v2 }
 0x287   :  { %1166 = vmatmul.mubr.msk.f32.gmra.mrb[22].mxu0 %vm717_vm3, %v594_v3 }
 0x33e   :  { %v1100_v5 = vpop.f32.mrb[8].mxu0 }
 0x33f   :  { %v546_v6 = vadd.f32 %v1100_v5, %v908_v4  ;;  %v540_v7 = vpop.f32.mrb[9].mxu0 }
 0x340   :  { %v541_v8 = vadd.f32 %v908_v4, %v540_v7 }
 0x341   :  { %580 = vst [vmem:[#allocation19 + $0x8] sm:$0xff] %v546_v6 }
 0x342   :  { %579 = vst [vmem:[#allocation19] sm:$0xff] %v541_v8  ;;  %v1103_v9 = vpop.f32.mrb[10].mxu0  ;;  %1142 = vmatprep.mubr.f32.mxu1 %v541_v8 }
 0x343   :  { %v556_v10 = vadd.f32 %v1103_v9, %v908_v4  ;;  %v550_v11 = vpop.f32.mrb[11].mxu0  ;;  %1143 = vmatmul.mubr.f32.vlgmr.msra.gmra.mrb[8].mxu1 %v546_v6 }
 0x344   :  { %v551_v12 = vadd.f32 %v908_v4, %v550_v11 }
 0x345   :  { %582 = vst [vmem:[#allocation19 + $0x18] sm:$0xff] %v556_v10 }
 0x346   :  { %581 = vst [vmem:[#allocation19 + $0x10] sm:$0xff] %v551_v12  ;;  %v1106_v13 = vpop.f32.mrb[12].mxu0  ;;  %1145 = vmatprep.mubr.f32.mxu1 %v551_v12 }
 0x347   :  { %v566_v14 = vadd.f32 %v1106_v13, %v908_v4  ;;  %v560_v15 = vpop.f32.mrb[13].mxu0  ;;  %1146 = vmatmul.mubr.f32.gmra.mrb[10].mxu1 %v556_v10 }
 0x348   :  { %v561_v16 = vadd.f32 %v908_v4, %v560_v15 }
 0x349   :  { %584 = vst [vmem:[#allocation19 + $0x28] sm:$0xff] %v566_v14 }
 0x34a   :  { %583 = vst [vmem:[#allocation19 + $0x20] sm:$0xff] %v561_v16  ;;  %v1109_v17 = vpop.f32.mrb[14].mxu0  ;;  %1148 = vmatprep.mubr.f32.mxu1 %v561_v16 }
 0x34b   :  { %v576_v18 = vadd.f32 %v1109_v17, %v908_v4  ;;  %v570_v19 = vpop.f32.mrb[15].mxu0  ;;  %1149 = vmatmul.mubr.f32.gmra.mrb[12].mxu1 %v566_v14 }
 0x34c   :  { %v571_v20 = vadd.f32 %v908_v4, %v570_v19 }
 0x34d   :  { %586 = vst [vmem:[#allocation19 + $0x38] sm:$0xff] %v576_v18 }
 0x34e   :  { %585 = vst [vmem:[#allocation19 + $0x30] sm:$0xff] %v571_v20  ;;  %1151 = vmatprep.mubr.f32.mxu1 %v571_v20  ;;  %v1158_v21 = vpop.f32.mrb[16].mxu0 }
 0x34f   :  { %1152 = vmatmul.mubr.f32.gmra.mrb[14].mxu1 %v576_v18  ;;  %v812_v22 = vpop.f32.mrb[17].mxu0 }
 0x352   :  { %v1161_v23 = vpop.f32.mrb[18].mxu0 }
 0x353   :  { %v822_v24 = vpop.f32.mrb[19].mxu0 }
 0x356   :  { %v1164_v25 = vpop.f32.mrb[20].mxu0 }
 0x357   :  { %v832_v26 = vpop.f32.mrb[21].mxu0 }
 0x35a   :  { %v1167_v27 = vpop.f32.mrb[22].mxu0 }
 0x35b   :  { %v842_v28 = vpop.f32.mrb[23].mxu0 }
 0x35c   :  { %1517 = shalt.err (!%p1514_p0)
}
 0x35d   :  { %s1518_s20 = scalar_lea.hbm %s1847_s10, 1024 }
 0x35e   :  { %p1519_p1 = scmp.ne.s32.totalorder %s1847_s10, %s1518_s20  ;;  %p1522_p2 = scmp.lt.u32.totalorder %s1518_s20, %s1847_s10 }
 0x360   :  { %p1524_p3 = pnand %p1522_p2, %p1519_p1 }
 0x362   :  { %1527 = shalt.err (!%p1524_p3)
}
 0x363   :  { %870 = dma.vmem_to_hbm [thread:$0]  %s865_s4, 1024, %s1847_s10, [#allocation4], %s1568_s29, %s1568_s29, %s1569_s30  }
 0x364   :  { %s1579_s24 = smov [#allocation20]  }
 0x365   :  { %s876_s2 = sshll.u32 %s1579_s24, 4  ;;  %s877_s2 = int_to_ptr.vmem [resolvable:$true] %s876_s2 }
 0x366   :  { %s1528_s10 = scalar_lea.vmem %s877_s2, 1024  ;;  %p1533_p5 = scmp.lt.s32.totalorder %s877_s2, %s877_s2 }
 0x367   :  { %p1529_p4 = scmp.ne.s32.totalorder %s877_s2, %s1528_s10  ;;  %p1534_p6 = scmp.lt.s32.totalorder %s1528_s10, %s1528_s10 }
 0x369   :  { %p1535_p7 = por %p1534_p6, %p1533_p5 }
 0x36b   :  { %p1536_p8 = pnand %p1535_p7, %p1529_p4 }
 0x416   :  { %v1144_v29 = vpop.f32.mrb[8].mxu1 }
 0x417   :  { %v818_v30 = vadd.f32 %v1158_v21, %v1144_v29  ;;  %v678_v31 = vpop.f32.mrb[9].mxu1 }
 0x418   :  { %v813_v32 = vadd.f32 %v812_v22, %v678_v31 }
 0x419   :  { %852 = vst [vmem:[#allocation20 + $0x8] sm:$0xff] %v818_v30 }
 0x41a   :  { %851 = vst [vmem:[#allocation20] sm:$0xff] %v813_v32  ;;  %v1147_v33 = vpop.f32.mrb[10].mxu1 }
 0x41b   :  { %v828_v34 = vadd.f32 %v1161_v23, %v1147_v33  ;;  %v688_v35 = vpop.f32.mrb[11].mxu1 }
 0x41c   :  { %v823_v36 = vadd.f32 %v822_v24, %v688_v35 }
 0x41d   :  { %854 = vst [vmem:[#allocation20 + $0x18] sm:$0xff] %v828_v34 }
 0x41e   :  { %853 = vst [vmem:[#allocation20 + $0x10] sm:$0xff] %v823_v36  ;;  %v1150_v37 = vpop.f32.mrb[12].mxu1 }
 0x41f   :  { %v838_v38 = vadd.f32 %v1164_v25, %v1150_v37  ;;  %v698_v39 = vpop.f32.mrb[13].mxu1 }
 0x420   :  { %v833_v40 = vadd.f32 %v832_v26, %v698_v39 }
 0x421   :  { %856 = vst [vmem:[#allocation20 + $0x28] sm:$0xff] %v838_v38 }
 0x422   :  { %855 = vst [vmem:[#allocation20 + $0x20] sm:$0xff] %v833_v40  ;;  %v1153_v41 = vpop.f32.mrb[14].mxu1 }
 0x423   :  { %v848_v42 = vadd.f32 %v1167_v27, %v1153_v41  ;;  %v708_v43 = vpop.f32.mrb[15].mxu1 }
 0x424   :  { %v843_v44 = vadd.f32 %v842_v28, %v708_v43 }
 0x425   :  { %858 = vst [vmem:[#allocation20 + $0x38] sm:$0xff] %v848_v42 }
 0x426   :  { %857 = vst [vmem:[#allocation20 + $0x30] sm:$0xff] %v843_v44 }
 0x427   :  { %1539 = shalt.err (!%p1536_p8)
}
 0x428   :  { %s1540_s19 = scalar_lea.hbm %s1848_s11, 1024 }
 0x429   :  { %p1541_p9 = scmp.ne.s32.totalorder %s1848_s11, %s1540_s19  ;;  %p1544_p10 = scmp.lt.u32.totalorder %s1540_s19, %s1848_s11 }
 0x42b   :  { %p1546_p11 = pnand %p1544_p10, %p1541_p9 }
 0x42d   :  { %1549 = shalt.err (!%p1546_p11)
}
 0x42e   :  { %882 = dma.vmem_to_hbm [thread:$0]  %s877_s2, 1024, %s1848_s11, [#allocation21], %s1568_s29, %s1568_s29, %s1569_s30  }
 0x42f   :  { %1562 = dma.done.wait [#allocation4], 1024  }
 0x430   :  { %1563 = vsyncadd [#allocation4], 4294966272 }
 0x431   :  { %1564 = dma.done.wait [#allocation21], 1024  }
 0x432   :  { %1565 = vsyncadd [#allocation21], 4294966272 }
 0x433   :  { %889 = vsyncpa [#allocation3], 1 }
 0x434   :  { %890 = vsyncpa [#allocation6], 1 }
 0x435   :  { %891 = vsyncpa [#allocation9], 1 }
 0x436   :  { %892 = vsyncpa [#allocation12], 1 }
 0x437   :  { %893 = vsyncpa [#allocation15], 1 }
 0x438   :  { %894 = vsyncpa [#allocation18], 1 }
 0x439   :  { %895 = vsyncpa [#allocation4], 1 }
 0x43a   :  { %896 = vsyncpa [#allocation21], 1 }

// kernel: point_gnn_con_forward.7
= control target key start
LH: loop header
LB: loop body
LE: loop exit
PB: predicated region body
PF: predicated region fallthrough
CT: control target
= control target key end

     0   :  { %s2893_s0 = inlined_call_operand.hbm [shape: f32[64,128], index: 0, kind: input, shape index: {}]   ;;  %s2894_s1 = inlined_call_operand.hbm [shape: f32[64,3], index: 1, kind: input, shape index: {}]   ;;  %s2895_s2 = inlined_call_operand.hbm [shape: f32[4,64,128], index: 2, kind: input, shape index: {}]   ;;  %s2896_s3 = inlined_call_operand.hbm [shape: f32[128,128], index: 3, kind: input, shape index: {}]   ;;  %s2897_s4 = inlined_call_operand.hbm [shape: f32[1,128], index: 4, kind: input, shape index: {}]   ;;  %s2898_s5 = inlined_call_operand.hbm [shape: f32[128,128], index: 5, kind: input, shape index: {}]   ;;  %s2899_s6 = inlined_call_operand.hbm [shape: f32[3,128], index: 6, kind: input, shape index: {}]   ;;  %s2900_s7 = inlined_call_operand.hbm [shape: f32[1,128], index: 7, kind: input, shape index: {}]   ;;  %s2901_s8 = inlined_call_operand.hbm [shape: f32[128,128], index: 8, kind: input, shape index: {}]   ;;  %s2902_s9 = inlined_call_operand.hbm [shape: f32[1,128], index: 9, kind: input, shape index: {}]   ;;  %s2903_s10 = inlined_call_operand.hbm [shape: f32[128,128], index: 10, kind: input, shape index: {}]   ;;  %s2904_s11 = inlined_call_operand.hbm [shape: f32[1,128], index: 11, kind: input, shape index: {}]   ;;  %s2905_s12 = inlined_call_operand.hbm [shape: f32[128,128], index: 12, kind: input, shape index: {}]   ;;  %s2906_s13 = inlined_call_operand.hbm [shape: f32[1,128], index: 13, kind: input, shape index: {}]   ;;  %s2907_s14 = inlined_call_operand.hbm [shape: f32[64,128], index: 14, kind: output, shape index: {0}]   ;;  %s2908_s15 = inlined_call_operand.hbm [shape: f32[1,1,128], index: 15, kind: output, shape index: {1}]   ;;  %s2909_s16 = inlined_call_operand.hbm [shape: f32[1,1,128], index: 16, kind: output, shape index: {2}]  }
   0x1   :  { %2911 = sst [smem:[#allocation39_spill]] %s2893_s0 }
   0x2   :  { %22 = vsyncpa [#allocation3], 0 }
   0x3   :  { %23 = vsyncpa [#allocation6], 0 }
   0x4   :  { %24 = vsyncpa [#allocation9], 0 }
   0x5   :  { %25 = vsyncpa [#allocation12], 0 }
   0x6   :  { %26 = vsyncpa [#allocation15], 0 }
   0x7   :  { %27 = vsyncpa [#allocation18], 0 }
   0x8   :  { %28 = vsyncpa [#allocation21], 0 }
   0x9   :  { %29 = vsyncpa [#allocation24], 0 }
   0xa   :  { %30 = vsyncpa [#allocation4], 0 }
   0xb   :  { %31 = vsyncpa [#allocation27], 0  ;;  %s2419_s21 = smov [#allocation5]   ;;  %s2420_s23 = smov [#allocation8]  }
   0xc   :  { %s49_s22 = sshll.u32 %s2419_s21, 4  ;;  %s73_s24 = sshll.u32 %s2420_s23, 4  ;;  %s50_s22 = int_to_ptr.vmem [resolvable:$true] %s49_s22  ;;  %s2523_s24 = int_to_ptr.vmem [resolvable:$true] %s73_s24 }
   0xd   :  { %s2025_s27 = scalar_lea.hbm %s2894_s1, 1024 }
   0xe   :  { %p2026_p0 = scmp.ne.s32.totalorder %s2894_s1, %s2025_s27  ;;  %p2029_p1 = scmp.lt.u32.totalorder %s2025_s27, %s2894_s1 }
  0x10   :  { %p2031_p2 = pnand %p2029_p1, %p2026_p0 }
  0x12   :  { %2034 = shalt.err (!%p2031_p2)
}
  0x13   :  { %s2035_s17 = scalar_lea.vmem %s50_s22, 1024  ;;  %p2040_p4 = scmp.lt.s32.totalorder %s50_s22, %s50_s22 }
  0x14   :  { %p2036_p3 = scmp.ne.s32.totalorder %s50_s22, %s2035_s17  ;;  %p2041_p5 = scmp.lt.s32.totalorder %s2035_s17, %s2035_s17 }
  0x16   :  { %p2042_p6 = por %p2041_p5, %p2040_p4 }
  0x18   :  { %p2043_p7 = pnand %p2042_p6, %p2036_p3 }
  0x1a   :  { %2046 = shalt.err (!%p2043_p7)
}
  0x1b   :  { %s2421_s18 = smov 128   ;;  %s2422_s19 = smov 8  }
  0x1c   :  { %55 = dma.hbm_to_vmem [thread:$0]  %s2894_s1, 1024, %s50_s22, [#allocation6], %s2421_s18, %s2421_s18, %s2422_s19  }
  0x1d   :  { %s2047_s26 = scalar_lea.hbm %s2896_s3, 2048 }
  0x1e   :  { %p2048_p8 = scmp.ne.s32.totalorder %s2896_s3, %s2047_s26  ;;  %p2051_p9 = scmp.lt.u32.totalorder %s2047_s26, %s2896_s3 }
  0x20   :  { %p2053_p10 = pnand %p2051_p9, %p2048_p8 }
  0x22   :  { %2056 = shalt.err (!%p2053_p10)
}
  0x23   :  { %s2057_s0 = scalar_lea.vmem %s2523_s24, 2048  ;;  %p2062_p12 = scmp.lt.s32.totalorder %s2523_s24, %s2523_s24 }
  0x24   :  { %p2058_p11 = scmp.ne.s32.totalorder %s2523_s24, %s2057_s0  ;;  %p2063_p13 = scmp.lt.s32.totalorder %s2057_s0, %s2057_s0 }
  0x26   :  { %p2064_p0 = por %p2063_p13, %p2062_p12 }
  0x28   :  { %p2065_p1 = pnand %p2064_p0, %p2058_p11 }
  0x2a   :  { %2068 = shalt.err (!%p2065_p1)
}
  0x2b   :  { %79 = dma.hbm_to_vmem [thread:$0]  %s2896_s3, 2048, %s2523_s24, [#allocation9], %s2421_s18, %s2421_s18, %s2422_s19  }
  0x2c   :  { %s2423_s17 = smov [#allocation11]   ;;  %s2424_s21 = smov [#allocation14]  }
  0x2d   :  { %s95_s20 = sshll.u32 %s2423_s17, 4  ;;  %s118_s23 = sshll.u32 %s2424_s21, 4  ;;  %s96_s20 = int_to_ptr.vmem [resolvable:$true] %s95_s20  ;;  %s119_s23 = int_to_ptr.vmem [resolvable:$true] %s118_s23 }
  0x2e   :  { %s2069_s27 = scalar_lea.hbm %s2898_s5, 2048 }
  0x2f   :  { %p2070_p2 = scmp.ne.s32.totalorder %s2898_s5, %s2069_s27  ;;  %p2073_p3 = scmp.lt.u32.totalorder %s2069_s27, %s2898_s5 }
  0x31   :  { %p2075_p4 = pnand %p2073_p3, %p2070_p2 }
  0x33   :  { %2078 = shalt.err (!%p2075_p4)
}
  0x34   :  { %s2079_s3 = scalar_lea.vmem %s96_s20, 2048  ;;  %p2084_p6 = scmp.lt.s32.totalorder %s96_s20, %s96_s20 }
  0x35   :  { %p2080_p5 = scmp.ne.s32.totalorder %s96_s20, %s2079_s3  ;;  %p2085_p7 = scmp.lt.s32.totalorder %s2079_s3, %s2079_s3 }
  0x37   :  { %p2086_p8 = por %p2085_p7, %p2084_p6 }
  0x39   :  { %p2087_p9 = pnand %p2086_p8, %p2080_p5 }
  0x3b   :  { %2090 = shalt.err (!%p2087_p9)
}
  0x3c   :  { %101 = dma.hbm_to_vmem [thread:$0]  %s2898_s5, 2048, %s96_s20, [#allocation12], %s2421_s18, %s2421_s18, %s2422_s19  }
  0x3d   :  { %s2091_s21 = scalar_lea.hbm %s2900_s7, 16 }
  0x3e   :  { %p2092_p10 = scmp.ne.s32.totalorder %s2900_s7, %s2091_s21  ;;  %p2095_p11 = scmp.lt.u32.totalorder %s2091_s21, %s2900_s7 }
  0x40   :  { %p2097_p12 = pnand %p2095_p11, %p2092_p10 }
  0x42   :  { %2100 = shalt.err (!%p2097_p12)
}
  0x43   :  { %s2101_s29 = scalar_lea.vmem %s119_s23, 16  ;;  %s2105_s30 = scalar_lea.vmem %s119_s23, 32 }
  0x44   :  { %p2102_p13 = scmp.ne.s32.totalorder %s119_s23, %s2101_s29  ;;  %p2106_p0 = scmp.lt.s32.totalorder %s119_s23, %s119_s23 }
  0x45   :  { %p2107_p1 = scmp.lt.s32.totalorder %s2105_s30, %s2101_s29 }
  0x47   :  { %p2108_p2 = por %p2107_p1, %p2106_p0 }
  0x49   :  { %p2109_p3 = pnand %p2108_p2, %p2102_p13 }
  0x4b   :  { %2112 = shalt.err (!%p2109_p3)
}
  0x4c   :  { %121 = dma.hbm_to_vmem [thread:$0]  %s2900_s7, 16, %s119_s23, [#allocation15]  }
  0x4d   :  { %s2425_s0 = smov [#allocation17]   ;;  %s2426_s24 = smov [#allocation20]  }
  0x4e   :  { %s140_s3 = sshll.u32 %s2425_s0, 4  ;;  %s162_s1 = sshll.u32 %s2426_s24, 4  ;;  %s141_s3 = int_to_ptr.vmem [resolvable:$true] %s140_s3  ;;  %s163_s1 = int_to_ptr.vmem [resolvable:$true] %s162_s1 }
  0x4f   :  { %s2113_s21 = scalar_lea.hbm %s2902_s9, 16 }
  0x50   :  { %p2114_p4 = scmp.ne.s32.totalorder %s2902_s9, %s2113_s21  ;;  %p2117_p5 = scmp.lt.u32.totalorder %s2113_s21, %s2902_s9 }
  0x52   :  { %p2119_p6 = pnand %p2117_p5, %p2114_p4 }
  0x54   :  { %2122 = shalt.err (!%p2119_p6)
}
  0x55   :  { %s2123_s7 = scalar_lea.vmem %s141_s3, 16  ;;  %s2127_s23 = scalar_lea.vmem %s141_s3, 32 }
  0x56   :  { %p2124_p7 = scmp.ne.s32.totalorder %s141_s3, %s2123_s7  ;;  %p2128_p8 = scmp.lt.s32.totalorder %s141_s3, %s141_s3 }
  0x57   :  { %p2129_p9 = scmp.lt.s32.totalorder %s2127_s23, %s2123_s7 }
  0x59   :  { %p2130_p10 = por %p2129_p9, %p2128_p8 }
  0x5b   :  { %p2131_p11 = pnand %p2130_p10, %p2124_p7 }
  0x5d   :  { %2134 = shalt.err (!%p2131_p11)
}
  0x5e   :  { %143 = dma.hbm_to_vmem [thread:$0]  %s2902_s9, 16, %s141_s3, [#allocation18]  }
  0x5f   :  { %s2135_s0 = scalar_lea.hbm %s2904_s11, 16 }
  0x60   :  { %p2136_p12 = scmp.ne.s32.totalorder %s2904_s11, %s2135_s0  ;;  %p2139_p13 = scmp.lt.u32.totalorder %s2135_s0, %s2904_s11 }
  0x62   :  { %p2141_p0 = pnand %p2139_p13, %p2136_p12 }
  0x64   :  { %2144 = shalt.err (!%p2141_p0)
}
  0x65   :  { %s2145_s25 = scalar_lea.vmem %s163_s1, 16  ;;  %s2149_s26 = scalar_lea.vmem %s163_s1, 32 }
  0x66   :  { %p2146_p1 = scmp.ne.s32.totalorder %s163_s1, %s2145_s25  ;;  %p2150_p2 = scmp.lt.s32.totalorder %s163_s1, %s163_s1 }
  0x67   :  { %p2151_p3 = scmp.lt.s32.totalorder %s2149_s26, %s2145_s25 }
  0x69   :  { %p2152_p4 = por %p2151_p3, %p2150_p2 }
  0x6b   :  { %p2153_p5 = pnand %p2152_p4, %p2146_p1 }
  0x6d   :  { %2156 = shalt.err (!%p2153_p5)
}
  0x6e   :  { %165 = dma.hbm_to_vmem [thread:$0]  %s2904_s11, 16, %s163_s1, [#allocation21]  }
  0x6f   :  { %s2427_s27 = smov [#allocation2]   ;;  %s2428_s7 = smov [#allocation7]  }
  0x70   :  { %s37_s28 = sshll.u32 %s2427_s27, 4  ;;  %s61_s23 = sshll.u32 %s2428_s7, 4  ;;  %s38_s28 = int_to_ptr.vmem [resolvable:$true] %s37_s28  ;;  %s2611_s23 = int_to_ptr.vmem [resolvable:$true] %s61_s23 }
  0x71   :  { %s2912_s5 = sld [smem:[#allocation39_spill]] }
  0x77   :  { %s2157_s20 = scalar_lea.hbm %s2912_s5, 1024 }
  0x78   :  { %p2158_p6 = scmp.ne.s32.totalorder %s2912_s5, %s2157_s20  ;;  %p2161_p7 = scmp.lt.u32.totalorder %s2157_s20, %s2912_s5 }
  0x7a   :  { %p2163_p8 = pnand %p2161_p7, %p2158_p6 }
  0x7c   :  { %2166 = shalt.err (!%p2163_p8)
}
  0x7d   :  { %s2167_s11 = scalar_lea.vmem %s38_s28, 1024  ;;  %p2172_p10 = scmp.lt.s32.totalorder %s38_s28, %s38_s28 }
  0x7e   :  { %p2168_p9 = scmp.ne.s32.totalorder %s38_s28, %s2167_s11  ;;  %p2173_p11 = scmp.lt.s32.totalorder %s2167_s11, %s2167_s11 }
  0x80   :  { %p2174_p12 = por %p2173_p11, %p2172_p10 }
  0x82   :  { %p2175_p13 = pnand %p2174_p12, %p2168_p9 }
  0x84   :  { %2178 = shalt.err (!%p2175_p13)
}
  0x85   :  { %43 = dma.hbm_to_vmem [thread:$0]  %s2912_s5, 1024, %s38_s28, [#allocation3], %s2421_s18, %s2421_s18, %s2422_s19  }
  0x86   :  { %s2179_s9 = scalar_lea.hbm %s2895_s2, 4096 }
  0x87   :  { %p2180_p0 = scmp.ne.s32.totalorder %s2895_s2, %s2179_s9  ;;  %p2183_p1 = scmp.lt.u32.totalorder %s2179_s9, %s2895_s2 }
  0x89   :  { %p2185_p2 = pnand %p2183_p1, %p2180_p0 }
  0x8b   :  { %2188 = shalt.err (!%p2185_p2)
}
  0x8c   :  { %s2189_s30 = scalar_lea.vmem %s2611_s23, 4096  ;;  %p2194_p4 = scmp.lt.s32.totalorder %s2611_s23, %s2611_s23 }
  0x8d   :  { %p2190_p3 = scmp.ne.s32.totalorder %s2611_s23, %s2189_s30  ;;  %p2195_p5 = scmp.lt.s32.totalorder %s2189_s30, %s2189_s30 }
  0x8f   :  { %p2196_p6 = por %p2195_p5, %p2194_p4 }
  0x91   :  { %p2197_p7 = pnand %p2196_p6, %p2190_p3 }
  0x93   :  { %2200 = shalt.err (!%p2197_p7)
}
  0x94   :  { %67 = dma.hbm_to_vmem [thread:$0]  %s2895_s2, 4096, %s2611_s23, [#allocation6], %s2421_s18, %s2421_s18, %s2422_s19  }
  0x95   :  { %s2429_s20 = smov [#allocation10]   ;;  %s2430_s24 = smov [#allocation13]  }
  0x96   :  { %s86_s0 = sshll.u32 %s2429_s20, 4  ;;  %s108_s22 = sshll.u32 %s2430_s24, 4  ;;  %s87_s0 = int_to_ptr.vmem [resolvable:$true] %s86_s0  ;;  %s109_s22 = int_to_ptr.vmem [resolvable:$true] %s108_s22 }
  0x97   :  { %s2201_s1 = scalar_lea.hbm %s2897_s4, 16 }
  0x98   :  { %p2202_p8 = scmp.ne.s32.totalorder %s2897_s4, %s2201_s1  ;;  %p2205_p9 = scmp.lt.u32.totalorder %s2201_s1, %s2897_s4 }
  0x9a   :  { %p2207_p10 = pnand %p2205_p9, %p2202_p8 }
  0x9c   :  { %2210 = shalt.err (!%p2207_p10)
}
  0x9d   :  { %s2211_s2 = scalar_lea.vmem %s87_s0, 16  ;;  %s2215_s23 = scalar_lea.vmem %s87_s0, 32 }
  0x9e   :  { %p2212_p11 = scmp.ne.s32.totalorder %s87_s0, %s2211_s2  ;;  %p2216_p12 = scmp.lt.s32.totalorder %s87_s0, %s87_s0 }
  0x9f   :  { %p2217_p13 = scmp.lt.s32.totalorder %s2215_s23, %s2211_s2 }
  0xa1   :  { %p2218_p0 = por %p2217_p13, %p2216_p12 }
  0xa3   :  { %p2219_p1 = pnand %p2218_p0, %p2212_p11 }
  0xa5   :  { %2222 = shalt.err (!%p2219_p1)
}
  0xa6   :  { %89 = dma.hbm_to_vmem [thread:$0]  %s2897_s4, 16, %s87_s0, [#allocation9]  }
  0xa7   :  { %s2223_s30 = scalar_lea.hbm %s2899_s6, 64 }
  0xa8   :  { %p2224_p2 = scmp.ne.s32.totalorder %s2899_s6, %s2223_s30  ;;  %p2227_p3 = scmp.lt.u32.totalorder %s2223_s30, %s2899_s6 }
  0xaa   :  { %p2229_p4 = pnand %p2227_p3, %p2224_p2 }
  0xac   :  { %2232 = shalt.err (!%p2229_p4)
}
  0xad   :  { %s2233_s17 = scalar_lea.vmem %s109_s22, 64  ;;  %p2238_p6 = scmp.lt.s32.totalorder %s109_s22, %s109_s22 }
  0xae   :  { %p2234_p5 = scmp.ne.s32.totalorder %s109_s22, %s2233_s17  ;;  %p2239_p7 = scmp.lt.s32.totalorder %s2233_s17, %s2233_s17 }
  0xb0   :  { %p2240_p8 = por %p2239_p7, %p2238_p6 }
  0xb2   :  { %p2241_p9 = pnand %p2240_p8, %p2234_p5 }
  0xb4   :  { %2244 = shalt.err (!%p2241_p9)
}
  0xb5   :  { %111 = dma.hbm_to_vmem [thread:$0]  %s2899_s6, 64, %s109_s22, [#allocation12]  }
  0xb6   :  { %s2431_s11 = smov [#allocation16]   ;;  %s2432_s21 = smov [#allocation19]  }
  0xb7   :  { %s127_s1 = sshll.u32 %s2431_s11, 4  ;;  %s149_s25 = sshll.u32 %s2432_s21, 4  ;;  %s128_s1 = int_to_ptr.vmem [resolvable:$true] %s127_s1  ;;  %s2672_s25 = int_to_ptr.vmem [resolvable:$true] %s149_s25 }
  0xb8   :  { %s2245_s2 = scalar_lea.hbm %s2901_s8, 2048 }
  0xb9   :  { %p2246_p10 = scmp.ne.s32.totalorder %s2901_s8, %s2245_s2  ;;  %p2249_p11 = scmp.lt.u32.totalorder %s2245_s2, %s2901_s8 }
  0xbb   :  { %p2251_p12 = pnand %p2249_p11, %p2246_p10 }
  0xbd   :  { %2254 = shalt.err (!%p2251_p12)
}
  0xbe   :  { %s2255_s6 = scalar_lea.vmem %s128_s1, 2048  ;;  %p2260_p0 = scmp.lt.s32.totalorder %s128_s1, %s128_s1 }
  0xbf   :  { %p2256_p13 = scmp.ne.s32.totalorder %s128_s1, %s2255_s6  ;;  %p2261_p1 = scmp.lt.s32.totalorder %s2255_s6, %s2255_s6 }
  0xc1   :  { %p2262_p2 = por %p2261_p1, %p2260_p0 }
  0xc3   :  { %p2263_p3 = pnand %p2262_p2, %p2256_p13 }
  0xc5   :  { %2266 = shalt.err (!%p2263_p3)
}
  0xc6   :  { %133 = dma.hbm_to_vmem [thread:$0]  %s2901_s8, 2048, %s128_s1, [#allocation15], %s2421_s18, %s2421_s18, %s2422_s19  }
  0xc7   :  { %s2267_s5 = scalar_lea.hbm %s2903_s10, 2048 }
  0xc8   :  { %p2268_p4 = scmp.ne.s32.totalorder %s2903_s10, %s2267_s5  ;;  %p2271_p5 = scmp.lt.u32.totalorder %s2267_s5, %s2903_s10 }
  0xca   :  { %p2273_p6 = pnand %p2271_p5, %p2268_p4 }
  0xcc   :  { %2276 = shalt.err (!%p2273_p6)
}
  0xcd   :  { %s2277_s0 = scalar_lea.vmem %s2672_s25, 2048  ;;  %p2282_p8 = scmp.lt.s32.totalorder %s2672_s25, %s2672_s25 }
  0xce   :  { %p2278_p7 = scmp.ne.s32.totalorder %s2672_s25, %s2277_s0  ;;  %p2283_p9 = scmp.lt.s32.totalorder %s2277_s0, %s2277_s0 }
  0xd0   :  { %p2284_p10 = por %p2283_p9, %p2282_p8 }
  0xd2   :  { %p2285_p11 = pnand %p2284_p10, %p2278_p7 }
  0xd4   :  { %2288 = shalt.err (!%p2285_p11)
}
  0xd5   :  { %155 = dma.hbm_to_vmem [thread:$0]  %s2903_s10, 2048, %s2672_s25, [#allocation18], %s2421_s18, %s2421_s18, %s2422_s19  }
  0xd6   :  { %s2433_s1 = smov [#allocation22]   ;;  %s2434_s26 = smov [#allocation23]  }
  0xd7   :  { %s171_s21 = sshll.u32 %s2433_s1, 4  ;;  %s184_s9 = sshll.u32 %s2434_s26, 4  ;;  %s172_s21 = int_to_ptr.vmem [resolvable:$true] %s171_s21  ;;  %s185_s9 = int_to_ptr.vmem [resolvable:$true] %s184_s9 }
  0xd8   :  { %s2289_s3 = scalar_lea.hbm %s2905_s12, 2048 }
  0xd9   :  { %p2290_p12 = scmp.ne.s32.totalorder %s2905_s12, %s2289_s3  ;;  %p2293_p13 = scmp.lt.u32.totalorder %s2289_s3, %s2905_s12 }
  0xdb   :  { %p2295_p0 = pnand %p2293_p13, %p2290_p12 }
  0xdd   :  { %2298 = shalt.err (!%p2295_p0)
}
  0xde   :  { %s2299_s10 = scalar_lea.vmem %s172_s21, 2048  ;;  %p2304_p2 = scmp.lt.s32.totalorder %s172_s21, %s172_s21 }
  0xdf   :  { %p2300_p1 = scmp.ne.s32.totalorder %s172_s21, %s2299_s10  ;;  %p2305_p3 = scmp.lt.s32.totalorder %s2299_s10, %s2299_s10 }
  0xe1   :  { %p2306_p4 = por %p2305_p3, %p2304_p2 }
  0xe3   :  { %p2307_p5 = pnand %p2306_p4, %p2300_p1 }
  0xe5   :  { %2310 = shalt.err (!%p2307_p5)
}
  0xe6   :  { %177 = dma.hbm_to_vmem [thread:$0]  %s2905_s12, 2048, %s172_s21, [#allocation21], %s2421_s18, %s2421_s18, %s2422_s19  }
  0xe7   :  { %s2311_s5 = scalar_lea.hbm %s2906_s13, 16 }
  0xe8   :  { %p2312_p6 = scmp.ne.s32.totalorder %s2906_s13, %s2311_s5  ;;  %p2315_p7 = scmp.lt.u32.totalorder %s2311_s5, %s2906_s13 }
  0xea   :  { %p2317_p8 = pnand %p2315_p7, %p2312_p6 }
  0xec   :  { %2320 = shalt.err (!%p2317_p8)
}
  0xed   :  { %s2321_s0 = scalar_lea.vmem %s185_s9, 16  ;;  %s2325_s8 = scalar_lea.vmem %s185_s9, 32 }
  0xee   :  { %p2322_p9 = scmp.ne.s32.totalorder %s185_s9, %s2321_s0  ;;  %p2326_p10 = scmp.lt.s32.totalorder %s185_s9, %s185_s9 }
  0xef   :  { %p2327_p11 = scmp.lt.s32.totalorder %s2325_s8, %s2321_s0 }
  0xf1   :  { %p2328_p12 = por %p2327_p11, %p2326_p10 }
  0xf3   :  { %p2329_p13 = pnand %p2328_p12, %p2322_p9 }
  0xf5   :  { %2332 = shalt.err (!%p2329_p13)
}
  0xf6   :  { %187 = dma.hbm_to_vmem [thread:$0]  %s2906_s13, 16, %s185_s9, [#allocation24]  }
  0xf7   :  { %2399 = dma.done.wait [#allocation3], 1024  }
  0xf8   :  { %2400 = vsyncadd [#allocation3], 4294966272 }
  0xf9   :  { %2401 = dma.done.wait [#allocation6], 5120  }
  0xfa   :  { %2402 = vsyncadd [#allocation6], 4294962176 }
  0xfb   :  { %2403 = dma.done.wait [#allocation9], 2064  }
  0xfc   :  { %2404 = vsyncadd [#allocation9], 4294965232 }
  0xfd   :  { %2405 = dma.done.wait [#allocation12], 2112  }
  0xfe   :  { %2406 = vsyncadd [#allocation12], 4294965184 }
  0xff   :  { %2407 = dma.done.wait [#allocation15], 2064  }
 0x100   :  { %2408 = vsyncadd [#allocation15], 4294965232 }
 0x101   :  { %2409 = dma.done.wait [#allocation18], 2064  }
 0x102   :  { %2410 = vsyncadd [#allocation18], 4294965232 }
 0x103   :  { %2411 = dma.done.wait [#allocation21], 2064  }
 0x104   :  { %2412 = vsyncadd [#allocation21], 4294965232 }
 0x105   :  { %2413 = dma.done.wait [#allocation24], 16  }
 0x106   :  { %2414 = vsyncadd [#allocation24], 4294967280  ;;  %v246_v0 = vld [vmem:[#allocation8] sm:$0xff]  ;;  %v247_v1 = vld [vmem:[#allocation8 + $0x8] sm:$0xff]  ;;  %vm529_vm0 = vcmask 1042432   ;;  %vm504_vm1 = vcmask 23552  }
 0x107   :  { %v248_v2 = vld [vmem:[#allocation8 + $0x10] sm:$0xff]  ;;  %v1844_v3 = vpack.c.bf16 %v247_v1, %v246_v0  ;;  %v249_v4 = vld [vmem:[#allocation8 + $0x18] sm:$0xff]  ;;  %v250_v6 = vld [vmem:[#allocation8 + $0x20] sm:$0xff]  ;;  %s2435_s13 = smov [#allocation25]  }
 0x108   :  { %v1848_v5 = vpack.c.bf16 %v249_v4, %v248_v2  ;;  %v251_v7 = vld [vmem:[#allocation8 + $0x28] sm:$0xff]  ;;  %v230_v9 = vld [vmem:[#allocation2] sm:$0xff]  ;;  %v252_v10 = vld [vmem:[#allocation8 + $0x30] sm:$0xff]  ;;  %s1361_s1 = sshll.u32 %s2435_s13, 4  ;;  %s1362_s1 = int_to_ptr.vmem [resolvable:$true] %s1361_s1 }
 0x109   :  { %1845 = vmatprep.subr.bf16.mxu0 %v1844_v3  ;;  %v1852_v8 = vpack.c.bf16 %v251_v7, %v250_v6  ;;  %v253_v11 = vld [vmem:[#allocation8 + $0x38] sm:$0xff]  ;;  %1606 = vmatprep.mubr.f32.mxu0 %v230_v9  ;;  %v382_v12 = vld [vmem:[#allocation11] sm:$0xff]  ;;  %v383_v13 = vld [vmem:[#allocation11 + $0x8] sm:$0xff]  ;;  %s2333_s21 = scalar_lea.vmem %s1362_s1, 1024  ;;  %p2338_p1 = scmp.lt.s32.totalorder %s1362_s1, %s1362_s1 }
 0x10a   :  { %1847 = vmatpush3.bf16.msra.mxu0 %v1844_v3  ;;  %v384_v14 = vld [vmem:[#allocation11 + $0x10] sm:$0xff]  ;;  %v1856_v15 = vpack.c.bf16 %v253_v11, %v252_v10  ;;  %v254_v16 = vld [vmem:[#allocation8 + $0x40] sm:$0xff]  ;;  %v1876_v17 = vpack.c.bf16 %v383_v13, %v382_v12  ;;  %v255_v19 = vld [vmem:[#allocation8 + $0x48] sm:$0xff]  ;;  %p2334_p0 = scmp.ne.s32.totalorder %s1362_s1, %s2333_s21  ;;  %p2339_p2 = scmp.lt.s32.totalorder %s2333_s21, %s2333_s21 }
 0x10b   :  { %1849 = vmatprep.subr.bf16.mxu0 %v1848_v5  ;;  %v385_v18 = vld [vmem:[#allocation11 + $0x18] sm:$0xff]  ;;  %v386_v21 = vld [vmem:[#allocation11 + $0x20] sm:$0xff]  ;;  %v387_v22 = vld [vmem:[#allocation11 + $0x28] sm:$0xff]  ;;  %v1860_v23 = vpack.c.bf16 %v255_v19, %v254_v16 }
 0x10c   :  { %v1880_v20 = vpack.c.bf16 %v385_v18, %v384_v14  ;;  %1877 = vmatprep.subr.bf16.mxu1 %v1876_v17  ;;  %v256_v24 = vld [vmem:[#allocation8 + $0x50] sm:$0xff]  ;;  %v1884_v25 = vpack.c.bf16 %v387_v22, %v386_v21  ;;  %v257_v26 = vld [vmem:[#allocation8 + $0x58] sm:$0xff]  ;;  %v258_v30 = vld [vmem:[#allocation8 + $0x60] sm:$0xff]  ;;  %p2340_p3 = por %p2339_p2, %p2338_p1 }
 0x10d   :  { %1879 = vmatpush3.bf16.msra.mxu1 %v1876_v17  ;;  %v388_v27 = vld [vmem:[#allocation11 + $0x30] sm:$0xff]  ;;  %v389_v28 = vld [vmem:[#allocation11 + $0x38] sm:$0xff]  ;;  %v1864_v29 = vpack.c.bf16 %v257_v26, %v256_v24  ;;  %v259_v32 = vld [vmem:[#allocation8 + $0x68] sm:$0xff] }
 0x10e   :  { %1851 = vmatpush3.bf16.msra.mxu0 %v1848_v5  ;;  %1881 = vmatprep.subr.bf16.mxu1 %v1880_v20  ;;  %v1888_v31 = vpack.c.bf16 %v389_v28, %v388_v27  ;;  %v390_v33 = vld [vmem:[#allocation11 + $0x40] sm:$0xff]  ;;  %v391_v34 = vld [vmem:[#allocation11 + $0x48] sm:$0xff]  ;;  %v1868_v35 = vpack.c.bf16 %v259_v32, %v258_v30  ;;  %v261_v38 = vld [vmem:[#allocation8 + $0x78] sm:$0xff]  ;;  %p2341_p4 = pnand %p2340_p3, %p2334_p0 }
 0x10f   :  { %1853 = vmatprep.subr.bf16.mxu0 %v1852_v8  ;;  %v260_v36 = vld [vmem:[#allocation8 + $0x70] sm:$0xff]  ;;  %v1892_v37 = vpack.c.bf16 %v391_v34, %v390_v33  ;;  %v393_v40 = vld [vmem:[#allocation11 + $0x58] sm:$0xff]  ;;  %v394_v43 = vld [vmem:[#allocation11 + $0x60] sm:$0xff] }
 0x110   :  { %v392_v39 = vld [vmem:[#allocation11 + $0x50] sm:$0xff]  ;;  %v1872_v41 = vpack.c.bf16 %v261_v38, %v260_v36  ;;  %v395_v44 = vld [vmem:[#allocation11 + $0x68] sm:$0xff]  ;;  %v503_v46 = vld [vmem:[#allocation13] sm:$0x7] }
 0x111   :  { %1883 = vmatpush3.bf16.msra.mxu1 %v1880_v20  ;;  %v1896_v42 = vpack.c.bf16 %v393_v40, %v392_v39  ;;  %v1900_v45 = vpack.c.bf16 %v395_v44, %v394_v43  ;;  %v2736_v47 = vld [vmem:[#allocation2 + $0x8] sm:$0xff]  ;;  %v2738_v48 = vld [vmem:[#allocation2 + $0x10] sm:$0xff]  ;;  %v2742_v49 = vld [vmem:[#allocation2 + $0x18] sm:$0xff] }
 0x112   :  { %1855 = vmatpush3.bf16.msra.mxu0 %v1852_v8  ;;  %1885 = vmatprep.subr.bf16.mxu1 %v1884_v25  ;;  %v2744_v50 = vld [vmem:[#allocation2 + $0x20] sm:$0xff]  ;;  %v2748_v51 = vld [vmem:[#allocation2 + $0x28] sm:$0xff]  ;;  %v236_v52 = vld [vmem:[#allocation2 + $0x30] sm:$0xff] }
 0x113   :  { %1857 = vmatprep.subr.bf16.mxu0 %v1856_v15  ;;  %v2751_v53 = vld [vmem:[#allocation2 + $0x38] sm:$0xff]  ;;  %v238_v57 = vld [vmem:[#allocation5] sm:$0xff]  ;;  %v239_v58 = vld [vmem:[#allocation5 + $0x8] sm:$0xff] }
 0x114   :  { %v396_v54 = vld [vmem:[#allocation11 + $0x70] sm:$0xff]  ;;  %v397_v55 = vld [vmem:[#allocation11 + $0x78] sm:$0xff]  ;;  %v243_v62 = vld [vmem:[#allocation5 + $0x28] sm:$0xff] }
 0x115   :  { %1887 = vmatpush3.bf16.msra.mxu1 %v1884_v25  ;;  %v1904_v56 = vpack.c.bf16 %v397_v55, %v396_v54  ;;  %v240_v59 = vld [vmem:[#allocation5 + $0x10] sm:$0xff]  ;;  %v241_v60 = vld [vmem:[#allocation5 + $0x18] sm:$0xff]  ;;  %v242_v61 = vld [vmem:[#allocation5 + $0x20] sm:$0xff] }
 0x116   :  { %1859 = vmatpush3.bf16.msra.mxu0 %v1856_v15  ;;  %1889 = vmatprep.subr.bf16.mxu1 %v1888_v31  ;;  %v244_v63 = vld [vmem:[#allocation5 + $0x30] sm:$0xff]  ;;  %v245_v0 = vld [vmem:[#allocation5 + $0x38] sm:$0xff]  ;;  %v760_v1 = vld [vmem:[#allocation16] sm:$0xff] }
 0x117   :  { %1861 = vmatprep.subr.bf16.mxu0 %v1860_v23  ;;  %v761_v2 = vld [vmem:[#allocation16 + $0x8] sm:$0xff]  ;;  %v1407_v4 = vld [vmem:[#allocation10] ss:$0 sm:$0xff]  ;;  %v762_v9 = vld [vmem:[#allocation16 + $0x10] sm:$0xff] }
 0x118   :  { %v1908_v3 = vpack.c.bf16 %v761_v2, %v760_v1  ;;  %v763_v10 = vld [vmem:[#allocation16 + $0x18] sm:$0xff]  ;;  %v764_v18 = vld [vmem:[#allocation16 + $0x20] sm:$0xff]  ;;  %v765_v19 = vld [vmem:[#allocation16 + $0x28] sm:$0xff] }
 0x119   :  { %1891 = vmatpush3.bf16.msra.mxu1 %v1888_v31  ;;  %v1912_v16 = vpack.c.bf16 %v763_v10, %v762_v9  ;;  %v1916_v25 = vpack.c.bf16 %v765_v19, %v764_v18  ;;  %v766_v27 = vld [vmem:[#allocation16 + $0x30] sm:$0xff]  ;;  %v767_v28 = vld [vmem:[#allocation16 + $0x38] sm:$0xff]  ;;  %v768_v36 = vld [vmem:[#allocation16 + $0x40] sm:$0xff] }
 0x11a   :  { %1863 = vmatpush3.bf16.msra.mxu0 %v1860_v23  ;;  %1893 = vmatprep.subr.bf16.mxu1 %v1892_v37  ;;  %v1920_v34 = vpack.c.bf16 %v767_v28, %v766_v27  ;;  %v1417_v1 = vld [vmem:[#allocation14] ss:$0 sm:$0xff]  ;;  %v666_v27 = vld [vmem:[#allocation7 + $0x28] sm:$0xff] }
 0x11b   :  { %1865 = vmatprep.subr.bf16.mxu0 %v1864_v29 }
 0x11d   :  { %1895 = vmatpush3.bf16.msra.mxu1 %v1892_v37  ;;  %v769_v37 = vld [vmem:[#allocation16 + $0x48] sm:$0xff] }
 0x11e   :  { %1867 = vmatpush3.bf16.msra.mxu0 %v1864_v29  ;;  %1897 = vmatprep.subr.bf16.mxu1 %v1896_v42  ;;  %v1924_v40 = vpack.c.bf16 %v769_v37, %v768_v36 }
 0x11f   :  { %1869 = vmatprep.subr.bf16.mxu0 %v1868_v35 }
 0x121   :  { %1899 = vmatpush3.bf16.msra.mxu1 %v1896_v42  ;;  %v771_v42 = vld [vmem:[#allocation16 + $0x58] sm:$0xff] }
 0x122   :  { %1871 = vmatpush3.bf16.msra.mxu0 %v1868_v35  ;;  %1901 = vmatprep.subr.bf16.mxu1 %v1900_v45 }
 0x123   :  { %1873 = vmatprep.subr.bf16.mxu0 %v1872_v41 }
 0x125   :  { %1903 = vmatpush3.bf16.msra.mxu1 %v1900_v45 }
 0x126   :  { %1875 = vmatpush3.bf16.msra.mxu0 %v1872_v41  ;;  %1905 = vmatprep.subr.bf16.mxu1 %v1904_v56  ;;  %v770_v41 = vld [vmem:[#allocation16 + $0x50] sm:$0xff] }
 0x127   :  { %1662 = vmatprep.subr.msk.mxu0 %vm529_vm0, %v503_v46  ;;  %v1928_v43 = vpack.c.bf16 %v771_v42, %v770_v41  ;;  %v667_v41 = vld [vmem:[#allocation7 + $0x30] sm:$0xff]  ;;  %v686_v42 = vld [vmem:[#allocation7 + $0x40] sm:$0xff] }
 0x129   :  { %1607 = vmatmul.mubr.f32.vlgmr.msra.gmra.mrb[0].mxu0 %v2736_v47  ;;  %1907 = vmatpush3.bf16.msra.mxu1 %v1904_v56 }
 0x12a   :  { %1609 = vmatprep.mubr.f32.mxu0 %v2738_v48  ;;  %1663 = vmatpush3.msk.msra.mxu0 %vm529_vm0, %v503_v46  ;;  %v772_v46 = vld [vmem:[#allocation16 + $0x60] sm:$0xff] }
 0x12b   :  { %1909 = vmatprep.subr.bf16.mxu1 %v1908_v3 }
 0x12d   :  { %1610 = vmatmul.mubr.f32.gmra.mrb[2].mxu0 %v2742_v49 }
 0x12e   :  { %1612 = vmatprep.mubr.f32.mxu0 %v2744_v50 }
 0x131   :  { %1613 = vmatmul.mubr.f32.gmra.mrb[4].mxu0 %v2748_v51 }
 0x132   :  { %1615 = vmatprep.mubr.f32.mxu0 %v236_v52  ;;  %v773_v52 = vld [vmem:[#allocation16 + $0x68] sm:$0xff] }
 0x133   :  { %v1932_v54 = vpack.c.bf16 %v773_v52, %v772_v46 }
 0x135   :  { %1616 = vmatmul.mubr.f32.gmra.mrb[6].mxu0 %v2751_v53 }
 0x136   :  { %1664 = vmatprep.mubr.msk.f32.mxu0 %vm504_vm1, %v238_v57  ;;  %v774_v57 = vld [vmem:[#allocation16 + $0x70] sm:$0xff] }
 0x139   :  { %1665 = vmatmul.mubr.msk.f32.vlgmr.msra.gmra.mrb[8].mxu0 %vm504_vm1, %v239_v58  ;;  %v775_v58 = vld [vmem:[#allocation16 + $0x78] sm:$0xff] }
 0x13a   :  { %1667 = vmatprep.mubr.msk.f32.mxu0 %vm504_vm1, %v240_v59  ;;  %v1936_v59 = vpack.c.bf16 %v775_v58, %v774_v57 }
 0x13d   :  { %1668 = vmatmul.mubr.msk.f32.gmra.mrb[10].mxu0 %vm504_vm1, %v241_v60 }
 0x13e   :  { %1670 = vmatprep.mubr.msk.f32.mxu0 %vm504_vm1, %v242_v61 }
 0x141   :  { %1671 = vmatmul.mubr.msk.f32.gmra.mrb[12].mxu0 %vm504_vm1, %v243_v62 }
 0x142   :  { %1673 = vmatprep.mubr.msk.f32.mxu0 %vm504_vm1, %v244_v63 }
 0x145   :  { %1674 = vmatmul.mubr.msk.f32.gmra.mrb[14].mxu0 %vm504_vm1, %v245_v0 }
 0x1fc   :  { %v1608_v5 = vpop.f32.mrb[0].mxu0 }
 0x1fd   :  { %v341_v6 = vadd.f32 %v1608_v5, %v1407_v4  ;;  %v335_v7 = vpop.f32.mrb[1].mxu0 }
 0x1fe   :  { %v336_v8 = vadd.f32 %v1407_v4, %v335_v7  ;;  %v661_v7 = vld [vmem:[#allocation7] sm:$0xff] }
 0x1ff   :  { %v375_v13 = vmax.f32 %v341_v6, 0.0 }
 0x200   :  { %v1611_v11 = vpop.f32.mrb[2].mxu0  ;;  %v374_v12 = vmax.f32 %v336_v8, 0.0 }
 0x201   :  { %v351_v14 = vadd.f32 %v1611_v11, %v1407_v4  ;;  %v345_v15 = vpop.f32.mrb[3].mxu0 }
 0x202   :  { %v346_v17 = vadd.f32 %v1407_v4, %v345_v15  ;;  %1650 = vmatprep.mubr.f32.mxu1 %v374_v12  ;;  %v664_v15 = vld [vmem:[#allocation7 + $0x18] sm:$0xff] }
 0x203   :  { %1651 = vmatmul.mubr.f32.vlgmr.msra.gmra.mrb[0].mxu1 %v375_v13  ;;  %v377_v22 = vmax.f32 %v351_v14, 0.0 }
 0x204   :  { %v376_v20 = vmax.f32 %v346_v17, 0.0  ;;  %v1614_v21 = vpop.f32.mrb[4].mxu0  ;;  %1911 = vmatpush3.bf16.msra.mxu1 %v1908_v3  ;;  %v663_v17 = vld [vmem:[#allocation7 + $0x10] sm:$0xff] }
 0x205   :  { %v361_v23 = vadd.f32 %v1614_v21, %v1407_v4  ;;  %v355_v24 = vpop.f32.mrb[5].mxu0  ;;  %1913 = vmatprep.subr.bf16.mxu1 %v1912_v16 }
 0x206   :  { %v356_v26 = vadd.f32 %v1407_v4, %v355_v24  ;;  %1653 = vmatprep.mubr.f32.mxu1 %v376_v20 }
 0x207   :  { %1654 = vmatmul.mubr.f32.gmra.mrb[2].mxu1 %v377_v22  ;;  %v379_v31 = vmax.f32 %v361_v23, 0.0 }
 0x208   :  { %v378_v29 = vmax.f32 %v356_v26, 0.0  ;;  %v1617_v30 = vpop.f32.mrb[6].mxu0  ;;  %1915 = vmatpush3.bf16.msra.mxu1 %v1912_v16 }
 0x209   :  { %v371_v32 = vadd.f32 %v1617_v30, %v1407_v4  ;;  %v365_v33 = vpop.f32.mrb[7].mxu0  ;;  %1917 = vmatprep.subr.bf16.mxu1 %v1916_v25 }
 0x20a   :  { %v366_v35 = vadd.f32 %v1407_v4, %v365_v33  ;;  %1656 = vmatprep.mubr.f32.mxu1 %v378_v29  ;;  %v662_v4 = vld [vmem:[#allocation7 + $0x8] sm:$0xff]  ;;  %v665_v29 = vld [vmem:[#allocation7 + $0x20] sm:$0xff] }
 0x20b   :  { %1657 = vmatmul.mubr.f32.gmra.mrb[4].mxu1 %v379_v31  ;;  %v381_v39 = vmax.f32 %v371_v32, 0.0 }
 0x20c   :  { %v380_v38 = vmax.f32 %v366_v35, 0.0  ;;  %1919 = vmatpush3.bf16.msra.mxu1 %v1916_v25  ;;  %v1666_v44 = vpop.f32.mrb[8].mxu0 }
 0x20d   :  { %1921 = vmatprep.subr.bf16.mxu1 %v1920_v34  ;;  %v599_v45 = vpop.f32.mrb[9].mxu0 }
 0x20e   :  { %1659 = vmatprep.mubr.f32.mxu1 %v380_v38 }
 0x20f   :  { %1660 = vmatmul.mubr.f32.gmra.mrb[6].mxu1 %v381_v39  ;;  %v668_v39 = vld [vmem:[#allocation7 + $0x38] sm:$0xff] }
 0x210   :  { %1923 = vmatpush3.bf16.msra.mxu1 %v1920_v34  ;;  %v1669_v55 = vpop.f32.mrb[10].mxu0 }
 0x211   :  { %1925 = vmatprep.subr.bf16.mxu1 %v1924_v40  ;;  %v609_v56 = vpop.f32.mrb[11].mxu0 }
 0x214   :  { %1927 = vmatpush3.bf16.msra.mxu1 %v1924_v40  ;;  %v1672_v60 = vpop.f32.mrb[12].mxu0 }
 0x215   :  { %1929 = vmatprep.subr.bf16.mxu1 %v1928_v43  ;;  %v619_v61 = vpop.f32.mrb[13].mxu0 }
 0x218   :  { %1931 = vmatpush3.bf16.msra.mxu1 %v1928_v43  ;;  %v1675_v62 = vpop.f32.mrb[14].mxu0 }
 0x219   :  { %1933 = vmatprep.subr.bf16.mxu1 %v1932_v54  ;;  %v629_v63 = vpop.f32.mrb[15].mxu0 }
 0x21c   :  { %1935 = vmatpush3.bf16.msra.mxu1 %v1932_v54 }
 0x21d   :  { %1937 = vmatprep.subr.bf16.mxu1 %v1936_v59 }
 0x220   :  { %1939 = vmatpush3.bf16.msra.mxu1 %v1936_v59 }
 0x2d6   :  { %v1652_v0 = vpop.f32.mrb[0].mxu1 }
 0x2d7   :  { %v639_v2 = vsub.f32 %v1652_v0, %v1666_v44  ;;  %v464_v3 = vpop.f32.mrb[1].mxu1 }
 0x2d8   :  { %v638_v5 = vsub.f32 %v464_v3, %v599_v45 }
 0x2d9   :  { %v2754_v6 = vadd.f32 %v1417_v1, %v639_v2 }
 0x2da   :  { %v2756_v8 = vadd.f32 %v1417_v1, %v638_v5  ;;  %v1655_v9 = vpop.f32.mrb[2].mxu1  ;;  %v692_v5 = vld [vmem:[#allocation7 + $0x70] sm:$0xff] }
 0x2db   :  { %v670_v10 = vadd.f32 %v662_v4, %v2754_v6  ;;  %v641_v11 = vsub.f32 %v1655_v9, %v1669_v55  ;;  %v474_v12 = vpop.f32.mrb[3].mxu1  ;;  %v687_v55 = vld [vmem:[#allocation7 + $0x48] sm:$0xff] }
 0x2dc   :  { %v640_v13 = vsub.f32 %v474_v12, %v609_v56  ;;  %v669_v14 = vadd.f32 %v661_v7, %v2756_v8  ;;  %v694_v54 = vadd.f32 %v686_v42, %v2756_v8  ;;  %v688_v56 = vld [vmem:[#allocation7 + $0x50] sm:$0xff]  ;;  %v695_v59 = vadd.f32 %v687_v55, %v2754_v6  ;;  %v691_v4 = vld [vmem:[#allocation7 + $0x68] sm:$0xff]  ;;  %v693_v12 = vld [vmem:[#allocation7 + $0x78] sm:$0xff] }
 0x2dd   :  { %v2760_v16 = vadd.f32 %v1417_v1, %v641_v11  ;;  %v678_v21 = vmax.f32 %v670_v10, 0.0  ;;  %v736_v42 = vld [vmem:[#allocation7 + $0xc0] sm:$0xff]  ;;  %v738_v55 = vld [vmem:[#allocation7 + $0xd0] sm:$0xff] }
 0x2de   :  { %v2762_v18 = vadd.f32 %v1417_v1, %v640_v13  ;;  %v1658_v19 = vpop.f32.mrb[4].mxu1  ;;  %v677_v20 = vmax.f32 %v669_v14, 0.0  ;;  %v703_v0 = vmax.f32 %v695_v59, 0.0  ;;  %v711_v13 = vld [vmem:[#allocation7 + $0x80] sm:$0xff] }
 0x2df   :  { %v643_v22 = vsub.f32 %v1658_v19, %v1672_v60  ;;  %v484_v23 = vpop.f32.mrb[5].mxu1  ;;  %v672_v24 = vadd.f32 %v664_v15, %v2760_v16  ;;  %v702_v60 = vmax.f32 %v694_v54, 0.0  ;;  %v719_v19 = vadd.f32 %v711_v13, %v2756_v8  ;;  %v737_v54 = vld [vmem:[#allocation7 + $0xc8] sm:$0xff] }
 0x2e0   :  { %v642_v25 = vsub.f32 %v484_v23, %v619_v61  ;;  %1708 = vmatprep.mubr.f32.mxu1 %v677_v20  ;;  %v671_v26 = vadd.f32 %v663_v17, %v2762_v18  ;;  %v696_v61 = vadd.f32 %v688_v56, %v2762_v18  ;;  %v712_v20 = vld [vmem:[#allocation7 + $0x88] sm:$0xff]  ;;  %v746_v59 = vadd.f32 %v738_v55, %v2762_v18 }
 0x2e1   :  { %v2766_v28 = vadd.f32 %v1417_v1, %v643_v22  ;;  %1709 = vmatmul.mubr.f32.vlgmr.msra.gmra.mrb[8].mxu1 %v678_v21  ;;  %v680_v35 = vmax.f32 %v672_v24, 0.0  ;;  %v713_v21 = vld [vmem:[#allocation7 + $0x90] sm:$0xff]  ;;  %v720_v23 = vadd.f32 %v712_v20, %v2754_v6  ;;  %v727_v24 = vmax.f32 %v719_v19, 0.0  ;;  %v1035_v13 = vld [vmem:[#allocation19 + $0x18] sm:$0xff] }
 0x2e2   :  { %v2768_v30 = vadd.f32 %v1417_v1, %v642_v25  ;;  %v1661_v31 = vpop.f32.mrb[6].mxu1  ;;  %v679_v32 = vmax.f32 %v671_v26, 0.0  ;;  %v704_v2 = vmax.f32 %v696_v61, 0.0  ;;  %v721_v25 = vadd.f32 %v713_v21, %v2762_v18  ;;  %v714_v26 = vld [vmem:[#allocation7 + $0x98] sm:$0xff]  ;;  %v740_v61 = vld [vmem:[#allocation7 + $0xe0] sm:$0xff]  ;;  %v1040_v21 = vld [vmem:[#allocation19 + $0x40] sm:$0xff] }
 0x2e3   :  { %v645_v33 = vsub.f32 %v1661_v31, %v1675_v62  ;;  %v494_v34 = vpop.f32.mrb[7].mxu1  ;;  %v674_v36 = vadd.f32 %v666_v27, %v2766_v28  ;;  %v689_v62 = vld [vmem:[#allocation7 + $0x58] sm:$0xff]  ;;  %v699_v9 = vadd.f32 %v691_v4, %v2766_v28  ;;  %v715_v27 = vld [vmem:[#allocation7 + $0xa0] sm:$0xff]  ;;  %v722_v31 = vadd.f32 %v714_v26, %v2760_v16 }
 0x2e4   :  { %v644_v37 = vsub.f32 %v494_v34, %v629_v63  ;;  %1711 = vmatprep.mubr.f32.mxu1 %v679_v32  ;;  %v673_v38 = vadd.f32 %v665_v29, %v2768_v30  ;;  %v690_v63 = vld [vmem:[#allocation7 + $0x60] sm:$0xff]  ;;  %v728_v29 = vmax.f32 %v720_v23, 0.0  ;;  %v729_v32 = vmax.f32 %v721_v25, 0.0  ;;  %v716_v34 = vld [vmem:[#allocation7 + $0xa8] sm:$0xff] }
 0x2e5   :  { %v2772_v40 = vadd.f32 %v1417_v1, %v645_v33  ;;  %1712 = vmatmul.mubr.f32.gmra.mrb[10].mxu1 %v680_v35  ;;  %v682_v45 = vmax.f32 %v674_v36, 0.0  ;;  %v698_v3 = vadd.f32 %v690_v63, %v2768_v30  ;;  %v707_v14 = vmax.f32 %v699_v9, 0.0  ;;  %v717_v35 = vld [vmem:[#allocation7 + $0xb0] sm:$0xff]  ;;  %v1039_v19 = vld [vmem:[#allocation19 + $0x38] sm:$0xff] }
 0x2e6   :  { %v2774_v43 = vadd.f32 %v1417_v1, %v644_v37  ;;  %v681_v44 = vmax.f32 %v673_v38, 0.0  ;;  %v697_v1 = vadd.f32 %v689_v62, %v2760_v16  ;;  %v723_v33 = vadd.f32 %v715_v27, %v2768_v30  ;;  %v1043_v25 = vld [vmem:[#allocation19 + $0x58] sm:$0xff]  ;;  %v1044_v27 = vld [vmem:[#allocation19 + $0x60] sm:$0xff] }
 0x2e7   :  { %v676_v46 = vadd.f32 %v668_v39, %v2772_v40  ;;  %v706_v10 = vmax.f32 %v698_v3, 0.0  ;;  %v701_v15 = vadd.f32 %v693_v12, %v2772_v40  ;;  %v730_v36 = vmax.f32 %v722_v31, 0.0 }
 0x2e8   :  { %1714 = vmatprep.mubr.f32.mxu1 %v681_v44  ;;  %v675_v52 = vadd.f32 %v667_v41, %v2774_v43  ;;  %v705_v7 = vmax.f32 %v697_v1, 0.0  ;;  %v700_v11 = vadd.f32 %v692_v5, %v2774_v43  ;;  %v724_v37 = vadd.f32 %v716_v34, %v2766_v28  ;;  %v718_v41 = vld [vmem:[#allocation7 + $0xb8] sm:$0xff]  ;;  %v741_v1 = vld [vmem:[#allocation7 + $0xe8] sm:$0xff] }
 0x2e9   :  { %1715 = vmatmul.mubr.f32.gmra.mrb[12].mxu1 %v682_v45  ;;  %v684_v58 = vmax.f32 %v676_v46, 0.0  ;;  %v709_v22 = vmax.f32 %v701_v15, 0.0  ;;  %v731_v38 = vmax.f32 %v723_v33, 0.0  ;;  %v725_v39 = vadd.f32 %v717_v35, %v2774_v43  ;;  %v743_v5 = vld [vmem:[#allocation7 + $0xf8] sm:$0xff]  ;;  %v1047_v33 = vld [vmem:[#allocation19 + $0x78] sm:$0xff]  ;;  %v1168_v35 = vld [vmem:[#allocation22] sm:$0xff] }
 0x2ea   :  { %v683_v57 = vmax.f32 %v675_v52, 0.0  ;;  %v708_v17 = vmax.f32 %v700_v11, 0.0  ;;  %v732_v44 = vmax.f32 %v724_v37, 0.0  ;;  %v726_v45 = vadd.f32 %v718_v41, %v2772_v40  ;;  %v1033_v11 = vld [vmem:[#allocation19 + $0x8] sm:$0xff] }
 0x2eb   :  { %v733_v46 = vmax.f32 %v725_v39, 0.0  ;;  %v744_v52 = vadd.f32 %v736_v42, %v2756_v8  ;;  %v748_v8 = vadd.f32 %v740_v61, %v2768_v30  ;;  %v751_v9 = vadd.f32 %v743_v5, %v2772_v40  ;;  %v1037_v15 = vld [vmem:[#allocation19 + $0x28] sm:$0xff]  ;;  %v1038_v40 = vld [vmem:[#allocation19 + $0x30] sm:$0xff] }
 0x2ec   :  { %1717 = vmatprep.mubr.f32.mxu1 %v683_v57  ;;  %v734_v56 = vmax.f32 %v726_v45, 0.0  ;;  %v745_v57 = vadd.f32 %v737_v54, %v2754_v6  ;;  %v749_v6 = vadd.f32 %v741_v1, %v2766_v28  ;;  %v1034_v28 = vld [vmem:[#allocation19 + $0x10] sm:$0xff]  ;;  %v1952_v20 = vpack.c.bf16 %v1039_v19, %v1038_v40  ;;  %v2805_v54 = vld [vmem:[#allocation17] ss:$0 sm:$0xff] }
 0x2ed   :  { %1718 = vmatmul.mubr.f32.gmra.mrb[14].mxu1 %v684_v58  ;;  %v752_v58 = vmax.f32 %v744_v52, 0.0  ;;  %v756_v4 = vmax.f32 %v748_v8, 0.0  ;;  %v759_v30 = vmax.f32 %v751_v9, 0.0 }
 0x2ee   :  { %1720 = vmatprep.mubr.f32.mxu1 %v702_v60  ;;  %v739_v60 = vld [vmem:[#allocation7 + $0xd8] sm:$0xff]  ;;  %v753_v62 = vmax.f32 %v745_v57, 0.0 }
 0x2ef   :  { %v747_v63 = vadd.f32 %v739_v60, %v2760_v16 }
 0x2f1   :  { %1721 = vmatmul.mubr.f32.gmra.mrb[16].mxu1 %v703_v0  ;;  %v754_v0 = vmax.f32 %v746_v59, 0.0  ;;  %v755_v3 = vmax.f32 %v747_v63, 0.0 }
 0x2f2   :  { %1723 = vmatprep.mubr.f32.mxu1 %v704_v2  ;;  %v742_v2 = vld [vmem:[#allocation7 + $0xf0] sm:$0xff] }
 0x2f3   :  { %v750_v18 = vadd.f32 %v742_v2, %v2774_v43  ;;  %v1036_v43 = vld [vmem:[#allocation19 + $0x20] sm:$0xff] }
 0x2f5   :  { %1724 = vmatmul.mubr.f32.gmra.mrb[18].mxu1 %v705_v7  ;;  %v757_v7 = vmax.f32 %v749_v6, 0.0  ;;  %v758_v16 = vmax.f32 %v750_v18, 0.0 }
 0x2f6   :  { %1726 = vmatprep.mubr.f32.mxu1 %v706_v10  ;;  %v1032_v10 = vld [vmem:[#allocation19] sm:$0xff] }
 0x2f7   :  { %v1940_v12 = vpack.c.bf16 %v1033_v11, %v1032_v10 }
 0x2f9   :  { %1727 = vmatmul.mubr.f32.gmra.mrb[20].mxu1 %v707_v14  ;;  %1941 = vmatprep.subr.bf16.mxu0 %v1940_v12  ;;  %v1944_v14 = vpack.c.bf16 %v1035_v13, %v1034_v28 }
 0x2fa   :  { %1729 = vmatprep.mubr.f32.mxu1 %v708_v17  ;;  %1943 = vmatpush3.bf16.msra.mxu0 %v1940_v12  ;;  %v1948_v17 = vpack.c.bf16 %v1037_v15, %v1036_v43 }
 0x2fb   :  { %1945 = vmatprep.subr.bf16.mxu0 %v1944_v14 }
 0x2fd   :  { %1730 = vmatmul.mubr.f32.gmra.mrb[22].mxu1 %v709_v22  ;;  %v1041_v22 = vld [vmem:[#allocation19 + $0x48] sm:$0xff] }
 0x2fe   :  { %1732 = vmatprep.mubr.f32.mxu1 %v727_v24  ;;  %1947 = vmatpush3.bf16.msra.mxu0 %v1944_v14  ;;  %v1956_v23 = vpack.c.bf16 %v1041_v22, %v1040_v21  ;;  %v1042_v24 = vld [vmem:[#allocation19 + $0x50] sm:$0xff] }
 0x2ff   :  { %1949 = vmatprep.subr.bf16.mxu0 %v1948_v17  ;;  %v1960_v26 = vpack.c.bf16 %v1043_v25, %v1042_v24 }
 0x301   :  { %1733 = vmatmul.mubr.f32.gmra.mrb[24].mxu1 %v728_v29  ;;  %v1045_v29 = vld [vmem:[#allocation19 + $0x68] sm:$0xff] }
 0x302   :  { %1735 = vmatprep.mubr.f32.mxu1 %v729_v32  ;;  %1951 = vmatpush3.bf16.msra.mxu0 %v1948_v17  ;;  %v1964_v31 = vpack.c.bf16 %v1045_v29, %v1044_v27  ;;  %v1046_v32 = vld [vmem:[#allocation19 + $0x70] sm:$0xff] }
 0x303   :  { %1953 = vmatprep.subr.bf16.mxu0 %v1952_v20  ;;  %v1968_v34 = vpack.c.bf16 %v1047_v33, %v1046_v32 }
 0x305   :  { %1736 = vmatmul.mubr.f32.gmra.mrb[26].mxu1 %v730_v36  ;;  %v1169_v36 = vld [vmem:[#allocation22 + $0x8] sm:$0xff] }
 0x306   :  { %1738 = vmatprep.mubr.f32.mxu1 %v731_v38  ;;  %1955 = vmatpush3.bf16.msra.mxu0 %v1952_v20  ;;  %v2802_v37 = vpack.c.bf16 %v1169_v36, %v1168_v35 }
 0x307   :  { %1957 = vmatprep.subr.bf16.mxu0 %v1956_v23 }
 0x309   :  { %1739 = vmatmul.mubr.f32.gmra.mrb[28].mxu1 %v732_v44 }
 0x30a   :  { %1741 = vmatprep.mubr.f32.mxu1 %v733_v46  ;;  %1959 = vmatpush3.bf16.msra.mxu0 %v1956_v23 }
 0x30b   :  { %1961 = vmatprep.subr.bf16.mxu0 %v1960_v26 }
 0x30d   :  { %1742 = vmatmul.mubr.f32.gmra.mrb[30].mxu1 %v734_v56 }
 0x30e   :  { %1744 = vmatprep.mubr.f32.mxu1 %v752_v58  ;;  %1963 = vmatpush3.bf16.msra.mxu0 %v1960_v26 }
 0x30f   :  { %1965 = vmatprep.subr.bf16.mxu0 %v1964_v31 }
 0x311   :  { %1745 = vmatmul.mubr.f32.gmra.mrb[32].mxu1 %v753_v62 }
 0x312   :  { %1747 = vmatprep.mubr.f32.mxu1 %v754_v0  ;;  %1967 = vmatpush3.bf16.msra.mxu0 %v1964_v31 }
 0x313   :  { %1969 = vmatprep.subr.bf16.mxu0 %v1968_v34 }
 0x315   :  { %1748 = vmatmul.mubr.f32.gmra.mrb[34].mxu1 %v755_v3 }
 0x316   :  { %1750 = vmatprep.mubr.f32.mxu1 %v756_v4  ;;  %1971 = vmatpush3.bf16.msra.mxu0 %v1968_v34 }
 0x317   :  { %1973 = vmatprep.subr.bf16.mxu0 %v2802_v37 }
 0x319   :  { %1751 = vmatmul.mubr.f32.gmra.mrb[36].mxu1 %v757_v7 }
 0x31a   :  { %1753 = vmatprep.mubr.f32.mxu1 %v758_v16 }
 0x31d   :  { %1754 = vmatmul.mubr.f32.gmra.mrb[38].mxu1 %v759_v30 }
 0x3b4   :  { %v1710_v38 = vpop.f32.mrb[8].mxu1 }
 0x3b5   :  { %v849_v39 = vpop.f32.mrb[9].mxu1  ;;  %v855_v56 = vadd.f32 %v1710_v38, %v2805_v54 }
 0x3b6   :  { %v850_v59 = vadd.f32 %v2805_v54, %v849_v39 }
 0x3b8   :  { %v1713_v41 = vpop.f32.mrb[10].mxu1 }
 0x3b9   :  { %v859_v42 = vpop.f32.mrb[11].mxu1  ;;  %v865_v0 = vadd.f32 %v1713_v41, %v2805_v54 }
 0x3ba   :  { %v860_v2 = vadd.f32 %v2805_v54, %v859_v42 }
 0x3bc   :  { %v1716_v44 = vpop.f32.mrb[12].mxu1 }
 0x3bd   :  { %v869_v45 = vpop.f32.mrb[13].mxu1  ;;  %v875_v5 = vadd.f32 %v1716_v44, %v2805_v54 }
 0x3be   :  { %v870_v16 = vadd.f32 %v2805_v54, %v869_v45 }
 0x3c0   :  { %v1719_v46 = vpop.f32.mrb[14].mxu1 }
 0x3c1   :  { %v879_v52 = vpop.f32.mrb[15].mxu1  ;;  %v885_v28 = vadd.f32 %v1719_v46, %v2805_v54 }
 0x3c2   :  { %v880_v43 = vadd.f32 %v2805_v54, %v879_v52 }
 0x3c4   :  { %v1722_v55 = vpop.f32.mrb[16].mxu1 }
 0x3c5   :  { %v895_v57 = vadd.f32 %v1722_v55, %v2805_v54  ;;  %v889_v58 = vpop.f32.mrb[17].mxu1 }
 0x3c6   :  { %v890_v60 = vadd.f32 %v2805_v54, %v889_v58 }
 0x3c7   :  { %v1009_v61 = vmax.f32 %v855_v56, %v895_v57 }
 0x3c8   :  { %v1008_v62 = vmax.f32 %v850_v59, %v890_v60  ;;  %v1725_v63 = vpop.f32.mrb[18].mxu1  ;;  %v1170_v59 = vld [vmem:[#allocation22 + $0x10] sm:$0xff]  ;;  %v1171_v60 = vld [vmem:[#allocation22 + $0x18] sm:$0xff] }
 0x3c9   :  { %v905_v8 = vadd.f32 %v1725_v63, %v2805_v54  ;;  %v899_v1 = vpop.f32.mrb[19].mxu1 }
 0x3ca   :  { %v900_v3 = vadd.f32 %v2805_v54, %v899_v1  ;;  %v1976_v1 = vpack.c.bf16 %v1171_v60, %v1170_v59 }
 0x3cb   :  { %v1011_v6 = vmax.f32 %v865_v0, %v905_v8 }
 0x3cc   :  { %v1010_v4 = vmax.f32 %v860_v2, %v900_v3  ;;  %v1728_v18 = vpop.f32.mrb[20].mxu1  ;;  %v1172_v3 = vld [vmem:[#allocation22 + $0x20] sm:$0xff] }
 0x3cd   :  { %v915_v7 = vadd.f32 %v1728_v18, %v2805_v54  ;;  %v909_v9 = vpop.f32.mrb[21].mxu1 }
 0x3ce   :  { %v910_v30 = vadd.f32 %v2805_v54, %v909_v9 }
 0x3cf   :  { %v1013_v10 = vmax.f32 %v875_v5, %v915_v7 }
 0x3d0   :  { %v1012_v11 = vmax.f32 %v870_v16, %v910_v30  ;;  %v1731_v12 = vpop.f32.mrb[22].mxu1 }
 0x3d1   :  { %v925_v13 = vadd.f32 %v1731_v12, %v2805_v54  ;;  %v919_v14 = vpop.f32.mrb[23].mxu1 }
 0x3d2   :  { %v920_v15 = vadd.f32 %v2805_v54, %v919_v14 }
 0x3d3   :  { %v1015_v17 = vmax.f32 %v885_v28, %v925_v13 }
 0x3d4   :  { %v1014_v40 = vmax.f32 %v880_v43, %v920_v15  ;;  %v1734_v19 = vpop.f32.mrb[24].mxu1 }
 0x3d5   :  { %v935_v20 = vadd.f32 %v1734_v19, %v2805_v54  ;;  %v929_v21 = vpop.f32.mrb[25].mxu1 }
 0x3d6   :  { %v930_v22 = vadd.f32 %v2805_v54, %v929_v21 }
 0x3d7   :  { %v1017_v23 = vmax.f32 %v1009_v61, %v935_v20 }
 0x3d8   :  { %v1016_v24 = vmax.f32 %v1008_v62, %v930_v22  ;;  %v1737_v25 = vpop.f32.mrb[26].mxu1  ;;  %v1178_v22 = vld [vmem:[#allocation22 + $0x50] sm:$0xff] }
 0x3d9   :  { %v945_v26 = vadd.f32 %v1737_v25, %v2805_v54  ;;  %v939_v27 = vpop.f32.mrb[27].mxu1  ;;  %v1180_v25 = vld [vmem:[#allocation22 + $0x60] sm:$0xff] }
 0x3da   :  { %v940_v29 = vadd.f32 %v2805_v54, %v939_v27  ;;  %v1182_v27 = vld [vmem:[#allocation22 + $0x70] sm:$0xff] }
 0x3db   :  { %v1019_v31 = vmax.f32 %v1011_v6, %v945_v26  ;;  %v1173_v6 = vld [vmem:[#allocation22 + $0x28] sm:$0xff] }
 0x3dc   :  { %v1018_v32 = vmax.f32 %v1010_v4, %v940_v29  ;;  %v1740_v33 = vpop.f32.mrb[28].mxu1  ;;  %v1980_v16 = vpack.c.bf16 %v1173_v6, %v1172_v3  ;;  %v1181_v26 = vld [vmem:[#allocation22 + $0x68] sm:$0xff]  ;;  %v1183_v29 = vld [vmem:[#allocation22 + $0x78] sm:$0xff]  ;;  %v1420_v3 = vld [vmem:[#allocation23] ss:$0 sm:$0xff] }
 0x3dd   :  { %v955_v34 = vadd.f32 %v1740_v33, %v2805_v54  ;;  %v949_v35 = vpop.f32.mrb[29].mxu1 }
 0x3de   :  { %v950_v36 = vadd.f32 %v2805_v54, %v949_v35 }
 0x3df   :  { %v1021_v38 = vmax.f32 %v1013_v10, %v955_v34  ;;  %v1174_v10 = vld [vmem:[#allocation22 + $0x30] sm:$0xff] }
 0x3e0   :  { %v1020_v39 = vmax.f32 %v1012_v11, %v950_v36  ;;  %v1743_v41 = vpop.f32.mrb[30].mxu1  ;;  %v1175_v11 = vld [vmem:[#allocation22 + $0x38] sm:$0xff] }
 0x3e1   :  { %v965_v42 = vadd.f32 %v1743_v41, %v2805_v54  ;;  %v959_v44 = vpop.f32.mrb[31].mxu1 }
 0x3e2   :  { %v960_v45 = vadd.f32 %v2805_v54, %v959_v44 }
 0x3e3   :  { %v1023_v46 = vmax.f32 %v1015_v17, %v965_v42  ;;  %v1176_v17 = vld [vmem:[#allocation22 + $0x40] sm:$0xff] }
 0x3e4   :  { %v1022_v52 = vmax.f32 %v1014_v40, %v960_v45  ;;  %v1746_v55 = vpop.f32.mrb[32].mxu1  ;;  %v1177_v40 = vld [vmem:[#allocation22 + $0x48] sm:$0xff] }
 0x3e5   :  { %v975_v56 = vadd.f32 %v1746_v55, %v2805_v54  ;;  %v969_v57 = vpop.f32.mrb[33].mxu1  ;;  %v1988_v21 = vpack.c.bf16 %v1177_v40, %v1176_v17 }
 0x3e6   :  { %v970_v58 = vadd.f32 %v2805_v54, %v969_v57 }
 0x3e7   :  { %v1025_v61 = vmax.f32 %v1017_v23, %v975_v56  ;;  %v1179_v23 = vld [vmem:[#allocation22 + $0x58] sm:$0xff] }
 0x3e8   :  { %v1024_v62 = vmax.f32 %v1016_v24, %v970_v58  ;;  %v1749_v63 = vpop.f32.mrb[34].mxu1  ;;  %v1992_v24 = vpack.c.bf16 %v1179_v23, %v1178_v22 }
 0x3e9   :  { %v985_v0 = vadd.f32 %v1749_v63, %v2805_v54  ;;  %v979_v8 = vpop.f32.mrb[35].mxu1 }
 0x3ea   :  { %v980_v2 = vadd.f32 %v2805_v54, %v979_v8  ;;  %1788 = vmatprep.mubr.f32.mxu0 %v1024_v62 }
 0x3eb   :  { %v1027_v4 = vmax.f32 %v1019_v31, %v985_v0  ;;  %1789 = vmatmul.mubr.f32.vlgmr.msra.gmra.mrb[16].mxu0 %v1025_v61  ;;  %v2000_v31 = vpack.c.bf16 %v1183_v29, %v1182_v27  ;;  %v2024_v29 = vld [vmem:[#allocation2 + $0x30] sm:$0xff] }
 0x3ec   :  { %v1026_v18 = vmax.f32 %v1018_v32, %v980_v2  ;;  %v1752_v5 = vpop.f32.mrb[36].mxu1  ;;  %1975 = vmatpush3.bf16.msra.mxu0 %v2802_v37  ;;  %v1984_v37 = vpack.c.bf16 %v1175_v11, %v1174_v10  ;;  %v1419_v32 = vld [vmem:[#allocation20] ss:$0 sm:$0xff] }
 0x3ed   :  { %v995_v7 = vadd.f32 %v1752_v5, %v2805_v54  ;;  %v989_v9 = vpop.f32.mrb[37].mxu1  ;;  %1977 = vmatprep.subr.bf16.mxu0 %v1976_v1 }
 0x3ee   :  { %v990_v30 = vadd.f32 %v2805_v54, %v989_v9  ;;  %1791 = vmatprep.mubr.f32.mxu0 %v1026_v18  ;;  %v2023_v18 = vld [vmem:[#allocation2] sm:$0xff] }
 0x3ef   :  { %v1029_v12 = vmax.f32 %v1021_v38, %v995_v7  ;;  %1792 = vmatmul.mubr.f32.gmra.mrb[18].mxu0 %v1027_v4 }
 0x3f0   :  { %v1028_v28 = vmax.f32 %v1020_v39, %v990_v30  ;;  %v1755_v13 = vpop.f32.mrb[38].mxu1  ;;  %1979 = vmatpush3.bf16.msra.mxu0 %v1976_v1 }
 0x3f1   :  { %v1005_v14 = vadd.f32 %v1755_v13, %v2805_v54  ;;  %v999_v43 = vpop.f32.mrb[39].mxu1  ;;  %1981 = vmatprep.subr.bf16.mxu0 %v1980_v16 }
 0x3f2   :  { %v1000_v15 = vadd.f32 %v2805_v54, %v999_v43  ;;  %1794 = vmatprep.mubr.f32.mxu0 %v1028_v28  ;;  %v1996_v54 = vpack.c.bf16 %v1181_v26, %v1180_v25 }
 0x3f3   :  { %v1031_v19 = vmax.f32 %v1023_v46, %v1005_v14  ;;  %1795 = vmatmul.mubr.f32.gmra.mrb[20].mxu0 %v1029_v12 }
 0x3f4   :  { %v1030_v20 = vmax.f32 %v1022_v52, %v1000_v15  ;;  %1983 = vmatpush3.bf16.msra.mxu0 %v1980_v16 }
 0x3f5   :  { %1985 = vmatprep.subr.bf16.mxu0 %v1984_v37 }
 0x3f6   :  { %1797 = vmatprep.mubr.f32.mxu0 %v1030_v20 }
 0x3f7   :  { %1798 = vmatmul.mubr.f32.gmra.mrb[22].mxu0 %v1031_v19 }
 0x3f8   :  { %1987 = vmatpush3.bf16.msra.mxu0 %v1984_v37 }
 0x3f9   :  { %1989 = vmatprep.subr.bf16.mxu0 %v1988_v21 }
 0x3fc   :  { %1991 = vmatpush3.bf16.msra.mxu0 %v1988_v21 }
 0x3fd   :  { %1993 = vmatprep.subr.bf16.mxu0 %v1992_v24 }
 0x400   :  { %1995 = vmatpush3.bf16.msra.mxu0 %v1992_v24 }
 0x401   :  { %1997 = vmatprep.subr.bf16.mxu0 %v1996_v54 }
 0x404   :  { %1999 = vmatpush3.bf16.msra.mxu0 %v1996_v54 }
 0x405   :  { %2001 = vmatprep.subr.bf16.mxu0 %v2000_v31 }
 0x408   :  { %2003 = vmatpush3.bf16.msra.mxu0 %v2000_v31 }
 0x4be   :  { %v1790_v33 = vpop.f32.mrb[16].mxu0 }
 0x4bf   :  { %v1127_v34 = vadd.f32 %v1790_v33, %v1419_v32  ;;  %v1121_v35 = vpop.f32.mrb[17].mxu0 }
 0x4c0   :  { %v1122_v36 = vadd.f32 %v1419_v32, %v1121_v35 }
 0x4c1   :  { %v1161_v41 = vmax.f32 %v1127_v34, 0.0 }
 0x4c2   :  { %v1160_v38 = vmax.f32 %v1122_v36, 0.0  ;;  %v1793_v39 = vpop.f32.mrb[18].mxu0 }
 0x4c3   :  { %v1137_v42 = vadd.f32 %v1793_v39, %v1419_v32  ;;  %v1131_v44 = vpop.f32.mrb[19].mxu0 }
 0x4c4   :  { %v1132_v45 = vadd.f32 %v1419_v32, %v1131_v44  ;;  %1832 = vmatprep.mubr.f32.mxu0 %v1160_v38 }
 0x4c5   :  { %1833 = vmatmul.mubr.f32.vlgmr.msra.gmra.mrb[24].mxu0 %v1161_v41  ;;  %v1163_v55 = vmax.f32 %v1137_v42, 0.0 }
 0x4c6   :  { %v1162_v46 = vmax.f32 %v1132_v45, 0.0  ;;  %v1796_v52 = vpop.f32.mrb[20].mxu0 }
 0x4c7   :  { %v1147_v56 = vadd.f32 %v1796_v52, %v1419_v32  ;;  %v1141_v57 = vpop.f32.mrb[21].mxu0 }
 0x4c8   :  { %v1142_v58 = vadd.f32 %v1419_v32, %v1141_v57  ;;  %1835 = vmatprep.mubr.f32.mxu0 %v1162_v46 }
 0x4c9   :  { %1836 = vmatmul.mubr.f32.gmra.mrb[26].mxu0 %v1163_v55  ;;  %v1165_v61 = vmax.f32 %v1147_v56, 0.0 }
 0x4ca   :  { %v1164_v59 = vmax.f32 %v1142_v58, 0.0  ;;  %v1799_v60 = vpop.f32.mrb[22].mxu0 }
 0x4cb   :  { %v1157_v62 = vadd.f32 %v1799_v60, %v1419_v32  ;;  %v1151_v63 = vpop.f32.mrb[23].mxu0 }
 0x4cc   :  { %v1152_v0 = vadd.f32 %v1419_v32, %v1151_v63  ;;  %1838 = vmatprep.mubr.f32.mxu0 %v1164_v59 }
 0x4cd   :  { %1839 = vmatmul.mubr.f32.gmra.mrb[28].mxu0 %v1165_v61  ;;  %v1167_v1 = vmax.f32 %v1157_v62, 0.0 }
 0x4ce   :  { %v1166_v8 = vmax.f32 %v1152_v0, 0.0 }
 0x4d0   :  { %1841 = vmatprep.mubr.f32.mxu0 %v1166_v8 }
 0x4d1   :  { %1842 = vmatmul.mubr.f32.gmra.mrb[30].mxu0 %v1167_v1 }
 0x598   :  { %v1834_v2 = vpop.f32.mrb[24].mxu0 }
 0x599   :  { %v1290_v6 = vadd.f32 %v1834_v2, %v2736_v47  ;;  %v1250_v4 = vpop.f32.mrb[25].mxu0 }
 0x59a   :  { %v1289_v5 = vadd.f32 %v2023_v18, %v1250_v4 }
 0x59b   :  { %v1305_v7 = vadd.f32 %v1420_v3, %v1290_v6 }
 0x59c   :  { %v1304_v9 = vadd.f32 %v1420_v3, %v1289_v5  ;;  %v1837_v16 = vpop.f32.mrb[26].mxu0 }
 0x59d   :  { %1313 = vst [vmem:[#allocation25 + $0x8] sm:$0xff] %v1305_v7  ;;  %v1335_v30 = vmul.f32 %v1305_v7, %v1305_v7  ;;  %v1292_v10 = vadd.f32 %v1837_v16, %v2742_v49  ;;  %v1260_v11 = vpop.f32.mrb[27].mxu0 }
 0x59e   :  { %1312 = vst [vmem:[#allocation25] sm:$0xff] %v1304_v9  ;;  %v1320_v12 = vadd.f32 %v1305_v7, %v1304_v9  ;;  %v1334_v28 = vmul.f32 %v1304_v9, %v1304_v9  ;;  %v1291_v13 = vadd.f32 %v1260_v11, %v2738_v48 }
 0x59f   :  { %v1307_v14 = vadd.f32 %v1420_v3, %v1292_v10 }
 0x5a0   :  { %v1342_v43 = vadd.f32 %v1335_v30, %v1334_v28  ;;  %v1306_v37 = vadd.f32 %v1420_v3, %v1291_v13  ;;  %v1840_v47 = vpop.f32.mrb[28].mxu0 }
 0x5a1   :  { %1315 = vst [vmem:[#allocation25 + $0x18] sm:$0xff] %v1307_v14  ;;  %v1294_v15 = vadd.f32 %v1840_v47, %v2748_v51  ;;  %v1270_v17 = vpop.f32.mrb[29].mxu0  ;;  %v1337_v21 = vmul.f32 %v1307_v14, %v1307_v14 }
 0x5a2   :  { %1314 = vst [vmem:[#allocation25 + $0x10] sm:$0xff] %v1306_v37  ;;  %v1321_v40 = vadd.f32 %v1320_v12, %v1306_v37  ;;  %v1336_v19 = vmul.f32 %v1306_v37, %v1306_v37  ;;  %v1293_v20 = vadd.f32 %v1270_v17, %v2744_v50 }
 0x5a3   :  { %v1309_v49 = vadd.f32 %v1420_v3, %v1294_v15 }
 0x5a4   :  { %v1343_v22 = vadd.f32 %v1342_v43, %v1336_v19  ;;  %v1308_v23 = vadd.f32 %v1420_v3, %v1293_v20  ;;  %v1322_v24 = vadd.f32 %v1321_v40, %v1307_v14  ;;  %v1843_v25 = vpop.f32.mrb[30].mxu0 }
 0x5a5   :  { %1317 = vst [vmem:[#allocation25 + $0x28] sm:$0xff] %v1309_v49  ;;  %v1296_v48 = vadd.f32 %v1843_v25, %v2751_v53  ;;  %v1280_v26 = vpop.f32.mrb[31].mxu0  ;;  %v1339_v50 = vmul.f32 %v1309_v49, %v1309_v49 }
 0x5a6   :  { %1316 = vst [vmem:[#allocation25 + $0x20] sm:$0xff] %v1308_v23  ;;  %v1323_v51 = vadd.f32 %v1322_v24, %v1308_v23  ;;  %v1338_v54 = vmul.f32 %v1308_v23, %v1308_v23  ;;  %v1344_v27 = vadd.f32 %v1343_v22, %v1337_v21  ;;  %v1295_v31 = vadd.f32 %v2024_v29, %v1280_v26 }
 0x5a7   :  { %v1311_v32 = vadd.f32 %v1420_v3, %v1296_v48 }
 0x5a8   :  { %v1345_v33 = vadd.f32 %v1344_v27, %v1338_v54  ;;  %v1310_v34 = vadd.f32 %v1420_v3, %v1295_v31  ;;  %v1324_v35 = vadd.f32 %v1323_v51, %v1309_v49 }
 0x5a9   :  { %1319 = vst [vmem:[#allocation25 + $0x38] sm:$0xff] %v1311_v32 }
 0x5aa   :  { %1318 = vst [vmem:[#allocation25 + $0x30] sm:$0xff] %v1310_v34  ;;  %v1325_v36 = vadd.f32 %v1324_v35, %v1310_v34  ;;  %v1340_v38 = vmul.f32 %v1310_v34, %v1310_v34  ;;  %v1346_v53 = vadd.f32 %v1345_v33, %v1339_v50 }
 0x5ab   :  { %2344 = shalt.err (!%p2341_p4)
}
 0x5ac   :  { %s2345_s2 = scalar_lea.hbm %s2907_s14, 1024 }
 0x5ad   :  { %p2346_p5 = scmp.ne.s32.totalorder %s2907_s14, %s2345_s2  ;;  %p2349_p6 = scmp.lt.u32.totalorder %s2345_s2, %s2907_s14 }
 0x5af   :  { %p2351_p7 = pnand %p2349_p6, %p2346_p5 }
 0x5b1   :  { %2354 = shalt.err (!%p2351_p7)
}
 0x5b2   :  { %1367 = dma.vmem_to_hbm [thread:$0]  %s1362_s1, 1024, %s2907_s14, [#allocation4], %s2421_s18, %s2421_s18, %s2422_s19   ;;  %v1341_v39 = vmul.f32 %v1311_v32, %v1311_v32  ;;  %v1326_v41 = vadd.f32 %v1325_v36, %v1311_v32  ;;  %v1347_v42 = vadd.f32 %v1346_v53, %v1340_v38 }
 0x5b3   :  { %s2436_s10 = smov [#allocation26]   ;;  %s2437_s29 = smov [#allocation28]  }
 0x5b4   :  { %v1348_v44 = vadd.f32 %v1347_v42, %v1341_v39  ;;  %v1327_v45 = vrot.slane %v1326_v41, 4  ;;  %s1374_s25 = sshll.u32 %s2436_s10, 4  ;;  %s1384_s30 = sshll.u32 %s2437_s29, 4  ;;  %s1375_s25 = int_to_ptr.vmem [resolvable:$true] %s1374_s25  ;;  %s2861_s30 = int_to_ptr.vmem [resolvable:$true] %s1384_s30 }
 0x5b5   :  { %s2355_s14 = scalar_lea.vmem %s1375_s25, 16  ;;  %s2359_s18 = scalar_lea.vmem %s1375_s25, 32 }
 0x5b6   :  { %v1328_v46 = vadd.f32 %v1327_v45, %v1326_v41  ;;  %v1349_v52 = vrot.slane %v1348_v44, 4  ;;  %p2356_p8 = scmp.ne.s32.totalorder %s1375_s25, %s2355_s14  ;;  %p2360_p9 = scmp.lt.s32.totalorder %s1375_s25, %s1375_s25 }
 0x5b7   :  { %p2361_p10 = scmp.lt.s32.totalorder %s2359_s18, %s2355_s14 }
 0x5b8   :  { %v1329_v55 = vrot.slane %v1328_v46, 2  ;;  %v1350_v56 = vadd.f32 %v1349_v52, %v1348_v44 }
 0x5b9   :  { %p2362_p11 = por %p2361_p10, %p2360_p9 }
 0x5ba   :  { %v1330_v57 = vadd.f32 %v1329_v55, %v1328_v46  ;;  %v1351_v58 = vrot.slane %v1350_v56, 2 }
 0x5bb   :  { %p2363_p12 = pnand %p2362_p11, %p2356_p8 }
 0x5bc   :  { %v1331_v59 = vrot.slane %v1330_v57, 1  ;;  %v1352_v60 = vadd.f32 %v1351_v58, %v1350_v56 }
 0x5be   :  { %v1332_v61 = vadd.f32 %v1331_v59, %v1330_v57  ;;  %v1353_v62 = vrot.slane %v1352_v60, 1 }
 0x5c0   :  { %1333 = vst [vmem:[#allocation26] sm:$0x1] %v1332_v61  ;;  %v1354_v63 = vadd.f32 %v1353_v62, %v1352_v60 }
 0x5c1   :  { %2366 = shalt.err (!%p2363_p12)
}
 0x5c2   :  { %s2367_s5 = scalar_lea.hbm %s2908_s15, 16 }
 0x5c3   :  { %p2368_p13 = scmp.ne.s32.totalorder %s2908_s15, %s2367_s5  ;;  %p2371_p0 = scmp.lt.u32.totalorder %s2367_s5, %s2908_s15 }
 0x5c5   :  { %p2373_p1 = pnand %p2371_p0, %p2368_p13 }
 0x5c7   :  { %2376 = shalt.err (!%p2373_p1)
}
 0x5c8   :  { %1377 = dma.vmem_to_hbm [thread:$0]  %s1375_s25, 16, %s2908_s15, [#allocation27]   ;;  %1355 = vst [vmem:[#allocation28] sm:$0x1] %v1354_v63 }
 0x5c9   :  { %s2377_s12 = scalar_lea.vmem %s2861_s30, 16  ;;  %s2381_s11 = scalar_lea.vmem %s2861_s30, 32 }
 0x5ca   :  { %p2378_p2 = scmp.ne.s32.totalorder %s2861_s30, %s2377_s12  ;;  %p2382_p3 = scmp.lt.s32.totalorder %s2861_s30, %s2861_s30 }
 0x5cb   :  { %p2383_p4 = scmp.lt.s32.totalorder %s2381_s11, %s2377_s12 }
 0x5cd   :  { %p2384_p5 = por %p2383_p4, %p2382_p3 }
 0x5cf   :  { %p2385_p6 = pnand %p2384_p5, %p2378_p2 }
 0x5d1   :  { %2388 = shalt.err (!%p2385_p6)
}
 0x5d2   :  { %s2389_s21 = scalar_lea.hbm %s2909_s16, 16 }
 0x5d3   :  { %p2390_p7 = scmp.ne.s32.totalorder %s2909_s16, %s2389_s21  ;;  %p2393_p8 = scmp.lt.u32.totalorder %s2389_s21, %s2909_s16 }
 0x5d5   :  { %p2395_p9 = pnand %p2393_p8, %p2390_p7 }
 0x5d7   :  { %2398 = shalt.err (!%p2395_p9)
}
 0x5d8   :  { %1387 = dma.vmem_to_hbm [thread:$0]  %s2861_s30, 16, %s2909_s16, [#allocation27]  }
 0x5d9   :  { %2415 = dma.done.wait [#allocation4], 1024  }
 0x5da   :  { %2416 = vsyncadd [#allocation4], 4294966272 }
 0x5db   :  { %2417 = dma.done.wait [#allocation27], 32  }
 0x5dc   :  { %2418 = vsyncadd [#allocation27], 4294967264 }
 0x5dd   :  { %1397 = vsyncpa [#allocation3], 1 }
 0x5de   :  { %1398 = vsyncpa [#allocation6], 1 }
 0x5df   :  { %1399 = vsyncpa [#allocation9], 1 }
 0x5e0   :  { %1400 = vsyncpa [#allocation12], 1 }
 0x5e1   :  { %1401 = vsyncpa [#allocation15], 1 }
 0x5e2   :  { %1402 = vsyncpa [#allocation18], 1 }
 0x5e3   :  { %1403 = vsyncpa [#allocation21], 1 }
 0x5e4   :  { %1404 = vsyncpa [#allocation24], 1 }
 0x5e5   :  { %1405 = vsyncpa [#allocation4], 1 }
 0x5e6   :  { %1406 = vsyncpa [#allocation27], 1 }

// kernel: point_gnn_con_forward.11
= control target key start
LH: loop header
LB: loop body
LE: loop exit
PB: predicated region body
PF: predicated region fallthrough
CT: control target
= control target key end

     0   :  { %s3427_s0 = inlined_call_operand.hbm [shape: f32[64,128], index: 0, kind: input, shape index: {}]   ;;  %s3428_s1 = inlined_call_operand.hbm [shape: f32[64,3], index: 1, kind: input, shape index: {}]   ;;  %s3429_s2 = inlined_call_operand.hbm [shape: f32[4,64,128], index: 2, kind: input, shape index: {}]   ;;  %s3430_s3 = inlined_call_operand.hbm [shape: f32[128,128], index: 3, kind: input, shape index: {}]   ;;  %s3431_s4 = inlined_call_operand.hbm [shape: f32[1,128], index: 4, kind: input, shape index: {}]   ;;  %s3432_s5 = inlined_call_operand.hbm [shape: f32[128,128], index: 5, kind: input, shape index: {}]   ;;  %s3433_s6 = inlined_call_operand.hbm [shape: f32[3,128], index: 6, kind: input, shape index: {}]   ;;  %s3434_s7 = inlined_call_operand.hbm [shape: f32[1,128], index: 7, kind: input, shape index: {}]   ;;  %s3435_s8 = inlined_call_operand.hbm [shape: f32[128,128], index: 8, kind: input, shape index: {}]   ;;  %s3436_s9 = inlined_call_operand.hbm [shape: f32[1,128], index: 9, kind: input, shape index: {}]   ;;  %s3437_s10 = inlined_call_operand.hbm [shape: f32[128,128], index: 10, kind: input, shape index: {}]   ;;  %s3438_s11 = inlined_call_operand.hbm [shape: f32[1,128], index: 11, kind: input, shape index: {}]   ;;  %s3439_s12 = inlined_call_operand.hbm [shape: f32[128,128], index: 12, kind: input, shape index: {}]   ;;  %s3440_s13 = inlined_call_operand.hbm [shape: f32[1,128], index: 13, kind: input, shape index: {}]   ;;  %s3441_s14 = inlined_call_operand.hbm [shape: f32[128,128], index: 14, kind: input, shape index: {}]   ;;  %s3442_s15 = inlined_call_operand.hbm [shape: f32[1,128], index: 15, kind: input, shape index: {}]   ;;  %s3443_s16 = inlined_call_operand.hbm [shape: f32[128,128], index: 16, kind: input, shape index: {}]   ;;  %s3444_s17 = inlined_call_operand.hbm [shape: f32[1,128], index: 17, kind: input, shape index: {}]   ;;  %s3445_s18 = inlined_call_operand.hbm [shape: f32[64,128], index: 18, kind: output, shape index: {}]  }
   0x1   :  { %3450 = sst [smem:[#allocation43_spill]] %s3427_s0 }
   0x2   :  { %3451 = sst [smem:[#allocation44_spill]] %s3428_s1 }
   0x3   :  { %3452 = sst [smem:[#allocation45_spill]] %s3429_s2 }
   0x4   :  { %3453 = sst [smem:[#allocation46_spill]] %s3445_s18 }
   0x5   :  { %23 = vsyncpa [#allocation3], 0 }
   0x6   :  { %24 = vsyncpa [#allocation6], 0 }
   0x7   :  { %25 = vsyncpa [#allocation9], 0 }
   0x8   :  { %26 = vsyncpa [#allocation12], 0 }
   0x9   :  { %27 = vsyncpa [#allocation15], 0 }
   0xa   :  { %28 = vsyncpa [#allocation18], 0 }
   0xb   :  { %29 = vsyncpa [#allocation21], 0 }
   0xc   :  { %30 = vsyncpa [#allocation24], 0 }
   0xd   :  { %31 = vsyncpa [#allocation27], 0 }
   0xe   :  { %32 = vsyncpa [#allocation30], 0 }
   0xf   :  { %33 = vsyncpa [#allocation4], 0  ;;  %s2936_s27 = smov [#allocation5]   ;;  %s2937_s29 = smov [#allocation8]  }
  0x10   :  { %s51_s28 = sshll.u32 %s2936_s27, 4  ;;  %s75_s30 = sshll.u32 %s2937_s29, 4  ;;  %s52_s28 = int_to_ptr.vmem [resolvable:$true] %s51_s28  ;;  %s3052_s30 = int_to_ptr.vmem [resolvable:$true] %s75_s30 }
  0x11   :  { %s3454_s1 = sld [smem:[#allocation44_spill]] }
  0x17   :  { %s2496_s20 = scalar_lea.hbm %s3454_s1, 1024 }
  0x18   :  { %p2497_p0 = scmp.ne.s32.totalorder %s3454_s1, %s2496_s20  ;;  %p2500_p1 = scmp.lt.u32.totalorder %s2496_s20, %s3454_s1 }
  0x1a   :  { %p2502_p2 = pnand %p2500_p1, %p2497_p0 }
  0x1c   :  { %2505 = shalt.err (!%p2502_p2)
}
  0x1d   :  { %s2506_s24 = scalar_lea.vmem %s52_s28, 1024  ;;  %p2511_p4 = scmp.lt.s32.totalorder %s52_s28, %s52_s28 }
  0x1e   :  { %p2507_p3 = scmp.ne.s32.totalorder %s52_s28, %s2506_s24  ;;  %p2512_p5 = scmp.lt.s32.totalorder %s2506_s24, %s2506_s24 }
  0x20   :  { %p2513_p6 = por %p2512_p5, %p2511_p4 }
  0x22   :  { %p2514_p7 = pnand %p2513_p6, %p2507_p3 }
  0x24   :  { %2517 = shalt.err (!%p2514_p7)
}
  0x25   :  { %s2938_s25 = smov 128   ;;  %s2939_s26 = smov 8  }
  0x26   :  { %57 = dma.hbm_to_vmem [thread:$0]  %s3454_s1, 1024, %s52_s28, [#allocation6], %s2938_s25, %s2938_s25, %s2939_s26  }
  0x27   :  { %s2518_s20 = scalar_lea.hbm %s3430_s3, 2048 }
  0x28   :  { %p2519_p8 = scmp.ne.s32.totalorder %s3430_s3, %s2518_s20  ;;  %p2522_p9 = scmp.lt.u32.totalorder %s2518_s20, %s3430_s3 }
  0x2a   :  { %p2524_p10 = pnand %p2522_p9, %p2519_p8 }
  0x2c   :  { %2527 = shalt.err (!%p2524_p10)
}
  0x2d   :  { %s2528_s24 = scalar_lea.vmem %s3052_s30, 2048  ;;  %p2533_p12 = scmp.lt.s32.totalorder %s3052_s30, %s3052_s30 }
  0x2e   :  { %p2529_p11 = scmp.ne.s32.totalorder %s3052_s30, %s2528_s24  ;;  %p2534_p13 = scmp.lt.s32.totalorder %s2528_s24, %s2528_s24 }
  0x30   :  { %p2535_p0 = por %p2534_p13, %p2533_p12 }
  0x32   :  { %p2536_p1 = pnand %p2535_p0, %p2529_p11 }
  0x34   :  { %2539 = shalt.err (!%p2536_p1)
}
  0x35   :  { %81 = dma.hbm_to_vmem [thread:$0]  %s3430_s3, 2048, %s3052_s30, [#allocation9], %s2938_s25, %s2938_s25, %s2939_s26  }
  0x36   :  { %s2940_s27 = smov [#allocation11]   ;;  %s2941_s0 = smov [#allocation14]  }
  0x37   :  { %s97_s29 = sshll.u32 %s2940_s27, 4  ;;  %s120_s19 = sshll.u32 %s2941_s0, 4  ;;  %s98_s29 = int_to_ptr.vmem [resolvable:$true] %s97_s29  ;;  %s121_s19 = int_to_ptr.vmem [resolvable:$true] %s120_s19 }
  0x38   :  { %s2540_s22 = scalar_lea.hbm %s3432_s5, 2048 }
  0x39   :  { %p2541_p2 = scmp.ne.s32.totalorder %s3432_s5, %s2540_s22  ;;  %p2544_p3 = scmp.lt.u32.totalorder %s2540_s22, %s3432_s5 }
  0x3b   :  { %p2546_p4 = pnand %p2544_p3, %p2541_p2 }
  0x3d   :  { %2549 = shalt.err (!%p2546_p4)
}
  0x3e   :  { %s2550_s3 = scalar_lea.vmem %s98_s29, 2048  ;;  %p2555_p6 = scmp.lt.s32.totalorder %s98_s29, %s98_s29 }
  0x3f   :  { %p2551_p5 = scmp.ne.s32.totalorder %s98_s29, %s2550_s3  ;;  %p2556_p7 = scmp.lt.s32.totalorder %s2550_s3, %s2550_s3 }
  0x41   :  { %p2557_p8 = por %p2556_p7, %p2555_p6 }
  0x43   :  { %p2558_p9 = pnand %p2557_p8, %p2551_p5 }
  0x45   :  { %2561 = shalt.err (!%p2558_p9)
}
  0x46   :  { %103 = dma.hbm_to_vmem [thread:$0]  %s3432_s5, 2048, %s98_s29, [#allocation12], %s2938_s25, %s2938_s25, %s2939_s26  }
  0x47   :  { %s2562_s18 = scalar_lea.hbm %s3434_s7, 16 }
  0x48   :  { %p2563_p10 = scmp.ne.s32.totalorder %s3434_s7, %s2562_s18  ;;  %p2566_p11 = scmp.lt.u32.totalorder %s2562_s18, %s3434_s7 }
  0x4a   :  { %p2568_p12 = pnand %p2566_p11, %p2563_p10 }
  0x4c   :  { %2571 = shalt.err (!%p2568_p12)
}
  0x4d   :  { %s2572_s2 = scalar_lea.vmem %s121_s19, 16  ;;  %s2576_s23 = scalar_lea.vmem %s121_s19, 32 }
  0x4e   :  { %p2573_p13 = scmp.ne.s32.totalorder %s121_s19, %s2572_s2  ;;  %p2577_p0 = scmp.lt.s32.totalorder %s121_s19, %s121_s19 }
  0x4f   :  { %p2578_p1 = scmp.lt.s32.totalorder %s2576_s23, %s2572_s2 }
  0x51   :  { %p2579_p2 = por %p2578_p1, %p2577_p0 }
  0x53   :  { %p2580_p3 = pnand %p2579_p2, %p2573_p13 }
  0x55   :  { %2583 = shalt.err (!%p2580_p3)
}
  0x56   :  { %123 = dma.hbm_to_vmem [thread:$0]  %s3434_s7, 16, %s121_s19, [#allocation15]  }
  0x57   :  { %s2942_s24 = smov [#allocation17]   ;;  %s2943_s30 = smov [#allocation20]  }
  0x58   :  { %s142_s3 = sshll.u32 %s2942_s24, 4  ;;  %s164_s28 = sshll.u32 %s2943_s30, 4  ;;  %s143_s3 = int_to_ptr.vmem [resolvable:$true] %s142_s3  ;;  %s165_s28 = int_to_ptr.vmem [resolvable:$true] %s164_s28 }
  0x59   :  { %s2584_s18 = scalar_lea.hbm %s3436_s9, 16 }
  0x5a   :  { %p2585_p4 = scmp.ne.s32.totalorder %s3436_s9, %s2584_s18  ;;  %p2588_p5 = scmp.lt.u32.totalorder %s2584_s18, %s3436_s9 }
  0x5c   :  { %p2590_p6 = pnand %p2588_p5, %p2585_p4 }
  0x5e   :  { %2593 = shalt.err (!%p2590_p6)
}
  0x5f   :  { %s2594_s7 = scalar_lea.vmem %s143_s3, 16  ;;  %s2598_s19 = scalar_lea.vmem %s143_s3, 32 }
  0x60   :  { %p2595_p7 = scmp.ne.s32.totalorder %s143_s3, %s2594_s7  ;;  %p2599_p8 = scmp.lt.s32.totalorder %s143_s3, %s143_s3 }
  0x61   :  { %p2600_p9 = scmp.lt.s32.totalorder %s2598_s19, %s2594_s7 }
  0x63   :  { %p2601_p10 = por %p2600_p9, %p2599_p8 }
  0x65   :  { %p2602_p11 = pnand %p2601_p10, %p2595_p7 }
  0x67   :  { %2605 = shalt.err (!%p2602_p11)
}
  0x68   :  { %145 = dma.hbm_to_vmem [thread:$0]  %s3436_s9, 16, %s143_s3, [#allocation18]  }
  0x69   :  { %s2606_s24 = scalar_lea.hbm %s3438_s11, 16 }
  0x6a   :  { %p2607_p12 = scmp.ne.s32.totalorder %s3438_s11, %s2606_s24  ;;  %p2610_p13 = scmp.lt.u32.totalorder %s2606_s24, %s3438_s11 }
  0x6c   :  { %p2612_p0 = pnand %p2610_p13, %p2607_p12 }
  0x6e   :  { %2615 = shalt.err (!%p2612_p0)
}
  0x6f   :  { %s2616_s0 = scalar_lea.vmem %s165_s28, 16  ;;  %s2620_s20 = scalar_lea.vmem %s165_s28, 32 }
  0x70   :  { %p2617_p1 = scmp.ne.s32.totalorder %s165_s28, %s2616_s0  ;;  %p2621_p2 = scmp.lt.s32.totalorder %s165_s28, %s165_s28 }
  0x71   :  { %p2622_p3 = scmp.lt.s32.totalorder %s2620_s20, %s2616_s0 }
  0x73   :  { %p2623_p4 = por %p2622_p3, %p2621_p2 }
  0x75   :  { %p2624_p5 = pnand %p2623_p4, %p2617_p1 }
  0x77   :  { %2627 = shalt.err (!%p2624_p5)
}
  0x78   :  { %167 = dma.hbm_to_vmem [thread:$0]  %s3438_s11, 16, %s165_s28, [#allocation21]  }
  0x79   :  { %s2944_s21 = smov [#allocation23]   ;;  %s2945_s7 = smov [#allocation26]  }
  0x7a   :  { %s186_s22 = sshll.u32 %s2944_s21, 4  ;;  %s208_s19 = sshll.u32 %s2945_s7, 4  ;;  %s187_s22 = int_to_ptr.vmem [resolvable:$true] %s186_s22  ;;  %s209_s19 = int_to_ptr.vmem [resolvable:$true] %s208_s19 }
  0x7b   :  { %s2628_s5 = scalar_lea.hbm %s3440_s13, 16 }
  0x7c   :  { %p2629_p6 = scmp.ne.s32.totalorder %s3440_s13, %s2628_s5  ;;  %p2632_p7 = scmp.lt.u32.totalorder %s2628_s5, %s3440_s13 }
  0x7e   :  { %p2634_p8 = pnand %p2632_p7, %p2629_p6 }
  0x80   :  { %2637 = shalt.err (!%p2634_p8)
}
  0x81   :  { %s2638_s11 = scalar_lea.vmem %s187_s22, 16  ;;  %s2642_s28 = scalar_lea.vmem %s187_s22, 32 }
  0x82   :  { %p2639_p9 = scmp.ne.s32.totalorder %s187_s22, %s2638_s11  ;;  %p2643_p10 = scmp.lt.s32.totalorder %s187_s22, %s187_s22 }
  0x83   :  { %p2644_p11 = scmp.lt.s32.totalorder %s2642_s28, %s2638_s11 }
  0x85   :  { %p2645_p12 = por %p2644_p11, %p2643_p10 }
  0x87   :  { %p2646_p13 = pnand %p2645_p12, %p2639_p9 }
  0x89   :  { %2649 = shalt.err (!%p2646_p13)
}
  0x8a   :  { %189 = dma.hbm_to_vmem [thread:$0]  %s3440_s13, 16, %s187_s22, [#allocation24]  }
  0x8b   :  { %s2650_s9 = scalar_lea.hbm %s3442_s15, 16 }
  0x8c   :  { %p2651_p0 = scmp.ne.s32.totalorder %s3442_s15, %s2650_s9  ;;  %p2654_p1 = scmp.lt.u32.totalorder %s2650_s9, %s3442_s15 }
  0x8e   :  { %p2656_p2 = pnand %p2654_p1, %p2651_p0 }
  0x90   :  { %2659 = shalt.err (!%p2656_p2)
}
  0x91   :  { %s2660_s23 = scalar_lea.vmem %s209_s19, 16  ;;  %s2664_s5 = scalar_lea.vmem %s209_s19, 32 }
  0x92   :  { %p2661_p3 = scmp.ne.s32.totalorder %s209_s19, %s2660_s23  ;;  %p2665_p4 = scmp.lt.s32.totalorder %s209_s19, %s209_s19 }
  0x93   :  { %p2666_p5 = scmp.lt.s32.totalorder %s2664_s5, %s2660_s23 }
  0x95   :  { %p2667_p6 = por %p2666_p5, %p2665_p4 }
  0x97   :  { %p2668_p7 = pnand %p2667_p6, %p2661_p3 }
  0x99   :  { %2671 = shalt.err (!%p2668_p7)
}
  0x9a   :  { %211 = dma.hbm_to_vmem [thread:$0]  %s3442_s15, 16, %s209_s19, [#allocation27]  }
  0x9b   :  { %s2946_s29 = smov [#allocation2]   ;;  %s2947_s30 = smov [#allocation7]  }
  0x9c   :  { %s39_s24 = sshll.u32 %s2946_s29, 4  ;;  %s63_s1 = sshll.u32 %s2947_s30, 4  ;;  %s40_s24 = int_to_ptr.vmem [resolvable:$true] %s39_s24  ;;  %s3164_s1 = int_to_ptr.vmem [resolvable:$true] %s63_s1 }
  0x9d   :  { %s3455_s27 = sld [smem:[#allocation43_spill]] }
  0xa3   :  { %s2672_s18 = scalar_lea.hbm %s3455_s27, 1024 }
  0xa4   :  { %p2673_p8 = scmp.ne.s32.totalorder %s3455_s27, %s2672_s18  ;;  %p2676_p9 = scmp.lt.u32.totalorder %s2672_s18, %s3455_s27 }
  0xa6   :  { %p2678_p10 = pnand %p2676_p9, %p2673_p8 }
  0xa8   :  { %2681 = shalt.err (!%p2678_p10)
}
  0xa9   :  { %s2682_s15 = scalar_lea.vmem %s40_s24, 1024  ;;  %p2687_p12 = scmp.lt.s32.totalorder %s40_s24, %s40_s24 }
  0xaa   :  { %p2683_p11 = scmp.ne.s32.totalorder %s40_s24, %s2682_s15  ;;  %p2688_p13 = scmp.lt.s32.totalorder %s2682_s15, %s2682_s15 }
  0xac   :  { %p2689_p0 = por %p2688_p13, %p2687_p12 }
  0xae   :  { %p2690_p1 = pnand %p2689_p0, %p2683_p11 }
  0xb0   :  { %2693 = shalt.err (!%p2690_p1)
}
  0xb1   :  { %45 = dma.hbm_to_vmem [thread:$0]  %s3455_s27, 1024, %s40_s24, [#allocation3], %s2938_s25, %s2938_s25, %s2939_s26  }
  0xb2   :  { %s3456_s23 = sld [smem:[#allocation45_spill]] }
  0xb8   :  { %s2694_s5 = scalar_lea.hbm %s3456_s23, 4096 }
  0xb9   :  { %p2695_p2 = scmp.ne.s32.totalorder %s3456_s23, %s2694_s5  ;;  %p2698_p3 = scmp.lt.u32.totalorder %s2694_s5, %s3456_s23 }
  0xbb   :  { %p2700_p4 = pnand %p2698_p3, %p2695_p2 }
  0xbd   :  { %2703 = shalt.err (!%p2700_p4)
}
  0xbe   :  { %s2704_s11 = scalar_lea.vmem %s3164_s1, 4096  ;;  %p2709_p6 = scmp.lt.s32.totalorder %s3164_s1, %s3164_s1 }
  0xbf   :  { %p2705_p5 = scmp.ne.s32.totalorder %s3164_s1, %s2704_s11  ;;  %p2710_p7 = scmp.lt.s32.totalorder %s2704_s11, %s2704_s11 }
  0xc1   :  { %p2711_p8 = por %p2710_p7, %p2709_p6 }
  0xc3   :  { %p2712_p9 = pnand %p2711_p8, %p2705_p5 }
  0xc5   :  { %2715 = shalt.err (!%p2712_p9)
}
  0xc6   :  { %69 = dma.hbm_to_vmem [thread:$0]  %s3456_s23, 4096, %s3164_s1, [#allocation6], %s2938_s25, %s2938_s25, %s2939_s26  }
  0xc7   :  { %s2948_s27 = smov [#allocation10]   ;;  %s2949_s0 = smov [#allocation13]  }
  0xc8   :  { %s88_s18 = sshll.u32 %s2948_s27, 4  ;;  %s110_s20 = sshll.u32 %s2949_s0, 4  ;;  %s89_s18 = int_to_ptr.vmem [resolvable:$true] %s88_s18  ;;  %s111_s20 = int_to_ptr.vmem [resolvable:$true] %s110_s20 }
  0xc9   :  { %s2716_s15 = scalar_lea.hbm %s3431_s4, 16 }
  0xca   :  { %p2717_p10 = scmp.ne.s32.totalorder %s3431_s4, %s2716_s15  ;;  %p2720_p11 = scmp.lt.u32.totalorder %s2716_s15, %s3431_s4 }
  0xcc   :  { %p2722_p12 = pnand %p2720_p11, %p2717_p10 }
  0xce   :  { %2725 = shalt.err (!%p2722_p12)
}
  0xcf   :  { %s2726_s1 = scalar_lea.vmem %s89_s18, 16  ;;  %s2730_s23 = scalar_lea.vmem %s89_s18, 32 }
  0xd0   :  { %p2727_p13 = scmp.ne.s32.totalorder %s89_s18, %s2726_s1  ;;  %p2731_p0 = scmp.lt.s32.totalorder %s89_s18, %s89_s18 }
  0xd1   :  { %p2732_p1 = scmp.lt.s32.totalorder %s2730_s23, %s2726_s1 }
  0xd3   :  { %p2733_p2 = por %p2732_p1, %p2731_p0 }
  0xd5   :  { %p2734_p3 = pnand %p2733_p2, %p2727_p13 }
  0xd7   :  { %2737 = shalt.err (!%p2734_p3)
}
  0xd8   :  { %91 = dma.hbm_to_vmem [thread:$0]  %s3431_s4, 16, %s89_s18, [#allocation9]  }
  0xd9   :  { %s2738_s30 = scalar_lea.hbm %s3433_s6, 64 }
  0xda   :  { %p2739_p4 = scmp.ne.s32.totalorder %s3433_s6, %s2738_s30  ;;  %p2742_p5 = scmp.lt.u32.totalorder %s2738_s30, %s3433_s6 }
  0xdc   :  { %p2744_p6 = pnand %p2742_p5, %p2739_p4 }
  0xde   :  { %2747 = shalt.err (!%p2744_p6)
}
  0xdf   :  { %s2748_s0 = scalar_lea.vmem %s111_s20, 64  ;;  %p2753_p8 = scmp.lt.s32.totalorder %s111_s20, %s111_s20 }
  0xe0   :  { %p2749_p7 = scmp.ne.s32.totalorder %s111_s20, %s2748_s0  ;;  %p2754_p9 = scmp.lt.s32.totalorder %s2748_s0, %s2748_s0 }
  0xe2   :  { %p2755_p10 = por %p2754_p9, %p2753_p8 }
  0xe4   :  { %p2756_p11 = pnand %p2755_p10, %p2749_p7 }
  0xe6   :  { %2759 = shalt.err (!%p2756_p11)
}
  0xe7   :  { %113 = dma.hbm_to_vmem [thread:$0]  %s3433_s6, 64, %s111_s20, [#allocation12]  }
  0xe8   :  { %s2950_s9 = smov [#allocation16]   ;;  %s2951_s15 = smov [#allocation19]  }
  0xe9   :  { %s129_s3 = sshll.u32 %s2950_s9, 4  ;;  %s151_s19 = sshll.u32 %s2951_s15, 4  ;;  %s130_s3 = int_to_ptr.vmem [resolvable:$true] %s129_s3  ;;  %s3225_s19 = int_to_ptr.vmem [resolvable:$true] %s151_s19 }
  0xea   :  { %s2760_s2 = scalar_lea.hbm %s3435_s8, 2048 }
  0xeb   :  { %p2761_p12 = scmp.ne.s32.totalorder %s3435_s8, %s2760_s2  ;;  %p2764_p13 = scmp.lt.u32.totalorder %s2760_s2, %s3435_s8 }
  0xed   :  { %p2766_p0 = pnand %p2764_p13, %p2761_p12 }
  0xef   :  { %2769 = shalt.err (!%p2766_p0)
}
  0xf0   :  { %s2770_s6 = scalar_lea.vmem %s130_s3, 2048  ;;  %p2775_p2 = scmp.lt.s32.totalorder %s130_s3, %s130_s3 }
  0xf1   :  { %p2771_p1 = scmp.ne.s32.totalorder %s130_s3, %s2770_s6  ;;  %p2776_p3 = scmp.lt.s32.totalorder %s2770_s6, %s2770_s6 }
  0xf3   :  { %p2777_p4 = por %p2776_p3, %p2775_p2 }
  0xf5   :  { %p2778_p5 = pnand %p2777_p4, %p2771_p1 }
  0xf7   :  { %2781 = shalt.err (!%p2778_p5)
}
  0xf8   :  { %135 = dma.hbm_to_vmem [thread:$0]  %s3435_s8, 2048, %s130_s3, [#allocation15], %s2938_s25, %s2938_s25, %s2939_s26  }
  0xf9   :  { %s2782_s11 = scalar_lea.hbm %s3437_s10, 2048 }
  0xfa   :  { %p2783_p6 = scmp.ne.s32.totalorder %s3437_s10, %s2782_s11  ;;  %p2786_p7 = scmp.lt.u32.totalorder %s2782_s11, %s3437_s10 }
  0xfc   :  { %p2788_p8 = pnand %p2786_p7, %p2783_p6 }
  0xfe   :  { %2791 = shalt.err (!%p2788_p8)
}
  0xff   :  { %s2792_s4 = scalar_lea.vmem %s3225_s19, 2048  ;;  %p2797_p10 = scmp.lt.s32.totalorder %s3225_s19, %s3225_s19 }
 0x100   :  { %p2793_p9 = scmp.ne.s32.totalorder %s3225_s19, %s2792_s4  ;;  %p2798_p11 = scmp.lt.s32.totalorder %s2792_s4, %s2792_s4 }
 0x102   :  { %p2799_p12 = por %p2798_p11, %p2797_p10 }
 0x104   :  { %p2800_p13 = pnand %p2799_p12, %p2793_p9 }
 0x106   :  { %2803 = shalt.err (!%p2800_p13)
}
 0x107   :  { %157 = dma.hbm_to_vmem [thread:$0]  %s3437_s10, 2048, %s3225_s19, [#allocation18], %s2938_s25, %s2938_s25, %s2939_s26  }
 0x108   :  { %s2952_s9 = smov [#allocation22]   ;;  %s2953_s15 = smov [#allocation25]  }
 0x109   :  { %s173_s3 = sshll.u32 %s2952_s9, 4  ;;  %s195_s21 = sshll.u32 %s2953_s15, 4  ;;  %s174_s3 = int_to_ptr.vmem [resolvable:$true] %s173_s3  ;;  %s3262_s21 = int_to_ptr.vmem [resolvable:$true] %s195_s21 }
 0x10a   :  { %s2804_s1 = scalar_lea.hbm %s3439_s12, 2048 }
 0x10b   :  { %p2805_p0 = scmp.ne.s32.totalorder %s3439_s12, %s2804_s1  ;;  %p2808_p1 = scmp.lt.u32.totalorder %s2804_s1, %s3439_s12 }
 0x10d   :  { %p2810_p2 = pnand %p2808_p1, %p2805_p0 }
 0x10f   :  { %2813 = shalt.err (!%p2810_p2)
}
 0x110   :  { %s2814_s10 = scalar_lea.vmem %s174_s3, 2048  ;;  %p2819_p4 = scmp.lt.s32.totalorder %s174_s3, %s174_s3 }
 0x111   :  { %p2815_p3 = scmp.ne.s32.totalorder %s174_s3, %s2814_s10  ;;  %p2820_p5 = scmp.lt.s32.totalorder %s2814_s10, %s2814_s10 }
 0x113   :  { %p2821_p6 = por %p2820_p5, %p2819_p4 }
 0x115   :  { %p2822_p7 = pnand %p2821_p6, %p2815_p3 }
 0x117   :  { %2825 = shalt.err (!%p2822_p7)
}
 0x118   :  { %179 = dma.hbm_to_vmem [thread:$0]  %s3439_s12, 2048, %s174_s3, [#allocation21], %s2938_s25, %s2938_s25, %s2939_s26  }
 0x119   :  { %s2826_s30 = scalar_lea.hbm %s3441_s14, 2048 }
 0x11a   :  { %p2827_p8 = scmp.ne.s32.totalorder %s3441_s14, %s2826_s30  ;;  %p2830_p9 = scmp.lt.u32.totalorder %s2826_s30, %s3441_s14 }
 0x11c   :  { %p2832_p10 = pnand %p2830_p9, %p2827_p8 }
 0x11e   :  { %2835 = shalt.err (!%p2832_p10)
}
 0x11f   :  { %s2836_s0 = scalar_lea.vmem %s3262_s21, 2048  ;;  %p2841_p12 = scmp.lt.s32.totalorder %s3262_s21, %s3262_s21 }
 0x120   :  { %p2837_p11 = scmp.ne.s32.totalorder %s3262_s21, %s2836_s0  ;;  %p2842_p13 = scmp.lt.s32.totalorder %s2836_s0, %s2836_s0 }
 0x122   :  { %p2843_p0 = por %p2842_p13, %p2841_p12 }
 0x124   :  { %p2844_p1 = pnand %p2843_p0, %p2837_p11 }
 0x126   :  { %2847 = shalt.err (!%p2844_p1)
}
 0x127   :  { %201 = dma.hbm_to_vmem [thread:$0]  %s3441_s14, 2048, %s3262_s21, [#allocation24], %s2938_s25, %s2938_s25, %s2939_s26  }
 0x128   :  { %s2954_s8 = smov [#allocation28]   ;;  %s2955_s9 = smov [#allocation29]  }
 0x129   :  { %s217_s18 = sshll.u32 %s2954_s8, 4  ;;  %s230_s3 = sshll.u32 %s2955_s9, 4  ;;  %s218_s18 = int_to_ptr.vmem [resolvable:$true] %s217_s18  ;;  %s231_s3 = int_to_ptr.vmem [resolvable:$true] %s230_s3 }
 0x12a   :  { %s2848_s2 = scalar_lea.hbm %s3443_s16, 2048 }
 0x12b   :  { %p2849_p2 = scmp.ne.s32.totalorder %s3443_s16, %s2848_s2  ;;  %p2852_p3 = scmp.lt.u32.totalorder %s2848_s2, %s3443_s16 }
 0x12d   :  { %p2854_p4 = pnand %p2852_p3, %p2849_p2 }
 0x12f   :  { %2857 = shalt.err (!%p2854_p4)
}
 0x130   :  { %s2858_s14 = scalar_lea.vmem %s218_s18, 2048  ;;  %p2863_p6 = scmp.lt.s32.totalorder %s218_s18, %s218_s18 }
 0x131   :  { %p2859_p5 = scmp.ne.s32.totalorder %s218_s18, %s2858_s14  ;;  %p2864_p7 = scmp.lt.s32.totalorder %s2858_s14, %s2858_s14 }
 0x133   :  { %p2865_p8 = por %p2864_p7, %p2863_p6 }
 0x135   :  { %p2866_p9 = pnand %p2865_p8, %p2859_p5 }
 0x137   :  { %2869 = shalt.err (!%p2866_p9)
}
 0x138   :  { %223 = dma.hbm_to_vmem [thread:$0]  %s3443_s16, 2048, %s218_s18, [#allocation27], %s2938_s25, %s2938_s25, %s2939_s26  }
 0x139   :  { %s2870_s20 = scalar_lea.hbm %s3444_s17, 16 }
 0x13a   :  { %p2871_p10 = scmp.ne.s32.totalorder %s3444_s17, %s2870_s20  ;;  %p2874_p11 = scmp.lt.u32.totalorder %s2870_s20, %s3444_s17 }
 0x13c   :  { %p2876_p12 = pnand %p2874_p11, %p2871_p10 }
 0x13e   :  { %2879 = shalt.err (!%p2876_p12)
}
 0x13f   :  { %s2880_s24 = scalar_lea.vmem %s231_s3, 16  ;;  %s2884_s28 = scalar_lea.vmem %s231_s3, 32 }
 0x140   :  { %p2881_p13 = scmp.ne.s32.totalorder %s231_s3, %s2880_s24  ;;  %p2885_p0 = scmp.lt.s32.totalorder %s231_s3, %s231_s3 }
 0x141   :  { %p2886_p1 = scmp.lt.s32.totalorder %s2884_s28, %s2880_s24 }
 0x143   :  { %p2887_p2 = por %p2886_p1, %p2885_p0 }
 0x145   :  { %p2888_p3 = pnand %p2887_p2, %p2881_p13 }
 0x147   :  { %2891 = shalt.err (!%p2888_p3)
}
 0x148   :  { %233 = dma.hbm_to_vmem [thread:$0]  %s3444_s17, 16, %s231_s3, [#allocation30]  }
 0x149   :  { %2914 = dma.done.wait [#allocation3], 1024  }
 0x14a   :  { %2915 = vsyncadd [#allocation3], 4294966272 }
 0x14b   :  { %2916 = dma.done.wait [#allocation6], 5120  }
 0x14c   :  { %2917 = vsyncadd [#allocation6], 4294962176 }
 0x14d   :  { %2918 = dma.done.wait [#allocation9], 2064  }
 0x14e   :  { %2919 = vsyncadd [#allocation9], 4294965232 }
 0x14f   :  { %2920 = dma.done.wait [#allocation12], 2112  }
 0x150   :  { %2921 = vsyncadd [#allocation12], 4294965184 }
 0x151   :  { %2922 = dma.done.wait [#allocation15], 2064  }
 0x152   :  { %2923 = vsyncadd [#allocation15], 4294965232 }
 0x153   :  { %2924 = dma.done.wait [#allocation18], 2064  }
 0x154   :  { %2925 = vsyncadd [#allocation18], 4294965232 }
 0x155   :  { %2926 = dma.done.wait [#allocation21], 2064  }
 0x156   :  { %2927 = vsyncadd [#allocation21], 4294965232 }
 0x157   :  { %2928 = dma.done.wait [#allocation24], 2064  }
 0x158   :  { %2929 = vsyncadd [#allocation24], 4294965232 }
 0x159   :  { %2930 = dma.done.wait [#allocation27], 2064  }
 0x15a   :  { %2931 = vsyncadd [#allocation27], 4294965232 }
 0x15b   :  { %2932 = dma.done.wait [#allocation30], 16  }
 0x15c   :  { %2933 = vsyncadd [#allocation30], 4294967280  ;;  %v304_v0 = vld [vmem:[#allocation8] sm:$0xff]  ;;  %v305_v1 = vld [vmem:[#allocation8 + $0x8] sm:$0xff]  ;;  %vm587_vm0 = vcmask 1042432   ;;  %vm562_vm1 = vcmask 23552  }
 0x15d   :  { %v306_v2 = vld [vmem:[#allocation8 + $0x10] sm:$0xff]  ;;  %v2243_v3 = vpack.c.bf16 %v305_v1, %v304_v0  ;;  %v307_v4 = vld [vmem:[#allocation8 + $0x18] sm:$0xff]  ;;  %v308_v6 = vld [vmem:[#allocation8 + $0x20] sm:$0xff]  ;;  %s2956_s17 = smov [#allocation31]  }
 0x15e   :  { %v2247_v5 = vpack.c.bf16 %v307_v4, %v306_v2  ;;  %v309_v7 = vld [vmem:[#allocation8 + $0x28] sm:$0xff]  ;;  %v288_v9 = vld [vmem:[#allocation2] sm:$0xff]  ;;  %v310_v10 = vld [vmem:[#allocation8 + $0x30] sm:$0xff]  ;;  %s1647_s0 = sshll.u32 %s2956_s17, 4  ;;  %s1648_s0 = int_to_ptr.vmem [resolvable:$true] %s1647_s0 }
 0x15f   :  { %2244 = vmatprep.subr.bf16.mxu0 %v2243_v3  ;;  %v2251_v8 = vpack.c.bf16 %v309_v7, %v308_v6  ;;  %v311_v11 = vld [vmem:[#allocation8 + $0x38] sm:$0xff]  ;;  %1917 = vmatprep.mubr.f32.mxu0 %v288_v9  ;;  %v440_v12 = vld [vmem:[#allocation11] sm:$0xff]  ;;  %v441_v13 = vld [vmem:[#allocation11 + $0x8] sm:$0xff]  ;;  %s2892_s12 = scalar_lea.vmem %s1648_s0, 1024  ;;  %p2897_p5 = scmp.lt.s32.totalorder %s1648_s0, %s1648_s0 }
 0x160   :  { %2246 = vmatpush3.bf16.msra.mxu0 %v2243_v3  ;;  %v442_v14 = vld [vmem:[#allocation11 + $0x10] sm:$0xff]  ;;  %v2255_v15 = vpack.c.bf16 %v311_v11, %v310_v10  ;;  %v312_v16 = vld [vmem:[#allocation8 + $0x40] sm:$0xff]  ;;  %v2275_v17 = vpack.c.bf16 %v441_v13, %v440_v12  ;;  %v313_v19 = vld [vmem:[#allocation8 + $0x48] sm:$0xff]  ;;  %p2893_p4 = scmp.ne.s32.totalorder %s1648_s0, %s2892_s12  ;;  %p2898_p6 = scmp.lt.s32.totalorder %s2892_s12, %s2892_s12 }
 0x161   :  { %2248 = vmatprep.subr.bf16.mxu0 %v2247_v5  ;;  %v443_v18 = vld [vmem:[#allocation11 + $0x18] sm:$0xff]  ;;  %v444_v21 = vld [vmem:[#allocation11 + $0x20] sm:$0xff]  ;;  %v445_v22 = vld [vmem:[#allocation11 + $0x28] sm:$0xff]  ;;  %v2259_v23 = vpack.c.bf16 %v313_v19, %v312_v16 }
 0x162   :  { %v2279_v20 = vpack.c.bf16 %v443_v18, %v442_v14  ;;  %2276 = vmatprep.subr.bf16.mxu1 %v2275_v17  ;;  %v314_v24 = vld [vmem:[#allocation8 + $0x50] sm:$0xff]  ;;  %v2283_v25 = vpack.c.bf16 %v445_v22, %v444_v21  ;;  %v315_v26 = vld [vmem:[#allocation8 + $0x58] sm:$0xff]  ;;  %v316_v30 = vld [vmem:[#allocation8 + $0x60] sm:$0xff]  ;;  %p2899_p7 = por %p2898_p6, %p2897_p5 }
 0x163   :  { %2278 = vmatpush3.bf16.msra.mxu1 %v2275_v17  ;;  %v446_v27 = vld [vmem:[#allocation11 + $0x30] sm:$0xff]  ;;  %v447_v28 = vld [vmem:[#allocation11 + $0x38] sm:$0xff]  ;;  %v2263_v29 = vpack.c.bf16 %v315_v26, %v314_v24  ;;  %v317_v32 = vld [vmem:[#allocation8 + $0x68] sm:$0xff] }
 0x164   :  { %2250 = vmatpush3.bf16.msra.mxu0 %v2247_v5  ;;  %2280 = vmatprep.subr.bf16.mxu1 %v2279_v20  ;;  %v2287_v31 = vpack.c.bf16 %v447_v28, %v446_v27  ;;  %v448_v33 = vld [vmem:[#allocation11 + $0x40] sm:$0xff]  ;;  %v449_v34 = vld [vmem:[#allocation11 + $0x48] sm:$0xff]  ;;  %v2267_v35 = vpack.c.bf16 %v317_v32, %v316_v30  ;;  %v319_v38 = vld [vmem:[#allocation8 + $0x78] sm:$0xff]  ;;  %p2900_p8 = pnand %p2899_p7, %p2893_p4 }
 0x165   :  { %2252 = vmatprep.subr.bf16.mxu0 %v2251_v8  ;;  %v318_v36 = vld [vmem:[#allocation8 + $0x70] sm:$0xff]  ;;  %v2291_v37 = vpack.c.bf16 %v449_v34, %v448_v33  ;;  %v451_v40 = vld [vmem:[#allocation11 + $0x58] sm:$0xff]  ;;  %v452_v43 = vld [vmem:[#allocation11 + $0x60] sm:$0xff] }
 0x166   :  { %v450_v39 = vld [vmem:[#allocation11 + $0x50] sm:$0xff]  ;;  %v2271_v41 = vpack.c.bf16 %v319_v38, %v318_v36  ;;  %v453_v44 = vld [vmem:[#allocation11 + $0x68] sm:$0xff]  ;;  %v561_v46 = vld [vmem:[#allocation13] sm:$0x7] }
 0x167   :  { %2282 = vmatpush3.bf16.msra.mxu1 %v2279_v20  ;;  %v2295_v42 = vpack.c.bf16 %v451_v40, %v450_v39  ;;  %v2299_v45 = vpack.c.bf16 %v453_v44, %v452_v43  ;;  %v289_v47 = vld [vmem:[#allocation2 + $0x8] sm:$0xff]  ;;  %v290_v48 = vld [vmem:[#allocation2 + $0x10] sm:$0xff]  ;;  %v291_v49 = vld [vmem:[#allocation2 + $0x18] sm:$0xff] }
 0x168   :  { %2254 = vmatpush3.bf16.msra.mxu0 %v2251_v8  ;;  %2284 = vmatprep.subr.bf16.mxu1 %v2283_v25  ;;  %v292_v50 = vld [vmem:[#allocation2 + $0x20] sm:$0xff]  ;;  %v293_v51 = vld [vmem:[#allocation2 + $0x28] sm:$0xff]  ;;  %v294_v52 = vld [vmem:[#allocation2 + $0x30] sm:$0xff] }
 0x169   :  { %2256 = vmatprep.subr.bf16.mxu0 %v2255_v15  ;;  %v295_v53 = vld [vmem:[#allocation2 + $0x38] sm:$0xff]  ;;  %v296_v57 = vld [vmem:[#allocation5] sm:$0xff]  ;;  %v297_v58 = vld [vmem:[#allocation5 + $0x8] sm:$0xff] }
 0x16a   :  { %v454_v54 = vld [vmem:[#allocation11 + $0x70] sm:$0xff]  ;;  %v455_v55 = vld [vmem:[#allocation11 + $0x78] sm:$0xff]  ;;  %v301_v62 = vld [vmem:[#allocation5 + $0x28] sm:$0xff] }
 0x16b   :  { %2286 = vmatpush3.bf16.msra.mxu1 %v2283_v25  ;;  %v2303_v56 = vpack.c.bf16 %v455_v55, %v454_v54  ;;  %v298_v59 = vld [vmem:[#allocation5 + $0x10] sm:$0xff]  ;;  %v299_v60 = vld [vmem:[#allocation5 + $0x18] sm:$0xff]  ;;  %v300_v61 = vld [vmem:[#allocation5 + $0x20] sm:$0xff] }
 0x16c   :  { %2258 = vmatpush3.bf16.msra.mxu0 %v2255_v15  ;;  %2288 = vmatprep.subr.bf16.mxu1 %v2287_v31  ;;  %v302_v63 = vld [vmem:[#allocation5 + $0x30] sm:$0xff]  ;;  %v303_v0 = vld [vmem:[#allocation5 + $0x38] sm:$0xff]  ;;  %v818_v1 = vld [vmem:[#allocation16] sm:$0xff] }
 0x16d   :  { %2260 = vmatprep.subr.bf16.mxu0 %v2259_v23  ;;  %v819_v2 = vld [vmem:[#allocation16 + $0x8] sm:$0xff]  ;;  %v1668_v4 = vld [vmem:[#allocation10] ss:$0 sm:$0xff]  ;;  %v820_v9 = vld [vmem:[#allocation16 + $0x10] sm:$0xff] }
 0x16e   :  { %v2307_v3 = vpack.c.bf16 %v819_v2, %v818_v1  ;;  %v821_v10 = vld [vmem:[#allocation16 + $0x18] sm:$0xff]  ;;  %v822_v18 = vld [vmem:[#allocation16 + $0x20] sm:$0xff]  ;;  %v823_v19 = vld [vmem:[#allocation16 + $0x28] sm:$0xff] }
 0x16f   :  { %2290 = vmatpush3.bf16.msra.mxu1 %v2287_v31  ;;  %v2311_v16 = vpack.c.bf16 %v821_v10, %v820_v9  ;;  %v2315_v25 = vpack.c.bf16 %v823_v19, %v822_v18  ;;  %v824_v27 = vld [vmem:[#allocation16 + $0x30] sm:$0xff]  ;;  %v825_v28 = vld [vmem:[#allocation16 + $0x38] sm:$0xff]  ;;  %v826_v36 = vld [vmem:[#allocation16 + $0x40] sm:$0xff] }
 0x170   :  { %2262 = vmatpush3.bf16.msra.mxu0 %v2259_v23  ;;  %2292 = vmatprep.subr.bf16.mxu1 %v2291_v37  ;;  %v2319_v34 = vpack.c.bf16 %v825_v28, %v824_v27  ;;  %v719_v1 = vld [vmem:[#allocation7] sm:$0xff]  ;;  %v722_v9 = vld [vmem:[#allocation7 + $0x18] sm:$0xff] }
 0x171   :  { %2264 = vmatprep.subr.bf16.mxu0 %v2263_v29 }
 0x173   :  { %2294 = vmatpush3.bf16.msra.mxu1 %v2291_v37  ;;  %v827_v37 = vld [vmem:[#allocation16 + $0x48] sm:$0xff] }
 0x174   :  { %2266 = vmatpush3.bf16.msra.mxu0 %v2263_v29  ;;  %2296 = vmatprep.subr.bf16.mxu1 %v2295_v42  ;;  %v2323_v40 = vpack.c.bf16 %v827_v37, %v826_v36  ;;  %v744_v36 = vld [vmem:[#allocation7 + $0x40] sm:$0xff] }
 0x175   :  { %2268 = vmatprep.subr.bf16.mxu0 %v2267_v35 }
 0x177   :  { %2298 = vmatpush3.bf16.msra.mxu1 %v2295_v42  ;;  %v829_v42 = vld [vmem:[#allocation16 + $0x58] sm:$0xff] }
 0x178   :  { %2270 = vmatpush3.bf16.msra.mxu0 %v2267_v35  ;;  %2300 = vmatprep.subr.bf16.mxu1 %v2299_v45 }
 0x179   :  { %2272 = vmatprep.subr.bf16.mxu0 %v2271_v41 }
 0x17b   :  { %2302 = vmatpush3.bf16.msra.mxu1 %v2299_v45 }
 0x17c   :  { %2274 = vmatpush3.bf16.msra.mxu0 %v2271_v41  ;;  %2304 = vmatprep.subr.bf16.mxu1 %v2303_v56  ;;  %v828_v41 = vld [vmem:[#allocation16 + $0x50] sm:$0xff] }
 0x17d   :  { %1973 = vmatprep.subr.msk.mxu0 %vm587_vm0, %v561_v46  ;;  %v2327_v43 = vpack.c.bf16 %v829_v42, %v828_v41 }
 0x17f   :  { %1918 = vmatmul.mubr.f32.vlgmr.msra.gmra.mrb[0].mxu0 %v289_v47  ;;  %2306 = vmatpush3.bf16.msra.mxu1 %v2303_v56  ;;  %v831_v47 = vld [vmem:[#allocation16 + $0x68] sm:$0xff] }
 0x180   :  { %1920 = vmatprep.mubr.f32.mxu0 %v290_v48  ;;  %1974 = vmatpush3.msk.msra.mxu0 %vm587_vm0, %v561_v46  ;;  %v830_v46 = vld [vmem:[#allocation16 + $0x60] sm:$0xff] }
 0x181   :  { %2308 = vmatprep.subr.bf16.mxu1 %v2307_v3  ;;  %v2331_v48 = vpack.c.bf16 %v831_v47, %v830_v46 }
 0x183   :  { %1921 = vmatmul.mubr.f32.gmra.mrb[2].mxu0 %v291_v49 }
 0x184   :  { %1923 = vmatprep.mubr.f32.mxu0 %v292_v50 }
 0x187   :  { %1924 = vmatmul.mubr.f32.gmra.mrb[4].mxu0 %v293_v51  ;;  %v832_v51 = vld [vmem:[#allocation16 + $0x70] sm:$0xff] }
 0x188   :  { %1926 = vmatprep.mubr.f32.mxu0 %v294_v52  ;;  %v833_v52 = vld [vmem:[#allocation16 + $0x78] sm:$0xff] }
 0x18b   :  { %1927 = vmatmul.mubr.f32.gmra.mrb[6].mxu0 %v295_v53  ;;  %v2335_v53 = vpack.c.bf16 %v833_v52, %v832_v51  ;;  %v748_v51 = vld [vmem:[#allocation7 + $0x60] sm:$0xff] }
 0x18c   :  { %1975 = vmatprep.mubr.msk.f32.mxu0 %vm562_vm1, %v296_v57 }
 0x18f   :  { %1976 = vmatmul.mubr.msk.f32.vlgmr.msra.gmra.mrb[8].mxu0 %vm562_vm1, %v297_v58 }
 0x190   :  { %1978 = vmatprep.mubr.msk.f32.mxu0 %vm562_vm1, %v298_v59  ;;  %v1678_v59 = vld [vmem:[#allocation14] ss:$0 sm:$0xff] }
 0x193   :  { %1979 = vmatmul.mubr.msk.f32.gmra.mrb[10].mxu0 %vm562_vm1, %v299_v60 }
 0x194   :  { %1981 = vmatprep.mubr.msk.f32.mxu0 %vm562_vm1, %v300_v61 }
 0x197   :  { %1982 = vmatmul.mubr.msk.f32.gmra.mrb[12].mxu0 %vm562_vm1, %v301_v62  ;;  %v720_v62 = vld [vmem:[#allocation7 + $0x8] sm:$0xff] }
 0x198   :  { %1984 = vmatprep.mubr.msk.f32.mxu0 %vm562_vm1, %v302_v63 }
 0x19b   :  { %1985 = vmatmul.mubr.msk.f32.gmra.mrb[14].mxu0 %vm562_vm1, %v303_v0 }
 0x252   :  { %v1919_v5 = vpop.f32.mrb[0].mxu0 }
 0x253   :  { %v399_v6 = vadd.f32 %v1919_v5, %v1668_v4  ;;  %v393_v7 = vpop.f32.mrb[1].mxu0 }
 0x254   :  { %v394_v8 = vadd.f32 %v1668_v4, %v393_v7 }
 0x255   :  { %v433_v13 = vmax.f32 %v399_v6, 0.0 }
 0x256   :  { %v1922_v11 = vpop.f32.mrb[2].mxu0  ;;  %v432_v12 = vmax.f32 %v394_v8, 0.0 }
 0x257   :  { %v409_v14 = vadd.f32 %v1922_v11, %v1668_v4  ;;  %v403_v15 = vpop.f32.mrb[3].mxu0  ;;  %v721_v11 = vld [vmem:[#allocation7 + $0x10] sm:$0xff] }
 0x258   :  { %v404_v17 = vadd.f32 %v1668_v4, %v403_v15  ;;  %1961 = vmatprep.mubr.f32.mxu1 %v432_v12 }
 0x259   :  { %1962 = vmatmul.mubr.f32.vlgmr.msra.gmra.mrb[0].mxu1 %v433_v13  ;;  %v435_v22 = vmax.f32 %v409_v14, 0.0 }
 0x25a   :  { %v434_v20 = vmax.f32 %v404_v17, 0.0  ;;  %v1925_v21 = vpop.f32.mrb[4].mxu0  ;;  %2310 = vmatpush3.bf16.msra.mxu1 %v2307_v3 }
 0x25b   :  { %v419_v23 = vadd.f32 %v1925_v21, %v1668_v4  ;;  %v413_v24 = vpop.f32.mrb[5].mxu0  ;;  %2312 = vmatprep.subr.bf16.mxu1 %v2311_v16  ;;  %v724_v21 = vld [vmem:[#allocation7 + $0x28] sm:$0xff] }
 0x25c   :  { %v414_v26 = vadd.f32 %v1668_v4, %v413_v24  ;;  %1964 = vmatprep.mubr.f32.mxu1 %v434_v20 }
 0x25d   :  { %1965 = vmatmul.mubr.f32.gmra.mrb[2].mxu1 %v435_v22  ;;  %v437_v31 = vmax.f32 %v419_v23, 0.0  ;;  %v723_v23 = vld [vmem:[#allocation7 + $0x20] sm:$0xff] }
 0x25e   :  { %v436_v29 = vmax.f32 %v414_v26, 0.0  ;;  %v1928_v30 = vpop.f32.mrb[6].mxu0  ;;  %2314 = vmatpush3.bf16.msra.mxu1 %v2311_v16 }
 0x25f   :  { %v429_v32 = vadd.f32 %v1928_v30, %v1668_v4  ;;  %v423_v33 = vpop.f32.mrb[7].mxu0  ;;  %2316 = vmatprep.subr.bf16.mxu1 %v2315_v25 }
 0x260   :  { %v424_v35 = vadd.f32 %v1668_v4, %v423_v33  ;;  %1967 = vmatprep.mubr.f32.mxu1 %v436_v29  ;;  %v726_v33 = vld [vmem:[#allocation7 + $0x38] sm:$0xff] }
 0x261   :  { %1968 = vmatmul.mubr.f32.gmra.mrb[4].mxu1 %v437_v31  ;;  %v439_v39 = vmax.f32 %v429_v32, 0.0 }
 0x262   :  { %v438_v38 = vmax.f32 %v424_v35, 0.0  ;;  %2318 = vmatpush3.bf16.msra.mxu1 %v2315_v25  ;;  %v1977_v44 = vpop.f32.mrb[8].mxu0  ;;  %v725_v35 = vld [vmem:[#allocation7 + $0x30] sm:$0xff] }
 0x263   :  { %2320 = vmatprep.subr.bf16.mxu1 %v2319_v34  ;;  %v657_v45 = vpop.f32.mrb[9].mxu0 }
 0x264   :  { %1970 = vmatprep.mubr.f32.mxu1 %v438_v38 }
 0x265   :  { %1971 = vmatmul.mubr.f32.gmra.mrb[6].mxu1 %v439_v39 }
 0x266   :  { %2322 = vmatpush3.bf16.msra.mxu1 %v2319_v34  ;;  %v1980_v49 = vpop.f32.mrb[10].mxu0 }
 0x267   :  { %2324 = vmatprep.subr.bf16.mxu1 %v2323_v40  ;;  %v667_v50 = vpop.f32.mrb[11].mxu0 }
 0x26a   :  { %2326 = vmatpush3.bf16.msra.mxu1 %v2323_v40  ;;  %v1983_v54 = vpop.f32.mrb[12].mxu0 }
 0x26b   :  { %2328 = vmatprep.subr.bf16.mxu1 %v2327_v43  ;;  %v677_v55 = vpop.f32.mrb[13].mxu0 }
 0x26e   :  { %2330 = vmatpush3.bf16.msra.mxu1 %v2327_v43  ;;  %v1986_v56 = vpop.f32.mrb[14].mxu0  ;;  %v745_v43 = vld [vmem:[#allocation7 + $0x48] sm:$0xff] }
 0x26f   :  { %2332 = vmatprep.subr.bf16.mxu1 %v2331_v48  ;;  %v687_v57 = vpop.f32.mrb[15].mxu0 }
 0x272   :  { %2334 = vmatpush3.bf16.msra.mxu1 %v2331_v48 }
 0x273   :  { %2336 = vmatprep.subr.bf16.mxu1 %v2335_v53 }
 0x276   :  { %2338 = vmatpush3.bf16.msra.mxu1 %v2335_v53 }
 0x32c   :  { %v1963_v58 = vpop.f32.mrb[0].mxu1 }
 0x32d   :  { %v697_v60 = vsub.f32 %v1963_v58, %v1977_v44  ;;  %v522_v61 = vpop.f32.mrb[1].mxu1  ;;  %v746_v44 = vld [vmem:[#allocation7 + $0x50] sm:$0xff] }
 0x32e   :  { %v696_v63 = vsub.f32 %v522_v61, %v657_v45 }
 0x32f   :  { %v3326_v0 = vadd.f32 %v1678_v59, %v697_v60 }
 0x330   :  { %v3328_v2 = vadd.f32 %v1678_v59, %v696_v63  ;;  %v1966_v3 = vpop.f32.mrb[2].mxu1  ;;  %v769_v63 = vld [vmem:[#allocation7 + $0x80] sm:$0xff] }
 0x331   :  { %v728_v4 = vadd.f32 %v720_v62, %v3326_v0  ;;  %v699_v5 = vsub.f32 %v1966_v3, %v1980_v49  ;;  %v532_v6 = vpop.f32.mrb[3].mxu1  ;;  %v753_v47 = vadd.f32 %v745_v43, %v3326_v0  ;;  %v751_v62 = vld [vmem:[#allocation7 + $0x78] sm:$0xff]  ;;  %v798_v43 = vld [vmem:[#allocation7 + $0xe0] sm:$0xff] }
 0x332   :  { %v698_v7 = vsub.f32 %v532_v6, %v667_v50  ;;  %v727_v8 = vadd.f32 %v719_v1, %v3328_v2  ;;  %v752_v42 = vadd.f32 %v744_v36, %v3328_v2  ;;  %v747_v50 = vld [vmem:[#allocation7 + $0x58] sm:$0xff]  ;;  %v770_v6 = vld [vmem:[#allocation7 + $0x88] sm:$0xff]  ;;  %v796_v36 = vld [vmem:[#allocation7 + $0xd0] sm:$0xff] }
 0x333   :  { %v3332_v10 = vadd.f32 %v1678_v59, %v699_v5  ;;  %v736_v15 = vmax.f32 %v728_v4, 0.0  ;;  %v761_v52 = vmax.f32 %v753_v47, 0.0  ;;  %v777_v5 = vadd.f32 %v769_v63, %v3328_v2  ;;  %v799_v47 = vld [vmem:[#allocation7 + $0xe8] sm:$0xff] }
 0x334   :  { %v3334_v12 = vadd.f32 %v1678_v59, %v698_v7  ;;  %v1969_v13 = vpop.f32.mrb[4].mxu1  ;;  %v735_v14 = vmax.f32 %v727_v8, 0.0  ;;  %v760_v48 = vmax.f32 %v752_v42, 0.0  ;;  %v771_v7 = vld [vmem:[#allocation7 + $0x90] sm:$0xff]  ;;  %v797_v42 = vld [vmem:[#allocation7 + $0xd8] sm:$0xff] }
 0x335   :  { %v701_v16 = vsub.f32 %v1969_v13, %v1983_v54  ;;  %v542_v17 = vpop.f32.mrb[5].mxu1  ;;  %v730_v18 = vadd.f32 %v722_v9, %v3332_v10  ;;  %v755_v53 = vadd.f32 %v747_v50, %v3332_v10  ;;  %v778_v9 = vadd.f32 %v770_v6, %v3326_v0  ;;  %v1098_v63 = vld [vmem:[#allocation19 + $0x40] sm:$0xff] }
 0x336   :  { %v700_v19 = vsub.f32 %v542_v17, %v677_v55  ;;  %2019 = vmatprep.mubr.f32.mxu1 %v735_v14  ;;  %v729_v20 = vadd.f32 %v721_v11, %v3334_v12  ;;  %v754_v49 = vadd.f32 %v746_v44, %v3334_v12  ;;  %v785_v11 = vmax.f32 %v777_v5, 0.0  ;;  %v772_v14 = vld [vmem:[#allocation7 + $0x98] sm:$0xff]  ;;  %v1101_v5 = vld [vmem:[#allocation19 + $0x58] sm:$0xff] }
 0x337   :  { %v3338_v22 = vadd.f32 %v1678_v59, %v701_v16  ;;  %2020 = vmatmul.mubr.f32.vlgmr.msra.gmra.mrb[8].mxu1 %v736_v15  ;;  %v738_v29 = vmax.f32 %v730_v18, 0.0  ;;  %v763_v58 = vmax.f32 %v755_v53, 0.0  ;;  %v779_v13 = vadd.f32 %v771_v7, %v3334_v12  ;;  %v773_v15 = vld [vmem:[#allocation7 + $0xa0] sm:$0xff]  ;;  %v1102_v7 = vld [vmem:[#allocation19 + $0x60] sm:$0xff] }
 0x338   :  { %v3340_v24 = vadd.f32 %v1678_v59, %v700_v19  ;;  %v1972_v25 = vpop.f32.mrb[6].mxu1  ;;  %v737_v26 = vmax.f32 %v729_v20, 0.0  ;;  %v762_v54 = vmax.f32 %v754_v49, 0.0  ;;  %v786_v16 = vmax.f32 %v778_v9, 0.0  ;;  %v774_v20 = vld [vmem:[#allocation7 + $0xa8] sm:$0xff] }
 0x339   :  { %v703_v27 = vsub.f32 %v1972_v25, %v1986_v56  ;;  %v552_v28 = vpop.f32.mrb[7].mxu1  ;;  %v732_v30 = vadd.f32 %v724_v21, %v3338_v22  ;;  %v749_v56 = vld [vmem:[#allocation7 + $0x68] sm:$0xff]  ;;  %v780_v17 = vadd.f32 %v772_v14, %v3332_v10  ;;  %v787_v18 = vmax.f32 %v779_v13, 0.0  ;;  %v775_v21 = vld [vmem:[#allocation7 + $0xb0] sm:$0xff] }
 0x33a   :  { %v702_v31 = vsub.f32 %v552_v28, %v687_v57  ;;  %2022 = vmatprep.mubr.f32.mxu1 %v737_v26  ;;  %v731_v32 = vadd.f32 %v723_v23, %v3340_v24  ;;  %v756_v55 = vadd.f32 %v748_v51, %v3340_v24  ;;  %v750_v57 = vld [vmem:[#allocation7 + $0x70] sm:$0xff]  ;;  %v781_v19 = vadd.f32 %v773_v15, %v3340_v24  ;;  %v776_v28 = vld [vmem:[#allocation7 + $0xb8] sm:$0xff]  ;;  %v1105_v13 = vld [vmem:[#allocation19 + $0x78] sm:$0xff] }
 0x33b   :  { %v3344_v34 = vadd.f32 %v1678_v59, %v703_v27  ;;  %2023 = vmatmul.mubr.f32.gmra.mrb[10].mxu1 %v738_v29  ;;  %v740_v39 = vmax.f32 %v732_v30, 0.0  ;;  %v788_v23 = vmax.f32 %v780_v17, 0.0  ;;  %v782_v25 = vadd.f32 %v774_v20, %v3338_v22  ;;  %v794_v29 = vld [vmem:[#allocation7 + $0xc0] sm:$0xff]  ;;  %v801_v51 = vld [vmem:[#allocation7 + $0xf8] sm:$0xff]  ;;  %v1226_v15 = vld [vmem:[#allocation22] sm:$0xff] }
 0x33c   :  { %v3346_v37 = vadd.f32 %v1678_v59, %v702_v31  ;;  %v739_v38 = vmax.f32 %v731_v32, 0.0  ;;  %v757_v59 = vadd.f32 %v749_v56, %v3338_v22  ;;  %v764_v60 = vmax.f32 %v756_v55, 0.0  ;;  %v1091_v55 = vld [vmem:[#allocation19 + $0x8] sm:$0xff] }
 0x33d   :  { %v734_v40 = vadd.f32 %v726_v33, %v3344_v34  ;;  %v759_v3 = vadd.f32 %v751_v62, %v3344_v34  ;;  %v789_v26 = vmax.f32 %v781_v19, 0.0  ;;  %v790_v30 = vmax.f32 %v782_v25, 0.0 }
 0x33e   :  { %2025 = vmatprep.mubr.f32.mxu1 %v739_v38  ;;  %v733_v41 = vadd.f32 %v725_v35, %v3346_v37  ;;  %v758_v61 = vadd.f32 %v750_v57, %v3346_v37  ;;  %v765_v1 = vmax.f32 %v757_v59, 0.0  ;;  %v783_v27 = vadd.f32 %v775_v21, %v3346_v37  ;;  %v795_v35 = vld [vmem:[#allocation7 + $0xc8] sm:$0xff]  ;;  %v1095_v59 = vld [vmem:[#allocation19 + $0x28] sm:$0xff] }
 0x33f   :  { %2026 = vmatmul.mubr.f32.gmra.mrb[12].mxu1 %v740_v39  ;;  %v742_v46 = vmax.f32 %v734_v40, 0.0  ;;  %v767_v8 = vmax.f32 %v759_v3, 0.0  ;;  %v784_v31 = vadd.f32 %v776_v28, %v3344_v34  ;;  %v802_v33 = vadd.f32 %v794_v29, %v3328_v2  ;;  %v1093_v57 = vld [vmem:[#allocation19 + $0x18] sm:$0xff] }
 0x340   :  { %v741_v45 = vmax.f32 %v733_v41, 0.0  ;;  %v766_v4 = vmax.f32 %v758_v61, 0.0  ;;  %v791_v32 = vmax.f32 %v783_v27, 0.0  ;;  %v803_v39 = vadd.f32 %v795_v35, %v3326_v0  ;;  %v1097_v61 = vld [vmem:[#allocation19 + $0x38] sm:$0xff] }
 0x341   :  { %v792_v38 = vmax.f32 %v784_v31, 0.0  ;;  %v810_v40 = vmax.f32 %v802_v33, 0.0  ;;  %v804_v41 = vadd.f32 %v796_v36, %v3334_v12  ;;  %v806_v2 = vadd.f32 %v798_v43, %v3340_v24  ;;  %v3377_v28 = vld [vmem:[#allocation17] ss:$0 sm:$0xff] }
 0x342   :  { %2028 = vmatprep.mubr.f32.mxu1 %v741_v45  ;;  %v811_v44 = vmax.f32 %v803_v39, 0.0  ;;  %v805_v45 = vadd.f32 %v797_v42, %v3332_v10  ;;  %v807_v0 = vadd.f32 %v799_v47, %v3338_v22  ;;  %v809_v53 = vadd.f32 %v801_v51, %v3344_v34  ;;  %v1092_v22 = vld [vmem:[#allocation19 + $0x10] sm:$0xff] }
 0x343   :  { %2029 = vmatmul.mubr.f32.gmra.mrb[14].mxu1 %v742_v46  ;;  %v812_v46 = vmax.f32 %v804_v41, 0.0  ;;  %v814_v50 = vmax.f32 %v806_v2, 0.0  ;;  %v1096_v34 = vld [vmem:[#allocation19 + $0x30] sm:$0xff] }
 0x344   :  { %2031 = vmatprep.mubr.f32.mxu1 %v760_v48  ;;  %v800_v48 = vld [vmem:[#allocation7 + $0xf0] sm:$0xff]  ;;  %v813_v49 = vmax.f32 %v805_v45, 0.0  ;;  %v817_v24 = vmax.f32 %v809_v53, 0.0  ;;  %v2351_v62 = vpack.c.bf16 %v1097_v61, %v1096_v34 }
 0x345   :  { %v808_v12 = vadd.f32 %v800_v48, %v3346_v37  ;;  %v1094_v37 = vld [vmem:[#allocation19 + $0x20] sm:$0xff] }
 0x347   :  { %2032 = vmatmul.mubr.f32.gmra.mrb[16].mxu1 %v761_v52  ;;  %v815_v52 = vmax.f32 %v807_v0, 0.0  ;;  %v816_v10 = vmax.f32 %v808_v12, 0.0 }
 0x348   :  { %2034 = vmatprep.mubr.f32.mxu1 %v762_v54  ;;  %v1090_v54 = vld [vmem:[#allocation19] sm:$0xff] }
 0x349   :  { %v2339_v56 = vpack.c.bf16 %v1091_v55, %v1090_v54 }
 0x34b   :  { %2035 = vmatmul.mubr.f32.gmra.mrb[18].mxu1 %v763_v58  ;;  %2340 = vmatprep.subr.bf16.mxu0 %v2339_v56  ;;  %v2343_v58 = vpack.c.bf16 %v1093_v57, %v1092_v22 }
 0x34c   :  { %2037 = vmatprep.mubr.f32.mxu1 %v764_v60  ;;  %2342 = vmatpush3.bf16.msra.mxu0 %v2339_v56  ;;  %v2347_v60 = vpack.c.bf16 %v1095_v59, %v1094_v37 }
 0x34d   :  { %2344 = vmatprep.subr.bf16.mxu0 %v2343_v58 }
 0x34f   :  { %2038 = vmatmul.mubr.f32.gmra.mrb[20].mxu1 %v765_v1  ;;  %v1099_v1 = vld [vmem:[#allocation19 + $0x48] sm:$0xff] }
 0x350   :  { %2040 = vmatprep.mubr.f32.mxu1 %v766_v4  ;;  %2346 = vmatpush3.bf16.msra.mxu0 %v2343_v58  ;;  %v2355_v3 = vpack.c.bf16 %v1099_v1, %v1098_v63  ;;  %v1100_v4 = vld [vmem:[#allocation19 + $0x50] sm:$0xff] }
 0x351   :  { %2348 = vmatprep.subr.bf16.mxu0 %v2347_v60  ;;  %v2359_v6 = vpack.c.bf16 %v1101_v5, %v1100_v4 }
 0x353   :  { %2041 = vmatmul.mubr.f32.gmra.mrb[22].mxu1 %v767_v8  ;;  %v1103_v8 = vld [vmem:[#allocation19 + $0x68] sm:$0xff] }
 0x354   :  { %2043 = vmatprep.mubr.f32.mxu1 %v785_v11  ;;  %2350 = vmatpush3.bf16.msra.mxu0 %v2347_v60  ;;  %v2363_v9 = vpack.c.bf16 %v1103_v8, %v1102_v7  ;;  %v1104_v11 = vld [vmem:[#allocation19 + $0x70] sm:$0xff] }
 0x355   :  { %2352 = vmatprep.subr.bf16.mxu0 %v2351_v62  ;;  %v2367_v14 = vpack.c.bf16 %v1105_v13, %v1104_v11 }
 0x357   :  { %2044 = vmatmul.mubr.f32.gmra.mrb[24].mxu1 %v786_v16  ;;  %v1227_v16 = vld [vmem:[#allocation22 + $0x8] sm:$0xff] }
 0x358   :  { %2046 = vmatprep.mubr.f32.mxu1 %v787_v18  ;;  %2354 = vmatpush3.bf16.msra.mxu0 %v2351_v62  ;;  %v3374_v17 = vpack.c.bf16 %v1227_v16, %v1226_v15 }
 0x359   :  { %2356 = vmatprep.subr.bf16.mxu0 %v2355_v3 }
 0x35b   :  { %2047 = vmatmul.mubr.f32.gmra.mrb[26].mxu1 %v788_v23 }
 0x35c   :  { %2049 = vmatprep.mubr.f32.mxu1 %v789_v26  ;;  %2358 = vmatpush3.bf16.msra.mxu0 %v2355_v3 }
 0x35d   :  { %2360 = vmatprep.subr.bf16.mxu0 %v2359_v6 }
 0x35f   :  { %2050 = vmatmul.mubr.f32.gmra.mrb[28].mxu1 %v790_v30 }
 0x360   :  { %2052 = vmatprep.mubr.f32.mxu1 %v791_v32  ;;  %2362 = vmatpush3.bf16.msra.mxu0 %v2359_v6 }
 0x361   :  { %2364 = vmatprep.subr.bf16.mxu0 %v2363_v9 }
 0x363   :  { %2053 = vmatmul.mubr.f32.gmra.mrb[30].mxu1 %v792_v38 }
 0x364   :  { %2055 = vmatprep.mubr.f32.mxu1 %v810_v40  ;;  %2366 = vmatpush3.bf16.msra.mxu0 %v2363_v9 }
 0x365   :  { %2368 = vmatprep.subr.bf16.mxu0 %v2367_v14 }
 0x367   :  { %2056 = vmatmul.mubr.f32.gmra.mrb[32].mxu1 %v811_v44 }
 0x368   :  { %2058 = vmatprep.mubr.f32.mxu1 %v812_v46  ;;  %2370 = vmatpush3.bf16.msra.mxu0 %v2367_v14 }
 0x369   :  { %2372 = vmatprep.subr.bf16.mxu0 %v3374_v17 }
 0x36b   :  { %2059 = vmatmul.mubr.f32.gmra.mrb[34].mxu1 %v813_v49 }
 0x36c   :  { %2061 = vmatprep.mubr.f32.mxu1 %v814_v50 }
 0x36f   :  { %2062 = vmatmul.mubr.f32.gmra.mrb[36].mxu1 %v815_v52 }
 0x370   :  { %2064 = vmatprep.mubr.f32.mxu1 %v816_v10 }
 0x373   :  { %2065 = vmatmul.mubr.f32.gmra.mrb[38].mxu1 %v817_v24 }
 0x40a   :  { %v2021_v18 = vpop.f32.mrb[8].mxu1 }
 0x40b   :  { %v907_v19 = vpop.f32.mrb[9].mxu1  ;;  %v913_v30 = vadd.f32 %v2021_v18, %v3377_v28 }
 0x40c   :  { %v908_v33 = vadd.f32 %v3377_v28, %v907_v19 }
 0x40e   :  { %v2024_v20 = vpop.f32.mrb[10].mxu1 }
 0x40f   :  { %v917_v21 = vpop.f32.mrb[11].mxu1  ;;  %v923_v40 = vadd.f32 %v2024_v20, %v3377_v28 }
 0x410   :  { %v918_v43 = vadd.f32 %v3377_v28, %v917_v21 }
 0x412   :  { %v2027_v23 = vpop.f32.mrb[12].mxu1 }
 0x413   :  { %v927_v25 = vpop.f32.mrb[13].mxu1  ;;  %v933_v47 = vadd.f32 %v2027_v23, %v3377_v28 }
 0x414   :  { %v928_v0 = vadd.f32 %v3377_v28, %v927_v25 }
 0x416   :  { %v2030_v26 = vpop.f32.mrb[14].mxu1 }
 0x417   :  { %v937_v27 = vpop.f32.mrb[15].mxu1  ;;  %v943_v53 = vadd.f32 %v2030_v26, %v3377_v28  ;;  %v1228_v26 = vld [vmem:[#allocation22 + $0x10] sm:$0xff] }
 0x418   :  { %v938_v54 = vadd.f32 %v3377_v28, %v937_v27  ;;  %v1229_v27 = vld [vmem:[#allocation22 + $0x18] sm:$0xff] }
 0x41a   :  { %v2033_v29 = vpop.f32.mrb[16].mxu1 }
 0x41b   :  { %v953_v31 = vadd.f32 %v2033_v29, %v3377_v28  ;;  %v947_v32 = vpop.f32.mrb[17].mxu1 }
 0x41c   :  { %v948_v35 = vadd.f32 %v3377_v28, %v947_v32 }
 0x41d   :  { %v1067_v36 = vmax.f32 %v913_v30, %v953_v31 }
 0x41e   :  { %v1066_v38 = vmax.f32 %v908_v33, %v948_v35  ;;  %v2036_v39 = vpop.f32.mrb[18].mxu1  ;;  %v2375_v35 = vpack.c.bf16 %v1229_v27, %v1228_v26  ;;  %v1680_v27 = vld [vmem:[#allocation20] ss:$0 sm:$0xff] }
 0x41f   :  { %v963_v41 = vadd.f32 %v2036_v39, %v3377_v28  ;;  %v957_v42 = vpop.f32.mrb[19].mxu1  ;;  %v1231_v39 = vld [vmem:[#allocation22 + $0x28] sm:$0xff] }
 0x420   :  { %v958_v44 = vadd.f32 %v3377_v28, %v957_v42 }
 0x421   :  { %v1069_v45 = vmax.f32 %v923_v40, %v963_v41 }
 0x422   :  { %v1068_v46 = vmax.f32 %v918_v43, %v958_v44  ;;  %v2039_v2 = vpop.f32.mrb[20].mxu1 }
 0x423   :  { %v973_v48 = vadd.f32 %v2039_v2, %v3377_v28  ;;  %v967_v49 = vpop.f32.mrb[21].mxu1  ;;  %v1232_v2 = vld [vmem:[#allocation22 + $0x30] sm:$0xff] }
 0x424   :  { %v968_v50 = vadd.f32 %v3377_v28, %v967_v49 }
 0x425   :  { %v1071_v12 = vmax.f32 %v933_v47, %v973_v48  ;;  %v1233_v47 = vld [vmem:[#allocation22 + $0x38] sm:$0xff] }
 0x426   :  { %v1070_v51 = vmax.f32 %v928_v0, %v968_v50  ;;  %v2042_v52 = vpop.f32.mrb[22].mxu1 }
 0x427   :  { %v983_v10 = vadd.f32 %v2042_v52, %v3377_v28  ;;  %v977_v24 = vpop.f32.mrb[23].mxu1  ;;  %v1234_v52 = vld [vmem:[#allocation22 + $0x40] sm:$0xff] }
 0x428   :  { %v978_v55 = vadd.f32 %v3377_v28, %v977_v24 }
 0x429   :  { %v1073_v56 = vmax.f32 %v943_v53, %v983_v10  ;;  %v1235_v53 = vld [vmem:[#allocation22 + $0x48] sm:$0xff] }
 0x42a   :  { %v1072_v22 = vmax.f32 %v938_v54, %v978_v55  ;;  %v2045_v57 = vpop.f32.mrb[24].mxu1  ;;  %v2387_v54 = vpack.c.bf16 %v1235_v53, %v1234_v52  ;;  %v1236_v55 = vld [vmem:[#allocation22 + $0x50] sm:$0xff] }
 0x42b   :  { %v993_v58 = vadd.f32 %v2045_v57, %v3377_v28  ;;  %v987_v37 = vpop.f32.mrb[25].mxu1  ;;  %v1238_v57 = vld [vmem:[#allocation22 + $0x60] sm:$0xff]  ;;  %v1507_v52 = vld [vmem:[#allocation28 + $0x8] sm:$0xff]  ;;  %v1508_v53 = vld [vmem:[#allocation28 + $0x10] sm:$0xff] }
 0x42c   :  { %v988_v59 = vadd.f32 %v3377_v28, %v987_v37  ;;  %v1240_v37 = vld [vmem:[#allocation22 + $0x70] sm:$0xff] }
 0x42d   :  { %v1075_v60 = vmax.f32 %v1067_v36, %v993_v58  ;;  %v1239_v58 = vld [vmem:[#allocation22 + $0x68] sm:$0xff] }
 0x42e   :  { %v1074_v34 = vmax.f32 %v1066_v38, %v988_v59  ;;  %v2048_v61 = vpop.f32.mrb[26].mxu1  ;;  %v1230_v38 = vld [vmem:[#allocation22 + $0x20] sm:$0xff]  ;;  %v1241_v59 = vld [vmem:[#allocation22 + $0x78] sm:$0xff] }
 0x42f   :  { %v1003_v62 = vadd.f32 %v2048_v61, %v3377_v28  ;;  %v997_v63 = vpop.f32.mrb[27].mxu1  ;;  %v1371_v61 = vld [vmem:[#allocation25 + $0x8] sm:$0xff] }
 0x430   :  { %v998_v1 = vadd.f32 %v3377_v28, %v997_v63 }
 0x431   :  { %v1077_v3 = vmax.f32 %v1069_v45, %v1003_v62  ;;  %v2379_v45 = vpack.c.bf16 %v1231_v39, %v1230_v38  ;;  %v1372_v62 = vld [vmem:[#allocation25 + $0x10] sm:$0xff] }
 0x432   :  { %v1076_v4 = vmax.f32 %v1068_v46, %v998_v1  ;;  %v2051_v5 = vpop.f32.mrb[28].mxu1  ;;  %v1373_v1 = vld [vmem:[#allocation25 + $0x18] sm:$0xff] }
 0x433   :  { %v1013_v6 = vadd.f32 %v2051_v5, %v3377_v28  ;;  %v1007_v7 = vpop.f32.mrb[29].mxu1  ;;  %v1375_v5 = vld [vmem:[#allocation25 + $0x28] sm:$0xff] }
 0x434   :  { %v1008_v8 = vadd.f32 %v3377_v28, %v1007_v7  ;;  %v1376_v7 = vld [vmem:[#allocation25 + $0x30] sm:$0xff] }
 0x435   :  { %v1079_v9 = vmax.f32 %v1071_v12, %v1013_v6 }
 0x436   :  { %v1078_v11 = vmax.f32 %v1070_v51, %v1008_v8  ;;  %v2054_v13 = vpop.f32.mrb[30].mxu1  ;;  %v1377_v8 = vld [vmem:[#allocation25 + $0x38] sm:$0xff] }
 0x437   :  { %v1023_v14 = vadd.f32 %v2054_v13, %v3377_v28  ;;  %v1017_v15 = vpop.f32.mrb[31].mxu1  ;;  %v1379_v13 = vld [vmem:[#allocation25 + $0x48] sm:$0xff] }
 0x438   :  { %v1018_v16 = vadd.f32 %v3377_v28, %v1017_v15  ;;  %v1380_v15 = vld [vmem:[#allocation25 + $0x50] sm:$0xff] }
 0x439   :  { %v1081_v18 = vmax.f32 %v1073_v56, %v1023_v14  ;;  %v1237_v56 = vld [vmem:[#allocation22 + $0x58] sm:$0xff] }
 0x43a   :  { %v1080_v19 = vmax.f32 %v1072_v22, %v1018_v16  ;;  %v2057_v20 = vpop.f32.mrb[32].mxu1  ;;  %v2391_v22 = vpack.c.bf16 %v1237_v56, %v1236_v55  ;;  %v1381_v16 = vld [vmem:[#allocation25 + $0x58] sm:$0xff]  ;;  %v1510_v55 = vld [vmem:[#allocation28 + $0x20] sm:$0xff]  ;;  %v1511_v56 = vld [vmem:[#allocation28 + $0x28] sm:$0xff] }
 0x43b   :  { %v1033_v21 = vadd.f32 %v2057_v20, %v3377_v28  ;;  %v1027_v23 = vpop.f32.mrb[33].mxu1  ;;  %v1383_v20 = vld [vmem:[#allocation25 + $0x68] sm:$0xff] }
 0x43c   :  { %v1028_v25 = vadd.f32 %v3377_v28, %v1027_v23  ;;  %v1384_v23 = vld [vmem:[#allocation25 + $0x70] sm:$0xff] }
 0x43d   :  { %v1083_v29 = vmax.f32 %v1075_v60, %v1033_v21  ;;  %v2399_v60 = vpack.c.bf16 %v1241_v59, %v1240_v37  ;;  %v1514_v37 = vld [vmem:[#allocation28 + $0x40] sm:$0xff]  ;;  %v1515_v59 = vld [vmem:[#allocation28 + $0x48] sm:$0xff] }
 0x43e   :  { %v1082_v30 = vmax.f32 %v1074_v34, %v1028_v25  ;;  %v2060_v31 = vpop.f32.mrb[34].mxu1  ;;  %v1370_v34 = vld [vmem:[#allocation25] sm:$0xff]  ;;  %v1385_v25 = vld [vmem:[#allocation25 + $0x78] sm:$0xff] }
 0x43f   :  { %v1043_v32 = vadd.f32 %v2060_v31, %v3377_v28  ;;  %v1037_v33 = vpop.f32.mrb[35].mxu1  ;;  %v2403_v63 = vpack.c.bf16 %v1371_v61, %v1370_v34  ;;  %v2431_v26 = vpack.c.bf16 %v1385_v25, %v1384_v23  ;;  %v1516_v34 = vld [vmem:[#allocation28 + $0x50] sm:$0xff]  ;;  %v1517_v61 = vld [vmem:[#allocation28 + $0x58] sm:$0xff] }
 0x440   :  { %v1038_v36 = vadd.f32 %v3377_v28, %v1037_v33  ;;  %2099 = vmatprep.mubr.f32.mxu0 %v1082_v30 }
 0x441   :  { %v1085_v40 = vmax.f32 %v1077_v3, %v1043_v32  ;;  %2100 = vmatmul.mubr.f32.vlgmr.msra.gmra.mrb[16].mxu0 %v1083_v29  ;;  %v2407_v3 = vpack.c.bf16 %v1373_v1, %v1372_v62  ;;  %2404 = vmatprep.subr.bf16.mxu1 %v2403_v63  ;;  %v2455_v62 = vpack.c.bf16 %v1517_v61, %v1516_v34  ;;  %v1519_v1 = vld [vmem:[#allocation28 + $0x68] sm:$0xff] }
 0x442   :  { %v1084_v41 = vmax.f32 %v1076_v4, %v1038_v36  ;;  %v2063_v42 = vpop.f32.mrb[36].mxu1  ;;  %2374 = vmatpush3.bf16.msra.mxu0 %v3374_v17  ;;  %v2383_v17 = vpack.c.bf16 %v1233_v47, %v1232_v2  ;;  %v1374_v4 = vld [vmem:[#allocation25 + $0x20] sm:$0xff]  ;;  %2406 = vmatpush3.bf16.msra.mxu1 %v2403_v63 }
 0x443   :  { %v1053_v43 = vadd.f32 %v2063_v42, %v3377_v28  ;;  %v1047_v44 = vpop.f32.mrb[37].mxu1  ;;  %2376 = vmatprep.subr.bf16.mxu0 %v2375_v35  ;;  %2408 = vmatprep.subr.bf16.mxu1 %v2407_v3  ;;  %v2411_v6 = vpack.c.bf16 %v1375_v5, %v1374_v4  ;;  %v1518_v63 = vld [vmem:[#allocation28 + $0x60] sm:$0xff]  ;;  %v2488_v5 = vld [vmem:[#allocation2 + $0x8] sm:$0xff] }
 0x444   :  { %v1048_v46 = vadd.f32 %v3377_v28, %v1047_v44  ;;  %2102 = vmatprep.mubr.f32.mxu0 %v1084_v41 }
 0x445   :  { %v1087_v48 = vmax.f32 %v1079_v9, %v1053_v43  ;;  %2103 = vmatmul.mubr.f32.gmra.mrb[18].mxu0 %v1085_v40  ;;  %v2415_v9 = vpack.c.bf16 %v1377_v8, %v1376_v7  ;;  %v1681_v7 = vld [vmem:[#allocation23] ss:$0 sm:$0xff] }
 0x446   :  { %v1086_v49 = vmax.f32 %v1078_v11, %v1048_v46  ;;  %v2066_v0 = vpop.f32.mrb[38].mxu1  ;;  %2378 = vmatpush3.bf16.msra.mxu0 %v2375_v35  ;;  %2410 = vmatpush3.bf16.msra.mxu1 %v2407_v3  ;;  %v1378_v11 = vld [vmem:[#allocation25 + $0x40] sm:$0xff]  ;;  %v2459_v3 = vpack.c.bf16 %v1519_v1, %v1518_v63 }
 0x447   :  { %v1063_v50 = vadd.f32 %v2066_v0, %v3377_v28  ;;  %v1057_v12 = vpop.f32.mrb[39].mxu1  ;;  %2380 = vmatprep.subr.bf16.mxu0 %v2379_v45  ;;  %2412 = vmatprep.subr.bf16.mxu1 %v2411_v6  ;;  %v2419_v14 = vpack.c.bf16 %v1379_v13, %v1378_v11  ;;  %v1683_v63 = vld [vmem:[#allocation29] ss:$0 sm:$0xff] }
 0x448   :  { %v1058_v51 = vadd.f32 %v3377_v28, %v1057_v12  ;;  %2105 = vmatprep.mubr.f32.mxu0 %v1086_v49  ;;  %v2395_v28 = vpack.c.bf16 %v1239_v58, %v1238_v57  ;;  %v1512_v57 = vld [vmem:[#allocation28 + $0x30] sm:$0xff]  ;;  %v1513_v58 = vld [vmem:[#allocation28 + $0x38] sm:$0xff] }
 0x449   :  { %v1089_v10 = vmax.f32 %v1081_v18, %v1063_v50  ;;  %2106 = vmatmul.mubr.f32.gmra.mrb[20].mxu0 %v1087_v48  ;;  %v2423_v18 = vpack.c.bf16 %v1381_v16, %v1380_v15  ;;  %v2490_v16 = vld [vmem:[#allocation2 + $0x18] sm:$0xff] }
 0x44a   :  { %v1088_v24 = vmax.f32 %v1080_v19, %v1058_v51  ;;  %2382 = vmatpush3.bf16.msra.mxu0 %v2379_v45  ;;  %2414 = vmatpush3.bf16.msra.mxu1 %v2411_v6  ;;  %v1382_v19 = vld [vmem:[#allocation25 + $0x60] sm:$0xff] }
 0x44b   :  { %2384 = vmatprep.subr.bf16.mxu0 %v2383_v17  ;;  %2416 = vmatprep.subr.bf16.mxu1 %v2415_v9  ;;  %v2427_v21 = vpack.c.bf16 %v1383_v20, %v1382_v19  ;;  %v1506_v51 = vld [vmem:[#allocation28] sm:$0xff] }
 0x44c   :  { %2108 = vmatprep.mubr.f32.mxu0 %v1088_v24  ;;  %v1509_v24 = vld [vmem:[#allocation28 + $0x18] sm:$0xff]  ;;  %v2491_v20 = vld [vmem:[#allocation2 + $0x10] sm:$0xff] }
 0x44d   :  { %2109 = vmatmul.mubr.f32.gmra.mrb[22].mxu0 %v1089_v10  ;;  %v2435_v10 = vpack.c.bf16 %v1507_v52, %v1506_v51 }
 0x44e   :  { %2386 = vmatpush3.bf16.msra.mxu0 %v2383_v17  ;;  %2418 = vmatpush3.bf16.msra.mxu1 %v2415_v9  ;;  %v2489_v9 = vld [vmem:[#allocation2] sm:$0xff] }
 0x44f   :  { %2388 = vmatprep.subr.bf16.mxu0 %v2387_v54  ;;  %2420 = vmatprep.subr.bf16.mxu1 %v2419_v14 }
 0x452   :  { %2390 = vmatpush3.bf16.msra.mxu0 %v2387_v54  ;;  %2422 = vmatpush3.bf16.msra.mxu1 %v2419_v14  ;;  %v2439_v54 = vpack.c.bf16 %v1509_v24, %v1508_v53 }
 0x453   :  { %2392 = vmatprep.subr.bf16.mxu0 %v2391_v22  ;;  %2424 = vmatprep.subr.bf16.mxu1 %v2423_v18 }
 0x456   :  { %2394 = vmatpush3.bf16.msra.mxu0 %v2391_v22  ;;  %2426 = vmatpush3.bf16.msra.mxu1 %v2423_v18  ;;  %v2443_v22 = vpack.c.bf16 %v1511_v56, %v1510_v55 }
 0x457   :  { %2396 = vmatprep.subr.bf16.mxu0 %v2395_v28  ;;  %2428 = vmatprep.subr.bf16.mxu1 %v2427_v21 }
 0x45a   :  { %2398 = vmatpush3.bf16.msra.mxu0 %v2395_v28  ;;  %2430 = vmatpush3.bf16.msra.mxu1 %v2427_v21  ;;  %v2447_v28 = vpack.c.bf16 %v1513_v58, %v1512_v57 }
 0x45b   :  { %2400 = vmatprep.subr.bf16.mxu0 %v2399_v60  ;;  %2432 = vmatprep.subr.bf16.mxu1 %v2431_v26 }
 0x45e   :  { %2402 = vmatpush3.bf16.msra.mxu0 %v2399_v60  ;;  %2434 = vmatpush3.bf16.msra.mxu1 %v2431_v26  ;;  %v2451_v60 = vpack.c.bf16 %v1515_v59, %v1514_v37 }
 0x45f   :  { %2436 = vmatprep.subr.bf16.mxu0 %v2435_v10 }
 0x514   :  { %v2101_v29 = vpop.f32.mrb[16].mxu0 }
 0x515   :  { %v1185_v30 = vadd.f32 %v2101_v29, %v1680_v27  ;;  %v1179_v31 = vpop.f32.mrb[17].mxu0 }
 0x516   :  { %v1180_v32 = vadd.f32 %v1680_v27, %v1179_v31  ;;  %v2493_v31 = vld [vmem:[#allocation2 + $0x20] sm:$0xff] }
 0x517   :  { %v1219_v36 = vmax.f32 %v1185_v30, 0.0 }
 0x518   :  { %v1218_v33 = vmax.f32 %v1180_v32, 0.0  ;;  %v2104_v35 = vpop.f32.mrb[18].mxu0 }
 0x519   :  { %v1195_v38 = vadd.f32 %v2104_v35, %v1680_v27  ;;  %v1189_v39 = vpop.f32.mrb[19].mxu0 }
 0x51a   :  { %v1190_v40 = vadd.f32 %v1680_v27, %v1189_v39  ;;  %2143 = vmatprep.mubr.f32.mxu0 %v1218_v33 }
 0x51b   :  { %2144 = vmatmul.mubr.f32.vlgmr.msra.gmra.mrb[24].mxu0 %v1219_v36  ;;  %v1221_v43 = vmax.f32 %v1195_v38, 0.0  ;;  %v2494_v38 = vld [vmem:[#allocation2 + $0x38] sm:$0xff] }
 0x51c   :  { %v1220_v41 = vmax.f32 %v1190_v40, 0.0  ;;  %v2107_v42 = vpop.f32.mrb[20].mxu0  ;;  %2438 = vmatpush3.bf16.msra.mxu0 %v2435_v10 }
 0x51d   :  { %v1205_v44 = vadd.f32 %v2107_v42, %v1680_v27  ;;  %v1199_v45 = vpop.f32.mrb[21].mxu0  ;;  %2440 = vmatprep.subr.bf16.mxu0 %v2439_v54 }
 0x51e   :  { %v1200_v46 = vadd.f32 %v1680_v27, %v1199_v45  ;;  %2146 = vmatprep.mubr.f32.mxu0 %v1220_v41  ;;  %v2495_v41 = vld [vmem:[#allocation2 + $0x30] sm:$0xff]  ;;  %v1520_v45 = vld [vmem:[#allocation28 + $0x70] sm:$0xff] }
 0x51f   :  { %2147 = vmatmul.mubr.f32.gmra.mrb[26].mxu0 %v1221_v43  ;;  %v1223_v48 = vmax.f32 %v1205_v44, 0.0 }
 0x520   :  { %v1222_v2 = vmax.f32 %v1200_v46, 0.0  ;;  %v2110_v47 = vpop.f32.mrb[22].mxu0  ;;  %2442 = vmatpush3.bf16.msra.mxu0 %v2439_v54  ;;  %v1521_v46 = vld [vmem:[#allocation28 + $0x78] sm:$0xff] }
 0x521   :  { %v1215_v49 = vadd.f32 %v2110_v47, %v1680_v27  ;;  %v1209_v0 = vpop.f32.mrb[23].mxu0  ;;  %2444 = vmatprep.subr.bf16.mxu0 %v2443_v22  ;;  %v1682_v47 = vld [vmem:[#allocation26] ss:$0 sm:$0xff] }
 0x522   :  { %v1210_v50 = vadd.f32 %v1680_v27, %v1209_v0  ;;  %2149 = vmatprep.mubr.f32.mxu0 %v1222_v2  ;;  %v2492_v27 = vld [vmem:[#allocation2 + $0x28] sm:$0xff]  ;;  %v2463_v2 = vpack.c.bf16 %v1521_v46, %v1520_v45 }
 0x523   :  { %2150 = vmatmul.mubr.f32.gmra.mrb[28].mxu0 %v1223_v48  ;;  %v1225_v17 = vmax.f32 %v1215_v49, 0.0 }
 0x524   :  { %v1224_v12 = vmax.f32 %v1210_v50, 0.0  ;;  %2446 = vmatpush3.bf16.msra.mxu0 %v2443_v22 }
 0x525   :  { %2448 = vmatprep.subr.bf16.mxu0 %v2447_v28 }
 0x526   :  { %2152 = vmatprep.mubr.f32.mxu0 %v1224_v12 }
 0x527   :  { %2153 = vmatmul.mubr.f32.gmra.mrb[30].mxu0 %v1225_v17 }
 0x528   :  { %2450 = vmatpush3.bf16.msra.mxu0 %v2447_v28 }
 0x529   :  { %2452 = vmatprep.subr.bf16.mxu0 %v2451_v60 }
 0x52c   :  { %2454 = vmatpush3.bf16.msra.mxu0 %v2451_v60 }
 0x52d   :  { %2456 = vmatprep.subr.bf16.mxu0 %v2455_v62 }
 0x530   :  { %2458 = vmatpush3.bf16.msra.mxu0 %v2455_v62 }
 0x531   :  { %2460 = vmatprep.subr.bf16.mxu0 %v2459_v3 }
 0x534   :  { %2462 = vmatpush3.bf16.msra.mxu0 %v2459_v3 }
 0x535   :  { %2464 = vmatprep.subr.bf16.mxu0 %v2463_v2 }
 0x538   :  { %2466 = vmatpush3.bf16.msra.mxu0 %v2463_v2 }
 0x5ee   :  { %v2145_v4 = vpop.f32.mrb[24].mxu0 }
 0x5ef   :  { %v1348_v6 = vadd.f32 %v2488_v5, %v2145_v4  ;;  %v1308_v8 = vpop.f32.mrb[25].mxu0 }
 0x5f0   :  { %v1347_v11 = vadd.f32 %v2489_v9, %v1308_v8 }
 0x5f1   :  { %v1363_v15 = vadd.f32 %v1681_v7, %v1348_v6 }
 0x5f2   :  { %v1362_v13 = vadd.f32 %v1681_v7, %v1347_v11  ;;  %v2148_v14 = vpop.f32.mrb[26].mxu0 }
 0x5f3   :  { %v1350_v18 = vadd.f32 %v2490_v16, %v2148_v14  ;;  %v1318_v19 = vpop.f32.mrb[27].mxu0 }
 0x5f4   :  { %v1349_v21 = vadd.f32 %v2491_v20, %v1318_v19  ;;  %2187 = vmatprep.mubr.f32.mxu1 %v1362_v13 }
 0x5f5   :  { %2188 = vmatmul.mubr.f32.vlgmr.msra.gmra.mrb[40].mxu1 %v1363_v15  ;;  %v1365_v26 = vadd.f32 %v1681_v7, %v1350_v18 }
 0x5f6   :  { %v1364_v23 = vadd.f32 %v1681_v7, %v1349_v21  ;;  %v2151_v25 = vpop.f32.mrb[28].mxu0 }
 0x5f7   :  { %v1352_v29 = vadd.f32 %v2492_v27, %v2151_v25  ;;  %v1328_v30 = vpop.f32.mrb[29].mxu0 }
 0x5f8   :  { %v1351_v32 = vadd.f32 %v2493_v31, %v1328_v30  ;;  %2190 = vmatprep.mubr.f32.mxu1 %v1364_v23 }
 0x5f9   :  { %2191 = vmatmul.mubr.f32.gmra.mrb[42].mxu1 %v1365_v26  ;;  %v1367_v36 = vadd.f32 %v1681_v7, %v1352_v29 }
 0x5fa   :  { %v1366_v33 = vadd.f32 %v1681_v7, %v1351_v32  ;;  %v2154_v35 = vpop.f32.mrb[30].mxu0 }
 0x5fb   :  { %v1354_v39 = vadd.f32 %v2494_v38, %v2154_v35  ;;  %v1338_v40 = vpop.f32.mrb[31].mxu0 }
 0x5fc   :  { %v1353_v42 = vadd.f32 %v2495_v41, %v1338_v40  ;;  %2193 = vmatprep.mubr.f32.mxu1 %v1366_v33 }
 0x5fd   :  { %2194 = vmatmul.mubr.f32.gmra.mrb[44].mxu1 %v1367_v36  ;;  %v1369_v44 = vadd.f32 %v1681_v7, %v1354_v39 }
 0x5fe   :  { %v1368_v43 = vadd.f32 %v1681_v7, %v1353_v42 }
 0x600   :  { %2196 = vmatprep.mubr.f32.mxu1 %v1368_v43 }
 0x601   :  { %2197 = vmatmul.mubr.f32.gmra.mrb[46].mxu1 %v1369_v44 }
 0x6c8   :  { %v2189_v48 = vpop.f32.mrb[40].mxu1 }
 0x6c9   :  { %v1465_v49 = vadd.f32 %v2189_v48, %v1682_v47  ;;  %v1459_v0 = vpop.f32.mrb[41].mxu1 }
 0x6ca   :  { %v1460_v50 = vadd.f32 %v1682_v47, %v1459_v0 }
 0x6cb   :  { %v1499_v51 = vmax.f32 %v1465_v49, 0.0 }
 0x6cc   :  { %v1498_v12 = vmax.f32 %v1460_v50, 0.0  ;;  %v2192_v17 = vpop.f32.mrb[42].mxu1 }
 0x6cd   :  { %v1475_v52 = vadd.f32 %v2192_v17, %v1682_v47  ;;  %v1469_v53 = vpop.f32.mrb[43].mxu1 }
 0x6ce   :  { %v1470_v10 = vadd.f32 %v1682_v47, %v1469_v53  ;;  %2231 = vmatprep.mubr.f32.mxu0 %v1498_v12 }
 0x6cf   :  { %2232 = vmatmul.mubr.f32.vlgmr.msra.gmra.mrb[32].mxu0 %v1499_v51  ;;  %v1501_v55 = vmax.f32 %v1475_v52, 0.0 }
 0x6d0   :  { %v1500_v24 = vmax.f32 %v1470_v10, 0.0  ;;  %v2195_v54 = vpop.f32.mrb[44].mxu1 }
 0x6d1   :  { %v1485_v56 = vadd.f32 %v2195_v54, %v1682_v47  ;;  %v1479_v22 = vpop.f32.mrb[45].mxu1 }
 0x6d2   :  { %v1480_v57 = vadd.f32 %v1682_v47, %v1479_v22  ;;  %2234 = vmatprep.mubr.f32.mxu0 %v1500_v24 }
 0x6d3   :  { %2235 = vmatmul.mubr.f32.gmra.mrb[34].mxu0 %v1501_v55  ;;  %v1503_v37 = vmax.f32 %v1485_v56, 0.0 }
 0x6d4   :  { %v1502_v58 = vmax.f32 %v1480_v57, 0.0  ;;  %v2198_v28 = vpop.f32.mrb[46].mxu1 }
 0x6d5   :  { %v1495_v59 = vadd.f32 %v2198_v28, %v1682_v47  ;;  %v1489_v60 = vpop.f32.mrb[47].mxu1 }
 0x6d6   :  { %v1490_v34 = vadd.f32 %v1682_v47, %v1489_v60  ;;  %2237 = vmatprep.mubr.f32.mxu0 %v1502_v58 }
 0x6d7   :  { %2238 = vmatmul.mubr.f32.gmra.mrb[36].mxu0 %v1503_v37  ;;  %v1505_v62 = vmax.f32 %v1495_v59, 0.0 }
 0x6d8   :  { %v1504_v61 = vmax.f32 %v1490_v34, 0.0 }
 0x6da   :  { %2240 = vmatprep.mubr.f32.mxu0 %v1504_v61 }
 0x6db   :  { %2241 = vmatmul.mubr.f32.gmra.mrb[38].mxu0 %v1505_v62 }
 0x7a2   :  { %v2233_v1 = vpop.f32.mrb[32].mxu0 }
 0x7a3   :  { %v1601_v3 = vadd.f32 %v2233_v1, %v1683_v63  ;;  %v1595_v4 = vpop.f32.mrb[33].mxu0 }
 0x7a4   :  { %v1596_v5 = vadd.f32 %v1683_v63, %v1595_v4 }
 0x7a5   :  { %1635 = vst [vmem:[#allocation31 + $0x8] sm:$0xff] %v1601_v3 }
 0x7a6   :  { %1634 = vst [vmem:[#allocation31] sm:$0xff] %v1596_v5  ;;  %v2236_v6 = vpop.f32.mrb[34].mxu0 }
 0x7a7   :  { %v1611_v7 = vadd.f32 %v2236_v6, %v1683_v63  ;;  %v1605_v8 = vpop.f32.mrb[35].mxu0 }
 0x7a8   :  { %v1606_v9 = vadd.f32 %v1683_v63, %v1605_v8 }
 0x7a9   :  { %1637 = vst [vmem:[#allocation31 + $0x18] sm:$0xff] %v1611_v7 }
 0x7aa   :  { %1636 = vst [vmem:[#allocation31 + $0x10] sm:$0xff] %v1606_v9  ;;  %v2239_v11 = vpop.f32.mrb[36].mxu0 }
 0x7ab   :  { %v1621_v13 = vadd.f32 %v2239_v11, %v1683_v63  ;;  %v1615_v14 = vpop.f32.mrb[37].mxu0 }
 0x7ac   :  { %v1616_v15 = vadd.f32 %v1683_v63, %v1615_v14 }
 0x7ad   :  { %1639 = vst [vmem:[#allocation31 + $0x28] sm:$0xff] %v1621_v13 }
 0x7ae   :  { %1638 = vst [vmem:[#allocation31 + $0x20] sm:$0xff] %v1616_v15  ;;  %v2242_v16 = vpop.f32.mrb[38].mxu0 }
 0x7af   :  { %v1631_v18 = vadd.f32 %v2242_v16, %v1683_v63  ;;  %v1625_v19 = vpop.f32.mrb[39].mxu0 }
 0x7b0   :  { %v1626_v20 = vadd.f32 %v1683_v63, %v1625_v19 }
 0x7b1   :  { %1641 = vst [vmem:[#allocation31 + $0x38] sm:$0xff] %v1631_v18 }
 0x7b2   :  { %1640 = vst [vmem:[#allocation31 + $0x30] sm:$0xff] %v1626_v20 }
 0x7b3   :  { %2903 = shalt.err (!%p2900_p8)
}
 0x7b4   :  { %s3457_s18 = sld [smem:[#allocation46_spill]] }
 0x7ba   :  { %s2904_s9 = scalar_lea.hbm %s3457_s18, 1024 }
 0x7bb   :  { %p2905_p9 = scmp.ne.s32.totalorder %s3457_s18, %s2904_s9  ;;  %p2908_p10 = scmp.lt.u32.totalorder %s2904_s9, %s3457_s18 }
 0x7bd   :  { %p2910_p11 = pnand %p2908_p10, %p2905_p9 }
 0x7bf   :  { %2913 = shalt.err (!%p2910_p11)
}
 0x7c0   :  { %1653 = dma.vmem_to_hbm [thread:$0]  %s1648_s0, 1024, %s3457_s18, [#allocation4], %s2938_s25, %s2938_s25, %s2939_s26  }
 0x7c1   :  { %2934 = dma.done.wait [#allocation4], 1024  }
 0x7c2   :  { %2935 = vsyncadd [#allocation4], 4294966272 }
 0x7c3   :  { %1657 = vsyncpa [#allocation3], 1 }
 0x7c4   :  { %1658 = vsyncpa [#allocation6], 1 }
 0x7c5   :  { %1659 = vsyncpa [#allocation9], 1 }
 0x7c6   :  { %1660 = vsyncpa [#allocation12], 1 }
 0x7c7   :  { %1661 = vsyncpa [#allocation15], 1 }
 0x7c8   :  { %1662 = vsyncpa [#allocation18], 1 }
 0x7c9   :  { %1663 = vsyncpa [#allocation21], 1 }
 0x7ca   :  { %1664 = vsyncpa [#allocation24], 1 }
 0x7cb   :  { %1665 = vsyncpa [#allocation27], 1 }
 0x7cc   :  { %1666 = vsyncpa [#allocation30], 1 }
 0x7cd   :  { %1667 = vsyncpa [#allocation4], 1 }

</bundles_post_ra>
